<compile_context>
chip_gen: v7x
topology: tpu7x:2x2x1
jax: 0.10.0
libtpu: 0.0.40
codegen_flags: <defaults>
</compile_context>

<pallas_src>
import functools

import numpy as np
import jax
import jax.numpy as jnp
from jax.experimental import pallas as pl
from jax.experimental.pallas import tpu as pltpu

# ----------------------------- tiny T5 config -------------------------------
VOCAB = 64
D_MODEL = 32
N_HEADS = 4
D_KV = 8                    # d_model // n_heads
D_FF = 64
N_LAYERS = 2
NUM_LABELS = 3              # classifier head (unused in forward, like the module)
REL_BUCKETS = 32
REL_MAX_DIST = 128
EPS = 1e-6
NEG = -1e9
INNER = N_HEADS * D_KV      # 32


# ---------------- static relative-position buckets (trace-time, numpy) ------
def _rel_bucket_np(rel_pos, bidirectional):
    rel_pos = np.asarray(rel_pos, dtype=np.int64)
    nb = REL_BUCKETS
    ret = np.zeros_like(rel_pos)
    if bidirectional:
        nb //= 2
        ret = ret + (rel_pos > 0).astype(np.int64) * nb
        n = np.abs(rel_pos)
    else:
        n = -np.minimum(rel_pos, 0)
    max_exact = nb // 2
    is_small = n < max_exact
    n_clamped = np.maximum(n, 1)  # clamp before log (fixes int-cast-of-log(0) concern)
    val_large = max_exact + (
        np.log(n_clamped / max_exact) / np.log(REL_MAX_DIST / max_exact)
        * (nb - max_exact)
    ).astype(np.int64)
    val_large = np.minimum(val_large, nb - 1)
    return (ret + np.where(is_small, n, val_large)).astype(np.int32)


# ------------------------------ fused forward --------------------------------
def t5_forward(params, input_ids, attention_mask=None):
    """Mirrors base_model(input_ids, decoder_input_ids=input_ids, attention_mask).
    Returns (decoder_last_hidden_state, encoder_last_hidden_state)."""
    B, S = input_ids.shape
    D = D_MODEL

    if attention_mask is None:
        attention_mask = jnp.ones((B, S), jnp.float32)
    mask = attention_mask.astype(jnp.float32)
    ids2d = input_ids.reshape(B * S, 1).astype(jnp.int32)

    # ---- layer-invariant relative-position bias (gathered once, XLA glue) ----
    ctx_pos = np.arange(S)[:, None]
    mem_pos = np.arange(S)[None, :]
    enc_bucket = _rel_bucket_np(mem_pos - ctx_pos, bidirectional=True)    # (S,S) static
    dec_bucket = _rel_bucket_np(mem_pos - ctx_pos, bidirectional=False)
    enc_pos = jnp.transpose(params["enc_rel"][enc_bucket], (2, 0, 1))     # (H,S,S)
    dec_pos = jnp.transpose(params["dec_rel"][dec_bucket], (2, 0, 1))     # (H,S,S)

    # ---- stack per-layer weights on a leading L axis; fuse QKV on lanes ------
    def qkv_cat(a):
        return jnp.concatenate([a["wq"], a["wk"], a["wv"]], axis=1)       # (D, 3*INNER)

    def kv_cat(a):
        return jnp.concatenate([a["wk"], a["wv"]], axis=1)                # (D, 2*INNER)

    EL, DL = params["enc_layers"], params["dec_layers"]
    e_ln1 = jnp.stack([lp["ln1"] for lp in EL])                           # (L,1,D)
    e_wqkv = jnp.stack([qkv_cat(lp["self_attn"]) for lp in EL])           # (L,D,96)
    e_wo = jnp.stack([lp["self_attn"]["wo"] for lp in EL])                # (L,32,D)
    e_ln2 = jnp.stack([lp["ln2"] for lp in EL])
    e_wi = jnp.stack([lp["wi"] for lp in EL])                             # (L,D,FF)
    e_wff = jnp.stack([lp["wo"] for lp in EL])                            # (L,FF,D)

    d_ln1 = jnp.stack([lp["ln1"] for lp in DL])
    d_sqkv = jnp.stack([qkv_cat(lp["self_attn"]) for lp in DL])
    d_swo = jnp.stack([lp["self_attn"]["wo"] for lp in DL])
    d_ln2 = jnp.stack([lp["ln2"] for lp in DL])
    d_cwq = jnp.stack([lp["cross_attn"]["wq"] for lp in DL])              # (L,D,32)
    d_cwkv = jnp.stack([kv_cat(lp["cross_attn"]) for lp in DL])           # (L,D,64)
    d_cwo = jnp.stack([lp["cross_attn"]["wo"] for lp in DL])
    d_ln3 = jnp.stack([lp["ln3"] for lp in DL])
    d_wi = jnp.stack([lp["wi"] for lp in DL])
    d_wff = jnp.stack([lp["wo"] for lp in DL])

    # --------------------------- the fused kernel -----------------------------
    def fused_kernel(ids_ref, mask_ref, emb_ref, enc_pos_ref, dec_pos_ref,
                     e_ln1_ref, e_wqkv_ref, e_wo_ref, e_ln2_ref, e_wi_ref, e_wff_ref,
                     e_fln_ref,
                     d_ln1_ref, d_sqkv_ref, d_swo_ref, d_ln2_ref,
                     d_cwq_ref, d_cwkv_ref, d_cwo_ref, d_ln3_ref, d_wi_ref, d_wff_ref,
                     d_fln_ref,
                     dec_out_ref, enc_out_ref):

        def mm(a, b):
            return jnp.dot(a, b, preferred_element_type=jnp.float32)

        def rms(x, w):  # T5 LayerNorm: RMS only, no mean subtraction, no bias
            var = jnp.mean(x * x, axis=-1, keepdims=True)
            return w * (x * jax.lax.rsqrt(var + EPS))

        # additive masks — computed once, reused by every layer
        ext = (1.0 - mask_ref[...]) * NEG                                  # (B, S)
        ri = jax.lax.broadcasted_iota(jnp.int32, (S, S), 0)
        ci = jax.lax.broadcasted_iota(jnp.int32, (S, S), 1)
        causal_neg = jnp.where(ci <= ri, 0.0, NEG).astype(jnp.float32)     # (S, S)

        def enc_bias(b, h):
            return enc_pos_ref[h] + ext[b:b + 1, :]

        def dec_self_bias(b, h):
            return dec_pos_ref[h] + causal_neg

        def cross_bias(b, h):
            return ext[b:b + 1, :]

        def mha(q2d, k2d, v2d, wo, bias_fn):
            """q2d/k2d/v2d: (B*S, INNER) slabs with heads packed along lanes.
            Returns attention output already projected by wo: (B*S, D)."""
            outs = []
            for b in range(B):
                rows = slice(b * S, (b + 1) * S)
                acc = jnp.zeros((S, D_MODEL), jnp.float32)
                for h in range(N_HEADS):
                    cols = slice(h * D_KV, (h + 1) * D_KV)
                    qh = q2d[rows, cols]                                   # (S, Dk)
                    kh = k2d[rows, cols]
                    vh = v2d[rows, cols]
                    # T5 attention: no 1/sqrt(d_k) scaling; q·k^T via transposed
                    # contraction (no explicit .T materialization).
                    s = jax.lax.dot_general(
                        qh, kh, (((1,), (1,)), ((), ())),
                        preferred_element_type=jnp.float32) + bias_fn(b, h)
                    m = jnp.max(s, axis=-1, keepdims=True)
                    p = jnp.exp(s - m)
                    p = p * pl.reciprocal(jnp.sum(p, axis=-1, keepdims=True),
                                          approx=True)
                    ctx = mm(p, vh)                                        # (S, Dk)
                    # fold the output projection per head -> no head concat needed
                    acc = acc + mm(ctx, wo[cols, :])                       # (S, D)
                outs.append(acc)
            return jnp.concatenate(outs, axis=0)                           # (B*S, D)

        # ---------------- shared embedding (one-hot gather, on-chip) ----------
        ids = ids_ref[...]                                                 # (B*S, 1)
        onehot = (jax.lax.broadcasted_iota(jnp.int32, (B * S, VOCAB), 1)
                  == ids).astype(jnp.float32)                              # (B*S, V)
        h0 = mm(onehot, emb_ref[...])                                      # (B*S, D)

        # ---------------- encoder ---------------------------------------------
        h = h0
        for l in range(N_LAYERS):
            x = rms(h, e_ln1_ref[l])
            qkv = mm(x, e_wqkv_ref[l])                                     # (B*S, 96)
            h = h + mha(qkv[:, 0:INNER], qkv[:, INNER:2 * INNER],
                        qkv[:, 2 * INNER:3 * INNER], e_wo_ref[l], enc_bias)
            x = rms(h, e_ln2_ref[l])
            h = h + mm(jnp.maximum(mm(x, e_wi_ref[l]), 0.0), e_wff_ref[l])
        enc = rms(h, e_fln_ref[...])
        enc_out_ref[...] = enc

        # ---------------- decoder (decoder_input_ids = input_ids) -------------
        h = h0
        for l in range(N_LAYERS):
            x = rms(h, d_ln1_ref[l])
            qkv = mm(x, d_sqkv_ref[l])
            h = h + mha(qkv[:, 0:INNER], qkv[:, INNER:2 * INNER],
                        qkv[:, 2 * INNER:3 * INNER], d_swo_ref[l], dec_self_bias)
            x = rms(h, d_ln2_ref[l])
            q = mm(x, d_cwq_ref[l])                                        # (B*S, 32)
            kv = mm(enc, d_cwkv_ref[l])                                    # (B*S, 64)
            h = h + mha(q, kv[:, 0:INNER], kv[:, INNER:2 * INNER],
                        d_cwo_ref[l], cross_bias)
            x = rms(h, d_ln3_ref[l])
            h = h + mm(jnp.maximum(mm(x, d_wi_ref[l]), 0.0), d_wff_ref[l])
        dec_out_ref[...] = rms(h, d_fln_ref[...])

    vmem_spec = pl.BlockSpec(memory_space=pltpu.MemorySpace.VMEM)
    dec2d, enc2d = pl.pallas_call(
        fused_kernel,
        out_shape=(jax.ShapeDtypeStruct((B * S, D), jnp.float32),
                   jax.ShapeDtypeStruct((B * S, D), jnp.float32)),
        in_specs=[vmem_spec] * 23,
        out_specs=(vmem_spec, vmem_spec),
    )(ids2d, mask, params["shared"], enc_pos, dec_pos,
      e_ln1, e_wqkv, e_wo, e_ln2, e_wi, e_wff, params["enc_final_ln"],
      d_ln1, d_sqkv, d_swo, d_ln2, d_cwq, d_cwkv, d_cwo, d_ln3, d_wi, d_wff,
      params["dec_final_ln"])

    # outputs[0] == decoder last_hidden_state (classifier NOT applied, like torch).
    return dec2d.reshape(B, S, D), enc2d.reshape(B, S, D)


# ------------------------------ parameter init -------------------------------
def init_params(key):
    keys = iter(jax.random.split(key, 64))

    def nrm(shape, scale=0.05):
        return scale * jax.random.normal(next(keys), shape, jnp.float32)

    def attn():
        return {"wq": nrm((D_MODEL, INNER)), "wk": nrm((D_MODEL, INNER)),
                "wv": nrm((D_MODEL, INNER)), "wo": nrm((INNER, D_MODEL))}

    ones_ln = lambda: jnp.ones((1, D_MODEL), jnp.float32)

    enc_layers = [{"self_attn": attn(), "ln1": ones_ln(), "ln2": ones_ln(),
                   "wi": nrm((D_MODEL, D_FF)), "wo": nrm((D_FF, D_MODEL))}
                  for _ in range(N_LAYERS)]
    dec_layers = [{"self_attn": attn(), "cross_attn": attn(),
                   "ln1": ones_ln(), "ln2": ones_ln(), "ln3": ones_ln(),
                   "wi": nrm((D_MODEL, D_FF)), "wo": nrm((D_FF, D_MODEL))}
                  for _ in range(N_LAYERS)]

    return {
        "shared": nrm((VOCAB, D_MODEL), scale=1.0),
        "enc_rel": nrm((REL_BUCKETS, N_HEADS)),
        "dec_rel": nrm((REL_BUCKETS, N_HEADS)),
        "enc_final_ln": ones_ln(),
        "dec_final_ln": ones_ln(),
        "enc_layers": enc_layers,
        "dec_layers": dec_layers,
        # classifier head: defined (as in __init__) but never used in forward
        "classifier_w": nrm((D_MODEL, NUM_LABELS)),
        "classifier_b": jnp.zeros((NUM_LABELS,), jnp.float32),
    }


# ---------------------------------- main -------------------------------------
if __name__ == "__main__":
    root = jax.random.PRNGKey(0)
    pkey, ikey = jax.random.split(root)
    params = init_params(pkey)

    B, S = 2, 8
    input_ids = jax.random.randint(ikey, (B, S), 0, VOCAB, dtype=jnp.int32)
    attention_mask = jnp.array([[1, 1, 1, 1, 1, 1, 1, 1],
                                [1, 1, 1, 1, 1, 1, 0, 0]], jnp.float32)

    fwd = jax.jit(functools.partial(t5_forward, params))
    dec_out, enc_out = fwd(input_ids, attention_mask)
    jax.block_until_ready((dec_out, enc_out))

    assert dec_out.shape == (B, S, D_MODEL)
    assert enc_out.shape == (B, S, D_MODEL)
    assert bool(jnp.all(jnp.isfinite(dec_out)))
    assert bool(jnp.all(jnp.isfinite(enc_out)))
    # (the torch forward prints outputs[0].size(), i.e. (B, S, D_MODEL), here)
    print("KERNEL_OK")
</pallas_src>

<mosaic_0001>
module attributes {stable_mosaic.version = 11 : i64} {
  func.func @fused_kernel(%arg0: memref<16x1xi32, #tpu.memory_space<vmem>>, %arg1: memref<2x8xf32, #tpu.memory_space<vmem>>, %arg2: memref<64x32xf32, #tpu.memory_space<vmem>>, %arg3: memref<4x8x8xf32, #tpu.memory_space<vmem>>, %arg4: memref<4x8x8xf32, #tpu.memory_space<vmem>>, %arg5: memref<2x1x32xf32, #tpu.memory_space<vmem>>, %arg6: memref<2x32x96xf32, #tpu.memory_space<vmem>>, %arg7: memref<2x32x32xf32, #tpu.memory_space<vmem>>, %arg8: memref<2x1x32xf32, #tpu.memory_space<vmem>>, %arg9: memref<2x32x64xf32, #tpu.memory_space<vmem>>, %arg10: memref<2x64x32xf32, #tpu.memory_space<vmem>>, %arg11: memref<1x32xf32, #tpu.memory_space<vmem>>, %arg12: memref<2x1x32xf32, #tpu.memory_space<vmem>>, %arg13: memref<2x32x96xf32, #tpu.memory_space<vmem>>, %arg14: memref<2x32x32xf32, #tpu.memory_space<vmem>>, %arg15: memref<2x1x32xf32, #tpu.memory_space<vmem>>, %arg16: memref<2x32x32xf32, #tpu.memory_space<vmem>>, %arg17: memref<2x32x64xf32, #tpu.memory_space<vmem>>, %arg18: memref<2x32x32xf32, #tpu.memory_space<vmem>>, %arg19: memref<2x1x32xf32, #tpu.memory_space<vmem>>, %arg20: memref<2x32x64xf32, #tpu.memory_space<vmem>>, %arg21: memref<2x64x32xf32, #tpu.memory_space<vmem>>, %arg22: memref<1x32xf32, #tpu.memory_space<vmem>>, %arg23: memref<16x32xf32, #tpu.memory_space<vmem>>, %arg24: memref<16x32xf32, #tpu.memory_space<vmem>>) attributes {dimension_semantics = [], scalar_prefetch = 0 : i64, scratch_operands = 0 : i64, tpu.core_type = #tpu.core_type<tc>} {
    %c0 = arith.constant 0 : index
    %c0_0 = arith.constant 0 : index
    %0 = vector.load %arg1[%c0, %c0_0] : memref<2x8xf32, #tpu.memory_space<vmem>>, vector<2x8xf32>
    %cst = arith.constant 1.000000e+00 : f32
    %1 = vector.broadcast %cst : f32 to vector<2x8xf32>
    %2 = arith.subf %1, %0 : vector<2x8xf32>
    %cst_1 = arith.constant -1.000000e+09 : f32
    %3 = vector.broadcast %cst_1 : f32 to vector<2x8xf32>
    %4 = arith.mulf %2, %3 : vector<2x8xf32>
    %5 = tpu.iota {dimensions = array<i32: 0>} : vector<8x8xi32>
    %6 = tpu.iota {dimensions = array<i32: 1>} : vector<8x8xi32>
    %7 = arith.cmpi sle, %6, %5 : vector<8x8xi32>
    %cst_2 = arith.constant 0.000000e+00 : f32
    %cst_3 = arith.constant -1.000000e+09 : f32
    %8 = vector.broadcast %cst_2 : f32 to vector<8x8xf32>
    %9 = vector.broadcast %cst_3 : f32 to vector<8x8xf32>
    %10 = arith.select %7, %8, %9 : vector<8x8xi1>, vector<8x8xf32>
    %c0_4 = arith.constant 0 : index
    %c0_5 = arith.constant 0 : index
    %11 = vector.load %arg0[%c0_4, %c0_5] : memref<16x1xi32, #tpu.memory_space<vmem>>, vector<16x1xi32>
    %12 = tpu.iota {dimensions = array<i32: 1>} : vector<16x64xi32>
    %13 = vector.broadcast %11 : vector<16x1xi32> to vector<16x64xi32>
    %14 = arith.cmpi eq, %12, %13 : vector<16x64xi32>
    %15 = arith.extui %14 : vector<16x64xi1> to vector<16x64xi32>
    %16 = arith.sitofp %15 : vector<16x64xi32> to vector<16x64xf32>
    %c0_6 = arith.constant 0 : index
    %c0_7 = arith.constant 0 : index
    %17 = vector.load %arg2[%c0_6, %c0_7] : memref<64x32xf32, #tpu.memory_space<vmem>>, vector<64x32xf32>
    %cst_8 = arith.constant dense<0.000000e+00> : vector<16x32xf32>
    %18 = tpu.matmul %16, %17, %cst_8 {dimension_numbers = #tpu.dot_dimension_numbers<[1], [0], [0], [1], [0, 0, 1, 1], [], []>} : vector<16x64xf32>, vector<64x32xf32>, vector<16x32xf32> -> vector<16x32xf32>
    %c0_9 = arith.constant 0 : index
    %c0_10 = arith.constant 0 : index
    %c0_11 = arith.constant 0 : index
    %19 = vector.load %arg5[%c0_9, %c0_10, %c0_11] : memref<2x1x32xf32, #tpu.memory_space<vmem>>, vector<1x1x32xf32>
    %20 = vector.shape_cast %19 : vector<1x1x32xf32> to vector<1x32xf32>
    %21 = arith.mulf %18, %18 : vector<16x32xf32>
    %cst_12 = arith.constant dense<0.000000e+00> : vector<16xf32>
    %22 = vector.multi_reduction <add>, %21, %cst_12 [1] : vector<16x32xf32> to vector<16xf32>
    %23 = vector.shape_cast %22 : vector<16xf32> to vector<16x1xf32>
    %cst_13 = arith.constant 3.200000e+01 : f32
    %24 = vector.broadcast %cst_13 : f32 to vector<16x1xf32>
    %25 = arith.divf %23, %24 : vector<16x1xf32>
    %cst_14 = arith.constant 9.99999997E-7 : f32
    %26 = vector.broadcast %cst_14 : f32 to vector<16x1xf32>
    %27 = arith.addf %25, %26 : vector<16x1xf32>
    %28 = math.rsqrt %27 : vector<16x1xf32>
    %29 = vector.broadcast %28 : vector<16x1xf32> to vector<16x32xf32>
    %30 = arith.mulf %18, %29 : vector<16x32xf32>
    %31 = vector.broadcast %20 : vector<1x32xf32> to vector<16x32xf32>
    %32 = arith.mulf %31, %30 : vector<16x32xf32>
    %c0_15 = arith.constant 0 : index
    %c0_16 = arith.constant 0 : index
    %c0_17 = arith.constant 0 : index
    %33 = vector.load %arg6[%c0_15, %c0_16, %c0_17] : memref<2x32x96xf32, #tpu.memory_space<vmem>>, vector<1x32x96xf32>
    %34 = vector.shape_cast %33 : vector<1x32x96xf32> to vector<32x96xf32>
    %cst_18 = arith.constant dense<0.000000e+00> : vector<16x96xf32>
    %35 = tpu.matmul %32, %34, %cst_18 {dimension_numbers = #tpu.dot_dimension_numbers<[1], [0], [0], [1], [0, 0, 1, 1], [], []>} : vector<16x32xf32>, vector<32x96xf32>, vector<16x96xf32> -> vector<16x96xf32>
    %36 = vector.extract_strided_slice %35 {offsets = [0, 0], sizes = [16, 32], strides = [1, 1]} : vector<16x96xf32> to vector<16x32xf32>
    %37 = vector.extract_strided_slice %35 {offsets = [0, 32], sizes = [16, 32], strides = [1, 1]} : vector<16x96xf32> to vector<16x32xf32>
    %38 = vector.extract_strided_slice %35 {offsets = [0, 64], sizes = [16, 32], strides = [1, 1]} : vector<16x96xf32> to vector<16x32xf32>
    %c0_19 = arith.constant 0 : index
    %c0_20 = arith.constant 0 : index
    %c0_21 = arith.constant 0 : index
    %39 = vector.load %arg7[%c0_19, %c0_20, %c0_21] : memref<2x32x32xf32, #tpu.memory_space<vmem>>, vector<1x32x32xf32>
    %40 = vector.shape_cast %39 : vector<1x32x32xf32> to vector<32x32xf32>
    %cst_22 = arith.constant 0.000000e+00 : f32
    %41 = vector.broadcast %cst_22 : f32 to vector<8x32xf32>
    %42 = vector.extract_strided_slice %36 {offsets = [0, 0], sizes = [8, 8], strides = [1, 1]} : vector<16x32xf32> to vector<8x8xf32>
    %43 = vector.extract_strided_slice %37 {offsets = [0, 0], sizes = [8, 8], strides = [1, 1]} : vector<16x32xf32> to vector<8x8xf32>
    %44 = vector.extract_strided_slice %38 {offsets = [0, 0], sizes = [8, 8], strides = [1, 1]} : vector<16x32xf32> to vector<8x8xf32>
    %cst_23 = arith.constant dense<0.000000e+00> : vector<8x8xf32>
    %45 = tpu.matmul %42, %43, %cst_23 {dimension_numbers = #tpu.dot_dimension_numbers<[1], [1], [0], [0], [0, 0, 1, 0], [], []>} : vector<8x8xf32>, vector<8x8xf32>, vector<8x8xf32> -> vector<8x8xf32>
    %c0_24 = arith.constant 0 : index
    %c0_25 = arith.constant 0 : index
    %c0_26 = arith.constant 0 : index
    %46 = vector.load %arg3[%c0_24, %c0_25, %c0_26] : memref<4x8x8xf32, #tpu.memory_space<vmem>>, vector<1x8x8xf32>
    %47 = vector.shape_cast %46 : vector<1x8x8xf32> to vector<8x8xf32>
    %48 = vector.extract_strided_slice %4 {offsets = [0, 0], sizes = [1, 8], strides = [1, 1]} : vector<2x8xf32> to vector<1x8xf32>
    %49 = vector.broadcast %48 : vector<1x8xf32> to vector<8x8xf32>
    %50 = arith.addf %47, %49 : vector<8x8xf32>
    %51 = arith.addf %45, %50 : vector<8x8xf32>
    %cst_27 = arith.constant dense<0xFF800000> : vector<8xf32>
    %52 = vector.multi_reduction <maximumf>, %51, %cst_27 [1] : vector<8x8xf32> to vector<8xf32>
    %53 = vector.shape_cast %52 : vector<8xf32> to vector<8x1xf32>
    %54 = vector.broadcast %53 : vector<8x1xf32> to vector<8x8xf32>
    %55 = arith.subf %51, %54 : vector<8x8xf32>
    %56 = math.exp %55 : vector<8x8xf32>
    %cst_28 = arith.constant dense<0.000000e+00> : vector<8xf32>
    %57 = vector.multi_reduction <add>, %56, %cst_28 [1] : vector<8x8xf32> to vector<8xf32>
    %58 = vector.shape_cast %57 : vector<8xf32> to vector<8x1xf32>
    %59 = tpu.reciprocal %58 {approx = true} : vector<8x1xf32> -> vector<8x1xf32>
    %60 = vector.broadcast %59 : vector<8x1xf32> to vector<8x8xf32>
    %61 = arith.mulf %56, %60 : vector<8x8xf32>
    %cst_29 = arith.constant dense<0.000000e+00> : vector<8x8xf32>
    %62 = tpu.matmul %61, %44, %cst_29 {dimension_numbers = #tpu.dot_dimension_numbers<[1], [0], [0], [1], [0, 0, 1, 1], [], []>} : vector<8x8xf32>, vector<8x8xf32>, vector<8x8xf32> -> vector<8x8xf32>
    %63 = vector.extract_strided_slice %40 {offsets = [0, 0], sizes = [8, 32], strides = [1, 1]} : vector<32x32xf32> to vector<8x32xf32>
    %cst_30 = arith.constant dense<0.000000e+00> : vector<8x32xf32>
    %64 = tpu.matmul %62, %63, %cst_30 {dimension_numbers = #tpu.dot_dimension_numbers<[1], [0], [0], [1], [0, 0, 1, 1], [], []>} : vector<8x8xf32>, vector<8x32xf32>, vector<8x32xf32> -> vector<8x32xf32>
    %65 = arith.addf %41, %64 : vector<8x32xf32>
    %66 = vector.extract_strided_slice %36 {offsets = [0, 8], sizes = [8, 8], strides = [1, 1]} : vector<16x32xf32> to vector<8x8xf32>
    %67 = vector.extract_strided_slice %37 {offsets = [0, 8], sizes = [8, 8], strides = [1, 1]} : vector<16x32xf32> to vector<8x8xf32>
    %68 = vector.extract_strided_slice %38 {offsets = [0, 8], sizes = [8, 8], strides = [1, 1]} : vector<16x32xf32> to vector<8x8xf32>
    %cst_31 = arith.constant dense<0.000000e+00> : vector<8x8xf32>
    %69 = tpu.matmul %66, %67, %cst_31 {dimension_numbers = #tpu.dot_dimension_numbers<[1], [1], [0], [0], [0, 0, 1, 0], [], []>} : vector<8x8xf32>, vector<8x8xf32>, vector<8x8xf32> -> vector<8x8xf32>
    %c1 = arith.constant 1 : index
    %c0_32 = arith.constant 0 : index
    %c0_33 = arith.constant 0 : index
    %70 = vector.load %arg3[%c1, %c0_32, %c0_33] : memref<4x8x8xf32, #tpu.memory_space<vmem>>, vector<1x8x8xf32>
    %71 = vector.shape_cast %70 : vector<1x8x8xf32> to vector<8x8xf32>
    %72 = vector.extract_strided_slice %4 {offsets = [0, 0], sizes = [1, 8], strides = [1, 1]} : vector<2x8xf32> to vector<1x8xf32>
    %73 = vector.broadcast %72 : vector<1x8xf32> to vector<8x8xf32>
    %74 = arith.addf %71, %73 : vector<8x8xf32>
    %75 = arith.addf %69, %74 : vector<8x8xf32>
    %cst_34 = arith.constant dense<0xFF800000> : vector<8xf32>
    %76 = vector.multi_reduction <maximumf>, %75, %cst_34 [1] : vector<8x8xf32> to vector<8xf32>
    %77 = vector.shape_cast %76 : vector<8xf32> to vector<8x1xf32>
    %78 = vector.broadcast %77 : vector<8x1xf32> to vector<8x8xf32>
    %79 = arith.subf %75, %78 : vector<8x8xf32>
    %80 = math.exp %79 : vector<8x8xf32>
    %cst_35 = arith.constant dense<0.000000e+00> : vector<8xf32>
    %81 = vector.multi_reduction <add>, %80, %cst_35 [1] : vector<8x8xf32> to vector<8xf32>
    %82 = vector.shape_cast %81 : vector<8xf32> to vector<8x1xf32>
    %83 = tpu.reciprocal %82 {approx = true} : vector<8x1xf32> -> vector<8x1xf32>
    %84 = vector.broadcast %83 : vector<8x1xf32> to vector<8x8xf32>
    %85 = arith.mulf %80, %84 : vector<8x8xf32>
    %cst_36 = arith.constant dense<0.000000e+00> : vector<8x8xf32>
    %86 = tpu.matmul %85, %68, %cst_36 {dimension_numbers = #tpu.dot_dimension_numbers<[1], [0], [0], [1], [0, 0, 1, 1], [], []>} : vector<8x8xf32>, vector<8x8xf32>, vector<8x8xf32> -> vector<8x8xf32>
    %87 = vector.extract_strided_slice %40 {offsets = [8, 0], sizes = [8, 32], strides = [1, 1]} : vector<32x32xf32> to vector<8x32xf32>
    %cst_37 = arith.constant dense<0.000000e+00> : vector<8x32xf32>
    %88 = tpu.matmul %86, %87, %cst_37 {dimension_numbers = #tpu.dot_dimension_numbers<[1], [0], [0], [1], [0, 0, 1, 1], [], []>} : vector<8x8xf32>, vector<8x32xf32>, vector<8x32xf32> -> vector<8x32xf32>
    %89 = arith.addf %65, %88 : vector<8x32xf32>
    %90 = vector.extract_strided_slice %36 {offsets = [0, 16], sizes = [8, 8], strides = [1, 1]} : vector<16x32xf32> to vector<8x8xf32>
    %91 = vector.extract_strided_slice %37 {offsets = [0, 16], sizes = [8, 8], strides = [1, 1]} : vector<16x32xf32> to vector<8x8xf32>
    %92 = vector.extract_strided_slice %38 {offsets = [0, 16], sizes = [8, 8], strides = [1, 1]} : vector<16x32xf32> to vector<8x8xf32>
    %cst_38 = arith.constant dense<0.000000e+00> : vector<8x8xf32>
    %93 = tpu.matmul %90, %91, %cst_38 {dimension_numbers = #tpu.dot_dimension_numbers<[1], [1], [0], [0], [0, 0, 1, 0], [], []>} : vector<8x8xf32>, vector<8x8xf32>, vector<8x8xf32> -> vector<8x8xf32>
    %c2 = arith.constant 2 : index
    %c0_39 = arith.constant 0 : index
    %c0_40 = arith.constant 0 : index
    %94 = vector.load %arg3[%c2, %c0_39, %c0_40] : memref<4x8x8xf32, #tpu.memory_space<vmem>>, vector<1x8x8xf32>
    %95 = vector.shape_cast %94 : vector<1x8x8xf32> to vector<8x8xf32>
    %96 = vector.extract_strided_slice %4 {offsets = [0, 0], sizes = [1, 8], strides = [1, 1]} : vector<2x8xf32> to vector<1x8xf32>
    %97 = vector.broadcast %96 : vector<1x8xf32> to vector<8x8xf32>
    %98 = arith.addf %95, %97 : vector<8x8xf32>
    %99 = arith.addf %93, %98 : vector<8x8xf32>
    %cst_41 = arith.constant dense<0xFF800000> : vector<8xf32>
    %100 = vector.multi_reduction <maximumf>, %99, %cst_41 [1] : vector<8x8xf32> to vector<8xf32>
    %101 = vector.shape_cast %100 : vector<8xf32> to vector<8x1xf32>
    %102 = vector.broadcast %101 : vector<8x1xf32> to vector<8x8xf32>
    %103 = arith.subf %99, %102 : vector<8x8xf32>
    %104 = math.exp %103 : vector<8x8xf32>
    %cst_42 = arith.constant dense<0.000000e+00> : vector<8xf32>
    %105 = vector.multi_reduction <add>, %104, %cst_42 [1] : vector<8x8xf32> to vector<8xf32>
    %106 = vector.shape_cast %105 : vector<8xf32> to vector<8x1xf32>
    %107 = tpu.reciprocal %106 {approx = true} : vector<8x1xf32> -> vector<8x1xf32>
    %108 = vector.broadcast %107 : vector<8x1xf32> to vector<8x8xf32>
    %109 = arith.mulf %104, %108 : vector<8x8xf32>
    %cst_43 = arith.constant dense<0.000000e+00> : vector<8x8xf32>
    %110 = tpu.matmul %109, %92, %cst_43 {dimension_numbers = #tpu.dot_dimension_numbers<[1], [0], [0], [1], [0, 0, 1, 1], [], []>} : vector<8x8xf32>, vector<8x8xf32>, vector<8x8xf32> -> vector<8x8xf32>
    %111 = vector.extract_strided_slice %40 {offsets = [16, 0], sizes = [8, 32], strides = [1, 1]} : vector<32x32xf32> to vector<8x32xf32>
    %cst_44 = arith.constant dense<0.000000e+00> : vector<8x32xf32>
    %112 = tpu.matmul %110, %111, %cst_44 {dimension_numbers = #tpu.dot_dimension_numbers<[1], [0], [0], [1], [0, 0, 1, 1], [], []>} : vector<8x8xf32>, vector<8x32xf32>, vector<8x32xf32> -> vector<8x32xf32>
    %113 = arith.addf %89, %112 : vector<8x32xf32>
    %114 = vector.extract_strided_slice %36 {offsets = [0, 24], sizes = [8, 8], strides = [1, 1]} : vector<16x32xf32> to vector<8x8xf32>
    %115 = vector.extract_strided_slice %37 {offsets = [0, 24], sizes = [8, 8], strides = [1, 1]} : vector<16x32xf32> to vector<8x8xf32>
    %116 = vector.extract_strided_slice %38 {offsets = [0, 24], sizes = [8, 8], strides = [1, 1]} : vector<16x32xf32> to vector<8x8xf32>
    %cst_45 = arith.constant dense<0.000000e+00> : vector<8x8xf32>
    %117 = tpu.matmul %114, %115, %cst_45 {dimension_numbers = #tpu.dot_dimension_numbers<[1], [1], [0], [0], [0, 0, 1, 0], [], []>} : vector<8x8xf32>, vector<8x8xf32>, vector<8x8xf32> -> vector<8x8xf32>
    %c3 = arith.constant 3 : index
    %c0_46 = arith.constant 0 : index
    %c0_47 = arith.constant 0 : index
    %118 = vector.load %arg3[%c3, %c0_46, %c0_47] : memref<4x8x8xf32, #tpu.memory_space<vmem>>, vector<1x8x8xf32>
    %119 = vector.shape_cast %118 : vector<1x8x8xf32> to vector<8x8xf32>
    %120 = vector.extract_strided_slice %4 {offsets = [0, 0], sizes = [1, 8], strides = [1, 1]} : vector<2x8xf32> to vector<1x8xf32>
    %121 = vector.broadcast %120 : vector<1x8xf32> to vector<8x8xf32>
    %122 = arith.addf %119, %121 : vector<8x8xf32>
    %123 = arith.addf %117, %122 : vector<8x8xf32>
    %cst_48 = arith.constant dense<0xFF800000> : vector<8xf32>
    %124 = vector.multi_reduction <maximumf>, %123, %cst_48 [1] : vector<8x8xf32> to vector<8xf32>
    %125 = vector.shape_cast %124 : vector<8xf32> to vector<8x1xf32>
    %126 = vector.broadcast %125 : vector<8x1xf32> to vector<8x8xf32>
    %127 = arith.subf %123, %126 : vector<8x8xf32>
    %128 = math.exp %127 : vector<8x8xf32>
    %cst_49 = arith.constant dense<0.000000e+00> : vector<8xf32>
    %129 = vector.multi_reduction <add>, %128, %cst_49 [1] : vector<8x8xf32> to vector<8xf32>
    %130 = vector.shape_cast %129 : vector<8xf32> to vector<8x1xf32>
    %131 = tpu.reciprocal %130 {approx = true} : vector<8x1xf32> -> vector<8x1xf32>
    %132 = vector.broadcast %131 : vector<8x1xf32> to vector<8x8xf32>
    %133 = arith.mulf %128, %132 : vector<8x8xf32>
    %cst_50 = arith.constant dense<0.000000e+00> : vector<8x8xf32>
    %134 = tpu.matmul %133, %116, %cst_50 {dimension_numbers = #tpu.dot_dimension_numbers<[1], [0], [0], [1], [0, 0, 1, 1], [], []>} : vector<8x8xf32>, vector<8x8xf32>, vector<8x8xf32> -> vector<8x8xf32>
    %135 = vector.extract_strided_slice %40 {offsets = [24, 0], sizes = [8, 32], strides = [1, 1]} : vector<32x32xf32> to vector<8x32xf32>
    %cst_51 = arith.constant dense<0.000000e+00> : vector<8x32xf32>
    %136 = tpu.matmul %134, %135, %cst_51 {dimension_numbers = #tpu.dot_dimension_numbers<[1], [0], [0], [1], [0, 0, 1, 1], [], []>} : vector<8x8xf32>, vector<8x32xf32>, vector<8x32xf32> -> vector<8x32xf32>
    %137 = arith.addf %113, %136 : vector<8x32xf32>
    %cst_52 = arith.constant 0.000000e+00 : f32
    %138 = vector.broadcast %cst_52 : f32 to vector<8x32xf32>
    %139 = vector.extract_strided_slice %36 {offsets = [8, 0], sizes = [8, 8], strides = [1, 1]} : vector<16x32xf32> to vector<8x8xf32>
    %140 = vector.extract_strided_slice %37 {offsets = [8, 0], sizes = [8, 8], strides = [1, 1]} : vector<16x32xf32> to vector<8x8xf32>
    %141 = vector.extract_strided_slice %38 {offsets = [8, 0], sizes = [8, 8], strides = [1, 1]} : vector<16x32xf32> to vector<8x8xf32>
    %cst_53 = arith.constant dense<0.000000e+00> : vector<8x8xf32>
    %142 = tpu.matmul %139, %140, %cst_53 {dimension_numbers = #tpu.dot_dimension_numbers<[1], [1], [0], [0], [0, 0, 1, 0], [], []>} : vector<8x8xf32>, vector<8x8xf32>, vector<8x8xf32> -> vector<8x8xf32>
    %c0_54 = arith.constant 0 : index
    %c0_55 = arith.constant 0 : index
    %c0_56 = arith.constant 0 : index
    %143 = vector.load %arg3[%c0_54, %c0_55, %c0_56] : memref<4x8x8xf32, #tpu.memory_space<vmem>>, vector<1x8x8xf32>
    %144 = vector.shape_cast %143 : vector<1x8x8xf32> to vector<8x8xf32>
    %145 = vector.extract_strided_slice %4 {offsets = [1, 0], sizes = [1, 8], strides = [1, 1]} : vector<2x8xf32> to vector<1x8xf32>
    %146 = vector.broadcast %145 : vector<1x8xf32> to vector<8x8xf32>
    %147 = arith.addf %144, %146 : vector<8x8xf32>
    %148 = arith.addf %142, %147 : vector<8x8xf32>
    %cst_57 = arith.constant dense<0xFF800000> : vector<8xf32>
    %149 = vector.multi_reduction <maximumf>, %148, %cst_57 [1] : vector<8x8xf32> to vector<8xf32>
    %150 = vector.shape_cast %149 : vector<8xf32> to vector<8x1xf32>
    %151 = vector.broadcast %150 : vector<8x1xf32> to vector<8x8xf32>
    %152 = arith.subf %148, %151 : vector<8x8xf32>
    %153 = math.exp %152 : vector<8x8xf32>
    %cst_58 = arith.constant dense<0.000000e+00> : vector<8xf32>
    %154 = vector.multi_reduction <add>, %153, %cst_58 [1] : vector<8x8xf32> to vector<8xf32>
    %155 = vector.shape_cast %154 : vector<8xf32> to vector<8x1xf32>
    %156 = tpu.reciprocal %155 {approx = true} : vector<8x1xf32> -> vector<8x1xf32>
    %157 = vector.broadcast %156 : vector<8x1xf32> to vector<8x8xf32>
    %158 = arith.mulf %153, %157 : vector<8x8xf32>
    %cst_59 = arith.constant dense<0.000000e+00> : vector<8x8xf32>
    %159 = tpu.matmul %158, %141, %cst_59 {dimension_numbers = #tpu.dot_dimension_numbers<[1], [0], [0], [1], [0, 0, 1, 1], [], []>} : vector<8x8xf32>, vector<8x8xf32>, vector<8x8xf32> -> vector<8x8xf32>
    %160 = vector.extract_strided_slice %40 {offsets = [0, 0], sizes = [8, 32], strides = [1, 1]} : vector<32x32xf32> to vector<8x32xf32>
    %cst_60 = arith.constant dense<0.000000e+00> : vector<8x32xf32>
    %161 = tpu.matmul %159, %160, %cst_60 {dimension_numbers = #tpu.dot_dimension_numbers<[1], [0], [0], [1], [0, 0, 1, 1], [], []>} : vector<8x8xf32>, vector<8x32xf32>, vector<8x32xf32> -> vector<8x32xf32>
    %162 = arith.addf %138, %161 : vector<8x32xf32>
    %163 = vector.extract_strided_slice %36 {offsets = [8, 8], sizes = [8, 8], strides = [1, 1]} : vector<16x32xf32> to vector<8x8xf32>
    %164 = vector.extract_strided_slice %37 {offsets = [8, 8], sizes = [8, 8], strides = [1, 1]} : vector<16x32xf32> to vector<8x8xf32>
    %165 = vector.extract_strided_slice %38 {offsets = [8, 8], sizes = [8, 8], strides = [1, 1]} : vector<16x32xf32> to vector<8x8xf32>
    %cst_61 = arith.constant dense<0.000000e+00> : vector<8x8xf32>
    %166 = tpu.matmul %163, %164, %cst_61 {dimension_numbers = #tpu.dot_dimension_numbers<[1], [1], [0], [0], [0, 0, 1, 0], [], []>} : vector<8x8xf32>, vector<8x8xf32>, vector<8x8xf32> -> vector<8x8xf32>
    %c1_62 = arith.constant 1 : index
    %c0_63 = arith.constant 0 : index
    %c0_64 = arith.constant 0 : index
    %167 = vector.load %arg3[%c1_62, %c0_63, %c0_64] : memref<4x8x8xf32, #tpu.memory_space<vmem>>, vector<1x8x8xf32>
    %168 = vector.shape_cast %167 : vector<1x8x8xf32> to vector<8x8xf32>
    %169 = vector.extract_strided_slice %4 {offsets = [1, 0], sizes = [1, 8], strides = [1, 1]} : vector<2x8xf32> to vector<1x8xf32>
    %170 = vector.broadcast %169 : vector<1x8xf32> to vector<8x8xf32>
    %171 = arith.addf %168, %170 : vector<8x8xf32>
    %172 = arith.addf %166, %171 : vector<8x8xf32>
    %cst_65 = arith.constant dense<0xFF800000> : vector<8xf32>
    %173 = vector.multi_reduction <maximumf>, %172, %cst_65 [1] : vector<8x8xf32> to vector<8xf32>
    %174 = vector.shape_cast %173 : vector<8xf32> to vector<8x1xf32>
    %175 = vector.broadcast %174 : vector<8x1xf32> to vector<8x8xf32>
    %176 = arith.subf %172, %175 : vector<8x8xf32>
    %177 = math.exp %176 : vector<8x8xf32>
    %cst_66 = arith.constant dense<0.000000e+00> : vector<8xf32>
    %178 = vector.multi_reduction <add>, %177, %cst_66 [1] : vector<8x8xf32> to vector<8xf32>
    %179 = vector.shape_cast %178 : vector<8xf32> to vector<8x1xf32>
    %180 = tpu.reciprocal %179 {approx = true} : vector<8x1xf32> -> vector<8x1xf32>
    %181 = vector.broadcast %180 : vector<8x1xf32> to vector<8x8xf32>
    %182 = arith.mulf %177, %181 : vector<8x8xf32>
    %cst_67 = arith.constant dense<0.000000e+00> : vector<8x8xf32>
    %183 = tpu.matmul %182, %165, %cst_67 {dimension_numbers = #tpu.dot_dimension_numbers<[1], [0], [0], [1], [0, 0, 1, 1], [], []>} : vector<8x8xf32>, vector<8x8xf32>, vector<8x8xf32> -> vector<8x8xf32>
    %184 = vector.extract_strided_slice %40 {offsets = [8, 0], sizes = [8, 32], strides = [1, 1]} : vector<32x32xf32> to vector<8x32xf32>
    %cst_68 = arith.constant dense<0.000000e+00> : vector<8x32xf32>
    %185 = tpu.matmul %183, %184, %cst_68 {dimension_numbers = #tpu.dot_dimension_numbers<[1], [0], [0], [1], [0, 0, 1, 1], [], []>} : vector<8x8xf32>, vector<8x32xf32>, vector<8x32xf32> -> vector<8x32xf32>
    %186 = arith.addf %162, %185 : vector<8x32xf32>
    %187 = vector.extract_strided_slice %36 {offsets = [8, 16], sizes = [8, 8], strides = [1, 1]} : vector<16x32xf32> to vector<8x8xf32>
    %188 = vector.extract_strided_slice %37 {offsets = [8, 16], sizes = [8, 8], strides = [1, 1]} : vector<16x32xf32> to vector<8x8xf32>
    %189 = vector.extract_strided_slice %38 {offsets = [8, 16], sizes = [8, 8], strides = [1, 1]} : vector<16x32xf32> to vector<8x8xf32>
    %cst_69 = arith.constant dense<0.000000e+00> : vector<8x8xf32>
    %190 = tpu.matmul %187, %188, %cst_69 {dimension_numbers = #tpu.dot_dimension_numbers<[1], [1], [0], [0], [0, 0, 1, 0], [], []>} : vector<8x8xf32>, vector<8x8xf32>, vector<8x8xf32> -> vector<8x8xf32>
    %c2_70 = arith.constant 2 : index
    %c0_71 = arith.constant 0 : index
    %c0_72 = arith.constant 0 : index
    %191 = vector.load %arg3[%c2_70, %c0_71, %c0_72] : memref<4x8x8xf32, #tpu.memory_space<vmem>>, vector<1x8x8xf32>
    %192 = vector.shape_cast %191 : vector<1x8x8xf32> to vector<8x8xf32>
    %193 = vector.extract_strided_slice %4 {offsets = [1, 0], sizes = [1, 8], strides = [1, 1]} : vector<2x8xf32> to vector<1x8xf32>
    %194 = vector.broadcast %193 : vector<1x8xf32> to vector<8x8xf32>
    %195 = arith.addf %192, %194 : vector<8x8xf32>
    %196 = arith.addf %190, %195 : vector<8x8xf32>
    %cst_73 = arith.constant dense<0xFF800000> : vector<8xf32>
    %197 = vector.multi_reduction <maximumf>, %196, %cst_73 [1] : vector<8x8xf32> to vector<8xf32>
    %198 = vector.shape_cast %197 : vector<8xf32> to vector<8x1xf32>
    %199 = vector.broadcast %198 : vector<8x1xf32> to vector<8x8xf32>
    %200 = arith.subf %196, %199 : vector<8x8xf32>
    %201 = math.exp %200 : vector<8x8xf32>
    %cst_74 = arith.constant dense<0.000000e+00> : vector<8xf32>
    %202 = vector.multi_reduction <add>, %201, %cst_74 [1] : vector<8x8xf32> to vector<8xf32>
    %203 = vector.shape_cast %202 : vector<8xf32> to vector<8x1xf32>
    %204 = tpu.reciprocal %203 {approx = true} : vector<8x1xf32> -> vector<8x1xf32>
    %205 = vector.broadcast %204 : vector<8x1xf32> to vector<8x8xf32>
    %206 = arith.mulf %201, %205 : vector<8x8xf32>
    %cst_75 = arith.constant dense<0.000000e+00> : vector<8x8xf32>
    %207 = tpu.matmul %206, %189, %cst_75 {dimension_numbers = #tpu.dot_dimension_numbers<[1], [0], [0], [1], [0, 0, 1, 1], [], []>} : vector<8x8xf32>, vector<8x8xf32>, vector<8x8xf32> -> vector<8x8xf32>
    %208 = vector.extract_strided_slice %40 {offsets = [16, 0], sizes = [8, 32], strides = [1, 1]} : vector<32x32xf32> to vector<8x32xf32>
    %cst_76 = arith.constant dense<0.000000e+00> : vector<8x32xf32>
    %209 = tpu.matmul %207, %208, %cst_76 {dimension_numbers = #tpu.dot_dimension_numbers<[1], [0], [0], [1], [0, 0, 1, 1], [], []>} : vector<8x8xf32>, vector<8x32xf32>, vector<8x32xf32> -> vector<8x32xf32>
    %210 = arith.addf %186, %209 : vector<8x32xf32>
    %211 = vector.extract_strided_slice %36 {offsets = [8, 24], sizes = [8, 8], strides = [1, 1]} : vector<16x32xf32> to vector<8x8xf32>
    %212 = vector.extract_strided_slice %37 {offsets = [8, 24], sizes = [8, 8], strides = [1, 1]} : vector<16x32xf32> to vector<8x8xf32>
    %213 = vector.extract_strided_slice %38 {offsets = [8, 24], sizes = [8, 8], strides = [1, 1]} : vector<16x32xf32> to vector<8x8xf32>
    %cst_77 = arith.constant dense<0.000000e+00> : vector<8x8xf32>
    %214 = tpu.matmul %211, %212, %cst_77 {dimension_numbers = #tpu.dot_dimension_numbers<[1], [1], [0], [0], [0, 0, 1, 0], [], []>} : vector<8x8xf32>, vector<8x8xf32>, vector<8x8xf32> -> vector<8x8xf32>
    %c3_78 = arith.constant 3 : index
    %c0_79 = arith.constant 0 : index
    %c0_80 = arith.constant 0 : index
    %215 = vector.load %arg3[%c3_78, %c0_79, %c0_80] : memref<4x8x8xf32, #tpu.memory_space<vmem>>, vector<1x8x8xf32>
    %216 = vector.shape_cast %215 : vector<1x8x8xf32> to vector<8x8xf32>
    %217 = vector.extract_strided_slice %4 {offsets = [1, 0], sizes = [1, 8], strides = [1, 1]} : vector<2x8xf32> to vector<1x8xf32>
    %218 = vector.broadcast %217 : vector<1x8xf32> to vector<8x8xf32>
    %219 = arith.addf %216, %218 : vector<8x8xf32>
    %220 = arith.addf %214, %219 : vector<8x8xf32>
    %cst_81 = arith.constant dense<0xFF800000> : vector<8xf32>
    %221 = vector.multi_reduction <maximumf>, %220, %cst_81 [1] : vector<8x8xf32> to vector<8xf32>
    %222 = vector.shape_cast %221 : vector<8xf32> to vector<8x1xf32>
    %223 = vector.broadcast %222 : vector<8x1xf32> to vector<8x8xf32>
    %224 = arith.subf %220, %223 : vector<8x8xf32>
    %225 = math.exp %224 : vector<8x8xf32>
    %cst_82 = arith.constant dense<0.000000e+00> : vector<8xf32>
    %226 = vector.multi_reduction <add>, %225, %cst_82 [1] : vector<8x8xf32> to vector<8xf32>
    %227 = vector.shape_cast %226 : vector<8xf32> to vector<8x1xf32>
    %228 = tpu.reciprocal %227 {approx = true} : vector<8x1xf32> -> vector<8x1xf32>
    %229 = vector.broadcast %228 : vector<8x1xf32> to vector<8x8xf32>
    %230 = arith.mulf %225, %229 : vector<8x8xf32>
    %cst_83 = arith.constant dense<0.000000e+00> : vector<8x8xf32>
    %231 = tpu.matmul %230, %213, %cst_83 {dimension_numbers = #tpu.dot_dimension_numbers<[1], [0], [0], [1], [0, 0, 1, 1], [], []>} : vector<8x8xf32>, vector<8x8xf32>, vector<8x8xf32> -> vector<8x8xf32>
    %232 = vector.extract_strided_slice %40 {offsets = [24, 0], sizes = [8, 32], strides = [1, 1]} : vector<32x32xf32> to vector<8x32xf32>
    %cst_84 = arith.constant dense<0.000000e+00> : vector<8x32xf32>
    %233 = tpu.matmul %231, %232, %cst_84 {dimension_numbers = #tpu.dot_dimension_numbers<[1], [0], [0], [1], [0, 0, 1, 1], [], []>} : vector<8x8xf32>, vector<8x32xf32>, vector<8x32xf32> -> vector<8x32xf32>
    %234 = arith.addf %210, %233 : vector<8x32xf32>
    %235 = tpu.concatenate %137, %234 in 0 : vector<8x32xf32>, vector<8x32xf32> -> vector<16x32xf32>
    %236 = arith.addf %18, %235 : vector<16x32xf32>
    %c0_85 = arith.constant 0 : index
    %c0_86 = arith.constant 0 : index
    %c0_87 = arith.constant 0 : index
    %237 = vector.load %arg8[%c0_85, %c0_86, %c0_87] : memref<2x1x32xf32, #tpu.memory_space<vmem>>, vector<1x1x32xf32>
    %238 = vector.shape_cast %237 : vector<1x1x32xf32> to vector<1x32xf32>
    %239 = arith.mulf %236, %236 : vector<16x32xf32>
    %cst_88 = arith.constant dense<0.000000e+00> : vector<16xf32>
    %240 = vector.multi_reduction <add>, %239, %cst_88 [1] : vector<16x32xf32> to vector<16xf32>
    %241 = vector.shape_cast %240 : vector<16xf32> to vector<16x1xf32>
    %cst_89 = arith.constant 3.200000e+01 : f32
    %242 = vector.broadcast %cst_89 : f32 to vector<16x1xf32>
    %243 = arith.divf %241, %242 : vector<16x1xf32>
    %cst_90 = arith.constant 9.99999997E-7 : f32
    %244 = vector.broadcast %cst_90 : f32 to vector<16x1xf32>
    %245 = arith.addf %243, %244 : vector<16x1xf32>
    %246 = math.rsqrt %245 : vector<16x1xf32>
    %247 = vector.broadcast %246 : vector<16x1xf32> to vector<16x32xf32>
    %248 = arith.mulf %236, %247 : vector<16x32xf32>
    %249 = vector.broadcast %238 : vector<1x32xf32> to vector<16x32xf32>
    %250 = arith.mulf %249, %248 : vector<16x32xf32>
    %c0_91 = arith.constant 0 : index
    %c0_92 = arith.constant 0 : index
    %c0_93 = arith.constant 0 : index
    %251 = vector.load %arg9[%c0_91, %c0_92, %c0_93] : memref<2x32x64xf32, #tpu.memory_space<vmem>>, vector<1x32x64xf32>
    %252 = vector.shape_cast %251 : vector<1x32x64xf32> to vector<32x64xf32>
    %cst_94 = arith.constant dense<0.000000e+00> : vector<16x64xf32>
    %253 = tpu.matmul %250, %252, %cst_94 {dimension_numbers = #tpu.dot_dimension_numbers<[1], [0], [0], [1], [0, 0, 1, 1], [], []>} : vector<16x32xf32>, vector<32x64xf32>, vector<16x64xf32> -> vector<16x64xf32>
    %cst_95 = arith.constant 0.000000e+00 : f32
    %254 = vector.broadcast %cst_95 : f32 to vector<16x64xf32>
    %255 = arith.maximumf %253, %254 : vector<16x64xf32>
    %c0_96 = arith.constant 0 : index
    %c0_97 = arith.constant 0 : index
    %c0_98 = arith.constant 0 : index
    %256 = vector.load %arg10[%c0_96, %c0_97, %c0_98] : memref<2x64x32xf32, #tpu.memory_space<vmem>>, vector<1x64x32xf32>
    %257 = vector.shape_cast %256 : vector<1x64x32xf32> to vector<64x32xf32>
    %cst_99 = arith.constant dense<0.000000e+00> : vector<16x32xf32>
    %258 = tpu.matmul %255, %257, %cst_99 {dimension_numbers = #tpu.dot_dimension_numbers<[1], [0], [0], [1], [0, 0, 1, 1], [], []>} : vector<16x64xf32>, vector<64x32xf32>, vector<16x32xf32> -> vector<16x32xf32>
    %259 = arith.addf %236, %258 : vector<16x32xf32>
    %c1_100 = arith.constant 1 : index
    %c0_101 = arith.constant 0 : index
    %c0_102 = arith.constant 0 : index
    %260 = vector.load %arg5[%c1_100, %c0_101, %c0_102] : memref<2x1x32xf32, #tpu.memory_space<vmem>>, vector<1x1x32xf32>
    %261 = vector.shape_cast %260 : vector<1x1x32xf32> to vector<1x32xf32>
    %262 = arith.mulf %259, %259 : vector<16x32xf32>
    %cst_103 = arith.constant dense<0.000000e+00> : vector<16xf32>
    %263 = vector.multi_reduction <add>, %262, %cst_103 [1] : vector<16x32xf32> to vector<16xf32>
    %264 = vector.shape_cast %263 : vector<16xf32> to vector<16x1xf32>
    %cst_104 = arith.constant 3.200000e+01 : f32
    %265 = vector.broadcast %cst_104 : f32 to vector<16x1xf32>
    %266 = arith.divf %264, %265 : vector<16x1xf32>
    %cst_105 = arith.constant 9.99999997E-7 : f32
    %267 = vector.broadcast %cst_105 : f32 to vector<16x1xf32>
    %268 = arith.addf %266, %267 : vector<16x1xf32>
    %269 = math.rsqrt %268 : vector<16x1xf32>
    %270 = vector.broadcast %269 : vector<16x1xf32> to vector<16x32xf32>
    %271 = arith.mulf %259, %270 : vector<16x32xf32>
    %272 = vector.broadcast %261 : vector<1x32xf32> to vector<16x32xf32>
    %273 = arith.mulf %272, %271 : vector<16x32xf32>
    %c1_106 = arith.constant 1 : index
    %c0_107 = arith.constant 0 : index
    %c0_108 = arith.constant 0 : index
    %274 = vector.load %arg6[%c1_106, %c0_107, %c0_108] : memref<2x32x96xf32, #tpu.memory_space<vmem>>, vector<1x32x96xf32>
    %275 = vector.shape_cast %274 : vector<1x32x96xf32> to vector<32x96xf32>
    %cst_109 = arith.constant dense<0.000000e+00> : vector<16x96xf32>
    %276 = tpu.matmul %273, %275, %cst_109 {dimension_numbers = #tpu.dot_dimension_numbers<[1], [0], [0], [1], [0, 0, 1, 1], [], []>} : vector<16x32xf32>, vector<32x96xf32>, vector<16x96xf32> -> vector<16x96xf32>
    %277 = vector.extract_strided_slice %276 {offsets = [0, 0], sizes = [16, 32], strides = [1, 1]} : vector<16x96xf32> to vector<16x32xf32>
    %278 = vector.extract_strided_slice %276 {offsets = [0, 32], sizes = [16, 32], strides = [1, 1]} : vector<16x96xf32> to vector<16x32xf32>
    %279 = vector.extract_strided_slice %276 {offsets = [0, 64], sizes = [16, 32], strides = [1, 1]} : vector<16x96xf32> to vector<16x32xf32>
    %c1_110 = arith.constant 1 : index
    %c0_111 = arith.constant 0 : index
    %c0_112 = arith.constant 0 : index
    %280 = vector.load %arg7[%c1_110, %c0_111, %c0_112] : memref<2x32x32xf32, #tpu.memory_space<vmem>>, vector<1x32x32xf32>
    %281 = vector.shape_cast %280 : vector<1x32x32xf32> to vector<32x32xf32>
    %cst_113 = arith.constant 0.000000e+00 : f32
    %282 = vector.broadcast %cst_113 : f32 to vector<8x32xf32>
    %283 = vector.extract_strided_slice %277 {offsets = [0, 0], sizes = [8, 8], strides = [1, 1]} : vector<16x32xf32> to vector<8x8xf32>
    %284 = vector.extract_strided_slice %278 {offsets = [0, 0], sizes = [8, 8], strides = [1, 1]} : vector<16x32xf32> to vector<8x8xf32>
    %285 = vector.extract_strided_slice %279 {offsets = [0, 0], sizes = [8, 8], strides = [1, 1]} : vector<16x32xf32> to vector<8x8xf32>
    %cst_114 = arith.constant dense<0.000000e+00> : vector<8x8xf32>
    %286 = tpu.matmul %283, %284, %cst_114 {dimension_numbers = #tpu.dot_dimension_numbers<[1], [1], [0], [0], [0, 0, 1, 0], [], []>} : vector<8x8xf32>, vector<8x8xf32>, vector<8x8xf32> -> vector<8x8xf32>
    %c0_115 = arith.constant 0 : index
    %c0_116 = arith.constant 0 : index
    %c0_117 = arith.constant 0 : index
    %287 = vector.load %arg3[%c0_115, %c0_116, %c0_117] : memref<4x8x8xf32, #tpu.memory_space<vmem>>, vector<1x8x8xf32>
    %288 = vector.shape_cast %287 : vector<1x8x8xf32> to vector<8x8xf32>
    %289 = vector.extract_strided_slice %4 {offsets = [0, 0], sizes = [1, 8], strides = [1, 1]} : vector<2x8xf32> to vector<1x8xf32>
    %290 = vector.broadcast %289 : vector<1x8xf32> to vector<8x8xf32>
    %291 = arith.addf %288, %290 : vector<8x8xf32>
    %292 = arith.addf %286, %291 : vector<8x8xf32>
    %cst_118 = arith.constant dense<0xFF800000> : vector<8xf32>
    %293 = vector.multi_reduction <maximumf>, %292, %cst_118 [1] : vector<8x8xf32> to vector<8xf32>
    %294 = vector.shape_cast %293 : vector<8xf32> to vector<8x1xf32>
    %295 = vector.broadcast %294 : vector<8x1xf32> to vector<8x8xf32>
    %296 = arith.subf %292, %295 : vector<8x8xf32>
    %297 = math.exp %296 : vector<8x8xf32>
    %cst_119 = arith.constant dense<0.000000e+00> : vector<8xf32>
    %298 = vector.multi_reduction <add>, %297, %cst_119 [1] : vector<8x8xf32> to vector<8xf32>
    %299 = vector.shape_cast %298 : vector<8xf32> to vector<8x1xf32>
    %300 = tpu.reciprocal %299 {approx = true} : vector<8x1xf32> -> vector<8x1xf32>
    %301 = vector.broadcast %300 : vector<8x1xf32> to vector<8x8xf32>
    %302 = arith.mulf %297, %301 : vector<8x8xf32>
    %cst_120 = arith.constant dense<0.000000e+00> : vector<8x8xf32>
    %303 = tpu.matmul %302, %285, %cst_120 {dimension_numbers = #tpu.dot_dimension_numbers<[1], [0], [0], [1], [0, 0, 1, 1], [], []>} : vector<8x8xf32>, vector<8x8xf32>, vector<8x8xf32> -> vector<8x8xf32>
    %304 = vector.extract_strided_slice %281 {offsets = [0, 0], sizes = [8, 32], strides = [1, 1]} : vector<32x32xf32> to vector<8x32xf32>
    %cst_121 = arith.constant dense<0.000000e+00> : vector<8x32xf32>
    %305 = tpu.matmul %303, %304, %cst_121 {dimension_numbers = #tpu.dot_dimension_numbers<[1], [0], [0], [1], [0, 0, 1, 1], [], []>} : vector<8x8xf32>, vector<8x32xf32>, vector<8x32xf32> -> vector<8x32xf32>
    %306 = arith.addf %282, %305 : vector<8x32xf32>
    %307 = vector.extract_strided_slice %277 {offsets = [0, 8], sizes = [8, 8], strides = [1, 1]} : vector<16x32xf32> to vector<8x8xf32>
    %308 = vector.extract_strided_slice %278 {offsets = [0, 8], sizes = [8, 8], strides = [1, 1]} : vector<16x32xf32> to vector<8x8xf32>
    %309 = vector.extract_strided_slice %279 {offsets = [0, 8], sizes = [8, 8], strides = [1, 1]} : vector<16x32xf32> to vector<8x8xf32>
    %cst_122 = arith.constant dense<0.000000e+00> : vector<8x8xf32>
    %310 = tpu.matmul %307, %308, %cst_122 {dimension_numbers = #tpu.dot_dimension_numbers<[1], [1], [0], [0], [0, 0, 1, 0], [], []>} : vector<8x8xf32>, vector<8x8xf32>, vector<8x8xf32> -> vector<8x8xf32>
    %c1_123 = arith.constant 1 : index
    %c0_124 = arith.constant 0 : index
    %c0_125 = arith.constant 0 : index
    %311 = vector.load %arg3[%c1_123, %c0_124, %c0_125] : memref<4x8x8xf32, #tpu.memory_space<vmem>>, vector<1x8x8xf32>
    %312 = vector.shape_cast %311 : vector<1x8x8xf32> to vector<8x8xf32>
    %313 = vector.extract_strided_slice %4 {offsets = [0, 0], sizes = [1, 8], strides = [1, 1]} : vector<2x8xf32> to vector<1x8xf32>
    %314 = vector.broadcast %313 : vector<1x8xf32> to vector<8x8xf32>
    %315 = arith.addf %312, %314 : vector<8x8xf32>
    %316 = arith.addf %310, %315 : vector<8x8xf32>
    %cst_126 = arith.constant dense<0xFF800000> : vector<8xf32>
    %317 = vector.multi_reduction <maximumf>, %316, %cst_126 [1] : vector<8x8xf32> to vector<8xf32>
    %318 = vector.shape_cast %317 : vector<8xf32> to vector<8x1xf32>
    %319 = vector.broadcast %318 : vector<8x1xf32> to vector<8x8xf32>
    %320 = arith.subf %316, %319 : vector<8x8xf32>
    %321 = math.exp %320 : vector<8x8xf32>
    %cst_127 = arith.constant dense<0.000000e+00> : vector<8xf32>
    %322 = vector.multi_reduction <add>, %321, %cst_127 [1] : vector<8x8xf32> to vector<8xf32>
    %323 = vector.shape_cast %322 : vector<8xf32> to vector<8x1xf32>
    %324 = tpu.reciprocal %323 {approx = true} : vector<8x1xf32> -> vector<8x1xf32>
    %325 = vector.broadcast %324 : vector<8x1xf32> to vector<8x8xf32>
    %326 = arith.mulf %321, %325 : vector<8x8xf32>
    %cst_128 = arith.constant dense<0.000000e+00> : vector<8x8xf32>
    %327 = tpu.matmul %326, %309, %cst_128 {dimension_numbers = #tpu.dot_dimension_numbers<[1], [0], [0], [1], [0, 0, 1, 1], [], []>} : vector<8x8xf32>, vector<8x8xf32>, vector<8x8xf32> -> vector<8x8xf32>
    %328 = vector.extract_strided_slice %281 {offsets = [8, 0], sizes = [8, 32], strides = [1, 1]} : vector<32x32xf32> to vector<8x32xf32>
    %cst_129 = arith.constant dense<0.000000e+00> : vector<8x32xf32>
    %329 = tpu.matmul %327, %328, %cst_129 {dimension_numbers = #tpu.dot_dimension_numbers<[1], [0], [0], [1], [0, 0, 1, 1], [], []>} : vector<8x8xf32>, vector<8x32xf32>, vector<8x32xf32> -> vector<8x32xf32>
    %330 = arith.addf %306, %329 : vector<8x32xf32>
    %331 = vector.extract_strided_slice %277 {offsets = [0, 16], sizes = [8, 8], strides = [1, 1]} : vector<16x32xf32> to vector<8x8xf32>
    %332 = vector.extract_strided_slice %278 {offsets = [0, 16], sizes = [8, 8], strides = [1, 1]} : vector<16x32xf32> to vector<8x8xf32>
    %333 = vector.extract_strided_slice %279 {offsets = [0, 16], sizes = [8, 8], strides = [1, 1]} : vector<16x32xf32> to vector<8x8xf32>
    %cst_130 = arith.constant dense<0.000000e+00> : vector<8x8xf32>
    %334 = tpu.matmul %331, %332, %cst_130 {dimension_numbers = #tpu.dot_dimension_numbers<[1], [1], [0], [0], [0, 0, 1, 0], [], []>} : vector<8x8xf32>, vector<8x8xf32>, vector<8x8xf32> -> vector<8x8xf32>
    %c2_131 = arith.constant 2 : index
    %c0_132 = arith.constant 0 : index
    %c0_133 = arith.constant 0 : index
    %335 = vector.load %arg3[%c2_131, %c0_132, %c0_133] : memref<4x8x8xf32, #tpu.memory_space<vmem>>, vector<1x8x8xf32>
    %336 = vector.shape_cast %335 : vector<1x8x8xf32> to vector<8x8xf32>
    %337 = vector.extract_strided_slice %4 {offsets = [0, 0], sizes = [1, 8], strides = [1, 1]} : vector<2x8xf32> to vector<1x8xf32>
    %338 = vector.broadcast %337 : vector<1x8xf32> to vector<8x8xf32>
    %339 = arith.addf %336, %338 : vector<8x8xf32>
    %340 = arith.addf %334, %339 : vector<8x8xf32>
    %cst_134 = arith.constant dense<0xFF800000> : vector<8xf32>
    %341 = vector.multi_reduction <maximumf>, %340, %cst_134 [1] : vector<8x8xf32> to vector<8xf32>
    %342 = vector.shape_cast %341 : vector<8xf32> to vector<8x1xf32>
    %343 = vector.broadcast %342 : vector<8x1xf32> to vector<8x8xf32>
    %344 = arith.subf %340, %343 : vector<8x8xf32>
    %345 = math.exp %344 : vector<8x8xf32>
    %cst_135 = arith.constant dense<0.000000e+00> : vector<8xf32>
    %346 = vector.multi_reduction <add>, %345, %cst_135 [1] : vector<8x8xf32> to vector<8xf32>
    %347 = vector.shape_cast %346 : vector<8xf32> to vector<8x1xf32>
    %348 = tpu.reciprocal %347 {approx = true} : vector<8x1xf32> -> vector<8x1xf32>
    %349 = vector.broadcast %348 : vector<8x1xf32> to vector<8x8xf32>
    %350 = arith.mulf %345, %349 : vector<8x8xf32>
    %cst_136 = arith.constant dense<0.000000e+00> : vector<8x8xf32>
    %351 = tpu.matmul %350, %333, %cst_136 {dimension_numbers = #tpu.dot_dimension_numbers<[1], [0], [0], [1], [0, 0, 1, 1], [], []>} : vector<8x8xf32>, vector<8x8xf32>, vector<8x8xf32> -> vector<8x8xf32>
    %352 = vector.extract_strided_slice %281 {offsets = [16, 0], sizes = [8, 32], strides = [1, 1]} : vector<32x32xf32> to vector<8x32xf32>
    %cst_137 = arith.constant dense<0.000000e+00> : vector<8x32xf32>
    %353 = tpu.matmul %351, %352, %cst_137 {dimension_numbers = #tpu.dot_dimension_numbers<[1], [0], [0], [1], [0, 0, 1, 1], [], []>} : vector<8x8xf32>, vector<8x32xf32>, vector<8x32xf32> -> vector<8x32xf32>
    %354 = arith.addf %330, %353 : vector<8x32xf32>
    %355 = vector.extract_strided_slice %277 {offsets = [0, 24], sizes = [8, 8], strides = [1, 1]} : vector<16x32xf32> to vector<8x8xf32>
    %356 = vector.extract_strided_slice %278 {offsets = [0, 24], sizes = [8, 8], strides = [1, 1]} : vector<16x32xf32> to vector<8x8xf32>
    %357 = vector.extract_strided_slice %279 {offsets = [0, 24], sizes = [8, 8], strides = [1, 1]} : vector<16x32xf32> to vector<8x8xf32>
    %cst_138 = arith.constant dense<0.000000e+00> : vector<8x8xf32>
    %358 = tpu.matmul %355, %356, %cst_138 {dimension_numbers = #tpu.dot_dimension_numbers<[1], [1], [0], [0], [0, 0, 1, 0], [], []>} : vector<8x8xf32>, vector<8x8xf32>, vector<8x8xf32> -> vector<8x8xf32>
    %c3_139 = arith.constant 3 : index
    %c0_140 = arith.constant 0 : index
    %c0_141 = arith.constant 0 : index
    %359 = vector.load %arg3[%c3_139, %c0_140, %c0_141] : memref<4x8x8xf32, #tpu.memory_space<vmem>>, vector<1x8x8xf32>
    %360 = vector.shape_cast %359 : vector<1x8x8xf32> to vector<8x8xf32>
    %361 = vector.extract_strided_slice %4 {offsets = [0, 0], sizes = [1, 8], strides = [1, 1]} : vector<2x8xf32> to vector<1x8xf32>
    %362 = vector.broadcast %361 : vector<1x8xf32> to vector<8x8xf32>
    %363 = arith.addf %360, %362 : vector<8x8xf32>
    %364 = arith.addf %358, %363 : vector<8x8xf32>
    %cst_142 = arith.constant dense<0xFF800000> : vector<8xf32>
    %365 = vector.multi_reduction <maximumf>, %364, %cst_142 [1] : vector<8x8xf32> to vector<8xf32>
    %366 = vector.shape_cast %365 : vector<8xf32> to vector<8x1xf32>
    %367 = vector.broadcast %366 : vector<8x1xf32> to vector<8x8xf32>
    %368 = arith.subf %364, %367 : vector<8x8xf32>
    %369 = math.exp %368 : vector<8x8xf32>
    %cst_143 = arith.constant dense<0.000000e+00> : vector<8xf32>
    %370 = vector.multi_reduction <add>, %369, %cst_143 [1] : vector<8x8xf32> to vector<8xf32>
    %371 = vector.shape_cast %370 : vector<8xf32> to vector<8x1xf32>
    %372 = tpu.reciprocal %371 {approx = true} : vector<8x1xf32> -> vector<8x1xf32>
    %373 = vector.broadcast %372 : vector<8x1xf32> to vector<8x8xf32>
    %374 = arith.mulf %369, %373 : vector<8x8xf32>
    %cst_144 = arith.constant dense<0.000000e+00> : vector<8x8xf32>
    %375 = tpu.matmul %374, %357, %cst_144 {dimension_numbers = #tpu.dot_dimension_numbers<[1], [0], [0], [1], [0, 0, 1, 1], [], []>} : vector<8x8xf32>, vector<8x8xf32>, vector<8x8xf32> -> vector<8x8xf32>
    %376 = vector.extract_strided_slice %281 {offsets = [24, 0], sizes = [8, 32], strides = [1, 1]} : vector<32x32xf32> to vector<8x32xf32>
    %cst_145 = arith.constant dense<0.000000e+00> : vector<8x32xf32>
    %377 = tpu.matmul %375, %376, %cst_145 {dimension_numbers = #tpu.dot_dimension_numbers<[1], [0], [0], [1], [0, 0, 1, 1], [], []>} : vector<8x8xf32>, vector<8x32xf32>, vector<8x32xf32> -> vector<8x32xf32>
    %378 = arith.addf %354, %377 : vector<8x32xf32>
    %cst_146 = arith.constant 0.000000e+00 : f32
    %379 = vector.broadcast %cst_146 : f32 to vector<8x32xf32>
    %380 = vector.extract_strided_slice %277 {offsets = [8, 0], sizes = [8, 8], strides = [1, 1]} : vector<16x32xf32> to vector<8x8xf32>
    %381 = vector.extract_strided_slice %278 {offsets = [8, 0], sizes = [8, 8], strides = [1, 1]} : vector<16x32xf32> to vector<8x8xf32>
    %382 = vector.extract_strided_slice %279 {offsets = [8, 0], sizes = [8, 8], strides = [1, 1]} : vector<16x32xf32> to vector<8x8xf32>
    %cst_147 = arith.constant dense<0.000000e+00> : vector<8x8xf32>
    %383 = tpu.matmul %380, %381, %cst_147 {dimension_numbers = #tpu.dot_dimension_numbers<[1], [1], [0], [0], [0, 0, 1, 0], [], []>} : vector<8x8xf32>, vector<8x8xf32>, vector<8x8xf32> -> vector<8x8xf32>
    %c0_148 = arith.constant 0 : index
    %c0_149 = arith.constant 0 : index
    %c0_150 = arith.constant 0 : index
    %384 = vector.load %arg3[%c0_148, %c0_149, %c0_150] : memref<4x8x8xf32, #tpu.memory_space<vmem>>, vector<1x8x8xf32>
    %385 = vector.shape_cast %384 : vector<1x8x8xf32> to vector<8x8xf32>
    %386 = vector.extract_strided_slice %4 {offsets = [1, 0], sizes = [1, 8], strides = [1, 1]} : vector<2x8xf32> to vector<1x8xf32>
    %387 = vector.broadcast %386 : vector<1x8xf32> to vector<8x8xf32>
    %388 = arith.addf %385, %387 : vector<8x8xf32>
    %389 = arith.addf %383, %388 : vector<8x8xf32>
    %cst_151 = arith.constant dense<0xFF800000> : vector<8xf32>
    %390 = vector.multi_reduction <maximumf>, %389, %cst_151 [1] : vector<8x8xf32> to vector<8xf32>
    %391 = vector.shape_cast %390 : vector<8xf32> to vector<8x1xf32>
    %392 = vector.broadcast %391 : vector<8x1xf32> to vector<8x8xf32>
    %393 = arith.subf %389, %392 : vector<8x8xf32>
    %394 = math.exp %393 : vector<8x8xf32>
    %cst_152 = arith.constant dense<0.000000e+00> : vector<8xf32>
    %395 = vector.multi_reduction <add>, %394, %cst_152 [1] : vector<8x8xf32> to vector<8xf32>
    %396 = vector.shape_cast %395 : vector<8xf32> to vector<8x1xf32>
    %397 = tpu.reciprocal %396 {approx = true} : vector<8x1xf32> -> vector<8x1xf32>
    %398 = vector.broadcast %397 : vector<8x1xf32> to vector<8x8xf32>
    %399 = arith.mulf %394, %398 : vector<8x8xf32>
    %cst_153 = arith.constant dense<0.000000e+00> : vector<8x8xf32>
    %400 = tpu.matmul %399, %382, %cst_153 {dimension_numbers = #tpu.dot_dimension_numbers<[1], [0], [0], [1], [0, 0, 1, 1], [], []>} : vector<8x8xf32>, vector<8x8xf32>, vector<8x8xf32> -> vector<8x8xf32>
    %401 = vector.extract_strided_slice %281 {offsets = [0, 0], sizes = [8, 32], strides = [1, 1]} : vector<32x32xf32> to vector<8x32xf32>
    %cst_154 = arith.constant dense<0.000000e+00> : vector<8x32xf32>
    %402 = tpu.matmul %400, %401, %cst_154 {dimension_numbers = #tpu.dot_dimension_numbers<[1], [0], [0], [1], [0, 0, 1, 1], [], []>} : vector<8x8xf32>, vector<8x32xf32>, vector<8x32xf32> -> vector<8x32xf32>
    %403 = arith.addf %379, %402 : vector<8x32xf32>
    %404 = vector.extract_strided_slice %277 {offsets = [8, 8], sizes = [8, 8], strides = [1, 1]} : vector<16x32xf32> to vector<8x8xf32>
    %405 = vector.extract_strided_slice %278 {offsets = [8, 8], sizes = [8, 8], strides = [1, 1]} : vector<16x32xf32> to vector<8x8xf32>
    %406 = vector.extract_strided_slice %279 {offsets = [8, 8], sizes = [8, 8], strides = [1, 1]} : vector<16x32xf32> to vector<8x8xf32>
    %cst_155 = arith.constant dense<0.000000e+00> : vector<8x8xf32>
    %407 = tpu.matmul %404, %405, %cst_155 {dimension_numbers = #tpu.dot_dimension_numbers<[1], [1], [0], [0], [0, 0, 1, 0], [], []>} : vector<8x8xf32>, vector<8x8xf32>, vector<8x8xf32> -> vector<8x8xf32>
    %c1_156 = arith.constant 1 : index
    %c0_157 = arith.constant 0 : index
    %c0_158 = arith.constant 0 : index
    %408 = vector.load %arg3[%c1_156, %c0_157, %c0_158] : memref<4x8x8xf32, #tpu.memory_space<vmem>>, vector<1x8x8xf32>
    %409 = vector.shape_cast %408 : vector<1x8x8xf32> to vector<8x8xf32>
    %410 = vector.extract_strided_slice %4 {offsets = [1, 0], sizes = [1, 8], strides = [1, 1]} : vector<2x8xf32> to vector<1x8xf32>
    %411 = vector.broadcast %410 : vector<1x8xf32> to vector<8x8xf32>
    %412 = arith.addf %409, %411 : vector<8x8xf32>
    %413 = arith.addf %407, %412 : vector<8x8xf32>
    %cst_159 = arith.constant dense<0xFF800000> : vector<8xf32>
    %414 = vector.multi_reduction <maximumf>, %413, %cst_159 [1] : vector<8x8xf32> to vector<8xf32>
    %415 = vector.shape_cast %414 : vector<8xf32> to vector<8x1xf32>
    %416 = vector.broadcast %415 : vector<8x1xf32> to vector<8x8xf32>
    %417 = arith.subf %413, %416 : vector<8x8xf32>
    %418 = math.exp %417 : vector<8x8xf32>
    %cst_160 = arith.constant dense<0.000000e+00> : vector<8xf32>
    %419 = vector.multi_reduction <add>, %418, %cst_160 [1] : vector<8x8xf32> to vector<8xf32>
    %420 = vector.shape_cast %419 : vector<8xf32> to vector<8x1xf32>
    %421 = tpu.reciprocal %420 {approx = true} : vector<8x1xf32> -> vector<8x1xf32>
    %422 = vector.broadcast %421 : vector<8x1xf32> to vector<8x8xf32>
    %423 = arith.mulf %418, %422 : vector<8x8xf32>
    %cst_161 = arith.constant dense<0.000000e+00> : vector<8x8xf32>
    %424 = tpu.matmul %423, %406, %cst_161 {dimension_numbers = #tpu.dot_dimension_numbers<[1], [0], [0], [1], [0, 0, 1, 1], [], []>} : vector<8x8xf32>, vector<8x8xf32>, vector<8x8xf32> -> vector<8x8xf32>
    %425 = vector.extract_strided_slice %281 {offsets = [8, 0], sizes = [8, 32], strides = [1, 1]} : vector<32x32xf32> to vector<8x32xf32>
    %cst_162 = arith.constant dense<0.000000e+00> : vector<8x32xf32>
    %426 = tpu.matmul %424, %425, %cst_162 {dimension_numbers = #tpu.dot_dimension_numbers<[1], [0], [0], [1], [0, 0, 1, 1], [], []>} : vector<8x8xf32>, vector<8x32xf32>, vector<8x32xf32> -> vector<8x32xf32>
    %427 = arith.addf %403, %426 : vector<8x32xf32>
    %428 = vector.extract_strided_slice %277 {offsets = [8, 16], sizes = [8, 8], strides = [1, 1]} : vector<16x32xf32> to vector<8x8xf32>
    %429 = vector.extract_strided_slice %278 {offsets = [8, 16], sizes = [8, 8], strides = [1, 1]} : vector<16x32xf32> to vector<8x8xf32>
    %430 = vector.extract_strided_slice %279 {offsets = [8, 16], sizes = [8, 8], strides = [1, 1]} : vector<16x32xf32> to vector<8x8xf32>
    %cst_163 = arith.constant dense<0.000000e+00> : vector<8x8xf32>
    %431 = tpu.matmul %428, %429, %cst_163 {dimension_numbers = #tpu.dot_dimension_numbers<[1], [1], [0], [0], [0, 0, 1, 0], [], []>} : vector<8x8xf32>, vector<8x8xf32>, vector<8x8xf32> -> vector<8x8xf32>
    %c2_164 = arith.constant 2 : index
    %c0_165 = arith.constant 0 : index
    %c0_166 = arith.constant 0 : index
    %432 = vector.load %arg3[%c2_164, %c0_165, %c0_166] : memref<4x8x8xf32, #tpu.memory_space<vmem>>, vector<1x8x8xf32>
    %433 = vector.shape_cast %432 : vector<1x8x8xf32> to vector<8x8xf32>
    %434 = vector.extract_strided_slice %4 {offsets = [1, 0], sizes = [1, 8], strides = [1, 1]} : vector<2x8xf32> to vector<1x8xf32>
    %435 = vector.broadcast %434 : vector<1x8xf32> to vector<8x8xf32>
    %436 = arith.addf %433, %435 : vector<8x8xf32>
    %437 = arith.addf %431, %436 : vector<8x8xf32>
    %cst_167 = arith.constant dense<0xFF800000> : vector<8xf32>
    %438 = vector.multi_reduction <maximumf>, %437, %cst_167 [1] : vector<8x8xf32> to vector<8xf32>
    %439 = vector.shape_cast %438 : vector<8xf32> to vector<8x1xf32>
    %440 = vector.broadcast %439 : vector<8x1xf32> to vector<8x8xf32>
    %441 = arith.subf %437, %440 : vector<8x8xf32>
    %442 = math.exp %441 : vector<8x8xf32>
    %cst_168 = arith.constant dense<0.000000e+00> : vector<8xf32>
    %443 = vector.multi_reduction <add>, %442, %cst_168 [1] : vector<8x8xf32> to vector<8xf32>
    %444 = vector.shape_cast %443 : vector<8xf32> to vector<8x1xf32>
    %445 = tpu.reciprocal %444 {approx = true} : vector<8x1xf32> -> vector<8x1xf32>
    %446 = vector.broadcast %445 : vector<8x1xf32> to vector<8x8xf32>
    %447 = arith.mulf %442, %446 : vector<8x8xf32>
    %cst_169 = arith.constant dense<0.000000e+00> : vector<8x8xf32>
    %448 = tpu.matmul %447, %430, %cst_169 {dimension_numbers = #tpu.dot_dimension_numbers<[1], [0], [0], [1], [0, 0, 1, 1], [], []>} : vector<8x8xf32>, vector<8x8xf32>, vector<8x8xf32> -> vector<8x8xf32>
    %449 = vector.extract_strided_slice %281 {offsets = [16, 0], sizes = [8, 32], strides = [1, 1]} : vector<32x32xf32> to vector<8x32xf32>
    %cst_170 = arith.constant dense<0.000000e+00> : vector<8x32xf32>
    %450 = tpu.matmul %448, %449, %cst_170 {dimension_numbers = #tpu.dot_dimension_numbers<[1], [0], [0], [1], [0, 0, 1, 1], [], []>} : vector<8x8xf32>, vector<8x32xf32>, vector<8x32xf32> -> vector<8x32xf32>
    %451 = arith.addf %427, %450 : vector<8x32xf32>
    %452 = vector.extract_strided_slice %277 {offsets = [8, 24], sizes = [8, 8], strides = [1, 1]} : vector<16x32xf32> to vector<8x8xf32>
    %453 = vector.extract_strided_slice %278 {offsets = [8, 24], sizes = [8, 8], strides = [1, 1]} : vector<16x32xf32> to vector<8x8xf32>
    %454 = vector.extract_strided_slice %279 {offsets = [8, 24], sizes = [8, 8], strides = [1, 1]} : vector<16x32xf32> to vector<8x8xf32>
    %cst_171 = arith.constant dense<0.000000e+00> : vector<8x8xf32>
    %455 = tpu.matmul %452, %453, %cst_171 {dimension_numbers = #tpu.dot_dimension_numbers<[1], [1], [0], [0], [0, 0, 1, 0], [], []>} : vector<8x8xf32>, vector<8x8xf32>, vector<8x8xf32> -> vector<8x8xf32>
    %c3_172 = arith.constant 3 : index
    %c0_173 = arith.constant 0 : index
    %c0_174 = arith.constant 0 : index
    %456 = vector.load %arg3[%c3_172, %c0_173, %c0_174] : memref<4x8x8xf32, #tpu.memory_space<vmem>>, vector<1x8x8xf32>
    %457 = vector.shape_cast %456 : vector<1x8x8xf32> to vector<8x8xf32>
    %458 = vector.extract_strided_slice %4 {offsets = [1, 0], sizes = [1, 8], strides = [1, 1]} : vector<2x8xf32> to vector<1x8xf32>
    %459 = vector.broadcast %458 : vector<1x8xf32> to vector<8x8xf32>
    %460 = arith.addf %457, %459 : vector<8x8xf32>
    %461 = arith.addf %455, %460 : vector<8x8xf32>
    %cst_175 = arith.constant dense<0xFF800000> : vector<8xf32>
    %462 = vector.multi_reduction <maximumf>, %461, %cst_175 [1] : vector<8x8xf32> to vector<8xf32>
    %463 = vector.shape_cast %462 : vector<8xf32> to vector<8x1xf32>
    %464 = vector.broadcast %463 : vector<8x1xf32> to vector<8x8xf32>
    %465 = arith.subf %461, %464 : vector<8x8xf32>
    %466 = math.exp %465 : vector<8x8xf32>
    %cst_176 = arith.constant dense<0.000000e+00> : vector<8xf32>
    %467 = vector.multi_reduction <add>, %466, %cst_176 [1] : vector<8x8xf32> to vector<8xf32>
    %468 = vector.shape_cast %467 : vector<8xf32> to vector<8x1xf32>
    %469 = tpu.reciprocal %468 {approx = true} : vector<8x1xf32> -> vector<8x1xf32>
    %470 = vector.broadcast %469 : vector<8x1xf32> to vector<8x8xf32>
    %471 = arith.mulf %466, %470 : vector<8x8xf32>
    %cst_177 = arith.constant dense<0.000000e+00> : vector<8x8xf32>
    %472 = tpu.matmul %471, %454, %cst_177 {dimension_numbers = #tpu.dot_dimension_numbers<[1], [0], [0], [1], [0, 0, 1, 1], [], []>} : vector<8x8xf32>, vector<8x8xf32>, vector<8x8xf32> -> vector<8x8xf32>
    %473 = vector.extract_strided_slice %281 {offsets = [24, 0], sizes = [8, 32], strides = [1, 1]} : vector<32x32xf32> to vector<8x32xf32>
    %cst_178 = arith.constant dense<0.000000e+00> : vector<8x32xf32>
    %474 = tpu.matmul %472, %473, %cst_178 {dimension_numbers = #tpu.dot_dimension_numbers<[1], [0], [0], [1], [0, 0, 1, 1], [], []>} : vector<8x8xf32>, vector<8x32xf32>, vector<8x32xf32> -> vector<8x32xf32>
    %475 = arith.addf %451, %474 : vector<8x32xf32>
    %476 = tpu.concatenate %378, %475 in 0 : vector<8x32xf32>, vector<8x32xf32> -> vector<16x32xf32>
    %477 = arith.addf %259, %476 : vector<16x32xf32>
    %c1_179 = arith.constant 1 : index
    %c0_180 = arith.constant 0 : index
    %c0_181 = arith.constant 0 : index
    %478 = vector.load %arg8[%c1_179, %c0_180, %c0_181] : memref<2x1x32xf32, #tpu.memory_space<vmem>>, vector<1x1x32xf32>
    %479 = vector.shape_cast %478 : vector<1x1x32xf32> to vector<1x32xf32>
    %480 = arith.mulf %477, %477 : vector<16x32xf32>
    %cst_182 = arith.constant dense<0.000000e+00> : vector<16xf32>
    %481 = vector.multi_reduction <add>, %480, %cst_182 [1] : vector<16x32xf32> to vector<16xf32>
    %482 = vector.shape_cast %481 : vector<16xf32> to vector<16x1xf32>
    %cst_183 = arith.constant 3.200000e+01 : f32
    %483 = vector.broadcast %cst_183 : f32 to vector<16x1xf32>
    %484 = arith.divf %482, %483 : vector<16x1xf32>
    %cst_184 = arith.constant 9.99999997E-7 : f32
    %485 = vector.broadcast %cst_184 : f32 to vector<16x1xf32>
    %486 = arith.addf %484, %485 : vector<16x1xf32>
    %487 = math.rsqrt %486 : vector<16x1xf32>
    %488 = vector.broadcast %487 : vector<16x1xf32> to vector<16x32xf32>
    %489 = arith.mulf %477, %488 : vector<16x32xf32>
    %490 = vector.broadcast %479 : vector<1x32xf32> to vector<16x32xf32>
    %491 = arith.mulf %490, %489 : vector<16x32xf32>
    %c1_185 = arith.constant 1 : index
    %c0_186 = arith.constant 0 : index
    %c0_187 = arith.constant 0 : index
    %492 = vector.load %arg9[%c1_185, %c0_186, %c0_187] : memref<2x32x64xf32, #tpu.memory_space<vmem>>, vector<1x32x64xf32>
    %493 = vector.shape_cast %492 : vector<1x32x64xf32> to vector<32x64xf32>
    %cst_188 = arith.constant dense<0.000000e+00> : vector<16x64xf32>
    %494 = tpu.matmul %491, %493, %cst_188 {dimension_numbers = #tpu.dot_dimension_numbers<[1], [0], [0], [1], [0, 0, 1, 1], [], []>} : vector<16x32xf32>, vector<32x64xf32>, vector<16x64xf32> -> vector<16x64xf32>
    %cst_189 = arith.constant 0.000000e+00 : f32
    %495 = vector.broadcast %cst_189 : f32 to vector<16x64xf32>
    %496 = arith.maximumf %494, %495 : vector<16x64xf32>
    %c1_190 = arith.constant 1 : index
    %c0_191 = arith.constant 0 : index
    %c0_192 = arith.constant 0 : index
    %497 = vector.load %arg10[%c1_190, %c0_191, %c0_192] : memref<2x64x32xf32, #tpu.memory_space<vmem>>, vector<1x64x32xf32>
    %498 = vector.shape_cast %497 : vector<1x64x32xf32> to vector<64x32xf32>
    %cst_193 = arith.constant dense<0.000000e+00> : vector<16x32xf32>
    %499 = tpu.matmul %496, %498, %cst_193 {dimension_numbers = #tpu.dot_dimension_numbers<[1], [0], [0], [1], [0, 0, 1, 1], [], []>} : vector<16x64xf32>, vector<64x32xf32>, vector<16x32xf32> -> vector<16x32xf32>
    %500 = arith.addf %477, %499 : vector<16x32xf32>
    %c0_194 = arith.constant 0 : index
    %c0_195 = arith.constant 0 : index
    %501 = vector.load %arg11[%c0_194, %c0_195] : memref<1x32xf32, #tpu.memory_space<vmem>>, vector<1x32xf32>
    %502 = arith.mulf %500, %500 : vector<16x32xf32>
    %cst_196 = arith.constant dense<0.000000e+00> : vector<16xf32>
    %503 = vector.multi_reduction <add>, %502, %cst_196 [1] : vector<16x32xf32> to vector<16xf32>
    %504 = vector.shape_cast %503 : vector<16xf32> to vector<16x1xf32>
    %cst_197 = arith.constant 3.200000e+01 : f32
    %505 = vector.broadcast %cst_197 : f32 to vector<16x1xf32>
    %506 = arith.divf %504, %505 : vector<16x1xf32>
    %cst_198 = arith.constant 9.99999997E-7 : f32
    %507 = vector.broadcast %cst_198 : f32 to vector<16x1xf32>
    %508 = arith.addf %506, %507 : vector<16x1xf32>
    %509 = math.rsqrt %508 : vector<16x1xf32>
    %510 = vector.broadcast %509 : vector<16x1xf32> to vector<16x32xf32>
    %511 = arith.mulf %500, %510 : vector<16x32xf32>
    %512 = vector.broadcast %501 : vector<1x32xf32> to vector<16x32xf32>
    %513 = arith.mulf %512, %511 : vector<16x32xf32>
    %c0_199 = arith.constant 0 : index
    %c0_200 = arith.constant 0 : index
    %514 = vector.load %arg24[%c0_199, %c0_200] : memref<16x32xf32, #tpu.memory_space<vmem>>, vector<16x32xf32>
    tpu.vector_store %arg24[%c0_199, %c0_200], %513 {strides = array<i32>} : memref<16x32xf32, #tpu.memory_space<vmem>>, vector<16x32xf32>,
    %c0_201 = arith.constant 0 : index
    %c0_202 = arith.constant 0 : index
    %c0_203 = arith.constant 0 : index
    %515 = vector.load %arg12[%c0_201, %c0_202, %c0_203] : memref<2x1x32xf32, #tpu.memory_space<vmem>>, vector<1x1x32xf32>
    %516 = vector.shape_cast %515 : vector<1x1x32xf32> to vector<1x32xf32>
    %517 = arith.mulf %18, %18 : vector<16x32xf32>
    %cst_204 = arith.constant dense<0.000000e+00> : vector<16xf32>
    %518 = vector.multi_reduction <add>, %517, %cst_204 [1] : vector<16x32xf32> to vector<16xf32>
    %519 = vector.shape_cast %518 : vector<16xf32> to vector<16x1xf32>
    %cst_205 = arith.constant 3.200000e+01 : f32
    %520 = vector.broadcast %cst_205 : f32 to vector<16x1xf32>
    %521 = arith.divf %519, %520 : vector<16x1xf32>
    %cst_206 = arith.constant 9.99999997E-7 : f32
    %522 = vector.broadcast %cst_206 : f32 to vector<16x1xf32>
    %523 = arith.addf %521, %522 : vector<16x1xf32>
    %524 = math.rsqrt %523 : vector<16x1xf32>
    %525 = vector.broadcast %524 : vector<16x1xf32> to vector<16x32xf32>
    %526 = arith.mulf %18, %525 : vector<16x32xf32>
    %527 = vector.broadcast %516 : vector<1x32xf32> to vector<16x32xf32>
    %528 = arith.mulf %527, %526 : vector<16x32xf32>
    %c0_207 = arith.constant 0 : index
    %c0_208 = arith.constant 0 : index
    %c0_209 = arith.constant 0 : index
    %529 = vector.load %arg13[%c0_207, %c0_208, %c0_209] : memref<2x32x96xf32, #tpu.memory_space<vmem>>, vector<1x32x96xf32>
    %530 = vector.shape_cast %529 : vector<1x32x96xf32> to vector<32x96xf32>
    %cst_210 = arith.constant dense<0.000000e+00> : vector<16x96xf32>
    %531 = tpu.matmul %528, %530, %cst_210 {dimension_numbers = #tpu.dot_dimension_numbers<[1], [0], [0], [1], [0, 0, 1, 1], [], []>} : vector<16x32xf32>, vector<32x96xf32>, vector<16x96xf32> -> vector<16x96xf32>
    %532 = vector.extract_strided_slice %531 {offsets = [0, 0], sizes = [16, 32], strides = [1, 1]} : vector<16x96xf32> to vector<16x32xf32>
    %533 = vector.extract_strided_slice %531 {offsets = [0, 32], sizes = [16, 32], strides = [1, 1]} : vector<16x96xf32> to vector<16x32xf32>
    %534 = vector.extract_strided_slice %531 {offsets = [0, 64], sizes = [16, 32], strides = [1, 1]} : vector<16x96xf32> to vector<16x32xf32>
    %c0_211 = arith.constant 0 : index
    %c0_212 = arith.constant 0 : index
    %c0_213 = arith.constant 0 : index
    %535 = vector.load %arg14[%c0_211, %c0_212, %c0_213] : memref<2x32x32xf32, #tpu.memory_space<vmem>>, vector<1x32x32xf32>
    %536 = vector.shape_cast %535 : vector<1x32x32xf32> to vector<32x32xf32>
    %cst_214 = arith.constant 0.000000e+00 : f32
    %537 = vector.broadcast %cst_214 : f32 to vector<8x32xf32>
    %538 = vector.extract_strided_slice %532 {offsets = [0, 0], sizes = [8, 8], strides = [1, 1]} : vector<16x32xf32> to vector<8x8xf32>
    %539 = vector.extract_strided_slice %533 {offsets = [0, 0], sizes = [8, 8], strides = [1, 1]} : vector<16x32xf32> to vector<8x8xf32>
    %540 = vector.extract_strided_slice %534 {offsets = [0, 0], sizes = [8, 8], strides = [1, 1]} : vector<16x32xf32> to vector<8x8xf32>
    %cst_215 = arith.constant dense<0.000000e+00> : vector<8x8xf32>
    %541 = tpu.matmul %538, %539, %cst_215 {dimension_numbers = #tpu.dot_dimension_numbers<[1], [1], [0], [0], [0, 0, 1, 0], [], []>} : vector<8x8xf32>, vector<8x8xf32>, vector<8x8xf32> -> vector<8x8xf32>
    %c0_216 = arith.constant 0 : index
    %c0_217 = arith.constant 0 : index
    %c0_218 = arith.constant 0 : index
    %542 = vector.load %arg4[%c0_216, %c0_217, %c0_218] : memref<4x8x8xf32, #tpu.memory_space<vmem>>, vector<1x8x8xf32>
    %543 = vector.shape_cast %542 : vector<1x8x8xf32> to vector<8x8xf32>
    %544 = arith.addf %543, %10 : vector<8x8xf32>
    %545 = arith.addf %541, %544 : vector<8x8xf32>
    %cst_219 = arith.constant dense<0xFF800000> : vector<8xf32>
    %546 = vector.multi_reduction <maximumf>, %545, %cst_219 [1] : vector<8x8xf32> to vector<8xf32>
    %547 = vector.shape_cast %546 : vector<8xf32> to vector<8x1xf32>
    %548 = vector.broadcast %547 : vector<8x1xf32> to vector<8x8xf32>
    %549 = arith.subf %545, %548 : vector<8x8xf32>
    %550 = math.exp %549 : vector<8x8xf32>
    %cst_220 = arith.constant dense<0.000000e+00> : vector<8xf32>
    %551 = vector.multi_reduction <add>, %550, %cst_220 [1] : vector<8x8xf32> to vector<8xf32>
    %552 = vector.shape_cast %551 : vector<8xf32> to vector<8x1xf32>
    %553 = tpu.reciprocal %552 {approx = true} : vector<8x1xf32> -> vector<8x1xf32>
    %554 = vector.broadcast %553 : vector<8x1xf32> to vector<8x8xf32>
    %555 = arith.mulf %550, %554 : vector<8x8xf32>
    %cst_221 = arith.constant dense<0.000000e+00> : vector<8x8xf32>
    %556 = tpu.matmul %555, %540, %cst_221 {dimension_numbers = #tpu.dot_dimension_numbers<[1], [0], [0], [1], [0, 0, 1, 1], [], []>} : vector<8x8xf32>, vector<8x8xf32>, vector<8x8xf32> -> vector<8x8xf32>
    %557 = vector.extract_strided_slice %536 {offsets = [0, 0], sizes = [8, 32], strides = [1, 1]} : vector<32x32xf32> to vector<8x32xf32>
    %cst_222 = arith.constant dense<0.000000e+00> : vector<8x32xf32>
    %558 = tpu.matmul %556, %557, %cst_222 {dimension_numbers = #tpu.dot_dimension_numbers<[1], [0], [0], [1], [0, 0, 1, 1], [], []>} : vector<8x8xf32>, vector<8x32xf32>, vector<8x32xf32> -> vector<8x32xf32>
    %559 = arith.addf %537, %558 : vector<8x32xf32>
    %560 = vector.extract_strided_slice %532 {offsets = [0, 8], sizes = [8, 8], strides = [1, 1]} : vector<16x32xf32> to vector<8x8xf32>
    %561 = vector.extract_strided_slice %533 {offsets = [0, 8], sizes = [8, 8], strides = [1, 1]} : vector<16x32xf32> to vector<8x8xf32>
    %562 = vector.extract_strided_slice %534 {offsets = [0, 8], sizes = [8, 8], strides = [1, 1]} : vector<16x32xf32> to vector<8x8xf32>
    %cst_223 = arith.constant dense<0.000000e+00> : vector<8x8xf32>
    %563 = tpu.matmul %560, %561, %cst_223 {dimension_numbers = #tpu.dot_dimension_numbers<[1], [1], [0], [0], [0, 0, 1, 0], [], []>} : vector<8x8xf32>, vector<8x8xf32>, vector<8x8xf32> -> vector<8x8xf32>
    %c1_224 = arith.constant 1 : index
    %c0_225 = arith.constant 0 : index
    %c0_226 = arith.constant 0 : index
    %564 = vector.load %arg4[%c1_224, %c0_225, %c0_226] : memref<4x8x8xf32, #tpu.memory_space<vmem>>, vector<1x8x8xf32>
    %565 = vector.shape_cast %564 : vector<1x8x8xf32> to vector<8x8xf32>
    %566 = arith.addf %565, %10 : vector<8x8xf32>
    %567 = arith.addf %563, %566 : vector<8x8xf32>
    %cst_227 = arith.constant dense<0xFF800000> : vector<8xf32>
    %568 = vector.multi_reduction <maximumf>, %567, %cst_227 [1] : vector<8x8xf32> to vector<8xf32>
    %569 = vector.shape_cast %568 : vector<8xf32> to vector<8x1xf32>
    %570 = vector.broadcast %569 : vector<8x1xf32> to vector<8x8xf32>
    %571 = arith.subf %567, %570 : vector<8x8xf32>
    %572 = math.exp %571 : vector<8x8xf32>
    %cst_228 = arith.constant dense<0.000000e+00> : vector<8xf32>
    %573 = vector.multi_reduction <add>, %572, %cst_228 [1] : vector<8x8xf32> to vector<8xf32>
    %574 = vector.shape_cast %573 : vector<8xf32> to vector<8x1xf32>
    %575 = tpu.reciprocal %574 {approx = true} : vector<8x1xf32> -> vector<8x1xf32>
    %576 = vector.broadcast %575 : vector<8x1xf32> to vector<8x8xf32>
    %577 = arith.mulf %572, %576 : vector<8x8xf32>
    %cst_229 = arith.constant dense<0.000000e+00> : vector<8x8xf32>
    %578 = tpu.matmul %577, %562, %cst_229 {dimension_numbers = #tpu.dot_dimension_numbers<[1], [0], [0], [1], [0, 0, 1, 1], [], []>} : vector<8x8xf32>, vector<8x8xf32>, vector<8x8xf32> -> vector<8x8xf32>
    %579 = vector.extract_strided_slice %536 {offsets = [8, 0], sizes = [8, 32], strides = [1, 1]} : vector<32x32xf32> to vector<8x32xf32>
    %cst_230 = arith.constant dense<0.000000e+00> : vector<8x32xf32>
    %580 = tpu.matmul %578, %579, %cst_230 {dimension_numbers = #tpu.dot_dimension_numbers<[1], [0], [0], [1], [0, 0, 1, 1], [], []>} : vector<8x8xf32>, vector<8x32xf32>, vector<8x32xf32> -> vector<8x32xf32>
    %581 = arith.addf %559, %580 : vector<8x32xf32>
    %582 = vector.extract_strided_slice %532 {offsets = [0, 16], sizes = [8, 8], strides = [1, 1]} : vector<16x32xf32> to vector<8x8xf32>
    %583 = vector.extract_strided_slice %533 {offsets = [0, 16], sizes = [8, 8], strides = [1, 1]} : vector<16x32xf32> to vector<8x8xf32>
    %584 = vector.extract_strided_slice %534 {offsets = [0, 16], sizes = [8, 8], strides = [1, 1]} : vector<16x32xf32> to vector<8x8xf32>
    %cst_231 = arith.constant dense<0.000000e+00> : vector<8x8xf32>
    %585 = tpu.matmul %582, %583, %cst_231 {dimension_numbers = #tpu.dot_dimension_numbers<[1], [1], [0], [0], [0, 0, 1, 0], [], []>} : vector<8x8xf32>, vector<8x8xf32>, vector<8x8xf32> -> vector<8x8xf32>
    %c2_232 = arith.constant 2 : index
    %c0_233 = arith.constant 0 : index
    %c0_234 = arith.constant 0 : index
    %586 = vector.load %arg4[%c2_232, %c0_233, %c0_234] : memref<4x8x8xf32, #tpu.memory_space<vmem>>, vector<1x8x8xf32>
    %587 = vector.shape_cast %586 : vector<1x8x8xf32> to vector<8x8xf32>
    %588 = arith.addf %587, %10 : vector<8x8xf32>
    %589 = arith.addf %585, %588 : vector<8x8xf32>
    %cst_235 = arith.constant dense<0xFF800000> : vector<8xf32>
    %590 = vector.multi_reduction <maximumf>, %589, %cst_235 [1] : vector<8x8xf32> to vector<8xf32>
    %591 = vector.shape_cast %590 : vector<8xf32> to vector<8x1xf32>
    %592 = vector.broadcast %591 : vector<8x1xf32> to vector<8x8xf32>
    %593 = arith.subf %589, %592 : vector<8x8xf32>
    %594 = math.exp %593 : vector<8x8xf32>
    %cst_236 = arith.constant dense<0.000000e+00> : vector<8xf32>
    %595 = vector.multi_reduction <add>, %594, %cst_236 [1] : vector<8x8xf32> to vector<8xf32>
    %596 = vector.shape_cast %595 : vector<8xf32> to vector<8x1xf32>
    %597 = tpu.reciprocal %596 {approx = true} : vector<8x1xf32> -> vector<8x1xf32>
    %598 = vector.broadcast %597 : vector<8x1xf32> to vector<8x8xf32>
    %599 = arith.mulf %594, %598 : vector<8x8xf32>
    %cst_237 = arith.constant dense<0.000000e+00> : vector<8x8xf32>
    %600 = tpu.matmul %599, %584, %cst_237 {dimension_numbers = #tpu.dot_dimension_numbers<[1], [0], [0], [1], [0, 0, 1, 1], [], []>} : vector<8x8xf32>, vector<8x8xf32>, vector<8x8xf32> -> vector<8x8xf32>
    %601 = vector.extract_strided_slice %536 {offsets = [16, 0], sizes = [8, 32], strides = [1, 1]} : vector<32x32xf32> to vector<8x32xf32>
    %cst_238 = arith.constant dense<0.000000e+00> : vector<8x32xf32>
    %602 = tpu.matmul %600, %601, %cst_238 {dimension_numbers = #tpu.dot_dimension_numbers<[1], [0], [0], [1], [0, 0, 1, 1], [], []>} : vector<8x8xf32>, vector<8x32xf32>, vector<8x32xf32> -> vector<8x32xf32>
    %603 = arith.addf %581, %602 : vector<8x32xf32>
    %604 = vector.extract_strided_slice %532 {offsets = [0, 24], sizes = [8, 8], strides = [1, 1]} : vector<16x32xf32> to vector<8x8xf32>
    %605 = vector.extract_strided_slice %533 {offsets = [0, 24], sizes = [8, 8], strides = [1, 1]} : vector<16x32xf32> to vector<8x8xf32>
    %606 = vector.extract_strided_slice %534 {offsets = [0, 24], sizes = [8, 8], strides = [1, 1]} : vector<16x32xf32> to vector<8x8xf32>
    %cst_239 = arith.constant dense<0.000000e+00> : vector<8x8xf32>
    %607 = tpu.matmul %604, %605, %cst_239 {dimension_numbers = #tpu.dot_dimension_numbers<[1], [1], [0], [0], [0, 0, 1, 0], [], []>} : vector<8x8xf32>, vector<8x8xf32>, vector<8x8xf32> -> vector<8x8xf32>
    %c3_240 = arith.constant 3 : index
    %c0_241 = arith.constant 0 : index
    %c0_242 = arith.constant 0 : index
    %608 = vector.load %arg4[%c3_240, %c0_241, %c0_242] : memref<4x8x8xf32, #tpu.memory_space<vmem>>, vector<1x8x8xf32>
    %609 = vector.shape_cast %608 : vector<1x8x8xf32> to vector<8x8xf32>
    %610 = arith.addf %609, %10 : vector<8x8xf32>
    %611 = arith.addf %607, %610 : vector<8x8xf32>
    %cst_243 = arith.constant dense<0xFF800000> : vector<8xf32>
    %612 = vector.multi_reduction <maximumf>, %611, %cst_243 [1] : vector<8x8xf32> to vector<8xf32>
    %613 = vector.shape_cast %612 : vector<8xf32> to vector<8x1xf32>
    %614 = vector.broadcast %613 : vector<8x1xf32> to vector<8x8xf32>
    %615 = arith.subf %611, %614 : vector<8x8xf32>
    %616 = math.exp %615 : vector<8x8xf32>
    %cst_244 = arith.constant dense<0.000000e+00> : vector<8xf32>
    %617 = vector.multi_reduction <add>, %616, %cst_244 [1] : vector<8x8xf32> to vector<8xf32>
    %618 = vector.shape_cast %617 : vector<8xf32> to vector<8x1xf32>
    %619 = tpu.reciprocal %618 {approx = true} : vector<8x1xf32> -> vector<8x1xf32>
    %620 = vector.broadcast %619 : vector<8x1xf32> to vector<8x8xf32>
    %621 = arith.mulf %616, %620 : vector<8x8xf32>
    %cst_245 = arith.constant dense<0.000000e+00> : vector<8x8xf32>
    %622 = tpu.matmul %621, %606, %cst_245 {dimension_numbers = #tpu.dot_dimension_numbers<[1], [0], [0], [1], [0, 0, 1, 1], [], []>} : vector<8x8xf32>, vector<8x8xf32>, vector<8x8xf32> -> vector<8x8xf32>
    %623 = vector.extract_strided_slice %536 {offsets = [24, 0], sizes = [8, 32], strides = [1, 1]} : vector<32x32xf32> to vector<8x32xf32>
    %cst_246 = arith.constant dense<0.000000e+00> : vector<8x32xf32>
    %624 = tpu.matmul %622, %623, %cst_246 {dimension_numbers = #tpu.dot_dimension_numbers<[1], [0], [0], [1], [0, 0, 1, 1], [], []>} : vector<8x8xf32>, vector<8x32xf32>, vector<8x32xf32> -> vector<8x32xf32>
    %625 = arith.addf %603, %624 : vector<8x32xf32>
    %cst_247 = arith.constant 0.000000e+00 : f32
    %626 = vector.broadcast %cst_247 : f32 to vector<8x32xf32>
    %627 = vector.extract_strided_slice %532 {offsets = [8, 0], sizes = [8, 8], strides = [1, 1]} : vector<16x32xf32> to vector<8x8xf32>
    %628 = vector.extract_strided_slice %533 {offsets = [8, 0], sizes = [8, 8], strides = [1, 1]} : vector<16x32xf32> to vector<8x8xf32>
    %629 = vector.extract_strided_slice %534 {offsets = [8, 0], sizes = [8, 8], strides = [1, 1]} : vector<16x32xf32> to vector<8x8xf32>
    %cst_248 = arith.constant dense<0.000000e+00> : vector<8x8xf32>
    %630 = tpu.matmul %627, %628, %cst_248 {dimension_numbers = #tpu.dot_dimension_numbers<[1], [1], [0], [0], [0, 0, 1, 0], [], []>} : vector<8x8xf32>, vector<8x8xf32>, vector<8x8xf32> -> vector<8x8xf32>
    %c0_249 = arith.constant 0 : index
    %c0_250 = arith.constant 0 : index
    %c0_251 = arith.constant 0 : index
    %631 = vector.load %arg4[%c0_249, %c0_250, %c0_251] : memref<4x8x8xf32, #tpu.memory_space<vmem>>, vector<1x8x8xf32>
    %632 = vector.shape_cast %631 : vector<1x8x8xf32> to vector<8x8xf32>
    %633 = arith.addf %632, %10 : vector<8x8xf32>
    %634 = arith.addf %630, %633 : vector<8x8xf32>
    %cst_252 = arith.constant dense<0xFF800000> : vector<8xf32>
    %635 = vector.multi_reduction <maximumf>, %634, %cst_252 [1] : vector<8x8xf32> to vector<8xf32>
    %636 = vector.shape_cast %635 : vector<8xf32> to vector<8x1xf32>
    %637 = vector.broadcast %636 : vector<8x1xf32> to vector<8x8xf32>
    %638 = arith.subf %634, %637 : vector<8x8xf32>
    %639 = math.exp %638 : vector<8x8xf32>
    %cst_253 = arith.constant dense<0.000000e+00> : vector<8xf32>
    %640 = vector.multi_reduction <add>, %639, %cst_253 [1] : vector<8x8xf32> to vector<8xf32>
    %641 = vector.shape_cast %640 : vector<8xf32> to vector<8x1xf32>
    %642 = tpu.reciprocal %641 {approx = true} : vector<8x1xf32> -> vector<8x1xf32>
    %643 = vector.broadcast %642 : vector<8x1xf32> to vector<8x8xf32>
    %644 = arith.mulf %639, %643 : vector<8x8xf32>
    %cst_254 = arith.constant dense<0.000000e+00> : vector<8x8xf32>
    %645 = tpu.matmul %644, %629, %cst_254 {dimension_numbers = #tpu.dot_dimension_numbers<[1], [0], [0], [1], [0, 0, 1, 1], [], []>} : vector<8x8xf32>, vector<8x8xf32>, vector<8x8xf32> -> vector<8x8xf32>
    %646 = vector.extract_strided_slice %536 {offsets = [0, 0], sizes = [8, 32], strides = [1, 1]} : vector<32x32xf32> to vector<8x32xf32>
    %cst_255 = arith.constant dense<0.000000e+00> : vector<8x32xf32>
    %647 = tpu.matmul %645, %646, %cst_255 {dimension_numbers = #tpu.dot_dimension_numbers<[1], [0], [0], [1], [0, 0, 1, 1], [], []>} : vector<8x8xf32>, vector<8x32xf32>, vector<8x32xf32> -> vector<8x32xf32>
    %648 = arith.addf %626, %647 : vector<8x32xf32>
    %649 = vector.extract_strided_slice %532 {offsets = [8, 8], sizes = [8, 8], strides = [1, 1]} : vector<16x32xf32> to vector<8x8xf32>
    %650 = vector.extract_strided_slice %533 {offsets = [8, 8], sizes = [8, 8], strides = [1, 1]} : vector<16x32xf32> to vector<8x8xf32>
    %651 = vector.extract_strided_slice %534 {offsets = [8, 8], sizes = [8, 8], strides = [1, 1]} : vector<16x32xf32> to vector<8x8xf32>
    %cst_256 = arith.constant dense<0.000000e+00> : vector<8x8xf32>
    %652 = tpu.matmul %649, %650, %cst_256 {dimension_numbers = #tpu.dot_dimension_numbers<[1], [1], [0], [0], [0, 0, 1, 0], [], []>} : vector<8x8xf32>, vector<8x8xf32>, vector<8x8xf32> -> vector<8x8xf32>
    %c1_257 = arith.constant 1 : index
    %c0_258 = arith.constant 0 : index
    %c0_259 = arith.constant 0 : index
    %653 = vector.load %arg4[%c1_257, %c0_258, %c0_259] : memref<4x8x8xf32, #tpu.memory_space<vmem>>, vector<1x8x8xf32>
    %654 = vector.shape_cast %653 : vector<1x8x8xf32> to vector<8x8xf32>
    %655 = arith.addf %654, %10 : vector<8x8xf32>
    %656 = arith.addf %652, %655 : vector<8x8xf32>
    %cst_260 = arith.constant dense<0xFF800000> : vector<8xf32>
    %657 = vector.multi_reduction <maximumf>, %656, %cst_260 [1] : vector<8x8xf32> to vector<8xf32>
    %658 = vector.shape_cast %657 : vector<8xf32> to vector<8x1xf32>
    %659 = vector.broadcast %658 : vector<8x1xf32> to vector<8x8xf32>
    %660 = arith.subf %656, %659 : vector<8x8xf32>
    %661 = math.exp %660 : vector<8x8xf32>
    %cst_261 = arith.constant dense<0.000000e+00> : vector<8xf32>
    %662 = vector.multi_reduction <add>, %661, %cst_261 [1] : vector<8x8xf32> to vector<8xf32>
    %663 = vector.shape_cast %662 : vector<8xf32> to vector<8x1xf32>
    %664 = tpu.reciprocal %663 {approx = true} : vector<8x1xf32> -> vector<8x1xf32>
    %665 = vector.broadcast %664 : vector<8x1xf32> to vector<8x8xf32>
    %666 = arith.mulf %661, %665 : vector<8x8xf32>
    %cst_262 = arith.constant dense<0.000000e+00> : vector<8x8xf32>
    %667 = tpu.matmul %666, %651, %cst_262 {dimension_numbers = #tpu.dot_dimension_numbers<[1], [0], [0], [1], [0, 0, 1, 1], [], []>} : vector<8x8xf32>, vector<8x8xf32>, vector<8x8xf32> -> vector<8x8xf32>
    %668 = vector.extract_strided_slice %536 {offsets = [8, 0], sizes = [8, 32], strides = [1, 1]} : vector<32x32xf32> to vector<8x32xf32>
    %cst_263 = arith.constant dense<0.000000e+00> : vector<8x32xf32>
    %669 = tpu.matmul %667, %668, %cst_263 {dimension_numbers = #tpu.dot_dimension_numbers<[1], [0], [0], [1], [0, 0, 1, 1], [], []>} : vector<8x8xf32>, vector<8x32xf32>, vector<8x32xf32> -> vector<8x32xf32>
    %670 = arith.addf %648, %669 : vector<8x32xf32>
    %671 = vector.extract_strided_slice %532 {offsets = [8, 16], sizes = [8, 8], strides = [1, 1]} : vector<16x32xf32> to vector<8x8xf32>
    %672 = vector.extract_strided_slice %533 {offsets = [8, 16], sizes = [8, 8], strides = [1, 1]} : vector<16x32xf32> to vector<8x8xf32>
    %673 = vector.extract_strided_slice %534 {offsets = [8, 16], sizes = [8, 8], strides = [1, 1]} : vector<16x32xf32> to vector<8x8xf32>
    %cst_264 = arith.constant dense<0.000000e+00> : vector<8x8xf32>
    %674 = tpu.matmul %671, %672, %cst_264 {dimension_numbers = #tpu.dot_dimension_numbers<[1], [1], [0], [0], [0, 0, 1, 0], [], []>} : vector<8x8xf32>, vector<8x8xf32>, vector<8x8xf32> -> vector<8x8xf32>
    %c2_265 = arith.constant 2 : index
    %c0_266 = arith.constant 0 : index
    %c0_267 = arith.constant 0 : index
    %675 = vector.load %arg4[%c2_265, %c0_266, %c0_267] : memref<4x8x8xf32, #tpu.memory_space<vmem>>, vector<1x8x8xf32>
    %676 = vector.shape_cast %675 : vector<1x8x8xf32> to vector<8x8xf32>
    %677 = arith.addf %676, %10 : vector<8x8xf32>
    %678 = arith.addf %674, %677 : vector<8x8xf32>
    %cst_268 = arith.constant dense<0xFF800000> : vector<8xf32>
    %679 = vector.multi_reduction <maximumf>, %678, %cst_268 [1] : vector<8x8xf32> to vector<8xf32>
    %680 = vector.shape_cast %679 : vector<8xf32> to vector<8x1xf32>
    %681 = vector.broadcast %680 : vector<8x1xf32> to vector<8x8xf32>
    %682 = arith.subf %678, %681 : vector<8x8xf32>
    %683 = math.exp %682 : vector<8x8xf32>
    %cst_269 = arith.constant dense<0.000000e+00> : vector<8xf32>
    %684 = vector.multi_reduction <add>, %683, %cst_269 [1] : vector<8x8xf32> to vector<8xf32>
    %685 = vector.shape_cast %684 : vector<8xf32> to vector<8x1xf32>
    %686 = tpu.reciprocal %685 {approx = true} : vector<8x1xf32> -> vector<8x1xf32>
    %687 = vector.broadcast %686 : vector<8x1xf32> to vector<8x8xf32>
    %688 = arith.mulf %683, %687 : vector<8x8xf32>
    %cst_270 = arith.constant dense<0.000000e+00> : vector<8x8xf32>
    %689 = tpu.matmul %688, %673, %cst_270 {dimension_numbers = #tpu.dot_dimension_numbers<[1], [0], [0], [1], [0, 0, 1, 1], [], []>} : vector<8x8xf32>, vector<8x8xf32>, vector<8x8xf32> -> vector<8x8xf32>
    %690 = vector.extract_strided_slice %536 {offsets = [16, 0], sizes = [8, 32], strides = [1, 1]} : vector<32x32xf32> to vector<8x32xf32>
    %cst_271 = arith.constant dense<0.000000e+00> : vector<8x32xf32>
    %691 = tpu.matmul %689, %690, %cst_271 {dimension_numbers = #tpu.dot_dimension_numbers<[1], [0], [0], [1], [0, 0, 1, 1], [], []>} : vector<8x8xf32>, vector<8x32xf32>, vector<8x32xf32> -> vector<8x32xf32>
    %692 = arith.addf %670, %691 : vector<8x32xf32>
    %693 = vector.extract_strided_slice %532 {offsets = [8, 24], sizes = [8, 8], strides = [1, 1]} : vector<16x32xf32> to vector<8x8xf32>
    %694 = vector.extract_strided_slice %533 {offsets = [8, 24], sizes = [8, 8], strides = [1, 1]} : vector<16x32xf32> to vector<8x8xf32>
    %695 = vector.extract_strided_slice %534 {offsets = [8, 24], sizes = [8, 8], strides = [1, 1]} : vector<16x32xf32> to vector<8x8xf32>
    %cst_272 = arith.constant dense<0.000000e+00> : vector<8x8xf32>
    %696 = tpu.matmul %693, %694, %cst_272 {dimension_numbers = #tpu.dot_dimension_numbers<[1], [1], [0], [0], [0, 0, 1, 0], [], []>} : vector<8x8xf32>, vector<8x8xf32>, vector<8x8xf32> -> vector<8x8xf32>
    %c3_273 = arith.constant 3 : index
    %c0_274 = arith.constant 0 : index
    %c0_275 = arith.constant 0 : index
    %697 = vector.load %arg4[%c3_273, %c0_274, %c0_275] : memref<4x8x8xf32, #tpu.memory_space<vmem>>, vector<1x8x8xf32>
    %698 = vector.shape_cast %697 : vector<1x8x8xf32> to vector<8x8xf32>
    %699 = arith.addf %698, %10 : vector<8x8xf32>
    %700 = arith.addf %696, %699 : vector<8x8xf32>
    %cst_276 = arith.constant dense<0xFF800000> : vector<8xf32>
    %701 = vector.multi_reduction <maximumf>, %700, %cst_276 [1] : vector<8x8xf32> to vector<8xf32>
    %702 = vector.shape_cast %701 : vector<8xf32> to vector<8x1xf32>
    %703 = vector.broadcast %702 : vector<8x1xf32> to vector<8x8xf32>
    %704 = arith.subf %700, %703 : vector<8x8xf32>
    %705 = math.exp %704 : vector<8x8xf32>
    %cst_277 = arith.constant dense<0.000000e+00> : vector<8xf32>
    %706 = vector.multi_reduction <add>, %705, %cst_277 [1] : vector<8x8xf32> to vector<8xf32>
    %707 = vector.shape_cast %706 : vector<8xf32> to vector<8x1xf32>
    %708 = tpu.reciprocal %707 {approx = true} : vector<8x1xf32> -> vector<8x1xf32>
    %709 = vector.broadcast %708 : vector<8x1xf32> to vector<8x8xf32>
    %710 = arith.mulf %705, %709 : vector<8x8xf32>
    %cst_278 = arith.constant dense<0.000000e+00> : vector<8x8xf32>
    %711 = tpu.matmul %710, %695, %cst_278 {dimension_numbers = #tpu.dot_dimension_numbers<[1], [0], [0], [1], [0, 0, 1, 1], [], []>} : vector<8x8xf32>, vector<8x8xf32>, vector<8x8xf32> -> vector<8x8xf32>
    %712 = vector.extract_strided_slice %536 {offsets = [24, 0], sizes = [8, 32], strides = [1, 1]} : vector<32x32xf32> to vector<8x32xf32>
    %cst_279 = arith.constant dense<0.000000e+00> : vector<8x32xf32>
    %713 = tpu.matmul %711, %712, %cst_279 {dimension_numbers = #tpu.dot_dimension_numbers<[1], [0], [0], [1], [0, 0, 1, 1], [], []>} : vector<8x8xf32>, vector<8x32xf32>, vector<8x32xf32> -> vector<8x32xf32>
    %714 = arith.addf %692, %713 : vector<8x32xf32>
    %715 = tpu.concatenate %625, %714 in 0 : vector<8x32xf32>, vector<8x32xf32> -> vector<16x32xf32>
    %716 = arith.addf %18, %715 : vector<16x32xf32>
    %c0_280 = arith.constant 0 : index
    %c0_281 = arith.constant 0 : index
    %c0_282 = arith.constant 0 : index
    %717 = vector.load %arg15[%c0_280, %c0_281, %c0_282] : memref<2x1x32xf32, #tpu.memory_space<vmem>>, vector<1x1x32xf32>
    %718 = vector.shape_cast %717 : vector<1x1x32xf32> to vector<1x32xf32>
    %719 = arith.mulf %716, %716 : vector<16x32xf32>
    %cst_283 = arith.constant dense<0.000000e+00> : vector<16xf32>
    %720 = vector.multi_reduction <add>, %719, %cst_283 [1] : vector<16x32xf32> to vector<16xf32>
    %721 = vector.shape_cast %720 : vector<16xf32> to vector<16x1xf32>
    %cst_284 = arith.constant 3.200000e+01 : f32
    %722 = vector.broadcast %cst_284 : f32 to vector<16x1xf32>
    %723 = arith.divf %721, %722 : vector<16x1xf32>
    %cst_285 = arith.constant 9.99999997E-7 : f32
    %724 = vector.broadcast %cst_285 : f32 to vector<16x1xf32>
    %725 = arith.addf %723, %724 : vector<16x1xf32>
    %726 = math.rsqrt %725 : vector<16x1xf32>
    %727 = vector.broadcast %726 : vector<16x1xf32> to vector<16x32xf32>
    %728 = arith.mulf %716, %727 : vector<16x32xf32>
    %729 = vector.broadcast %718 : vector<1x32xf32> to vector<16x32xf32>
    %730 = arith.mulf %729, %728 : vector<16x32xf32>
    %c0_286 = arith.constant 0 : index
    %c0_287 = arith.constant 0 : index
    %c0_288 = arith.constant 0 : index
    %731 = vector.load %arg16[%c0_286, %c0_287, %c0_288] : memref<2x32x32xf32, #tpu.memory_space<vmem>>, vector<1x32x32xf32>
    %732 = vector.shape_cast %731 : vector<1x32x32xf32> to vector<32x32xf32>
    %cst_289 = arith.constant dense<0.000000e+00> : vector<16x32xf32>
    %733 = tpu.matmul %730, %732, %cst_289 {dimension_numbers = #tpu.dot_dimension_numbers<[1], [0], [0], [1], [0, 0, 1, 1], [], []>} : vector<16x32xf32>, vector<32x32xf32>, vector<16x32xf32> -> vector<16x32xf32>
    %c0_290 = arith.constant 0 : index
    %c0_291 = arith.constant 0 : index
    %c0_292 = arith.constant 0 : index
    %734 = vector.load %arg17[%c0_290, %c0_291, %c0_292] : memref<2x32x64xf32, #tpu.memory_space<vmem>>, vector<1x32x64xf32>
    %735 = vector.shape_cast %734 : vector<1x32x64xf32> to vector<32x64xf32>
    %cst_293 = arith.constant dense<0.000000e+00> : vector<16x64xf32>
    %736 = tpu.matmul %513, %735, %cst_293 {dimension_numbers = #tpu.dot_dimension_numbers<[1], [0], [0], [1], [0, 0, 1, 1], [], []>} : vector<16x32xf32>, vector<32x64xf32>, vector<16x64xf32> -> vector<16x64xf32>
    %737 = vector.extract_strided_slice %736 {offsets = [0, 0], sizes = [16, 32], strides = [1, 1]} : vector<16x64xf32> to vector<16x32xf32>
    %738 = vector.extract_strided_slice %736 {offsets = [0, 32], sizes = [16, 32], strides = [1, 1]} : vector<16x64xf32> to vector<16x32xf32>
    %c0_294 = arith.constant 0 : index
    %c0_295 = arith.constant 0 : index
    %c0_296 = arith.constant 0 : index
    %739 = vector.load %arg18[%c0_294, %c0_295, %c0_296] : memref<2x32x32xf32, #tpu.memory_space<vmem>>, vector<1x32x32xf32>
    %740 = vector.shape_cast %739 : vector<1x32x32xf32> to vector<32x32xf32>
    %cst_297 = arith.constant 0.000000e+00 : f32
    %741 = vector.broadcast %cst_297 : f32 to vector<8x32xf32>
    %742 = vector.extract_strided_slice %733 {offsets = [0, 0], sizes = [8, 8], strides = [1, 1]} : vector<16x32xf32> to vector<8x8xf32>
    %743 = vector.extract_strided_slice %737 {offsets = [0, 0], sizes = [8, 8], strides = [1, 1]} : vector<16x32xf32> to vector<8x8xf32>
    %744 = vector.extract_strided_slice %738 {offsets = [0, 0], sizes = [8, 8], strides = [1, 1]} : vector<16x32xf32> to vector<8x8xf32>
    %cst_298 = arith.constant dense<0.000000e+00> : vector<8x8xf32>
    %745 = tpu.matmul %742, %743, %cst_298 {dimension_numbers = #tpu.dot_dimension_numbers<[1], [1], [0], [0], [0, 0, 1, 0], [], []>} : vector<8x8xf32>, vector<8x8xf32>, vector<8x8xf32> -> vector<8x8xf32>
    %746 = vector.extract_strided_slice %4 {offsets = [0, 0], sizes = [1, 8], strides = [1, 1]} : vector<2x8xf32> to vector<1x8xf32>
    %747 = vector.broadcast %746 : vector<1x8xf32> to vector<8x8xf32>
    %748 = arith.addf %745, %747 : vector<8x8xf32>
    %cst_299 = arith.constant dense<0xFF800000> : vector<8xf32>
    %749 = vector.multi_reduction <maximumf>, %748, %cst_299 [1] : vector<8x8xf32> to vector<8xf32>
    %750 = vector.shape_cast %749 : vector<8xf32> to vector<8x1xf32>
    %751 = vector.broadcast %750 : vector<8x1xf32> to vector<8x8xf32>
    %752 = arith.subf %748, %751 : vector<8x8xf32>
    %753 = math.exp %752 : vector<8x8xf32>
    %cst_300 = arith.constant dense<0.000000e+00> : vector<8xf32>
    %754 = vector.multi_reduction <add>, %753, %cst_300 [1] : vector<8x8xf32> to vector<8xf32>
    %755 = vector.shape_cast %754 : vector<8xf32> to vector<8x1xf32>
    %756 = tpu.reciprocal %755 {approx = true} : vector<8x1xf32> -> vector<8x1xf32>
    %757 = vector.broadcast %756 : vector<8x1xf32> to vector<8x8xf32>
    %758 = arith.mulf %753, %757 : vector<8x8xf32>
    %cst_301 = arith.constant dense<0.000000e+00> : vector<8x8xf32>
    %759 = tpu.matmul %758, %744, %cst_301 {dimension_numbers = #tpu.dot_dimension_numbers<[1], [0], [0], [1], [0, 0, 1, 1], [], []>} : vector<8x8xf32>, vector<8x8xf32>, vector<8x8xf32> -> vector<8x8xf32>
    %760 = vector.extract_strided_slice %740 {offsets = [0, 0], sizes = [8, 32], strides = [1, 1]} : vector<32x32xf32> to vector<8x32xf32>
    %cst_302 = arith.constant dense<0.000000e+00> : vector<8x32xf32>
    %761 = tpu.matmul %759, %760, %cst_302 {dimension_numbers = #tpu.dot_dimension_numbers<[1], [0], [0], [1], [0, 0, 1, 1], [], []>} : vector<8x8xf32>, vector<8x32xf32>, vector<8x32xf32> -> vector<8x32xf32>
    %762 = arith.addf %741, %761 : vector<8x32xf32>
    %763 = vector.extract_strided_slice %733 {offsets = [0, 8], sizes = [8, 8], strides = [1, 1]} : vector<16x32xf32> to vector<8x8xf32>
    %764 = vector.extract_strided_slice %737 {offsets = [0, 8], sizes = [8, 8], strides = [1, 1]} : vector<16x32xf32> to vector<8x8xf32>
    %765 = vector.extract_strided_slice %738 {offsets = [0, 8], sizes = [8, 8], strides = [1, 1]} : vector<16x32xf32> to vector<8x8xf32>
    %cst_303 = arith.constant dense<0.000000e+00> : vector<8x8xf32>
    %766 = tpu.matmul %763, %764, %cst_303 {dimension_numbers = #tpu.dot_dimension_numbers<[1], [1], [0], [0], [0, 0, 1, 0], [], []>} : vector<8x8xf32>, vector<8x8xf32>, vector<8x8xf32> -> vector<8x8xf32>
    %767 = vector.extract_strided_slice %4 {offsets = [0, 0], sizes = [1, 8], strides = [1, 1]} : vector<2x8xf32> to vector<1x8xf32>
    %768 = vector.broadcast %767 : vector<1x8xf32> to vector<8x8xf32>
    %769 = arith.addf %766, %768 : vector<8x8xf32>
    %cst_304 = arith.constant dense<0xFF800000> : vector<8xf32>
    %770 = vector.multi_reduction <maximumf>, %769, %cst_304 [1] : vector<8x8xf32> to vector<8xf32>
    %771 = vector.shape_cast %770 : vector<8xf32> to vector<8x1xf32>
    %772 = vector.broadcast %771 : vector<8x1xf32> to vector<8x8xf32>
    %773 = arith.subf %769, %772 : vector<8x8xf32>
    %774 = math.exp %773 : vector<8x8xf32>
    %cst_305 = arith.constant dense<0.000000e+00> : vector<8xf32>
    %775 = vector.multi_reduction <add>, %774, %cst_305 [1] : vector<8x8xf32> to vector<8xf32>
    %776 = vector.shape_cast %775 : vector<8xf32> to vector<8x1xf32>
    %777 = tpu.reciprocal %776 {approx = true} : vector<8x1xf32> -> vector<8x1xf32>
    %778 = vector.broadcast %777 : vector<8x1xf32> to vector<8x8xf32>
    %779 = arith.mulf %774, %778 : vector<8x8xf32>
    %cst_306 = arith.constant dense<0.000000e+00> : vector<8x8xf32>
    %780 = tpu.matmul %779, %765, %cst_306 {dimension_numbers = #tpu.dot_dimension_numbers<[1], [0], [0], [1], [0, 0, 1, 1], [], []>} : vector<8x8xf32>, vector<8x8xf32>, vector<8x8xf32> -> vector<8x8xf32>
    %781 = vector.extract_strided_slice %740 {offsets = [8, 0], sizes = [8, 32], strides = [1, 1]} : vector<32x32xf32> to vector<8x32xf32>
    %cst_307 = arith.constant dense<0.000000e+00> : vector<8x32xf32>
    %782 = tpu.matmul %780, %781, %cst_307 {dimension_numbers = #tpu.dot_dimension_numbers<[1], [0], [0], [1], [0, 0, 1, 1], [], []>} : vector<8x8xf32>, vector<8x32xf32>, vector<8x32xf32> -> vector<8x32xf32>
    %783 = arith.addf %762, %782 : vector<8x32xf32>
    %784 = vector.extract_strided_slice %733 {offsets = [0, 16], sizes = [8, 8], strides = [1, 1]} : vector<16x32xf32> to vector<8x8xf32>
    %785 = vector.extract_strided_slice %737 {offsets = [0, 16], sizes = [8, 8], strides = [1, 1]} : vector<16x32xf32> to vector<8x8xf32>
    %786 = vector.extract_strided_slice %738 {offsets = [0, 16], sizes = [8, 8], strides = [1, 1]} : vector<16x32xf32> to vector<8x8xf32>
    %cst_308 = arith.constant dense<0.000000e+00> : vector<8x8xf32>
    %787 = tpu.matmul %784, %785, %cst_308 {dimension_numbers = #tpu.dot_dimension_numbers<[1], [1], [0], [0], [0, 0, 1, 0], [], []>} : vector<8x8xf32>, vector<8x8xf32>, vector<8x8xf32> -> vector<8x8xf32>
    %788 = vector.extract_strided_slice %4 {offsets = [0, 0], sizes = [1, 8], strides = [1, 1]} : vector<2x8xf32> to vector<1x8xf32>
    %789 = vector.broadcast %788 : vector<1x8xf32> to vector<8x8xf32>
    %790 = arith.addf %787, %789 : vector<8x8xf32>
    %cst_309 = arith.constant dense<0xFF800000> : vector<8xf32>
    %791 = vector.multi_reduction <maximumf>, %790, %cst_309 [1] : vector<8x8xf32> to vector<8xf32>
    %792 = vector.shape_cast %791 : vector<8xf32> to vector<8x1xf32>
    %793 = vector.broadcast %792 : vector<8x1xf32> to vector<8x8xf32>
    %794 = arith.subf %790, %793 : vector<8x8xf32>
    %795 = math.exp %794 : vector<8x8xf32>
    %cst_310 = arith.constant dense<0.000000e+00> : vector<8xf32>
    %796 = vector.multi_reduction <add>, %795, %cst_310 [1] : vector<8x8xf32> to vector<8xf32>
    %797 = vector.shape_cast %796 : vector<8xf32> to vector<8x1xf32>
    %798 = tpu.reciprocal %797 {approx = true} : vector<8x1xf32> -> vector<8x1xf32>
    %799 = vector.broadcast %798 : vector<8x1xf32> to vector<8x8xf32>
    %800 = arith.mulf %795, %799 : vector<8x8xf32>
    %cst_311 = arith.constant dense<0.000000e+00> : vector<8x8xf32>
    %801 = tpu.matmul %800, %786, %cst_311 {dimension_numbers = #tpu.dot_dimension_numbers<[1], [0], [0], [1], [0, 0, 1, 1], [], []>} : vector<8x8xf32>, vector<8x8xf32>, vector<8x8xf32> -> vector<8x8xf32>
    %802 = vector.extract_strided_slice %740 {offsets = [16, 0], sizes = [8, 32], strides = [1, 1]} : vector<32x32xf32> to vector<8x32xf32>
    %cst_312 = arith.constant dense<0.000000e+00> : vector<8x32xf32>
    %803 = tpu.matmul %801, %802, %cst_312 {dimension_numbers = #tpu.dot_dimension_numbers<[1], [0], [0], [1], [0, 0, 1, 1], [], []>} : vector<8x8xf32>, vector<8x32xf32>, vector<8x32xf32> -> vector<8x32xf32>
    %804 = arith.addf %783, %803 : vector<8x32xf32>
    %805 = vector.extract_strided_slice %733 {offsets = [0, 24], sizes = [8, 8], strides = [1, 1]} : vector<16x32xf32> to vector<8x8xf32>
    %806 = vector.extract_strided_slice %737 {offsets = [0, 24], sizes = [8, 8], strides = [1, 1]} : vector<16x32xf32> to vector<8x8xf32>
    %807 = vector.extract_strided_slice %738 {offsets = [0, 24], sizes = [8, 8], strides = [1, 1]} : vector<16x32xf32> to vector<8x8xf32>
    %cst_313 = arith.constant dense<0.000000e+00> : vector<8x8xf32>
    %808 = tpu.matmul %805, %806, %cst_313 {dimension_numbers = #tpu.dot_dimension_numbers<[1], [1], [0], [0], [0, 0, 1, 0], [], []>} : vector<8x8xf32>, vector<8x8xf32>, vector<8x8xf32> -> vector<8x8xf32>
    %809 = vector.extract_strided_slice %4 {offsets = [0, 0], sizes = [1, 8], strides = [1, 1]} : vector<2x8xf32> to vector<1x8xf32>
    %810 = vector.broadcast %809 : vector<1x8xf32> to vector<8x8xf32>
    %811 = arith.addf %808, %810 : vector<8x8xf32>
    %cst_314 = arith.constant dense<0xFF800000> : vector<8xf32>
    %812 = vector.multi_reduction <maximumf>, %811, %cst_314 [1] : vector<8x8xf32> to vector<8xf32>
    %813 = vector.shape_cast %812 : vector<8xf32> to vector<8x1xf32>
    %814 = vector.broadcast %813 : vector<8x1xf32> to vector<8x8xf32>
    %815 = arith.subf %811, %814 : vector<8x8xf32>
    %816 = math.exp %815 : vector<8x8xf32>
    %cst_315 = arith.constant dense<0.000000e+00> : vector<8xf32>
    %817 = vector.multi_reduction <add>, %816, %cst_315 [1] : vector<8x8xf32> to vector<8xf32>
    %818 = vector.shape_cast %817 : vector<8xf32> to vector<8x1xf32>
    %819 = tpu.reciprocal %818 {approx = true} : vector<8x1xf32> -> vector<8x1xf32>
    %820 = vector.broadcast %819 : vector<8x1xf32> to vector<8x8xf32>
    %821 = arith.mulf %816, %820 : vector<8x8xf32>
    %cst_316 = arith.constant dense<0.000000e+00> : vector<8x8xf32>
    %822 = tpu.matmul %821, %807, %cst_316 {dimension_numbers = #tpu.dot_dimension_numbers<[1], [0], [0], [1], [0, 0, 1, 1], [], []>} : vector<8x8xf32>, vector<8x8xf32>, vector<8x8xf32> -> vector<8x8xf32>
    %823 = vector.extract_strided_slice %740 {offsets = [24, 0], sizes = [8, 32], strides = [1, 1]} : vector<32x32xf32> to vector<8x32xf32>
    %cst_317 = arith.constant dense<0.000000e+00> : vector<8x32xf32>
    %824 = tpu.matmul %822, %823, %cst_317 {dimension_numbers = #tpu.dot_dimension_numbers<[1], [0], [0], [1], [0, 0, 1, 1], [], []>} : vector<8x8xf32>, vector<8x32xf32>, vector<8x32xf32> -> vector<8x32xf32>
    %825 = arith.addf %804, %824 : vector<8x32xf32>
    %cst_318 = arith.constant 0.000000e+00 : f32
    %826 = vector.broadcast %cst_318 : f32 to vector<8x32xf32>
    %827 = vector.extract_strided_slice %733 {offsets = [8, 0], sizes = [8, 8], strides = [1, 1]} : vector<16x32xf32> to vector<8x8xf32>
    %828 = vector.extract_strided_slice %737 {offsets = [8, 0], sizes = [8, 8], strides = [1, 1]} : vector<16x32xf32> to vector<8x8xf32>
    %829 = vector.extract_strided_slice %738 {offsets = [8, 0], sizes = [8, 8], strides = [1, 1]} : vector<16x32xf32> to vector<8x8xf32>
    %cst_319 = arith.constant dense<0.000000e+00> : vector<8x8xf32>
    %830 = tpu.matmul %827, %828, %cst_319 {dimension_numbers = #tpu.dot_dimension_numbers<[1], [1], [0], [0], [0, 0, 1, 0], [], []>} : vector<8x8xf32>, vector<8x8xf32>, vector<8x8xf32> -> vector<8x8xf32>
    %831 = vector.extract_strided_slice %4 {offsets = [1, 0], sizes = [1, 8], strides = [1, 1]} : vector<2x8xf32> to vector<1x8xf32>
    %832 = vector.broadcast %831 : vector<1x8xf32> to vector<8x8xf32>
    %833 = arith.addf %830, %832 : vector<8x8xf32>
    %cst_320 = arith.constant dense<0xFF800000> : vector<8xf32>
    %834 = vector.multi_reduction <maximumf>, %833, %cst_320 [1] : vector<8x8xf32> to vector<8xf32>
    %835 = vector.shape_cast %834 : vector<8xf32> to vector<8x1xf32>
    %836 = vector.broadcast %835 : vector<8x1xf32> to vector<8x8xf32>
    %837 = arith.subf %833, %836 : vector<8x8xf32>
    %838 = math.exp %837 : vector<8x8xf32>
    %cst_321 = arith.constant dense<0.000000e+00> : vector<8xf32>
    %839 = vector.multi_reduction <add>, %838, %cst_321 [1] : vector<8x8xf32> to vector<8xf32>
    %840 = vector.shape_cast %839 : vector<8xf32> to vector<8x1xf32>
    %841 = tpu.reciprocal %840 {approx = true} : vector<8x1xf32> -> vector<8x1xf32>
    %842 = vector.broadcast %841 : vector<8x1xf32> to vector<8x8xf32>
    %843 = arith.mulf %838, %842 : vector<8x8xf32>
    %cst_322 = arith.constant dense<0.000000e+00> : vector<8x8xf32>
    %844 = tpu.matmul %843, %829, %cst_322 {dimension_numbers = #tpu.dot_dimension_numbers<[1], [0], [0], [1], [0, 0, 1, 1], [], []>} : vector<8x8xf32>, vector<8x8xf32>, vector<8x8xf32> -> vector<8x8xf32>
    %845 = vector.extract_strided_slice %740 {offsets = [0, 0], sizes = [8, 32], strides = [1, 1]} : vector<32x32xf32> to vector<8x32xf32>
    %cst_323 = arith.constant dense<0.000000e+00> : vector<8x32xf32>
    %846 = tpu.matmul %844, %845, %cst_323 {dimension_numbers = #tpu.dot_dimension_numbers<[1], [0], [0], [1], [0, 0, 1, 1], [], []>} : vector<8x8xf32>, vector<8x32xf32>, vector<8x32xf32> -> vector<8x32xf32>
    %847 = arith.addf %826, %846 : vector<8x32xf32>
    %848 = vector.extract_strided_slice %733 {offsets = [8, 8], sizes = [8, 8], strides = [1, 1]} : vector<16x32xf32> to vector<8x8xf32>
    %849 = vector.extract_strided_slice %737 {offsets = [8, 8], sizes = [8, 8], strides = [1, 1]} : vector<16x32xf32> to vector<8x8xf32>
    %850 = vector.extract_strided_slice %738 {offsets = [8, 8], sizes = [8, 8], strides = [1, 1]} : vector<16x32xf32> to vector<8x8xf32>
    %cst_324 = arith.constant dense<0.000000e+00> : vector<8x8xf32>
    %851 = tpu.matmul %848, %849, %cst_324 {dimension_numbers = #tpu.dot_dimension_numbers<[1], [1], [0], [0], [0, 0, 1, 0], [], []>} : vector<8x8xf32>, vector<8x8xf32>, vector<8x8xf32> -> vector<8x8xf32>
    %852 = vector.extract_strided_slice %4 {offsets = [1, 0], sizes = [1, 8], strides = [1, 1]} : vector<2x8xf32> to vector<1x8xf32>
    %853 = vector.broadcast %852 : vector<1x8xf32> to vector<8x8xf32>
    %854 = arith.addf %851, %853 : vector<8x8xf32>
    %cst_325 = arith.constant dense<0xFF800000> : vector<8xf32>
    %855 = vector.multi_reduction <maximumf>, %854, %cst_325 [1] : vector<8x8xf32> to vector<8xf32>
    %856 = vector.shape_cast %855 : vector<8xf32> to vector<8x1xf32>
    %857 = vector.broadcast %856 : vector<8x1xf32> to vector<8x8xf32>
    %858 = arith.subf %854, %857 : vector<8x8xf32>
    %859 = math.exp %858 : vector<8x8xf32>
    %cst_326 = arith.constant dense<0.000000e+00> : vector<8xf32>
    %860 = vector.multi_reduction <add>, %859, %cst_326 [1] : vector<8x8xf32> to vector<8xf32>
    %861 = vector.shape_cast %860 : vector<8xf32> to vector<8x1xf32>
    %862 = tpu.reciprocal %861 {approx = true} : vector<8x1xf32> -> vector<8x1xf32>
    %863 = vector.broadcast %862 : vector<8x1xf32> to vector<8x8xf32>
    %864 = arith.mulf %859, %863 : vector<8x8xf32>
    %cst_327 = arith.constant dense<0.000000e+00> : vector<8x8xf32>
    %865 = tpu.matmul %864, %850, %cst_327 {dimension_numbers = #tpu.dot_dimension_numbers<[1], [0], [0], [1], [0, 0, 1, 1], [], []>} : vector<8x8xf32>, vector<8x8xf32>, vector<8x8xf32> -> vector<8x8xf32>
    %866 = vector.extract_strided_slice %740 {offsets = [8, 0], sizes = [8, 32], strides = [1, 1]} : vector<32x32xf32> to vector<8x32xf32>
    %cst_328 = arith.constant dense<0.000000e+00> : vector<8x32xf32>
    %867 = tpu.matmul %865, %866, %cst_328 {dimension_numbers = #tpu.dot_dimension_numbers<[1], [0], [0], [1], [0, 0, 1, 1], [], []>} : vector<8x8xf32>, vector<8x32xf32>, vector<8x32xf32> -> vector<8x32xf32>
    %868 = arith.addf %847, %867 : vector<8x32xf32>
    %869 = vector.extract_strided_slice %733 {offsets = [8, 16], sizes = [8, 8], strides = [1, 1]} : vector<16x32xf32> to vector<8x8xf32>
    %870 = vector.extract_strided_slice %737 {offsets = [8, 16], sizes = [8, 8], strides = [1, 1]} : vector<16x32xf32> to vector<8x8xf32>
    %871 = vector.extract_strided_slice %738 {offsets = [8, 16], sizes = [8, 8], strides = [1, 1]} : vector<16x32xf32> to vector<8x8xf32>
    %cst_329 = arith.constant dense<0.000000e+00> : vector<8x8xf32>
    %872 = tpu.matmul %869, %870, %cst_329 {dimension_numbers = #tpu.dot_dimension_numbers<[1], [1], [0], [0], [0, 0, 1, 0], [], []>} : vector<8x8xf32>, vector<8x8xf32>, vector<8x8xf32> -> vector<8x8xf32>
    %873 = vector.extract_strided_slice %4 {offsets = [1, 0], sizes = [1, 8], strides = [1, 1]} : vector<2x8xf32> to vector<1x8xf32>
    %874 = vector.broadcast %873 : vector<1x8xf32> to vector<8x8xf32>
    %875 = arith.addf %872, %874 : vector<8x8xf32>
    %cst_330 = arith.constant dense<0xFF800000> : vector<8xf32>
    %876 = vector.multi_reduction <maximumf>, %875, %cst_330 [1] : vector<8x8xf32> to vector<8xf32>
    %877 = vector.shape_cast %876 : vector<8xf32> to vector<8x1xf32>
    %878 = vector.broadcast %877 : vector<8x1xf32> to vector<8x8xf32>
    %879 = arith.subf %875, %878 : vector<8x8xf32>
    %880 = math.exp %879 : vector<8x8xf32>
    %cst_331 = arith.constant dense<0.000000e+00> : vector<8xf32>
    %881 = vector.multi_reduction <add>, %880, %cst_331 [1] : vector<8x8xf32> to vector<8xf32>
    %882 = vector.shape_cast %881 : vector<8xf32> to vector<8x1xf32>
    %883 = tpu.reciprocal %882 {approx = true} : vector<8x1xf32> -> vector<8x1xf32>
    %884 = vector.broadcast %883 : vector<8x1xf32> to vector<8x8xf32>
    %885 = arith.mulf %880, %884 : vector<8x8xf32>
    %cst_332 = arith.constant dense<0.000000e+00> : vector<8x8xf32>
    %886 = tpu.matmul %885, %871, %cst_332 {dimension_numbers = #tpu.dot_dimension_numbers<[1], [0], [0], [1], [0, 0, 1, 1], [], []>} : vector<8x8xf32>, vector<8x8xf32>, vector<8x8xf32> -> vector<8x8xf32>
    %887 = vector.extract_strided_slice %740 {offsets = [16, 0], sizes = [8, 32], strides = [1, 1]} : vector<32x32xf32> to vector<8x32xf32>
    %cst_333 = arith.constant dense<0.000000e+00> : vector<8x32xf32>
    %888 = tpu.matmul %886, %887, %cst_333 {dimension_numbers = #tpu.dot_dimension_numbers<[1], [0], [0], [1], [0, 0, 1, 1], [], []>} : vector<8x8xf32>, vector<8x32xf32>, vector<8x32xf32> -> vector<8x32xf32>
    %889 = arith.addf %868, %888 : vector<8x32xf32>
    %890 = vector.extract_strided_slice %733 {offsets = [8, 24], sizes = [8, 8], strides = [1, 1]} : vector<16x32xf32> to vector<8x8xf32>
    %891 = vector.extract_strided_slice %737 {offsets = [8, 24], sizes = [8, 8], strides = [1, 1]} : vector<16x32xf32> to vector<8x8xf32>
    %892 = vector.extract_strided_slice %738 {offsets = [8, 24], sizes = [8, 8], strides = [1, 1]} : vector<16x32xf32> to vector<8x8xf32>
    %cst_334 = arith.constant dense<0.000000e+00> : vector<8x8xf32>
    %893 = tpu.matmul %890, %891, %cst_334 {dimension_numbers = #tpu.dot_dimension_numbers<[1], [1], [0], [0], [0, 0, 1, 0], [], []>} : vector<8x8xf32>, vector<8x8xf32>, vector<8x8xf32> -> vector<8x8xf32>
    %894 = vector.extract_strided_slice %4 {offsets = [1, 0], sizes = [1, 8], strides = [1, 1]} : vector<2x8xf32> to vector<1x8xf32>
    %895 = vector.broadcast %894 : vector<1x8xf32> to vector<8x8xf32>
    %896 = arith.addf %893, %895 : vector<8x8xf32>
    %cst_335 = arith.constant dense<0xFF800000> : vector<8xf32>
    %897 = vector.multi_reduction <maximumf>, %896, %cst_335 [1] : vector<8x8xf32> to vector<8xf32>
    %898 = vector.shape_cast %897 : vector<8xf32> to vector<8x1xf32>
    %899 = vector.broadcast %898 : vector<8x1xf32> to vector<8x8xf32>
    %900 = arith.subf %896, %899 : vector<8x8xf32>
    %901 = math.exp %900 : vector<8x8xf32>
    %cst_336 = arith.constant dense<0.000000e+00> : vector<8xf32>
    %902 = vector.multi_reduction <add>, %901, %cst_336 [1] : vector<8x8xf32> to vector<8xf32>
    %903 = vector.shape_cast %902 : vector<8xf32> to vector<8x1xf32>
    %904 = tpu.reciprocal %903 {approx = true} : vector<8x1xf32> -> vector<8x1xf32>
    %905 = vector.broadcast %904 : vector<8x1xf32> to vector<8x8xf32>
    %906 = arith.mulf %901, %905 : vector<8x8xf32>
    %cst_337 = arith.constant dense<0.000000e+00> : vector<8x8xf32>
    %907 = tpu.matmul %906, %892, %cst_337 {dimension_numbers = #tpu.dot_dimension_numbers<[1], [0], [0], [1], [0, 0, 1, 1], [], []>} : vector<8x8xf32>, vector<8x8xf32>, vector<8x8xf32> -> vector<8x8xf32>
    %908 = vector.extract_strided_slice %740 {offsets = [24, 0], sizes = [8, 32], strides = [1, 1]} : vector<32x32xf32> to vector<8x32xf32>
    %cst_338 = arith.constant dense<0.000000e+00> : vector<8x32xf32>
    %909 = tpu.matmul %907, %908, %cst_338 {dimension_numbers = #tpu.dot_dimension_numbers<[1], [0], [0], [1], [0, 0, 1, 1], [], []>} : vector<8x8xf32>, vector<8x32xf32>, vector<8x32xf32> -> vector<8x32xf32>
    %910 = arith.addf %889, %909 : vector<8x32xf32>
    %911 = tpu.concatenate %825, %910 in 0 : vector<8x32xf32>, vector<8x32xf32> -> vector<16x32xf32>
    %912 = arith.addf %716, %911 : vector<16x32xf32>
    %c0_339 = arith.constant 0 : index
    %c0_340 = arith.constant 0 : index
    %c0_341 = arith.constant 0 : index
    %913 = vector.load %arg19[%c0_339, %c0_340, %c0_341] : memref<2x1x32xf32, #tpu.memory_space<vmem>>, vector<1x1x32xf32>
    %914 = vector.shape_cast %913 : vector<1x1x32xf32> to vector<1x32xf32>
    %915 = arith.mulf %912, %912 : vector<16x32xf32>
    %cst_342 = arith.constant dense<0.000000e+00> : vector<16xf32>
    %916 = vector.multi_reduction <add>, %915, %cst_342 [1] : vector<16x32xf32> to vector<16xf32>
    %917 = vector.shape_cast %916 : vector<16xf32> to vector<16x1xf32>
    %cst_343 = arith.constant 3.200000e+01 : f32
    %918 = vector.broadcast %cst_343 : f32 to vector<16x1xf32>
    %919 = arith.divf %917, %918 : vector<16x1xf32>
    %cst_344 = arith.constant 9.99999997E-7 : f32
    %920 = vector.broadcast %cst_344 : f32 to vector<16x1xf32>
    %921 = arith.addf %919, %920 : vector<16x1xf32>
    %922 = math.rsqrt %921 : vector<16x1xf32>
    %923 = vector.broadcast %922 : vector<16x1xf32> to vector<16x32xf32>
    %924 = arith.mulf %912, %923 : vector<16x32xf32>
    %925 = vector.broadcast %914 : vector<1x32xf32> to vector<16x32xf32>
    %926 = arith.mulf %925, %924 : vector<16x32xf32>
    %c0_345 = arith.constant 0 : index
    %c0_346 = arith.constant 0 : index
    %c0_347 = arith.constant 0 : index
    %927 = vector.load %arg20[%c0_345, %c0_346, %c0_347] : memref<2x32x64xf32, #tpu.memory_space<vmem>>, vector<1x32x64xf32>
    %928 = vector.shape_cast %927 : vector<1x32x64xf32> to vector<32x64xf32>
    %cst_348 = arith.constant dense<0.000000e+00> : vector<16x64xf32>
    %929 = tpu.matmul %926, %928, %cst_348 {dimension_numbers = #tpu.dot_dimension_numbers<[1], [0], [0], [1], [0, 0, 1, 1], [], []>} : vector<16x32xf32>, vector<32x64xf32>, vector<16x64xf32> -> vector<16x64xf32>
    %cst_349 = arith.constant 0.000000e+00 : f32
    %930 = vector.broadcast %cst_349 : f32 to vector<16x64xf32>
    %931 = arith.maximumf %929, %930 : vector<16x64xf32>
    %c0_350 = arith.constant 0 : index
    %c0_351 = arith.constant 0 : index
    %c0_352 = arith.constant 0 : index
    %932 = vector.load %arg21[%c0_350, %c0_351, %c0_352] : memref<2x64x32xf32, #tpu.memory_space<vmem>>, vector<1x64x32xf32>
    %933 = vector.shape_cast %932 : vector<1x64x32xf32> to vector<64x32xf32>
    %cst_353 = arith.constant dense<0.000000e+00> : vector<16x32xf32>
    %934 = tpu.matmul %931, %933, %cst_353 {dimension_numbers = #tpu.dot_dimension_numbers<[1], [0], [0], [1], [0, 0, 1, 1], [], []>} : vector<16x64xf32>, vector<64x32xf32>, vector<16x32xf32> -> vector<16x32xf32>
    %935 = arith.addf %912, %934 : vector<16x32xf32>
    %c1_354 = arith.constant 1 : index
    %c0_355 = arith.constant 0 : index
    %c0_356 = arith.constant 0 : index
    %936 = vector.load %arg12[%c1_354, %c0_355, %c0_356] : memref<2x1x32xf32, #tpu.memory_space<vmem>>, vector<1x1x32xf32>
    %937 = vector.shape_cast %936 : vector<1x1x32xf32> to vector<1x32xf32>
    %938 = arith.mulf %935, %935 : vector<16x32xf32>
    %cst_357 = arith.constant dense<0.000000e+00> : vector<16xf32>
    %939 = vector.multi_reduction <add>, %938, %cst_357 [1] : vector<16x32xf32> to vector<16xf32>
    %940 = vector.shape_cast %939 : vector<16xf32> to vector<16x1xf32>
    %cst_358 = arith.constant 3.200000e+01 : f32
    %941 = vector.broadcast %cst_358 : f32 to vector<16x1xf32>
    %942 = arith.divf %940, %941 : vector<16x1xf32>
    %cst_359 = arith.constant 9.99999997E-7 : f32
    %943 = vector.broadcast %cst_359 : f32 to vector<16x1xf32>
    %944 = arith.addf %942, %943 : vector<16x1xf32>
    %945 = math.rsqrt %944 : vector<16x1xf32>
    %946 = vector.broadcast %945 : vector<16x1xf32> to vector<16x32xf32>
    %947 = arith.mulf %935, %946 : vector<16x32xf32>
    %948 = vector.broadcast %937 : vector<1x32xf32> to vector<16x32xf32>
    %949 = arith.mulf %948, %947 : vector<16x32xf32>
    %c1_360 = arith.constant 1 : index
    %c0_361 = arith.constant 0 : index
    %c0_362 = arith.constant 0 : index
    %950 = vector.load %arg13[%c1_360, %c0_361, %c0_362] : memref<2x32x96xf32, #tpu.memory_space<vmem>>, vector<1x32x96xf32>
    %951 = vector.shape_cast %950 : vector<1x32x96xf32> to vector<32x96xf32>
    %cst_363 = arith.constant dense<0.000000e+00> : vector<16x96xf32>
    %952 = tpu.matmul %949, %951, %cst_363 {dimension_numbers = #tpu.dot_dimension_numbers<[1], [0], [0], [1], [0, 0, 1, 1], [], []>} : vector<16x32xf32>, vector<32x96xf32>, vector<16x96xf32> -> vector<16x96xf32>
    %953 = vector.extract_strided_slice %952 {offsets = [0, 0], sizes = [16, 32], strides = [1, 1]} : vector<16x96xf32> to vector<16x32xf32>
    %954 = vector.extract_strided_slice %952 {offsets = [0, 32], sizes = [16, 32], strides = [1, 1]} : vector<16x96xf32> to vector<16x32xf32>
    %955 = vector.extract_strided_slice %952 {offsets = [0, 64], sizes = [16, 32], strides = [1, 1]} : vector<16x96xf32> to vector<16x32xf32>
    %c1_364 = arith.constant 1 : index
    %c0_365 = arith.constant 0 : index
    %c0_366 = arith.constant 0 : index
    %956 = vector.load %arg14[%c1_364, %c0_365, %c0_366] : memref<2x32x32xf32, #tpu.memory_space<vmem>>, vector<1x32x32xf32>
    %957 = vector.shape_cast %956 : vector<1x32x32xf32> to vector<32x32xf32>
    %cst_367 = arith.constant 0.000000e+00 : f32
    %958 = vector.broadcast %cst_367 : f32 to vector<8x32xf32>
    %959 = vector.extract_strided_slice %953 {offsets = [0, 0], sizes = [8, 8], strides = [1, 1]} : vector<16x32xf32> to vector<8x8xf32>
    %960 = vector.extract_strided_slice %954 {offsets = [0, 0], sizes = [8, 8], strides = [1, 1]} : vector<16x32xf32> to vector<8x8xf32>
    %961 = vector.extract_strided_slice %955 {offsets = [0, 0], sizes = [8, 8], strides = [1, 1]} : vector<16x32xf32> to vector<8x8xf32>
    %cst_368 = arith.constant dense<0.000000e+00> : vector<8x8xf32>
    %962 = tpu.matmul %959, %960, %cst_368 {dimension_numbers = #tpu.dot_dimension_numbers<[1], [1], [0], [0], [0, 0, 1, 0], [], []>} : vector<8x8xf32>, vector<8x8xf32>, vector<8x8xf32> -> vector<8x8xf32>
    %c0_369 = arith.constant 0 : index
    %c0_370 = arith.constant 0 : index
    %c0_371 = arith.constant 0 : index
    %963 = vector.load %arg4[%c0_369, %c0_370, %c0_371] : memref<4x8x8xf32, #tpu.memory_space<vmem>>, vector<1x8x8xf32>
    %964 = vector.shape_cast %963 : vector<1x8x8xf32> to vector<8x8xf32>
    %965 = arith.addf %964, %10 : vector<8x8xf32>
    %966 = arith.addf %962, %965 : vector<8x8xf32>
    %cst_372 = arith.constant dense<0xFF800000> : vector<8xf32>
    %967 = vector.multi_reduction <maximumf>, %966, %cst_372 [1] : vector<8x8xf32> to vector<8xf32>
    %968 = vector.shape_cast %967 : vector<8xf32> to vector<8x1xf32>
    %969 = vector.broadcast %968 : vector<8x1xf32> to vector<8x8xf32>
    %970 = arith.subf %966, %969 : vector<8x8xf32>
    %971 = math.exp %970 : vector<8x8xf32>
    %cst_373 = arith.constant dense<0.000000e+00> : vector<8xf32>
    %972 = vector.multi_reduction <add>, %971, %cst_373 [1] : vector<8x8xf32> to vector<8xf32>
    %973 = vector.shape_cast %972 : vector<8xf32> to vector<8x1xf32>
    %974 = tpu.reciprocal %973 {approx = true} : vector<8x1xf32> -> vector<8x1xf32>
    %975 = vector.broadcast %974 : vector<8x1xf32> to vector<8x8xf32>
    %976 = arith.mulf %971, %975 : vector<8x8xf32>
    %cst_374 = arith.constant dense<0.000000e+00> : vector<8x8xf32>
    %977 = tpu.matmul %976, %961, %cst_374 {dimension_numbers = #tpu.dot_dimension_numbers<[1], [0], [0], [1], [0, 0, 1, 1], [], []>} : vector<8x8xf32>, vector<8x8xf32>, vector<8x8xf32> -> vector<8x8xf32>
    %978 = vector.extract_strided_slice %957 {offsets = [0, 0], sizes = [8, 32], strides = [1, 1]} : vector<32x32xf32> to vector<8x32xf32>
    %cst_375 = arith.constant dense<0.000000e+00> : vector<8x32xf32>
    %979 = tpu.matmul %977, %978, %cst_375 {dimension_numbers = #tpu.dot_dimension_numbers<[1], [0], [0], [1], [0, 0, 1, 1], [], []>} : vector<8x8xf32>, vector<8x32xf32>, vector<8x32xf32> -> vector<8x32xf32>
    %980 = arith.addf %958, %979 : vector<8x32xf32>
    %981 = vector.extract_strided_slice %953 {offsets = [0, 8], sizes = [8, 8], strides = [1, 1]} : vector<16x32xf32> to vector<8x8xf32>
    %982 = vector.extract_strided_slice %954 {offsets = [0, 8], sizes = [8, 8], strides = [1, 1]} : vector<16x32xf32> to vector<8x8xf32>
    %983 = vector.extract_strided_slice %955 {offsets = [0, 8], sizes = [8, 8], strides = [1, 1]} : vector<16x32xf32> to vector<8x8xf32>
    %cst_376 = arith.constant dense<0.000000e+00> : vector<8x8xf32>
    %984 = tpu.matmul %981, %982, %cst_376 {dimension_numbers = #tpu.dot_dimension_numbers<[1], [1], [0], [0], [0, 0, 1, 0], [], []>} : vector<8x8xf32>, vector<8x8xf32>, vector<8x8xf32> -> vector<8x8xf32>
    %c1_377 = arith.constant 1 : index
    %c0_378 = arith.constant 0 : index
    %c0_379 = arith.constant 0 : index
    %985 = vector.load %arg4[%c1_377, %c0_378, %c0_379] : memref<4x8x8xf32, #tpu.memory_space<vmem>>, vector<1x8x8xf32>
    %986 = vector.shape_cast %985 : vector<1x8x8xf32> to vector<8x8xf32>
    %987 = arith.addf %986, %10 : vector<8x8xf32>
    %988 = arith.addf %984, %987 : vector<8x8xf32>
    %cst_380 = arith.constant dense<0xFF800000> : vector<8xf32>
    %989 = vector.multi_reduction <maximumf>, %988, %cst_380 [1] : vector<8x8xf32> to vector<8xf32>
    %990 = vector.shape_cast %989 : vector<8xf32> to vector<8x1xf32>
    %991 = vector.broadcast %990 : vector<8x1xf32> to vector<8x8xf32>
    %992 = arith.subf %988, %991 : vector<8x8xf32>
    %993 = math.exp %992 : vector<8x8xf32>
    %cst_381 = arith.constant dense<0.000000e+00> : vector<8xf32>
    %994 = vector.multi_reduction <add>, %993, %cst_381 [1] : vector<8x8xf32> to vector<8xf32>
    %995 = vector.shape_cast %994 : vector<8xf32> to vector<8x1xf32>
    %996 = tpu.reciprocal %995 {approx = true} : vector<8x1xf32> -> vector<8x1xf32>
    %997 = vector.broadcast %996 : vector<8x1xf32> to vector<8x8xf32>
    %998 = arith.mulf %993, %997 : vector<8x8xf32>
    %cst_382 = arith.constant dense<0.000000e+00> : vector<8x8xf32>
    %999 = tpu.matmul %998, %983, %cst_382 {dimension_numbers = #tpu.dot_dimension_numbers<[1], [0], [0], [1], [0, 0, 1, 1], [], []>} : vector<8x8xf32>, vector<8x8xf32>, vector<8x8xf32> -> vector<8x8xf32>
    %1000 = vector.extract_strided_slice %957 {offsets = [8, 0], sizes = [8, 32], strides = [1, 1]} : vector<32x32xf32> to vector<8x32xf32>
    %cst_383 = arith.constant dense<0.000000e+00> : vector<8x32xf32>
    %1001 = tpu.matmul %999, %1000, %cst_383 {dimension_numbers = #tpu.dot_dimension_numbers<[1], [0], [0], [1], [0, 0, 1, 1], [], []>} : vector<8x8xf32>, vector<8x32xf32>, vector<8x32xf32> -> vector<8x32xf32>
    %1002 = arith.addf %980, %1001 : vector<8x32xf32>
    %1003 = vector.extract_strided_slice %953 {offsets = [0, 16], sizes = [8, 8], strides = [1, 1]} : vector<16x32xf32> to vector<8x8xf32>
    %1004 = vector.extract_strided_slice %954 {offsets = [0, 16], sizes = [8, 8], strides = [1, 1]} : vector<16x32xf32> to vector<8x8xf32>
    %1005 = vector.extract_strided_slice %955 {offsets = [0, 16], sizes = [8, 8], strides = [1, 1]} : vector<16x32xf32> to vector<8x8xf32>
    %cst_384 = arith.constant dense<0.000000e+00> : vector<8x8xf32>
    %1006 = tpu.matmul %1003, %1004, %cst_384 {dimension_numbers = #tpu.dot_dimension_numbers<[1], [1], [0], [0], [0, 0, 1, 0], [], []>} : vector<8x8xf32>, vector<8x8xf32>, vector<8x8xf32> -> vector<8x8xf32>
    %c2_385 = arith.constant 2 : index
    %c0_386 = arith.constant 0 : index
    %c0_387 = arith.constant 0 : index
    %1007 = vector.load %arg4[%c2_385, %c0_386, %c0_387] : memref<4x8x8xf32, #tpu.memory_space<vmem>>, vector<1x8x8xf32>
    %1008 = vector.shape_cast %1007 : vector<1x8x8xf32> to vector<8x8xf32>
    %1009 = arith.addf %1008, %10 : vector<8x8xf32>
    %1010 = arith.addf %1006, %1009 : vector<8x8xf32>
    %cst_388 = arith.constant dense<0xFF800000> : vector<8xf32>
    %1011 = vector.multi_reduction <maximumf>, %1010, %cst_388 [1] : vector<8x8xf32> to vector<8xf32>
    %1012 = vector.shape_cast %1011 : vector<8xf32> to vector<8x1xf32>
    %1013 = vector.broadcast %1012 : vector<8x1xf32> to vector<8x8xf32>
    %1014 = arith.subf %1010, %1013 : vector<8x8xf32>
    %1015 = math.exp %1014 : vector<8x8xf32>
    %cst_389 = arith.constant dense<0.000000e+00> : vector<8xf32>
    %1016 = vector.multi_reduction <add>, %1015, %cst_389 [1] : vector<8x8xf32> to vector<8xf32>
    %1017 = vector.shape_cast %1016 : vector<8xf32> to vector<8x1xf32>
    %1018 = tpu.reciprocal %1017 {approx = true} : vector<8x1xf32> -> vector<8x1xf32>
    %1019 = vector.broadcast %1018 : vector<8x1xf32> to vector<8x8xf32>
    %1020 = arith.mulf %1015, %1019 : vector<8x8xf32>
    %cst_390 = arith.constant dense<0.000000e+00> : vector<8x8xf32>
    %1021 = tpu.matmul %1020, %1005, %cst_390 {dimension_numbers = #tpu.dot_dimension_numbers<[1], [0], [0], [1], [0, 0, 1, 1], [], []>} : vector<8x8xf32>, vector<8x8xf32>, vector<8x8xf32> -> vector<8x8xf32>
    %1022 = vector.extract_strided_slice %957 {offsets = [16, 0], sizes = [8, 32], strides = [1, 1]} : vector<32x32xf32> to vector<8x32xf32>
    %cst_391 = arith.constant dense<0.000000e+00> : vector<8x32xf32>
    %1023 = tpu.matmul %1021, %1022, %cst_391 {dimension_numbers = #tpu.dot_dimension_numbers<[1], [0], [0], [1], [0, 0, 1, 1], [], []>} : vector<8x8xf32>, vector<8x32xf32>, vector<8x32xf32> -> vector<8x32xf32>
    %1024 = arith.addf %1002, %1023 : vector<8x32xf32>
    %1025 = vector.extract_strided_slice %953 {offsets = [0, 24], sizes = [8, 8], strides = [1, 1]} : vector<16x32xf32> to vector<8x8xf32>
    %1026 = vector.extract_strided_slice %954 {offsets = [0, 24], sizes = [8, 8], strides = [1, 1]} : vector<16x32xf32> to vector<8x8xf32>
    %1027 = vector.extract_strided_slice %955 {offsets = [0, 24], sizes = [8, 8], strides = [1, 1]} : vector<16x32xf32> to vector<8x8xf32>
    %cst_392 = arith.constant dense<0.000000e+00> : vector<8x8xf32>
    %1028 = tpu.matmul %1025, %1026, %cst_392 {dimension_numbers = #tpu.dot_dimension_numbers<[1], [1], [0], [0], [0, 0, 1, 0], [], []>} : vector<8x8xf32>, vector<8x8xf32>, vector<8x8xf32> -> vector<8x8xf32>
    %c3_393 = arith.constant 3 : index
    %c0_394 = arith.constant 0 : index
    %c0_395 = arith.constant 0 : index
    %1029 = vector.load %arg4[%c3_393, %c0_394, %c0_395] : memref<4x8x8xf32, #tpu.memory_space<vmem>>, vector<1x8x8xf32>
    %1030 = vector.shape_cast %1029 : vector<1x8x8xf32> to vector<8x8xf32>
    %1031 = arith.addf %1030, %10 : vector<8x8xf32>
    %1032 = arith.addf %1028, %1031 : vector<8x8xf32>
    %cst_396 = arith.constant dense<0xFF800000> : vector<8xf32>
    %1033 = vector.multi_reduction <maximumf>, %1032, %cst_396 [1] : vector<8x8xf32> to vector<8xf32>
    %1034 = vector.shape_cast %1033 : vector<8xf32> to vector<8x1xf32>
    %1035 = vector.broadcast %1034 : vector<8x1xf32> to vector<8x8xf32>
    %1036 = arith.subf %1032, %1035 : vector<8x8xf32>
    %1037 = math.exp %1036 : vector<8x8xf32>
    %cst_397 = arith.constant dense<0.000000e+00> : vector<8xf32>
    %1038 = vector.multi_reduction <add>, %1037, %cst_397 [1] : vector<8x8xf32> to vector<8xf32>
    %1039 = vector.shape_cast %1038 : vector<8xf32> to vector<8x1xf32>
    %1040 = tpu.reciprocal %1039 {approx = true} : vector<8x1xf32> -> vector<8x1xf32>
    %1041 = vector.broadcast %1040 : vector<8x1xf32> to vector<8x8xf32>
    %1042 = arith.mulf %1037, %1041 : vector<8x8xf32>
    %cst_398 = arith.constant dense<0.000000e+00> : vector<8x8xf32>
    %1043 = tpu.matmul %1042, %1027, %cst_398 {dimension_numbers = #tpu.dot_dimension_numbers<[1], [0], [0], [1], [0, 0, 1, 1], [], []>} : vector<8x8xf32>, vector<8x8xf32>, vector<8x8xf32> -> vector<8x8xf32>
    %1044 = vector.extract_strided_slice %957 {offsets = [24, 0], sizes = [8, 32], strides = [1, 1]} : vector<32x32xf32> to vector<8x32xf32>
    %cst_399 = arith.constant dense<0.000000e+00> : vector<8x32xf32>
    %1045 = tpu.matmul %1043, %1044, %cst_399 {dimension_numbers = #tpu.dot_dimension_numbers<[1], [0], [0], [1], [0, 0, 1, 1], [], []>} : vector<8x8xf32>, vector<8x32xf32>, vector<8x32xf32> -> vector<8x32xf32>
    %1046 = arith.addf %1024, %1045 : vector<8x32xf32>
    %cst_400 = arith.constant 0.000000e+00 : f32
    %1047 = vector.broadcast %cst_400 : f32 to vector<8x32xf32>
    %1048 = vector.extract_strided_slice %953 {offsets = [8, 0], sizes = [8, 8], strides = [1, 1]} : vector<16x32xf32> to vector<8x8xf32>
    %1049 = vector.extract_strided_slice %954 {offsets = [8, 0], sizes = [8, 8], strides = [1, 1]} : vector<16x32xf32> to vector<8x8xf32>
    %1050 = vector.extract_strided_slice %955 {offsets = [8, 0], sizes = [8, 8], strides = [1, 1]} : vector<16x32xf32> to vector<8x8xf32>
    %cst_401 = arith.constant dense<0.000000e+00> : vector<8x8xf32>
    %1051 = tpu.matmul %1048, %1049, %cst_401 {dimension_numbers = #tpu.dot_dimension_numbers<[1], [1], [0], [0], [0, 0, 1, 0], [], []>} : vector<8x8xf32>, vector<8x8xf32>, vector<8x8xf32> -> vector<8x8xf32>
    %c0_402 = arith.constant 0 : index
    %c0_403 = arith.constant 0 : index
    %c0_404 = arith.constant 0 : index
    %1052 = vector.load %arg4[%c0_402, %c0_403, %c0_404] : memref<4x8x8xf32, #tpu.memory_space<vmem>>, vector<1x8x8xf32>
    %1053 = vector.shape_cast %1052 : vector<1x8x8xf32> to vector<8x8xf32>
    %1054 = arith.addf %1053, %10 : vector<8x8xf32>
    %1055 = arith.addf %1051, %1054 : vector<8x8xf32>
    %cst_405 = arith.constant dense<0xFF800000> : vector<8xf32>
    %1056 = vector.multi_reduction <maximumf>, %1055, %cst_405 [1] : vector<8x8xf32> to vector<8xf32>
    %1057 = vector.shape_cast %1056 : vector<8xf32> to vector<8x1xf32>
    %1058 = vector.broadcast %1057 : vector<8x1xf32> to vector<8x8xf32>
    %1059 = arith.subf %1055, %1058 : vector<8x8xf32>
    %1060 = math.exp %1059 : vector<8x8xf32>
    %cst_406 = arith.constant dense<0.000000e+00> : vector<8xf32>
    %1061 = vector.multi_reduction <add>, %1060, %cst_406 [1] : vector<8x8xf32> to vector<8xf32>
    %1062 = vector.shape_cast %1061 : vector<8xf32> to vector<8x1xf32>
    %1063 = tpu.reciprocal %1062 {approx = true} : vector<8x1xf32> -> vector<8x1xf32>
    %1064 = vector.broadcast %1063 : vector<8x1xf32> to vector<8x8xf32>
    %1065 = arith.mulf %1060, %1064 : vector<8x8xf32>
    %cst_407 = arith.constant dense<0.000000e+00> : vector<8x8xf32>
    %1066 = tpu.matmul %1065, %1050, %cst_407 {dimension_numbers = #tpu.dot_dimension_numbers<[1], [0], [0], [1], [0, 0, 1, 1], [], []>} : vector<8x8xf32>, vector<8x8xf32>, vector<8x8xf32> -> vector<8x8xf32>
    %1067 = vector.extract_strided_slice %957 {offsets = [0, 0], sizes = [8, 32], strides = [1, 1]} : vector<32x32xf32> to vector<8x32xf32>
    %cst_408 = arith.constant dense<0.000000e+00> : vector<8x32xf32>
    %1068 = tpu.matmul %1066, %1067, %cst_408 {dimension_numbers = #tpu.dot_dimension_numbers<[1], [0], [0], [1], [0, 0, 1, 1], [], []>} : vector<8x8xf32>, vector<8x32xf32>, vector<8x32xf32> -> vector<8x32xf32>
    %1069 = arith.addf %1047, %1068 : vector<8x32xf32>
    %1070 = vector.extract_strided_slice %953 {offsets = [8, 8], sizes = [8, 8], strides = [1, 1]} : vector<16x32xf32> to vector<8x8xf32>
    %1071 = vector.extract_strided_slice %954 {offsets = [8, 8], sizes = [8, 8], strides = [1, 1]} : vector<16x32xf32> to vector<8x8xf32>
    %1072 = vector.extract_strided_slice %955 {offsets = [8, 8], sizes = [8, 8], strides = [1, 1]} : vector<16x32xf32> to vector<8x8xf32>
    %cst_409 = arith.constant dense<0.000000e+00> : vector<8x8xf32>
    %1073 = tpu.matmul %1070, %1071, %cst_409 {dimension_numbers = #tpu.dot_dimension_numbers<[1], [1], [0], [0], [0, 0, 1, 0], [], []>} : vector<8x8xf32>, vector<8x8xf32>, vector<8x8xf32> -> vector<8x8xf32>
    %c1_410 = arith.constant 1 : index
    %c0_411 = arith.constant 0 : index
    %c0_412 = arith.constant 0 : index
    %1074 = vector.load %arg4[%c1_410, %c0_411, %c0_412] : memref<4x8x8xf32, #tpu.memory_space<vmem>>, vector<1x8x8xf32>
    %1075 = vector.shape_cast %1074 : vector<1x8x8xf32> to vector<8x8xf32>
    %1076 = arith.addf %1075, %10 : vector<8x8xf32>
    %1077 = arith.addf %1073, %1076 : vector<8x8xf32>
    %cst_413 = arith.constant dense<0xFF800000> : vector<8xf32>
    %1078 = vector.multi_reduction <maximumf>, %1077, %cst_413 [1] : vector<8x8xf32> to vector<8xf32>
    %1079 = vector.shape_cast %1078 : vector<8xf32> to vector<8x1xf32>
    %1080 = vector.broadcast %1079 : vector<8x1xf32> to vector<8x8xf32>
    %1081 = arith.subf %1077, %1080 : vector<8x8xf32>
    %1082 = math.exp %1081 : vector<8x8xf32>
    %cst_414 = arith.constant dense<0.000000e+00> : vector<8xf32>
    %1083 = vector.multi_reduction <add>, %1082, %cst_414 [1] : vector<8x8xf32> to vector<8xf32>
    %1084 = vector.shape_cast %1083 : vector<8xf32> to vector<8x1xf32>
    %1085 = tpu.reciprocal %1084 {approx = true} : vector<8x1xf32> -> vector<8x1xf32>
    %1086 = vector.broadcast %1085 : vector<8x1xf32> to vector<8x8xf32>
    %1087 = arith.mulf %1082, %1086 : vector<8x8xf32>
    %cst_415 = arith.constant dense<0.000000e+00> : vector<8x8xf32>
    %1088 = tpu.matmul %1087, %1072, %cst_415 {dimension_numbers = #tpu.dot_dimension_numbers<[1], [0], [0], [1], [0, 0, 1, 1], [], []>} : vector<8x8xf32>, vector<8x8xf32>, vector<8x8xf32> -> vector<8x8xf32>
    %1089 = vector.extract_strided_slice %957 {offsets = [8, 0], sizes = [8, 32], strides = [1, 1]} : vector<32x32xf32> to vector<8x32xf32>
    %cst_416 = arith.constant dense<0.000000e+00> : vector<8x32xf32>
    %1090 = tpu.matmul %1088, %1089, %cst_416 {dimension_numbers = #tpu.dot_dimension_numbers<[1], [0], [0], [1], [0, 0, 1, 1], [], []>} : vector<8x8xf32>, vector<8x32xf32>, vector<8x32xf32> -> vector<8x32xf32>
    %1091 = arith.addf %1069, %1090 : vector<8x32xf32>
    %1092 = vector.extract_strided_slice %953 {offsets = [8, 16], sizes = [8, 8], strides = [1, 1]} : vector<16x32xf32> to vector<8x8xf32>
    %1093 = vector.extract_strided_slice %954 {offsets = [8, 16], sizes = [8, 8], strides = [1, 1]} : vector<16x32xf32> to vector<8x8xf32>
    %1094 = vector.extract_strided_slice %955 {offsets = [8, 16], sizes = [8, 8], strides = [1, 1]} : vector<16x32xf32> to vector<8x8xf32>
    %cst_417 = arith.constant dense<0.000000e+00> : vector<8x8xf32>
    %1095 = tpu.matmul %1092, %1093, %cst_417 {dimension_numbers = #tpu.dot_dimension_numbers<[1], [1], [0], [0], [0, 0, 1, 0], [], []>} : vector<8x8xf32>, vector<8x8xf32>, vector<8x8xf32> -> vector<8x8xf32>
    %c2_418 = arith.constant 2 : index
    %c0_419 = arith.constant 0 : index
    %c0_420 = arith.constant 0 : index
    %1096 = vector.load %arg4[%c2_418, %c0_419, %c0_420] : memref<4x8x8xf32, #tpu.memory_space<vmem>>, vector<1x8x8xf32>
    %1097 = vector.shape_cast %1096 : vector<1x8x8xf32> to vector<8x8xf32>
    %1098 = arith.addf %1097, %10 : vector<8x8xf32>
    %1099 = arith.addf %1095, %1098 : vector<8x8xf32>
    %cst_421 = arith.constant dense<0xFF800000> : vector<8xf32>
    %1100 = vector.multi_reduction <maximumf>, %1099, %cst_421 [1] : vector<8x8xf32> to vector<8xf32>
    %1101 = vector.shape_cast %1100 : vector<8xf32> to vector<8x1xf32>
    %1102 = vector.broadcast %1101 : vector<8x1xf32> to vector<8x8xf32>
    %1103 = arith.subf %1099, %1102 : vector<8x8xf32>
    %1104 = math.exp %1103 : vector<8x8xf32>
    %cst_422 = arith.constant dense<0.000000e+00> : vector<8xf32>
    %1105 = vector.multi_reduction <add>, %1104, %cst_422 [1] : vector<8x8xf32> to vector<8xf32>
    %1106 = vector.shape_cast %1105 : vector<8xf32> to vector<8x1xf32>
    %1107 = tpu.reciprocal %1106 {approx = true} : vector<8x1xf32> -> vector<8x1xf32>
    %1108 = vector.broadcast %1107 : vector<8x1xf32> to vector<8x8xf32>
    %1109 = arith.mulf %1104, %1108 : vector<8x8xf32>
    %cst_423 = arith.constant dense<0.000000e+00> : vector<8x8xf32>
    %1110 = tpu.matmul %1109, %1094, %cst_423 {dimension_numbers = #tpu.dot_dimension_numbers<[1], [0], [0], [1], [0, 0, 1, 1], [], []>} : vector<8x8xf32>, vector<8x8xf32>, vector<8x8xf32> -> vector<8x8xf32>
    %1111 = vector.extract_strided_slice %957 {offsets = [16, 0], sizes = [8, 32], strides = [1, 1]} : vector<32x32xf32> to vector<8x32xf32>
    %cst_424 = arith.constant dense<0.000000e+00> : vector<8x32xf32>
    %1112 = tpu.matmul %1110, %1111, %cst_424 {dimension_numbers = #tpu.dot_dimension_numbers<[1], [0], [0], [1], [0, 0, 1, 1], [], []>} : vector<8x8xf32>, vector<8x32xf32>, vector<8x32xf32> -> vector<8x32xf32>
    %1113 = arith.addf %1091, %1112 : vector<8x32xf32>
    %1114 = vector.extract_strided_slice %953 {offsets = [8, 24], sizes = [8, 8], strides = [1, 1]} : vector<16x32xf32> to vector<8x8xf32>
    %1115 = vector.extract_strided_slice %954 {offsets = [8, 24], sizes = [8, 8], strides = [1, 1]} : vector<16x32xf32> to vector<8x8xf32>
    %1116 = vector.extract_strided_slice %955 {offsets = [8, 24], sizes = [8, 8], strides = [1, 1]} : vector<16x32xf32> to vector<8x8xf32>
    %cst_425 = arith.constant dense<0.000000e+00> : vector<8x8xf32>
    %1117 = tpu.matmul %1114, %1115, %cst_425 {dimension_numbers = #tpu.dot_dimension_numbers<[1], [1], [0], [0], [0, 0, 1, 0], [], []>} : vector<8x8xf32>, vector<8x8xf32>, vector<8x8xf32> -> vector<8x8xf32>
    %c3_426 = arith.constant 3 : index
    %c0_427 = arith.constant 0 : index
    %c0_428 = arith.constant 0 : index
    %1118 = vector.load %arg4[%c3_426, %c0_427, %c0_428] : memref<4x8x8xf32, #tpu.memory_space<vmem>>, vector<1x8x8xf32>
    %1119 = vector.shape_cast %1118 : vector<1x8x8xf32> to vector<8x8xf32>
    %1120 = arith.addf %1119, %10 : vector<8x8xf32>
    %1121 = arith.addf %1117, %1120 : vector<8x8xf32>
    %cst_429 = arith.constant dense<0xFF800000> : vector<8xf32>
    %1122 = vector.multi_reduction <maximumf>, %1121, %cst_429 [1] : vector<8x8xf32> to vector<8xf32>
    %1123 = vector.shape_cast %1122 : vector<8xf32> to vector<8x1xf32>
    %1124 = vector.broadcast %1123 : vector<8x1xf32> to vector<8x8xf32>
    %1125 = arith.subf %1121, %1124 : vector<8x8xf32>
    %1126 = math.exp %1125 : vector<8x8xf32>
    %cst_430 = arith.constant dense<0.000000e+00> : vector<8xf32>
    %1127 = vector.multi_reduction <add>, %1126, %cst_430 [1] : vector<8x8xf32> to vector<8xf32>
    %1128 = vector.shape_cast %1127 : vector<8xf32> to vector<8x1xf32>
    %1129 = tpu.reciprocal %1128 {approx = true} : vector<8x1xf32> -> vector<8x1xf32>
    %1130 = vector.broadcast %1129 : vector<8x1xf32> to vector<8x8xf32>
    %1131 = arith.mulf %1126, %1130 : vector<8x8xf32>
    %cst_431 = arith.constant dense<0.000000e+00> : vector<8x8xf32>
    %1132 = tpu.matmul %1131, %1116, %cst_431 {dimension_numbers = #tpu.dot_dimension_numbers<[1], [0], [0], [1], [0, 0, 1, 1], [], []>} : vector<8x8xf32>, vector<8x8xf32>, vector<8x8xf32> -> vector<8x8xf32>
    %1133 = vector.extract_strided_slice %957 {offsets = [24, 0], sizes = [8, 32], strides = [1, 1]} : vector<32x32xf32> to vector<8x32xf32>
    %cst_432 = arith.constant dense<0.000000e+00> : vector<8x32xf32>
    %1134 = tpu.matmul %1132, %1133, %cst_432 {dimension_numbers = #tpu.dot_dimension_numbers<[1], [0], [0], [1], [0, 0, 1, 1], [], []>} : vector<8x8xf32>, vector<8x32xf32>, vector<8x32xf32> -> vector<8x32xf32>
    %1135 = arith.addf %1113, %1134 : vector<8x32xf32>
    %1136 = tpu.concatenate %1046, %1135 in 0 : vector<8x32xf32>, vector<8x32xf32> -> vector<16x32xf32>
    %1137 = arith.addf %935, %1136 : vector<16x32xf32>
    %c1_433 = arith.constant 1 : index
    %c0_434 = arith.constant 0 : index
    %c0_435 = arith.constant 0 : index
    %1138 = vector.load %arg15[%c1_433, %c0_434, %c0_435] : memref<2x1x32xf32, #tpu.memory_space<vmem>>, vector<1x1x32xf32>
    %1139 = vector.shape_cast %1138 : vector<1x1x32xf32> to vector<1x32xf32>
    %1140 = arith.mulf %1137, %1137 : vector<16x32xf32>
    %cst_436 = arith.constant dense<0.000000e+00> : vector<16xf32>
    %1141 = vector.multi_reduction <add>, %1140, %cst_436 [1] : vector<16x32xf32> to vector<16xf32>
    %1142 = vector.shape_cast %1141 : vector<16xf32> to vector<16x1xf32>
    %cst_437 = arith.constant 3.200000e+01 : f32
    %1143 = vector.broadcast %cst_437 : f32 to vector<16x1xf32>
    %1144 = arith.divf %1142, %1143 : vector<16x1xf32>
    %cst_438 = arith.constant 9.99999997E-7 : f32
    %1145 = vector.broadcast %cst_438 : f32 to vector<16x1xf32>
    %1146 = arith.addf %1144, %1145 : vector<16x1xf32>
    %1147 = math.rsqrt %1146 : vector<16x1xf32>
    %1148 = vector.broadcast %1147 : vector<16x1xf32> to vector<16x32xf32>
    %1149 = arith.mulf %1137, %1148 : vector<16x32xf32>
    %1150 = vector.broadcast %1139 : vector<1x32xf32> to vector<16x32xf32>
    %1151 = arith.mulf %1150, %1149 : vector<16x32xf32>
    %c1_439 = arith.constant 1 : index
    %c0_440 = arith.constant 0 : index
    %c0_441 = arith.constant 0 : index
    %1152 = vector.load %arg16[%c1_439, %c0_440, %c0_441] : memref<2x32x32xf32, #tpu.memory_space<vmem>>, vector<1x32x32xf32>
    %1153 = vector.shape_cast %1152 : vector<1x32x32xf32> to vector<32x32xf32>
    %cst_442 = arith.constant dense<0.000000e+00> : vector<16x32xf32>
    %1154 = tpu.matmul %1151, %1153, %cst_442 {dimension_numbers = #tpu.dot_dimension_numbers<[1], [0], [0], [1], [0, 0, 1, 1], [], []>} : vector<16x32xf32>, vector<32x32xf32>, vector<16x32xf32> -> vector<16x32xf32>
    %c1_443 = arith.constant 1 : index
    %c0_444 = arith.constant 0 : index
    %c0_445 = arith.constant 0 : index
    %1155 = vector.load %arg17[%c1_443, %c0_444, %c0_445] : memref<2x32x64xf32, #tpu.memory_space<vmem>>, vector<1x32x64xf32>
    %1156 = vector.shape_cast %1155 : vector<1x32x64xf32> to vector<32x64xf32>
    %cst_446 = arith.constant dense<0.000000e+00> : vector<16x64xf32>
    %1157 = tpu.matmul %513, %1156, %cst_446 {dimension_numbers = #tpu.dot_dimension_numbers<[1], [0], [0], [1], [0, 0, 1, 1], [], []>} : vector<16x32xf32>, vector<32x64xf32>, vector<16x64xf32> -> vector<16x64xf32>
    %1158 = vector.extract_strided_slice %1157 {offsets = [0, 0], sizes = [16, 32], strides = [1, 1]} : vector<16x64xf32> to vector<16x32xf32>
    %1159 = vector.extract_strided_slice %1157 {offsets = [0, 32], sizes = [16, 32], strides = [1, 1]} : vector<16x64xf32> to vector<16x32xf32>
    %c1_447 = arith.constant 1 : index
    %c0_448 = arith.constant 0 : index
    %c0_449 = arith.constant 0 : index
    %1160 = vector.load %arg18[%c1_447, %c0_448, %c0_449] : memref<2x32x32xf32, #tpu.memory_space<vmem>>, vector<1x32x32xf32>
    %1161 = vector.shape_cast %1160 : vector<1x32x32xf32> to vector<32x32xf32>
    %cst_450 = arith.constant 0.000000e+00 : f32
    %1162 = vector.broadcast %cst_450 : f32 to vector<8x32xf32>
    %1163 = vector.extract_strided_slice %1154 {offsets = [0, 0], sizes = [8, 8], strides = [1, 1]} : vector<16x32xf32> to vector<8x8xf32>
    %1164 = vector.extract_strided_slice %1158 {offsets = [0, 0], sizes = [8, 8], strides = [1, 1]} : vector<16x32xf32> to vector<8x8xf32>
    %1165 = vector.extract_strided_slice %1159 {offsets = [0, 0], sizes = [8, 8], strides = [1, 1]} : vector<16x32xf32> to vector<8x8xf32>
    %cst_451 = arith.constant dense<0.000000e+00> : vector<8x8xf32>
    %1166 = tpu.matmul %1163, %1164, %cst_451 {dimension_numbers = #tpu.dot_dimension_numbers<[1], [1], [0], [0], [0, 0, 1, 0], [], []>} : vector<8x8xf32>, vector<8x8xf32>, vector<8x8xf32> -> vector<8x8xf32>
    %1167 = vector.extract_strided_slice %4 {offsets = [0, 0], sizes = [1, 8], strides = [1, 1]} : vector<2x8xf32> to vector<1x8xf32>
    %1168 = vector.broadcast %1167 : vector<1x8xf32> to vector<8x8xf32>
    %1169 = arith.addf %1166, %1168 : vector<8x8xf32>
    %cst_452 = arith.constant dense<0xFF800000> : vector<8xf32>
    %1170 = vector.multi_reduction <maximumf>, %1169, %cst_452 [1] : vector<8x8xf32> to vector<8xf32>
    %1171 = vector.shape_cast %1170 : vector<8xf32> to vector<8x1xf32>
    %1172 = vector.broadcast %1171 : vector<8x1xf32> to vector<8x8xf32>
    %1173 = arith.subf %1169, %1172 : vector<8x8xf32>
    %1174 = math.exp %1173 : vector<8x8xf32>
    %cst_453 = arith.constant dense<0.000000e+00> : vector<8xf32>
    %1175 = vector.multi_reduction <add>, %1174, %cst_453 [1] : vector<8x8xf32> to vector<8xf32>
    %1176 = vector.shape_cast %1175 : vector<8xf32> to vector<8x1xf32>
    %1177 = tpu.reciprocal %1176 {approx = true} : vector<8x1xf32> -> vector<8x1xf32>
    %1178 = vector.broadcast %1177 : vector<8x1xf32> to vector<8x8xf32>
    %1179 = arith.mulf %1174, %1178 : vector<8x8xf32>
    %cst_454 = arith.constant dense<0.000000e+00> : vector<8x8xf32>
    %1180 = tpu.matmul %1179, %1165, %cst_454 {dimension_numbers = #tpu.dot_dimension_numbers<[1], [0], [0], [1], [0, 0, 1, 1], [], []>} : vector<8x8xf32>, vector<8x8xf32>, vector<8x8xf32> -> vector<8x8xf32>
    %1181 = vector.extract_strided_slice %1161 {offsets = [0, 0], sizes = [8, 32], strides = [1, 1]} : vector<32x32xf32> to vector<8x32xf32>
    %cst_455 = arith.constant dense<0.000000e+00> : vector<8x32xf32>
    %1182 = tpu.matmul %1180, %1181, %cst_455 {dimension_numbers = #tpu.dot_dimension_numbers<[1], [0], [0], [1], [0, 0, 1, 1], [], []>} : vector<8x8xf32>, vector<8x32xf32>, vector<8x32xf32> -> vector<8x32xf32>
    %1183 = arith.addf %1162, %1182 : vector<8x32xf32>
    %1184 = vector.extract_strided_slice %1154 {offsets = [0, 8], sizes = [8, 8], strides = [1, 1]} : vector<16x32xf32> to vector<8x8xf32>
    %1185 = vector.extract_strided_slice %1158 {offsets = [0, 8], sizes = [8, 8], strides = [1, 1]} : vector<16x32xf32> to vector<8x8xf32>
    %1186 = vector.extract_strided_slice %1159 {offsets = [0, 8], sizes = [8, 8], strides = [1, 1]} : vector<16x32xf32> to vector<8x8xf32>
    %cst_456 = arith.constant dense<0.000000e+00> : vector<8x8xf32>
    %1187 = tpu.matmul %1184, %1185, %cst_456 {dimension_numbers = #tpu.dot_dimension_numbers<[1], [1], [0], [0], [0, 0, 1, 0], [], []>} : vector<8x8xf32>, vector<8x8xf32>, vector<8x8xf32> -> vector<8x8xf32>
    %1188 = vector.extract_strided_slice %4 {offsets = [0, 0], sizes = [1, 8], strides = [1, 1]} : vector<2x8xf32> to vector<1x8xf32>
    %1189 = vector.broadcast %1188 : vector<1x8xf32> to vector<8x8xf32>
    %1190 = arith.addf %1187, %1189 : vector<8x8xf32>
    %cst_457 = arith.constant dense<0xFF800000> : vector<8xf32>
    %1191 = vector.multi_reduction <maximumf>, %1190, %cst_457 [1] : vector<8x8xf32> to vector<8xf32>
    %1192 = vector.shape_cast %1191 : vector<8xf32> to vector<8x1xf32>
    %1193 = vector.broadcast %1192 : vector<8x1xf32> to vector<8x8xf32>
    %1194 = arith.subf %1190, %1193 : vector<8x8xf32>
    %1195 = math.exp %1194 : vector<8x8xf32>
    %cst_458 = arith.constant dense<0.000000e+00> : vector<8xf32>
    %1196 = vector.multi_reduction <add>, %1195, %cst_458 [1] : vector<8x8xf32> to vector<8xf32>
    %1197 = vector.shape_cast %1196 : vector<8xf32> to vector<8x1xf32>
    %1198 = tpu.reciprocal %1197 {approx = true} : vector<8x1xf32> -> vector<8x1xf32>
    %1199 = vector.broadcast %1198 : vector<8x1xf32> to vector<8x8xf32>
    %1200 = arith.mulf %1195, %1199 : vector<8x8xf32>
    %cst_459 = arith.constant dense<0.000000e+00> : vector<8x8xf32>
    %1201 = tpu.matmul %1200, %1186, %cst_459 {dimension_numbers = #tpu.dot_dimension_numbers<[1], [0], [0], [1], [0, 0, 1, 1], [], []>} : vector<8x8xf32>, vector<8x8xf32>, vector<8x8xf32> -> vector<8x8xf32>
    %1202 = vector.extract_strided_slice %1161 {offsets = [8, 0], sizes = [8, 32], strides = [1, 1]} : vector<32x32xf32> to vector<8x32xf32>
    %cst_460 = arith.constant dense<0.000000e+00> : vector<8x32xf32>
    %1203 = tpu.matmul %1201, %1202, %cst_460 {dimension_numbers = #tpu.dot_dimension_numbers<[1], [0], [0], [1], [0, 0, 1, 1], [], []>} : vector<8x8xf32>, vector<8x32xf32>, vector<8x32xf32> -> vector<8x32xf32>
    %1204 = arith.addf %1183, %1203 : vector<8x32xf32>
    %1205 = vector.extract_strided_slice %1154 {offsets = [0, 16], sizes = [8, 8], strides = [1, 1]} : vector<16x32xf32> to vector<8x8xf32>
    %1206 = vector.extract_strided_slice %1158 {offsets = [0, 16], sizes = [8, 8], strides = [1, 1]} : vector<16x32xf32> to vector<8x8xf32>
    %1207 = vector.extract_strided_slice %1159 {offsets = [0, 16], sizes = [8, 8], strides = [1, 1]} : vector<16x32xf32> to vector<8x8xf32>
    %cst_461 = arith.constant dense<0.000000e+00> : vector<8x8xf32>
    %1208 = tpu.matmul %1205, %1206, %cst_461 {dimension_numbers = #tpu.dot_dimension_numbers<[1], [1], [0], [0], [0, 0, 1, 0], [], []>} : vector<8x8xf32>, vector<8x8xf32>, vector<8x8xf32> -> vector<8x8xf32>
    %1209 = vector.extract_strided_slice %4 {offsets = [0, 0], sizes = [1, 8], strides = [1, 1]} : vector<2x8xf32> to vector<1x8xf32>
    %1210 = vector.broadcast %1209 : vector<1x8xf32> to vector<8x8xf32>
    %1211 = arith.addf %1208, %1210 : vector<8x8xf32>
    %cst_462 = arith.constant dense<0xFF800000> : vector<8xf32>
    %1212 = vector.multi_reduction <maximumf>, %1211, %cst_462 [1] : vector<8x8xf32> to vector<8xf32>
    %1213 = vector.shape_cast %1212 : vector<8xf32> to vector<8x1xf32>
    %1214 = vector.broadcast %1213 : vector<8x1xf32> to vector<8x8xf32>
    %1215 = arith.subf %1211, %1214 : vector<8x8xf32>
    %1216 = math.exp %1215 : vector<8x8xf32>
    %cst_463 = arith.constant dense<0.000000e+00> : vector<8xf32>
    %1217 = vector.multi_reduction <add>, %1216, %cst_463 [1] : vector<8x8xf32> to vector<8xf32>
    %1218 = vector.shape_cast %1217 : vector<8xf32> to vector<8x1xf32>
    %1219 = tpu.reciprocal %1218 {approx = true} : vector<8x1xf32> -> vector<8x1xf32>
    %1220 = vector.broadcast %1219 : vector<8x1xf32> to vector<8x8xf32>
    %1221 = arith.mulf %1216, %1220 : vector<8x8xf32>
    %cst_464 = arith.constant dense<0.000000e+00> : vector<8x8xf32>
    %1222 = tpu.matmul %1221, %1207, %cst_464 {dimension_numbers = #tpu.dot_dimension_numbers<[1], [0], [0], [1], [0, 0, 1, 1], [], []>} : vector<8x8xf32>, vector<8x8xf32>, vector<8x8xf32> -> vector<8x8xf32>
    %1223 = vector.extract_strided_slice %1161 {offsets = [16, 0], sizes = [8, 32], strides = [1, 1]} : vector<32x32xf32> to vector<8x32xf32>
    %cst_465 = arith.constant dense<0.000000e+00> : vector<8x32xf32>
    %1224 = tpu.matmul %1222, %1223, %cst_465 {dimension_numbers = #tpu.dot_dimension_numbers<[1], [0], [0], [1], [0, 0, 1, 1], [], []>} : vector<8x8xf32>, vector<8x32xf32>, vector<8x32xf32> -> vector<8x32xf32>
    %1225 = arith.addf %1204, %1224 : vector<8x32xf32>
    %1226 = vector.extract_strided_slice %1154 {offsets = [0, 24], sizes = [8, 8], strides = [1, 1]} : vector<16x32xf32> to vector<8x8xf32>
    %1227 = vector.extract_strided_slice %1158 {offsets = [0, 24], sizes = [8, 8], strides = [1, 1]} : vector<16x32xf32> to vector<8x8xf32>
    %1228 = vector.extract_strided_slice %1159 {offsets = [0, 24], sizes = [8, 8], strides = [1, 1]} : vector<16x32xf32> to vector<8x8xf32>
    %cst_466 = arith.constant dense<0.000000e+00> : vector<8x8xf32>
    %1229 = tpu.matmul %1226, %1227, %cst_466 {dimension_numbers = #tpu.dot_dimension_numbers<[1], [1], [0], [0], [0, 0, 1, 0], [], []>} : vector<8x8xf32>, vector<8x8xf32>, vector<8x8xf32> -> vector<8x8xf32>
    %1230 = vector.extract_strided_slice %4 {offsets = [0, 0], sizes = [1, 8], strides = [1, 1]} : vector<2x8xf32> to vector<1x8xf32>
    %1231 = vector.broadcast %1230 : vector<1x8xf32> to vector<8x8xf32>
    %1232 = arith.addf %1229, %1231 : vector<8x8xf32>
    %cst_467 = arith.constant dense<0xFF800000> : vector<8xf32>
    %1233 = vector.multi_reduction <maximumf>, %1232, %cst_467 [1] : vector<8x8xf32> to vector<8xf32>
    %1234 = vector.shape_cast %1233 : vector<8xf32> to vector<8x1xf32>
    %1235 = vector.broadcast %1234 : vector<8x1xf32> to vector<8x8xf32>
    %1236 = arith.subf %1232, %1235 : vector<8x8xf32>
    %1237 = math.exp %1236 : vector<8x8xf32>
    %cst_468 = arith.constant dense<0.000000e+00> : vector<8xf32>
    %1238 = vector.multi_reduction <add>, %1237, %cst_468 [1] : vector<8x8xf32> to vector<8xf32>
    %1239 = vector.shape_cast %1238 : vector<8xf32> to vector<8x1xf32>
    %1240 = tpu.reciprocal %1239 {approx = true} : vector<8x1xf32> -> vector<8x1xf32>
    %1241 = vector.broadcast %1240 : vector<8x1xf32> to vector<8x8xf32>
    %1242 = arith.mulf %1237, %1241 : vector<8x8xf32>
    %cst_469 = arith.constant dense<0.000000e+00> : vector<8x8xf32>
    %1243 = tpu.matmul %1242, %1228, %cst_469 {dimension_numbers = #tpu.dot_dimension_numbers<[1], [0], [0], [1], [0, 0, 1, 1], [], []>} : vector<8x8xf32>, vector<8x8xf32>, vector<8x8xf32> -> vector<8x8xf32>
    %1244 = vector.extract_strided_slice %1161 {offsets = [24, 0], sizes = [8, 32], strides = [1, 1]} : vector<32x32xf32> to vector<8x32xf32>
    %cst_470 = arith.constant dense<0.000000e+00> : vector<8x32xf32>
    %1245 = tpu.matmul %1243, %1244, %cst_470 {dimension_numbers = #tpu.dot_dimension_numbers<[1], [0], [0], [1], [0, 0, 1, 1], [], []>} : vector<8x8xf32>, vector<8x32xf32>, vector<8x32xf32> -> vector<8x32xf32>
    %1246 = arith.addf %1225, %1245 : vector<8x32xf32>
    %cst_471 = arith.constant 0.000000e+00 : f32
    %1247 = vector.broadcast %cst_471 : f32 to vector<8x32xf32>
    %1248 = vector.extract_strided_slice %1154 {offsets = [8, 0], sizes = [8, 8], strides = [1, 1]} : vector<16x32xf32> to vector<8x8xf32>
    %1249 = vector.extract_strided_slice %1158 {offsets = [8, 0], sizes = [8, 8], strides = [1, 1]} : vector<16x32xf32> to vector<8x8xf32>
    %1250 = vector.extract_strided_slice %1159 {offsets = [8, 0], sizes = [8, 8], strides = [1, 1]} : vector<16x32xf32> to vector<8x8xf32>
    %cst_472 = arith.constant dense<0.000000e+00> : vector<8x8xf32>
    %1251 = tpu.matmul %1248, %1249, %cst_472 {dimension_numbers = #tpu.dot_dimension_numbers<[1], [1], [0], [0], [0, 0, 1, 0], [], []>} : vector<8x8xf32>, vector<8x8xf32>, vector<8x8xf32> -> vector<8x8xf32>
    %1252 = vector.extract_strided_slice %4 {offsets = [1, 0], sizes = [1, 8], strides = [1, 1]} : vector<2x8xf32> to vector<1x8xf32>
    %1253 = vector.broadcast %1252 : vector<1x8xf32> to vector<8x8xf32>
    %1254 = arith.addf %1251, %1253 : vector<8x8xf32>
    %cst_473 = arith.constant dense<0xFF800000> : vector<8xf32>
    %1255 = vector.multi_reduction <maximumf>, %1254, %cst_473 [1] : vector<8x8xf32> to vector<8xf32>
    %1256 = vector.shape_cast %1255 : vector<8xf32> to vector<8x1xf32>
    %1257 = vector.broadcast %1256 : vector<8x1xf32> to vector<8x8xf32>
    %1258 = arith.subf %1254, %1257 : vector<8x8xf32>
    %1259 = math.exp %1258 : vector<8x8xf32>
    %cst_474 = arith.constant dense<0.000000e+00> : vector<8xf32>
    %1260 = vector.multi_reduction <add>, %1259, %cst_474 [1] : vector<8x8xf32> to vector<8xf32>
    %1261 = vector.shape_cast %1260 : vector<8xf32> to vector<8x1xf32>
    %1262 = tpu.reciprocal %1261 {approx = true} : vector<8x1xf32> -> vector<8x1xf32>
    %1263 = vector.broadcast %1262 : vector<8x1xf32> to vector<8x8xf32>
    %1264 = arith.mulf %1259, %1263 : vector<8x8xf32>
    %cst_475 = arith.constant dense<0.000000e+00> : vector<8x8xf32>
    %1265 = tpu.matmul %1264, %1250, %cst_475 {dimension_numbers = #tpu.dot_dimension_numbers<[1], [0], [0], [1], [0, 0, 1, 1], [], []>} : vector<8x8xf32>, vector<8x8xf32>, vector<8x8xf32> -> vector<8x8xf32>
    %1266 = vector.extract_strided_slice %1161 {offsets = [0, 0], sizes = [8, 32], strides = [1, 1]} : vector<32x32xf32> to vector<8x32xf32>
    %cst_476 = arith.constant dense<0.000000e+00> : vector<8x32xf32>
    %1267 = tpu.matmul %1265, %1266, %cst_476 {dimension_numbers = #tpu.dot_dimension_numbers<[1], [0], [0], [1], [0, 0, 1, 1], [], []>} : vector<8x8xf32>, vector<8x32xf32>, vector<8x32xf32> -> vector<8x32xf32>
    %1268 = arith.addf %1247, %1267 : vector<8x32xf32>
    %1269 = vector.extract_strided_slice %1154 {offsets = [8, 8], sizes = [8, 8], strides = [1, 1]} : vector<16x32xf32> to vector<8x8xf32>
    %1270 = vector.extract_strided_slice %1158 {offsets = [8, 8], sizes = [8, 8], strides = [1, 1]} : vector<16x32xf32> to vector<8x8xf32>
    %1271 = vector.extract_strided_slice %1159 {offsets = [8, 8], sizes = [8, 8], strides = [1, 1]} : vector<16x32xf32> to vector<8x8xf32>
    %cst_477 = arith.constant dense<0.000000e+00> : vector<8x8xf32>
    %1272 = tpu.matmul %1269, %1270, %cst_477 {dimension_numbers = #tpu.dot_dimension_numbers<[1], [1], [0], [0], [0, 0, 1, 0], [], []>} : vector<8x8xf32>, vector<8x8xf32>, vector<8x8xf32> -> vector<8x8xf32>
    %1273 = vector.extract_strided_slice %4 {offsets = [1, 0], sizes = [1, 8], strides = [1, 1]} : vector<2x8xf32> to vector<1x8xf32>
    %1274 = vector.broadcast %1273 : vector<1x8xf32> to vector<8x8xf32>
    %1275 = arith.addf %1272, %1274 : vector<8x8xf32>
    %cst_478 = arith.constant dense<0xFF800000> : vector<8xf32>
    %1276 = vector.multi_reduction <maximumf>, %1275, %cst_478 [1] : vector<8x8xf32> to vector<8xf32>
    %1277 = vector.shape_cast %1276 : vector<8xf32> to vector<8x1xf32>
    %1278 = vector.broadcast %1277 : vector<8x1xf32> to vector<8x8xf32>
    %1279 = arith.subf %1275, %1278 : vector<8x8xf32>
    %1280 = math.exp %1279 : vector<8x8xf32>
    %cst_479 = arith.constant dense<0.000000e+00> : vector<8xf32>
    %1281 = vector.multi_reduction <add>, %1280, %cst_479 [1] : vector<8x8xf32> to vector<8xf32>
    %1282 = vector.shape_cast %1281 : vector<8xf32> to vector<8x1xf32>
    %1283 = tpu.reciprocal %1282 {approx = true} : vector<8x1xf32> -> vector<8x1xf32>
    %1284 = vector.broadcast %1283 : vector<8x1xf32> to vector<8x8xf32>
    %1285 = arith.mulf %1280, %1284 : vector<8x8xf32>
    %cst_480 = arith.constant dense<0.000000e+00> : vector<8x8xf32>
    %1286 = tpu.matmul %1285, %1271, %cst_480 {dimension_numbers = #tpu.dot_dimension_numbers<[1], [0], [0], [1], [0, 0, 1, 1], [], []>} : vector<8x8xf32>, vector<8x8xf32>, vector<8x8xf32> -> vector<8x8xf32>
    %1287 = vector.extract_strided_slice %1161 {offsets = [8, 0], sizes = [8, 32], strides = [1, 1]} : vector<32x32xf32> to vector<8x32xf32>
    %cst_481 = arith.constant dense<0.000000e+00> : vector<8x32xf32>
    %1288 = tpu.matmul %1286, %1287, %cst_481 {dimension_numbers = #tpu.dot_dimension_numbers<[1], [0], [0], [1], [0, 0, 1, 1], [], []>} : vector<8x8xf32>, vector<8x32xf32>, vector<8x32xf32> -> vector<8x32xf32>
    %1289 = arith.addf %1268, %1288 : vector<8x32xf32>
    %1290 = vector.extract_strided_slice %1154 {offsets = [8, 16], sizes = [8, 8], strides = [1, 1]} : vector<16x32xf32> to vector<8x8xf32>
    %1291 = vector.extract_strided_slice %1158 {offsets = [8, 16], sizes = [8, 8], strides = [1, 1]} : vector<16x32xf32> to vector<8x8xf32>
    %1292 = vector.extract_strided_slice %1159 {offsets = [8, 16], sizes = [8, 8], strides = [1, 1]} : vector<16x32xf32> to vector<8x8xf32>
    %cst_482 = arith.constant dense<0.000000e+00> : vector<8x8xf32>
    %1293 = tpu.matmul %1290, %1291, %cst_482 {dimension_numbers = #tpu.dot_dimension_numbers<[1], [1], [0], [0], [0, 0, 1, 0], [], []>} : vector<8x8xf32>, vector<8x8xf32>, vector<8x8xf32> -> vector<8x8xf32>
    %1294 = vector.extract_strided_slice %4 {offsets = [1, 0], sizes = [1, 8], strides = [1, 1]} : vector<2x8xf32> to vector<1x8xf32>
    %1295 = vector.broadcast %1294 : vector<1x8xf32> to vector<8x8xf32>
    %1296 = arith.addf %1293, %1295 : vector<8x8xf32>
    %cst_483 = arith.constant dense<0xFF800000> : vector<8xf32>
    %1297 = vector.multi_reduction <maximumf>, %1296, %cst_483 [1] : vector<8x8xf32> to vector<8xf32>
    %1298 = vector.shape_cast %1297 : vector<8xf32> to vector<8x1xf32>
    %1299 = vector.broadcast %1298 : vector<8x1xf32> to vector<8x8xf32>
    %1300 = arith.subf %1296, %1299 : vector<8x8xf32>
    %1301 = math.exp %1300 : vector<8x8xf32>
    %cst_484 = arith.constant dense<0.000000e+00> : vector<8xf32>
    %1302 = vector.multi_reduction <add>, %1301, %cst_484 [1] : vector<8x8xf32> to vector<8xf32>
    %1303 = vector.shape_cast %1302 : vector<8xf32> to vector<8x1xf32>
    %1304 = tpu.reciprocal %1303 {approx = true} : vector<8x1xf32> -> vector<8x1xf32>
    %1305 = vector.broadcast %1304 : vector<8x1xf32> to vector<8x8xf32>
    %1306 = arith.mulf %1301, %1305 : vector<8x8xf32>
    %cst_485 = arith.constant dense<0.000000e+00> : vector<8x8xf32>
    %1307 = tpu.matmul %1306, %1292, %cst_485 {dimension_numbers = #tpu.dot_dimension_numbers<[1], [0], [0], [1], [0, 0, 1, 1], [], []>} : vector<8x8xf32>, vector<8x8xf32>, vector<8x8xf32> -> vector<8x8xf32>
    %1308 = vector.extract_strided_slice %1161 {offsets = [16, 0], sizes = [8, 32], strides = [1, 1]} : vector<32x32xf32> to vector<8x32xf32>
    %cst_486 = arith.constant dense<0.000000e+00> : vector<8x32xf32>
    %1309 = tpu.matmul %1307, %1308, %cst_486 {dimension_numbers = #tpu.dot_dimension_numbers<[1], [0], [0], [1], [0, 0, 1, 1], [], []>} : vector<8x8xf32>, vector<8x32xf32>, vector<8x32xf32> -> vector<8x32xf32>
    %1310 = arith.addf %1289, %1309 : vector<8x32xf32>
    %1311 = vector.extract_strided_slice %1154 {offsets = [8, 24], sizes = [8, 8], strides = [1, 1]} : vector<16x32xf32> to vector<8x8xf32>
    %1312 = vector.extract_strided_slice %1158 {offsets = [8, 24], sizes = [8, 8], strides = [1, 1]} : vector<16x32xf32> to vector<8x8xf32>
    %1313 = vector.extract_strided_slice %1159 {offsets = [8, 24], sizes = [8, 8], strides = [1, 1]} : vector<16x32xf32> to vector<8x8xf32>
    %cst_487 = arith.constant dense<0.000000e+00> : vector<8x8xf32>
    %1314 = tpu.matmul %1311, %1312, %cst_487 {dimension_numbers = #tpu.dot_dimension_numbers<[1], [1], [0], [0], [0, 0, 1, 0], [], []>} : vector<8x8xf32>, vector<8x8xf32>, vector<8x8xf32> -> vector<8x8xf32>
    %1315 = vector.extract_strided_slice %4 {offsets = [1, 0], sizes = [1, 8], strides = [1, 1]} : vector<2x8xf32> to vector<1x8xf32>
    %1316 = vector.broadcast %1315 : vector<1x8xf32> to vector<8x8xf32>
    %1317 = arith.addf %1314, %1316 : vector<8x8xf32>
    %cst_488 = arith.constant dense<0xFF800000> : vector<8xf32>
    %1318 = vector.multi_reduction <maximumf>, %1317, %cst_488 [1] : vector<8x8xf32> to vector<8xf32>
    %1319 = vector.shape_cast %1318 : vector<8xf32> to vector<8x1xf32>
    %1320 = vector.broadcast %1319 : vector<8x1xf32> to vector<8x8xf32>
    %1321 = arith.subf %1317, %1320 : vector<8x8xf32>
    %1322 = math.exp %1321 : vector<8x8xf32>
    %cst_489 = arith.constant dense<0.000000e+00> : vector<8xf32>
    %1323 = vector.multi_reduction <add>, %1322, %cst_489 [1] : vector<8x8xf32> to vector<8xf32>
    %1324 = vector.shape_cast %1323 : vector<8xf32> to vector<8x1xf32>
    %1325 = tpu.reciprocal %1324 {approx = true} : vector<8x1xf32> -> vector<8x1xf32>
    %1326 = vector.broadcast %1325 : vector<8x1xf32> to vector<8x8xf32>
    %1327 = arith.mulf %1322, %1326 : vector<8x8xf32>
    %cst_490 = arith.constant dense<0.000000e+00> : vector<8x8xf32>
    %1328 = tpu.matmul %1327, %1313, %cst_490 {dimension_numbers = #tpu.dot_dimension_numbers<[1], [0], [0], [1], [0, 0, 1, 1], [], []>} : vector<8x8xf32>, vector<8x8xf32>, vector<8x8xf32> -> vector<8x8xf32>
    %1329 = vector.extract_strided_slice %1161 {offsets = [24, 0], sizes = [8, 32], strides = [1, 1]} : vector<32x32xf32> to vector<8x32xf32>
    %cst_491 = arith.constant dense<0.000000e+00> : vector<8x32xf32>
    %1330 = tpu.matmul %1328, %1329, %cst_491 {dimension_numbers = #tpu.dot_dimension_numbers<[1], [0], [0], [1], [0, 0, 1, 1], [], []>} : vector<8x8xf32>, vector<8x32xf32>, vector<8x32xf32> -> vector<8x32xf32>
    %1331 = arith.addf %1310, %1330 : vector<8x32xf32>
    %1332 = tpu.concatenate %1246, %1331 in 0 : vector<8x32xf32>, vector<8x32xf32> -> vector<16x32xf32>
    %1333 = arith.addf %1137, %1332 : vector<16x32xf32>
    %c1_492 = arith.constant 1 : index
    %c0_493 = arith.constant 0 : index
    %c0_494 = arith.constant 0 : index
    %1334 = vector.load %arg19[%c1_492, %c0_493, %c0_494] : memref<2x1x32xf32, #tpu.memory_space<vmem>>, vector<1x1x32xf32>
    %1335 = vector.shape_cast %1334 : vector<1x1x32xf32> to vector<1x32xf32>
    %1336 = arith.mulf %1333, %1333 : vector<16x32xf32>
    %cst_495 = arith.constant dense<0.000000e+00> : vector<16xf32>
    %1337 = vector.multi_reduction <add>, %1336, %cst_495 [1] : vector<16x32xf32> to vector<16xf32>
    %1338 = vector.shape_cast %1337 : vector<16xf32> to vector<16x1xf32>
    %cst_496 = arith.constant 3.200000e+01 : f32
    %1339 = vector.broadcast %cst_496 : f32 to vector<16x1xf32>
    %1340 = arith.divf %1338, %1339 : vector<16x1xf32>
    %cst_497 = arith.constant 9.99999997E-7 : f32
    %1341 = vector.broadcast %cst_497 : f32 to vector<16x1xf32>
    %1342 = arith.addf %1340, %1341 : vector<16x1xf32>
    %1343 = math.rsqrt %1342 : vector<16x1xf32>
    %1344 = vector.broadcast %1343 : vector<16x1xf32> to vector<16x32xf32>
    %1345 = arith.mulf %1333, %1344 : vector<16x32xf32>
    %1346 = vector.broadcast %1335 : vector<1x32xf32> to vector<16x32xf32>
    %1347 = arith.mulf %1346, %1345 : vector<16x32xf32>
    %c1_498 = arith.constant 1 : index
    %c0_499 = arith.constant 0 : index
    %c0_500 = arith.constant 0 : index
    %1348 = vector.load %arg20[%c1_498, %c0_499, %c0_500] : memref<2x32x64xf32, #tpu.memory_space<vmem>>, vector<1x32x64xf32>
    %1349 = vector.shape_cast %1348 : vector<1x32x64xf32> to vector<32x64xf32>
    %cst_501 = arith.constant dense<0.000000e+00> : vector<16x64xf32>
    %1350 = tpu.matmul %1347, %1349, %cst_501 {dimension_numbers = #tpu.dot_dimension_numbers<[1], [0], [0], [1], [0, 0, 1, 1], [], []>} : vector<16x32xf32>, vector<32x64xf32>, vector<16x64xf32> -> vector<16x64xf32>
    %cst_502 = arith.constant 0.000000e+00 : f32
    %1351 = vector.broadcast %cst_502 : f32 to vector<16x64xf32>
    %1352 = arith.maximumf %1350, %1351 : vector<16x64xf32>
    %c1_503 = arith.constant 1 : index
    %c0_504 = arith.constant 0 : index
    %c0_505 = arith.constant 0 : index
    %1353 = vector.load %arg21[%c1_503, %c0_504, %c0_505] : memref<2x64x32xf32, #tpu.memory_space<vmem>>, vector<1x64x32xf32>
    %1354 = vector.shape_cast %1353 : vector<1x64x32xf32> to vector<64x32xf32>
    %cst_506 = arith.constant dense<0.000000e+00> : vector<16x32xf32>
    %1355 = tpu.matmul %1352, %1354, %cst_506 {dimension_numbers = #tpu.dot_dimension_numbers<[1], [0], [0], [1], [0, 0, 1, 1], [], []>} : vector<16x64xf32>, vector<64x32xf32>, vector<16x32xf32> -> vector<16x32xf32>
    %1356 = arith.addf %1333, %1355 : vector<16x32xf32>
    %c0_507 = arith.constant 0 : index
    %c0_508 = arith.constant 0 : index
    %1357 = vector.load %arg22[%c0_507, %c0_508] : memref<1x32xf32, #tpu.memory_space<vmem>>, vector<1x32xf32>
    %1358 = arith.mulf %1356, %1356 : vector<16x32xf32>
    %cst_509 = arith.constant dense<0.000000e+00> : vector<16xf32>
    %1359 = vector.multi_reduction <add>, %1358, %cst_509 [1] : vector<16x32xf32> to vector<16xf32>
    %1360 = vector.shape_cast %1359 : vector<16xf32> to vector<16x1xf32>
    %cst_510 = arith.constant 3.200000e+01 : f32
    %1361 = vector.broadcast %cst_510 : f32 to vector<16x1xf32>
    %1362 = arith.divf %1360, %1361 : vector<16x1xf32>
    %cst_511 = arith.constant 9.99999997E-7 : f32
    %1363 = vector.broadcast %cst_511 : f32 to vector<16x1xf32>
    %1364 = arith.addf %1362, %1363 : vector<16x1xf32>
    %1365 = math.rsqrt %1364 : vector<16x1xf32>
    %1366 = vector.broadcast %1365 : vector<16x1xf32> to vector<16x32xf32>
    %1367 = arith.mulf %1356, %1366 : vector<16x32xf32>
    %1368 = vector.broadcast %1357 : vector<1x32xf32> to vector<16x32xf32>
    %1369 = arith.mulf %1368, %1367 : vector<16x32xf32>
    %c0_512 = arith.constant 0 : index
    %c0_513 = arith.constant 0 : index
    %1370 = vector.load %arg23[%c0_512, %c0_513] : memref<16x32xf32, #tpu.memory_space<vmem>>, vector<16x32xf32>
    tpu.vector_store %arg23[%c0_512, %c0_513], %1369 {strides = array<i32>} : memref<16x32xf32, #tpu.memory_space<vmem>>, vector<16x32xf32>,
    return
  }
}

</mosaic_0001>

<bundles_post_ra>
// kernel: t5_forward.1
= control target key start
LH: loop header
LB: loop body
LE: loop exit
PB: predicated region body
PF: predicated region fallthrough
CT: control target
= control target key end

     0   :  { %s17925_s0 = inlined_call_operand.vmem [shape: s32[16,1], index: 0, kind: input, shape index: {}]   ;;  %s17926_s1 = inlined_call_operand.vmem [shape: f32[2,8], index: 1, kind: input, shape index: {}]   ;;  %s17927_s2 = inlined_call_operand.vmem [shape: f32[64,32], index: 2, kind: input, shape index: {}]   ;;  %s17928_s3 = inlined_call_operand.hbm [shape: f32[4,8,8], index: 3, kind: input, shape index: {}]   ;;  %s17929_s4 = inlined_call_operand.hbm [shape: f32[4,8,8], index: 4, kind: input, shape index: {}]   ;;  %s17930_s5 = inlined_call_operand.vmem [shape: f32[2,1,32], index: 5, kind: input, shape index: {}, may-alias: {5,8,12,15,19}]   ;;  %s17931_s6 = inlined_call_operand.hbm [shape: f32[2,32,96], index: 6, kind: input, shape index: {}]   ;;  %s17932_s7 = inlined_call_operand.hbm [shape: f32[2,32,32], index: 7, kind: input, shape index: {}]   ;;  %s17933_s8 = inlined_call_operand.vmem [shape: f32[2,1,32], index: 8, kind: input, shape index: {}, may-alias: {5,8,12,15,19}]   ;;  %s17934_s9 = inlined_call_operand.hbm [shape: f32[2,32,64], index: 9, kind: input, shape index: {}]   ;;  %s17935_s10 = inlined_call_operand.hbm [shape: f32[2,64,32], index: 10, kind: input, shape index: {}]   ;;  %s17936_s11 = inlined_call_operand.vmem [shape: f32[1,32], index: 11, kind: input, shape index: {}, may-alias: {11,22}]   ;;  %s17937_s12 = inlined_call_operand.vmem [shape: f32[2,1,32], index: 12, kind: input, shape index: {}, may-alias: {5,8,12,15,19}]   ;;  %s17938_s13 = inlined_call_operand.hbm [shape: f32[2,32,96], index: 13, kind: input, shape index: {}]   ;;  %s17939_s14 = inlined_call_operand.hbm [shape: f32[2,32,32], index: 14, kind: input, shape index: {}]   ;;  %s17940_s15 = inlined_call_operand.vmem [shape: f32[2,1,32], index: 15, kind: input, shape index: {}, may-alias: {5,8,12,15,19}]   ;;  %s17941_s16 = inlined_call_operand.hbm [shape: f32[2,32,32], index: 16, kind: input, shape index: {}]   ;;  %s17942_s17 = inlined_call_operand.hbm [shape: f32[2,32,64], index: 17, kind: input, shape index: {}]   ;;  %s17943_s18 = inlined_call_operand.hbm [shape: f32[2,32,32], index: 18, kind: input, shape index: {}]   ;;  %s17944_s19 = inlined_call_operand.vmem [shape: f32[2,1,32], index: 19, kind: input, shape index: {}, may-alias: {5,8,12,15,19}]   ;;  %s17945_s20 = inlined_call_operand.hbm [shape: f32[2,32,64], index: 20, kind: input, shape index: {}]   ;;  %s17946_s21 = inlined_call_operand.hbm [shape: f32[2,64,32], index: 21, kind: input, shape index: {}]   ;;  %s17947_s22 = inlined_call_operand.vmem [shape: f32[1,32], index: 22, kind: input, shape index: {}, may-alias: {11,22}]   ;;  %s17948_s23 = inlined_call_operand.hbm [shape: f32[16,32], index: 23, kind: output, shape index: {0}]   ;;  %s17949_s24 = inlined_call_operand.hbm [shape: f32[16,32], index: 24, kind: output, shape index: {1}]  }
   0x1   :  { %17959 = sst [smem:[#allocation35_spill]] %s17925_s0 }
   0x2   :  { %17960 = sst [smem:[#allocation36_spill]] %s17926_s1 }
   0x3   :  { %17961 = sst [smem:[#allocation37_spill]] %s17927_s2 }
   0x4   :  { %17962 = sst [smem:[#allocation38_spill]] %s17928_s3 }
   0x5   :  { %17963 = sst [smem:[#allocation39_spill]] %s17929_s4 }
   0x6   :  { %17964 = sst [smem:[#allocation40_spill]] %s17930_s5 }
   0x7   :  { %17965 = sst [smem:[#allocation41_spill]] %s17931_s6 }
   0x8   :  { %17966 = sst [smem:[#allocation42_spill]] %s17932_s7 }
   0x9   :  { %17967 = sst [smem:[#allocation43_spill]] %s17933_s8 }
   0xa   :  { %17968 = sst [smem:[#allocation44_spill]] %s17947_s22 }
   0xb   :  { %17969 = sst [smem:[#allocation45_spill]] %s17948_s23 }
   0xc   :  { %30 = vsyncpa [#allocation3], 0 }
   0xd   :  { %31 = vsyncpa [#allocation6], 0 }
   0xe   :  { %32 = vsyncpa [#allocation9], 0 }
   0xf   :  { %33 = vsyncpa [#allocation12], 0 }
  0x10   :  { %34 = vsyncpa [#allocation15], 0 }
  0x11   :  { %35 = vsyncpa [#allocation18], 0 }
  0x12   :  { %36 = vsyncpa [#allocation21], 0 }
  0x13   :  { %37 = vsyncpa [#allocation4], 0 }
  0x14   :  { %38 = vsyncpa [#allocation25], 0  ;;  %s15996_s5 = smov [#allocation5]   ;;  %s15997_s27 = smov [#allocation8]  }
  0x15   :  { %s62_s26 = sshll.u32 %s15996_s5, 4  ;;  %s88_s28 = sshll.u32 %s15997_s27, 4  ;;  %s63_s26 = int_to_ptr.vmem [resolvable:$true] %s62_s26  ;;  %s16153_s28 = int_to_ptr.vmem [resolvable:$true] %s88_s28 }
  0x16   :  { %s17970_s29 = sld [smem:[#allocation39_spill]] }
  0x1c   :  { %s15648_s0 = scalar_lea.hbm %s17970_s29, 512 }
  0x1d   :  { %p15649_p0 = scmp.ne.s32.totalorder %s17970_s29, %s15648_s0  ;;  %p15652_p1 = scmp.lt.u32.totalorder %s15648_s0, %s17970_s29 }
  0x1f   :  { %p15654_p2 = pnand %p15652_p1, %p15649_p0 }
  0x21   :  { %15657 = shalt.err (!%p15654_p2)
}
  0x22   :  { %s15658_s8 = scalar_lea.vmem %s63_s26, 512  ;;  %p15663_p4 = scmp.lt.s32.totalorder %s63_s26, %s63_s26 }
  0x23   :  { %p15659_p3 = scmp.ne.s32.totalorder %s63_s26, %s15658_s8  ;;  %p15664_p5 = scmp.lt.s32.totalorder %s15658_s8, %s15658_s8 }
  0x25   :  { %p15665_p6 = por %p15664_p5, %p15663_p4 }
  0x27   :  { %p15666_p7 = pnand %p15665_p6, %p15659_p3 }
  0x29   :  { %15669 = shalt.err (!%p15666_p7)
}
  0x2a   :  { %s15998_s4 = smov 128   ;;  %s15999_s1 = smov 8  }
  0x2b   :  { %68 = dma.hbm_to_vmem [thread:$0]  %s17970_s29, 512, %s63_s26, [#allocation6], %s15998_s4, %s15998_s4, %s15999_s1  }
  0x2c   :  { %s17971_s0 = sld [smem:[#allocation42_spill]] }
  0x32   :  { %s15670_s7 = scalar_lea.hbm %s17971_s0, 1024 }
  0x33   :  { %p15671_p8 = scmp.ne.s32.totalorder %s17971_s0, %s15670_s7  ;;  %p15674_p9 = scmp.lt.u32.totalorder %s15670_s7, %s17971_s0 }
  0x35   :  { %p15676_p10 = pnand %p15674_p9, %p15671_p8 }
  0x37   :  { %15679 = shalt.err (!%p15676_p10)
}
  0x38   :  { %s15680_s23 = scalar_lea.vmem %s16153_s28, 1024  ;;  %p15685_p12 = scmp.lt.s32.totalorder %s16153_s28, %s16153_s28 }
  0x39   :  { %p15681_p11 = scmp.ne.s32.totalorder %s16153_s28, %s15680_s23  ;;  %p15686_p13 = scmp.lt.s32.totalorder %s15680_s23, %s15680_s23 }
  0x3b   :  { %p15687_p0 = por %p15686_p13, %p15685_p12 }
  0x3d   :  { %p15688_p1 = pnand %p15687_p0, %p15681_p11 }
  0x3f   :  { %15691 = shalt.err (!%p15688_p1)
}
  0x40   :  { %94 = dma.hbm_to_vmem [thread:$0]  %s17971_s0, 1024, %s16153_s28, [#allocation9], %s15998_s4, %s15998_s4, %s15999_s1  }
  0x41   :  { %s16000_s5 = smov [#allocation11]   ;;  %s16001_s6 = smov [#allocation14]  }
  0x42   :  { %s114_s27 = sshll.u32 %s16000_s5, 4  ;;  %s142_s2 = sshll.u32 %s16001_s6, 4  ;;  %s115_s27 = int_to_ptr.vmem [resolvable:$true] %s114_s27  ;;  %s16190_s2 = int_to_ptr.vmem [resolvable:$true] %s142_s2 }
  0x43   :  { %s15692_s30 = scalar_lea.hbm %s17935_s10, 2048 }
  0x44   :  { %p15693_p2 = scmp.ne.s32.totalorder %s17935_s10, %s15692_s30  ;;  %p15696_p3 = scmp.lt.u32.totalorder %s15692_s30, %s17935_s10 }
  0x46   :  { %p15698_p4 = pnand %p15696_p3, %p15693_p2 }
  0x48   :  { %15701 = shalt.err (!%p15698_p4)
}
  0x49   :  { %s15702_s28 = scalar_lea.vmem %s115_s27, 2048  ;;  %p15707_p6 = scmp.lt.s32.totalorder %s115_s27, %s115_s27 }
  0x4a   :  { %p15703_p5 = scmp.ne.s32.totalorder %s115_s27, %s15702_s28  ;;  %p15708_p7 = scmp.lt.s32.totalorder %s15702_s28, %s15702_s28 }
  0x4c   :  { %p15709_p8 = por %p15708_p7, %p15707_p6 }
  0x4e   :  { %p15710_p9 = pnand %p15709_p8, %p15703_p5 }
  0x50   :  { %15713 = shalt.err (!%p15710_p9)
}
  0x51   :  { %120 = dma.hbm_to_vmem [thread:$0]  %s17935_s10, 2048, %s115_s27, [#allocation12], %s15998_s4, %s15998_s4, %s15999_s1  }
  0x52   :  { %s15714_s22 = scalar_lea.hbm %s17939_s14, 1024 }
  0x53   :  { %p15715_p10 = scmp.ne.s32.totalorder %s17939_s14, %s15714_s22  ;;  %p15718_p11 = scmp.lt.u32.totalorder %s15714_s22, %s17939_s14 }
  0x55   :  { %p15720_p12 = pnand %p15718_p11, %p15715_p10 }
  0x57   :  { %15723 = shalt.err (!%p15720_p12)
}
  0x58   :  { %s15724_s3 = scalar_lea.vmem %s16190_s2, 1024  ;;  %p15729_p0 = scmp.lt.s32.totalorder %s16190_s2, %s16190_s2 }
  0x59   :  { %p15725_p13 = scmp.ne.s32.totalorder %s16190_s2, %s15724_s3  ;;  %p15730_p1 = scmp.lt.s32.totalorder %s15724_s3, %s15724_s3 }
  0x5b   :  { %p15731_p2 = por %p15730_p1, %p15729_p0 }
  0x5d   :  { %p15732_p3 = pnand %p15731_p2, %p15725_p13 }
  0x5f   :  { %15735 = shalt.err (!%p15732_p3)
}
  0x60   :  { %148 = dma.hbm_to_vmem [thread:$0]  %s17939_s14, 1024, %s16190_s2, [#allocation15], %s15998_s4, %s15998_s4, %s15999_s1  }
  0x61   :  { %s16002_s25 = smov [#allocation17]   ;;  %s16003_s28 = smov [#allocation20]  }
  0x62   :  { %s168_s8 = sshll.u32 %s16002_s25, 4  ;;  %s194_s0 = sshll.u32 %s16003_s28, 4  ;;  %s169_s8 = int_to_ptr.vmem [resolvable:$true] %s168_s8  ;;  %s16227_s0 = int_to_ptr.vmem [resolvable:$true] %s194_s0 }
  0x63   :  { %s15736_s5 = scalar_lea.hbm %s17942_s17, 1024 }
  0x64   :  { %p15737_p4 = scmp.ne.s32.totalorder %s17942_s17, %s15736_s5  ;;  %p15740_p5 = scmp.lt.u32.totalorder %s15736_s5, %s17942_s17 }
  0x66   :  { %p15742_p6 = pnand %p15740_p5, %p15737_p4 }
  0x68   :  { %15745 = shalt.err (!%p15742_p6)
}
  0x69   :  { %s15746_s14 = scalar_lea.vmem %s169_s8, 1024  ;;  %p15751_p8 = scmp.lt.s32.totalorder %s169_s8, %s169_s8 }
  0x6a   :  { %p15747_p7 = scmp.ne.s32.totalorder %s169_s8, %s15746_s14  ;;  %p15752_p9 = scmp.lt.s32.totalorder %s15746_s14, %s15746_s14 }
  0x6c   :  { %p15753_p10 = por %p15752_p9, %p15751_p8 }
  0x6e   :  { %p15754_p11 = pnand %p15753_p10, %p15747_p7 }
  0x70   :  { %15757 = shalt.err (!%p15754_p11)
}
  0x71   :  { %174 = dma.hbm_to_vmem [thread:$0]  %s17942_s17, 1024, %s169_s8, [#allocation18], %s15998_s4, %s15998_s4, %s15999_s1  }
  0x72   :  { %s15758_s27 = scalar_lea.hbm %s17945_s20, 1024 }
  0x73   :  { %p15759_p12 = scmp.ne.s32.totalorder %s17945_s20, %s15758_s27  ;;  %p15762_p13 = scmp.lt.u32.totalorder %s15758_s27, %s17945_s20 }
  0x75   :  { %p15764_p0 = pnand %p15762_p13, %p15759_p12 }
  0x77   :  { %15767 = shalt.err (!%p15764_p0)
}
  0x78   :  { %s15768_s5 = scalar_lea.vmem %s16227_s0, 1024  ;;  %p15773_p2 = scmp.lt.s32.totalorder %s16227_s0, %s16227_s0 }
  0x79   :  { %p15769_p1 = scmp.ne.s32.totalorder %s16227_s0, %s15768_s5  ;;  %p15774_p3 = scmp.lt.s32.totalorder %s15768_s5, %s15768_s5 }
  0x7b   :  { %p15775_p4 = por %p15774_p3, %p15773_p2 }
  0x7d   :  { %p15776_p5 = pnand %p15775_p4, %p15769_p1 }
  0x7f   :  { %15779 = shalt.err (!%p15776_p5)
}
  0x80   :  { %200 = dma.hbm_to_vmem [thread:$0]  %s17945_s20, 1024, %s16227_s0, [#allocation21], %s15998_s4, %s15998_s4, %s15999_s1  }
  0x81   :  { %s16004_s22 = smov [#allocation2]   ;;  %s16005_s7 = smov [#allocation7]  }
  0x82   :  { %s50_s6 = sshll.u32 %s16004_s22, 4  ;;  %s76_s23 = sshll.u32 %s16005_s7, 4  ;;  %s51_s6 = int_to_ptr.vmem [resolvable:$true] %s50_s6  ;;  %s16264_s23 = int_to_ptr.vmem [resolvable:$true] %s76_s23 }
  0x83   :  { %s17972_s30 = sld [smem:[#allocation38_spill]] }
  0x89   :  { %s15780_s3 = scalar_lea.hbm %s17972_s30, 512 }
  0x8a   :  { %p15781_p6 = scmp.ne.s32.totalorder %s17972_s30, %s15780_s3  ;;  %p15784_p7 = scmp.lt.u32.totalorder %s15780_s3, %s17972_s30 }
  0x8c   :  { %p15786_p8 = pnand %p15784_p7, %p15781_p6 }
  0x8e   :  { %15789 = shalt.err (!%p15786_p8)
}
  0x8f   :  { %s15790_s20 = scalar_lea.vmem %s51_s6, 512  ;;  %p15795_p10 = scmp.lt.s32.totalorder %s51_s6, %s51_s6 }
  0x90   :  { %p15791_p9 = scmp.ne.s32.totalorder %s51_s6, %s15790_s20  ;;  %p15796_p11 = scmp.lt.s32.totalorder %s15790_s20, %s15790_s20 }
  0x92   :  { %p15797_p12 = por %p15796_p11, %p15795_p10 }
  0x94   :  { %p15798_p13 = pnand %p15797_p12, %p15791_p9 }
  0x96   :  { %15801 = shalt.err (!%p15798_p13)
}
  0x97   :  { %56 = dma.hbm_to_vmem [thread:$0]  %s17972_s30, 512, %s51_s6, [#allocation3], %s15998_s4, %s15998_s4, %s15999_s1  }
  0x98   :  { %s17973_s17 = sld [smem:[#allocation41_spill]] }
  0x9e   :  { %s15802_s8 = scalar_lea.hbm %s17973_s17, 1024 }
  0x9f   :  { %p15803_p0 = scmp.ne.s32.totalorder %s17973_s17, %s15802_s8  ;;  %p15806_p1 = scmp.lt.u32.totalorder %s15802_s8, %s17973_s17 }
  0xa1   :  { %p15808_p2 = pnand %p15806_p1, %p15803_p0 }
  0xa3   :  { %15811 = shalt.err (!%p15808_p2)
}
  0xa4   :  { %s15812_s3 = scalar_lea.vmem %s16264_s23, 1024  ;;  %p15817_p4 = scmp.lt.s32.totalorder %s16264_s23, %s16264_s23 }
  0xa5   :  { %p15813_p3 = scmp.ne.s32.totalorder %s16264_s23, %s15812_s3  ;;  %p15818_p5 = scmp.lt.s32.totalorder %s15812_s3, %s15812_s3 }
  0xa7   :  { %p15819_p6 = por %p15818_p5, %p15817_p4 }
  0xa9   :  { %p15820_p7 = pnand %p15819_p6, %p15813_p3 }
  0xab   :  { %15823 = shalt.err (!%p15820_p7)
}
  0xac   :  { %82 = dma.hbm_to_vmem [thread:$0]  %s17973_s17, 1024, %s16264_s23, [#allocation6], %s15998_s4, %s15998_s4, %s15999_s1  }
  0xad   :  { %s16006_s10 = smov [#allocation10]   ;;  %s16007_s25 = smov [#allocation13]  }
  0xae   :  { %s102_s27 = sshll.u32 %s16006_s10, 4  ;;  %s130_s28 = sshll.u32 %s16007_s25, 4  ;;  %s103_s27 = int_to_ptr.vmem [resolvable:$true] %s102_s27  ;;  %s16301_s28 = int_to_ptr.vmem [resolvable:$true] %s130_s28 }
  0xaf   :  { %s15824_s26 = scalar_lea.hbm %s17934_s9, 1024 }
  0xb0   :  { %p15825_p8 = scmp.ne.s32.totalorder %s17934_s9, %s15824_s26  ;;  %p15828_p9 = scmp.lt.u32.totalorder %s15824_s26, %s17934_s9 }
  0xb2   :  { %p15830_p10 = pnand %p15828_p9, %p15825_p8 }
  0xb4   :  { %15833 = shalt.err (!%p15830_p10)
}
  0xb5   :  { %s15834_s23 = scalar_lea.vmem %s103_s27, 1024  ;;  %p15839_p12 = scmp.lt.s32.totalorder %s103_s27, %s103_s27 }
  0xb6   :  { %p15835_p11 = scmp.ne.s32.totalorder %s103_s27, %s15834_s23  ;;  %p15840_p13 = scmp.lt.s32.totalorder %s15834_s23, %s15834_s23 }
  0xb8   :  { %p15841_p0 = por %p15840_p13, %p15839_p12 }
  0xba   :  { %p15842_p1 = pnand %p15841_p0, %p15835_p11 }
  0xbc   :  { %15845 = shalt.err (!%p15842_p1)
}
  0xbd   :  { %108 = dma.hbm_to_vmem [thread:$0]  %s17934_s9, 1024, %s103_s27, [#allocation9], %s15998_s4, %s15998_s4, %s15999_s1  }
  0xbe   :  { %s15846_s3 = scalar_lea.hbm %s17938_s13, 1024 }
  0xbf   :  { %p15847_p2 = scmp.ne.s32.totalorder %s17938_s13, %s15846_s3  ;;  %p15850_p3 = scmp.lt.u32.totalorder %s15846_s3, %s17938_s13 }
  0xc1   :  { %p15852_p4 = pnand %p15850_p3, %p15847_p2 }
  0xc3   :  { %15855 = shalt.err (!%p15852_p4)
}
  0xc4   :  { %s15856_s20 = scalar_lea.vmem %s16301_s28, 1024  ;;  %p15861_p6 = scmp.lt.s32.totalorder %s16301_s28, %s16301_s28 }
  0xc5   :  { %p15857_p5 = scmp.ne.s32.totalorder %s16301_s28, %s15856_s20  ;;  %p15862_p7 = scmp.lt.s32.totalorder %s15856_s20, %s15856_s20 }
  0xc7   :  { %p15863_p8 = por %p15862_p7, %p15861_p6 }
  0xc9   :  { %p15864_p9 = pnand %p15863_p8, %p15857_p5 }
  0xcb   :  { %15867 = shalt.err (!%p15864_p9)
}
  0xcc   :  { %136 = dma.hbm_to_vmem [thread:$0]  %s17938_s13, 1024, %s16301_s28, [#allocation12], %s15998_s4, %s15998_s4, %s15999_s1  }
  0xcd   :  { %s16008_s0 = smov [#allocation16]   ;;  %s16009_s29 = smov [#allocation19]  }
  0xce   :  { %s156_s26 = sshll.u32 %s16008_s0, 4  ;;  %s180_s5 = sshll.u32 %s16009_s29, 4  ;;  %s157_s26 = int_to_ptr.vmem [resolvable:$true] %s156_s26  ;;  %s16338_s5 = int_to_ptr.vmem [resolvable:$true] %s180_s5 }
  0xcf   :  { %s15868_s23 = scalar_lea.hbm %s17941_s16, 1024 }
  0xd0   :  { %p15869_p10 = scmp.ne.s32.totalorder %s17941_s16, %s15868_s23  ;;  %p15872_p11 = scmp.lt.u32.totalorder %s15868_s23, %s17941_s16 }
  0xd2   :  { %p15874_p12 = pnand %p15872_p11, %p15869_p10 }
  0xd4   :  { %15877 = shalt.err (!%p15874_p12)
}
  0xd5   :  { %s15878_s13 = scalar_lea.vmem %s157_s26, 1024  ;;  %p15883_p0 = scmp.lt.s32.totalorder %s157_s26, %s157_s26 }
  0xd6   :  { %p15879_p13 = scmp.ne.s32.totalorder %s157_s26, %s15878_s13  ;;  %p15884_p1 = scmp.lt.s32.totalorder %s15878_s13, %s15878_s13 }
  0xd8   :  { %p15885_p2 = por %p15884_p1, %p15883_p0 }
  0xda   :  { %p15886_p3 = pnand %p15885_p2, %p15879_p13 }
  0xdc   :  { %15889 = shalt.err (!%p15886_p3)
}
  0xdd   :  { %162 = dma.hbm_to_vmem [thread:$0]  %s17941_s16, 1024, %s157_s26, [#allocation15], %s15998_s4, %s15998_s4, %s15999_s1  }
  0xde   :  { %s15890_s10 = scalar_lea.hbm %s17943_s18, 1024 }
  0xdf   :  { %p15891_p4 = scmp.ne.s32.totalorder %s17943_s18, %s15890_s10  ;;  %p15894_p5 = scmp.lt.u32.totalorder %s15890_s10, %s17943_s18 }
  0xe1   :  { %p15896_p6 = pnand %p15894_p5, %p15891_p4 }
  0xe3   :  { %15899 = shalt.err (!%p15896_p6)
}
  0xe4   :  { %s15900_s0 = scalar_lea.vmem %s16338_s5, 1024  ;;  %p15905_p8 = scmp.lt.s32.totalorder %s16338_s5, %s16338_s5 }
  0xe5   :  { %p15901_p7 = scmp.ne.s32.totalorder %s16338_s5, %s15900_s0  ;;  %p15906_p9 = scmp.lt.s32.totalorder %s15900_s0, %s15900_s0 }
  0xe7   :  { %p15907_p10 = por %p15906_p9, %p15905_p8 }
  0xe9   :  { %p15908_p11 = pnand %p15907_p10, %p15901_p7 }
  0xeb   :  { %15911 = shalt.err (!%p15908_p11)
}
  0xec   :  { %186 = dma.hbm_to_vmem [thread:$0]  %s17943_s18, 1024, %s16338_s5, [#allocation18], %s15998_s4, %s15998_s4, %s15999_s1  }
  0xed   :  { %s16010_s29 = smov [#allocation22]   ;;  %s15912_s17 = scalar_lea.hbm %s17946_s21, 2048 }
  0xee   :  { %s206_s8 = sshll.u32 %s16010_s29, 4  ;;  %p15913_p12 = scmp.ne.s32.totalorder %s17946_s21, %s15912_s17  ;;  %s207_s8 = int_to_ptr.vmem [resolvable:$true] %s206_s8 }
  0xef   :  { %p15916_p13 = scmp.lt.u32.totalorder %s15912_s17, %s17946_s21 }
  0xf1   :  { %p15918_p0 = pnand %p15916_p13, %p15913_p12 }
  0xf3   :  { %15921 = shalt.err (!%p15918_p0)
}
  0xf4   :  { %s15922_s28 = scalar_lea.vmem %s207_s8, 2048  ;;  %p15927_p2 = scmp.lt.s32.totalorder %s207_s8, %s207_s8 }
  0xf5   :  { %p15923_p1 = scmp.ne.s32.totalorder %s207_s8, %s15922_s28  ;;  %p15928_p3 = scmp.lt.s32.totalorder %s15922_s28, %s15922_s28 }
  0xf7   :  { %p15929_p4 = por %p15928_p3, %p15927_p2 }
  0xf9   :  { %p15930_p5 = pnand %p15929_p4, %p15923_p1 }
  0xfb   :  { %15933 = shalt.err (!%p15930_p5)
}
  0xfc   :  { %212 = dma.hbm_to_vmem [thread:$0]  %s17946_s21, 2048, %s207_s8, [#allocation21], %s15998_s4, %s15998_s4, %s15999_s1  }
  0xfd   :  { %15978 = dma.done.wait [#allocation3], 512  }
  0xfe   :  { %15979 = vsyncadd [#allocation3], 4294966784 }
  0xff   :  { %15980 = dma.done.wait [#allocation6], 1536  }
 0x100   :  { %15981 = vsyncadd [#allocation6], 4294965760 }
 0x101   :  { %15982 = dma.done.wait [#allocation9], 2048  }
 0x102   :  { %15983 = vsyncadd [#allocation9], 4294965248 }
 0x103   :  { %15984 = dma.done.wait [#allocation12], 3072  }
 0x104   :  { %15985 = vsyncadd [#allocation12], 4294964224 }
 0x105   :  { %15986 = dma.done.wait [#allocation15], 2048  }
 0x106   :  { %15987 = vsyncadd [#allocation15], 4294965248 }
 0x107   :  { %15988 = dma.done.wait [#allocation18], 2048  }
 0x108   :  { %15989 = vsyncadd [#allocation18], 4294965248 }
 0x109   :  { %15990 = dma.done.wait [#allocation21], 3072  }
 0x10a   :  { %15991 = vsyncadd [#allocation21], 4294964224  ;;  %v16011_v0 = vmov 0   ;;  %s17974_s30 = sld [smem:[#allocation35_spill]]  ;;  %s17975_s25 = sld [smem:[#allocation37_spill]]  ;;  %v257_v3 = vlaneseq  ;;  %v16012_v22 = vmov 0.0  }
 0x10b   :  { %15411 = vset.pattern.permute.xlu0 %v16011_v0  ;;  %s17976_s13 = sld [smem:[#allocation36_spill]]  ;;  %vm285_vm0 = vcmask 523264   ;;  %vm370_vm3 = vcmask 261120   ;;  %v394_v34 = vld [vmem:[#allocation7] sm:$0xff]  ;;  %v395_v35 = vld [vmem:[#allocation7 + $0x8] sm:$0xff]  ;;  %v396_v36 = vld [vmem:[#allocation7 + $0x10] sm:$0xff] }
 0x10c   :  { %v16408_v10 = vshrl.u32 %v257_v3, 7  ;;  %v16432_v23 = vand.u32 127, %v257_v3  ;;  %v15219_v37 = vpack.c.bf16 %v395_v35, %v394_v34  ;;  %v397_v38 = vld [vmem:[#allocation7 + $0x18] sm:$0xff]  ;;  %s17977_s21 = sld [smem:[#allocation40_spill]]  ;;  %vm16013_vm4 = vmmov 0   ;;  %s16014_s10 = smov 88  }
 0x10d   :  { %v15223_v39 = vpack.c.bf16 %v397_v38, %v396_v36  ;;  %s16016_s20 = smov 120   ;;  %vm492_vm5 = vcmask 64512   ;;  %v16493_v60 = vld [vmem:[#allocation2] sm:$0xff]  ;;  %v16499_v62 = vld [vmem:[#allocation2 + $0x8] sm:$0xff]  ;;  %s16017_s9 = smov 56  }
 0x10e   :  { %v1454_v15 = vsub.s32 1, %v16408_v10  ;;  %15220 = vmatprep.subr.bf16.mxu1 %v15219_v37  ;;  %v486_v58 = vsub.s32 0, %v16408_v10  ;;  %s16018_s27 = smov 112   ;;  %s16019_s0 = smov 64   ;;  %vm261_vm6 = vcmp.le.s32.totalorder %v16432_v23, %v16408_v10 }
 0x10f   :  { %15222 = vmatpush3.bf16.msra.mxu1 %v15219_v37  ;;  %s16020_s16 = smov 80   ;;  %s16021_s26 = smov 48  }
 0x110   :  { %v263_v1 = vld [vmem:[%s17974_s30] sm:$0xff]  ;;  %v278_v4 = vld [vmem:[%s17975_s25 + $0x8] sm:$0xff]  ;;  %v279_v5 = vld [vmem:[%s17975_s25 + $0x10] sm:$0xff]  ;;  %15224 = vmatprep.subr.bf16.mxu1 %v15223_v39  ;;  %s16022_s29 = smov 104   ;;  %s16023_s8 = smov 72  }
 0x111   :  { %v277_v2 = vld [vmem:[%s17975_s25] sm:$0xff]  ;;  %266 = vperm.xlu0 %15411, %v263_v1   ;;  %v280_v6 = vld [vmem:[%s17975_s25 + $0x18] sm:$0xff]  ;;  %v264_v7 = vld [vmem:[%s17974_s30 + $0x8] sm:$0xff]  ;;  %s16024_s22 = smov 40   ;;  %s17978_s7 = sld [smem:[#allocation43_spill]] }
 0x112   :  { %v15203_v8 = vpack.c.bf16 %v278_v4, %v277_v2  ;;  %v15207_v9 = vpack.c.bf16 %v280_v6, %v279_v5  ;;  %v281_v11 = vld [vmem:[%s17975_s25 + $0x20] sm:$0xff]  ;;  %v282_v12 = vld [vmem:[%s17975_s25 + $0x28] sm:$0xff]  ;;  %v283_v18 = vld [vmem:[%s17975_s25 + $0x30] sm:$0xff] }
 0x113   :  { %v254_v13 = vld [vmem:[%s17976_s13] sm:$0x3]  ;;  %v15211_v16 = vpack.c.bf16 %v282_v12, %v281_v11  ;;  %v284_v19 = vld [vmem:[%s17975_s25 + $0x38] sm:$0xff]  ;;  %15226 = vmatpush3.bf16.msra.mxu1 %v15223_v39  ;;  %s16015_s25 = smov 96  }
 0x114   :  { %15204 = vmatprep.subr.bf16.mxu0 %v15203_v8  ;;  %v255_v14 = vsub.f32 1.0, %v254_v13  ;;  %v15215_v21 = vpack.c.bf16 %v284_v19, %v283_v18  ;;  %14291 = vmatprep.subr.mxu1 %v16012_v22  ;;  %v13605_v47 = vld [vmem:[%s17977_s21] ss:$0 sm:$0xff]  ;;  %v16519_v19 = vld [vmem:[#allocation8 + $0x8] sm:$0xff] }
 0x115   :  { %269 = vperm.xlu0 %15411, %v264_v7   ;;  %15206 = vmatpush3.bf16.msra.mxu0 %v15203_v8 }
 0x116   :  { %15208 = vmatprep.subr.bf16.mxu0 %v15207_v9  ;;  %v16420_v17 = vmul.f32 -1e+09, %v255_v14 }
 0x118   :  { %v16429_v20 = vrot.slane %v16420_v17, %v1454_v15  ;;  %v16491_v59 = vrot.slane %v16420_v17, %v486_v58 }
 0x119   :  { %15210 = vmatpush3.bf16.msra.mxu0 %v15207_v9 }
 0x11a   :  { %15212 = vmatprep.subr.bf16.mxu0 %v15211_v16  ;;  %v16497_v61 = vadd.f32 %v16491_v59, %v16493_v60  ;;  %v16504_v2 = vadd.f32 %v16499_v62, %v16491_v59 }
 0x11d   :  { %15214 = vmatpush3.bf16.msra.mxu0 %v15211_v16 }
 0x11e   :  { %15216 = vmatprep.subr.bf16.mxu0 %v15215_v21 }
 0x121   :  { %15218 = vmatpush3.bf16.msra.mxu0 %v15215_v21 }
 0x122   :  { %14286 = vmatprep.subr.mxu0 %v16012_v22 }
 0x190   :  { %v267_v24 = vpop.permute.xlu0 %266 }
 0x191   :  { %vm271_vm1 = vcmp.eq.s32.totalorder %v16432_v23, %v267_v24 }
 0x192   :  { %v13601_v25 = vsel %vm271_vm1, 1.0, %v16012_v22 }
 0x193   :  { %14272 = vmatprep.mubr.msk.f32.mxu0 %vm285_vm0, %v13601_v25 }
 0x194   :  { %v270_v26 = vpop.permute.xlu0 %269 }
 0x195   :  { %vm272_vm2 = vcmp.eq.s32.totalorder %v16432_v23, %v270_v26 }
 0x196   :  { %v13602_v27 = vsel %vm272_vm2, 1.0, %v16012_v22 }
 0x197   :  { %14273 = vmatmul.mubr.msk.f32.vlgmr.msra.gmra.mrb[0].mxu0 %vm285_vm0, %v13602_v27 }
 0x198   :  { %14288 = vmatprep.mubr.msk.f32.mxu0 %vm16013_vm4, %v16012_v22 }
 0x26a   :  { %v16440_v28 = vpop.f32.mrb[0].mxu0 }
 0x26b   :  { %v16442_v29 = vpop.f32.mrb[1].mxu0  ;;  %v369_v32 = vmul.f32 %v16440_v28, %v16440_v28 }
 0x26c   :  { %v368_v30 = vmul.f32 %v16442_v29, %v16442_v29 }
 0x26d   :  { %v374_v33 = vsel %vm370_vm3, %v369_v32, 0.0 }
 0x26e   :  { %v371_v31 = vsel %vm370_vm3, %v368_v30, 0.0 }
 0x26f   :  { %372 = vadd.xlane.f32.xlu1 %v371_v31 }
 0x273   :  { %375 = vadd.xlane.f32.xlu1 %v374_v33  ;;  %v16531_v33 = vld [vmem:[#allocation8] sm:$0xff] }
 0x2fc   :  { %v373_v40 = vpop.xlane.xlu1 %372 }
 0x2fd   :  { %v378_v41 = vmul.f32 0.03125, %v373_v40 }
 0x2ff   :  { %v380_v42 = vadd.f32 1e-06, %v378_v41 }
 0x300   :  { %v376_v43 = vpop.xlane.xlu1 %375 }
 0x301   :  { %15412 = vrsqrt.f32 %v380_v42  ;;  %v379_v44 = vmul.f32 0.03125, %v376_v43  ;;  %v16546_v42 = vld [vmem:[#allocation2 + $0x10] sm:$0xff] }
 0x303   :  { %v381_v45 = vadd.f32 1e-06, %v379_v44 }
 0x305   :  { %15414 = vrsqrt.f32 %v381_v45 }
 0x30b   :  { %v15413_v46 = vpop.eup %15412 }
 0x30c   :  { %v16455_v48 = vmul.f32 %v15413_v46, %v16442_v29  ;;  %v16552_v46 = vadd.f32 %v16546_v42, %v16491_v59 }
 0x30e   :  { %v392_v49 = vmul.f32 %v13605_v47, %v16455_v48 }
 0x30f   :  { %v15415_v50 = vpop.eup %15414 }
 0x310   :  { %v16459_v51 = vmul.f32 %v15415_v50, %v16440_v28  ;;  %14283 = vmatprep.mubr.msk.f32.mxu1 %vm370_vm3, %v392_v49 }
 0x312   :  { %v393_v52 = vmul.f32 %v13605_v47, %v16459_v51 }
 0x314   :  { %14284 = vmatmul.mubr.msk.f32.vlgmr.msra.gmra.mrb[0].mxu1 %vm370_vm3, %v393_v52 }
 0x315   :  { %14293 = vmatprep.mubr.msk.f32.mxu1 %vm16013_vm4, %v16012_v22 }
 0x3e7   :  { %v16468_v53 = vpop.f32.mrb[0].mxu1 }
 0x3e8   :  { %v16470_v54 = vpop.f32.mrb[1].mxu1 }
 0x3e9   :  { %659 = vrot.lane.b32.xlu1 %v16470_v54, %s16014_s10  ;;  %490 = vrot.lane.b32.xlu0 %v16470_v54, %s16015_s25 }
 0x3ed   :  { %657 = vrot.lane.b32.xlu0 %v16470_v54, %s16016_s20 }
 0x45b   :  { %v491_v55 = vpop.permute.xlu0 %490  ;;  %v660_v56 = vpop.permute.xlu1 %659 }
 0x45c   :  { %14287 = vmatpush3.xpose.msk.msra.mxu0 %vm492_vm5, %v491_v55 }
 0x45d   :  { %14296 = vmatprep.subr.mxu0 %v16012_v22 }
 0x45f   :  { %14289 = vmatmul.mubr.msk.f32.vlgmr.msra.gmra.mrb[2].mxu0 %vm492_vm5, %v16470_v54  ;;  %v658_v57 = vpop.permute.xlu0 %657 }
 0x460   :  { %14297 = vmatpush3.xpose.msk.msra.mxu0 %vm492_vm5, %v660_v56  ;;  %14298 = vmatprep.mubr.msk.f32.mxu0 %vm16013_vm4, %v16012_v22 }
 0x461   :  { %14306 = vmatprep.subr.mxu0 %v16012_v22 }
 0x463   :  { %14299 = vmatmul.mubr.msk.f32.vlgmr.msra.gmra.mrb[4].mxu0 %vm492_vm5, %v658_v57 }
 0x464   :  { %14308 = vmatprep.mubr.msk.f32.mxu0 %vm16013_vm4, %v16012_v22  ;;  %14307 = vmatpush3.msra.mxu0 %v16519_v19 }
 0x465   :  { %14316 = vmatprep.subr.mxu0 %v16012_v22 }
 0x532   :  { %v563_v63 = vpop.f32.mrb[2].mxu0 }
 0x533   :  { %v564_v0 = vadd.f32 %v563_v63, %v16497_v61  ;;  %v14290_v1 = vpop.f32.mrb[3].mxu0 }
 0x535   :  { %v567_v3 = vsel %vm492_vm5, %v564_v0, -inf }
 0x536   :  { %v731_v4 = vpop.f32.mrb[4].mxu0  ;;  %568 = vmax.xlane.f32.xlu0 %v567_v3 }
 0x537   :  { %v732_v5 = vadd.f32 %v731_v4, %v16504_v2  ;;  %v14300_v6 = vpop.f32.mrb[5].mxu0 }
 0x539   :  { %v735_v7 = vsel %vm492_vm5, %v732_v5, -inf }
 0x53a   :  { %736 = vmax.xlane.f32.xlu1 %v735_v7  ;;  %v16572_v7 = vld [vmem:[#allocation8 + $0x10] sm:$0xff] }
 0x54b   :  { %746 = vrot.lane.b32.xlu1 %v16470_v54, %s16017_s9 }
 0x54f   :  { %971 = vrot.lane.b32.xlu1 %v16470_v54, %s16018_s27 }
 0x5c3   :  { %v569_v8 = vpop.xlane.xlu0 %568 }
 0x5c4   :  { %v570_v9 = vsub.f32 %v564_v0, %v569_v8  ;;  %v16576_v8 = vld [vmem:[#allocation2 + $0x18] sm:$0xff] }
 0x5c6   :  { %v571_v11 = vmul.f32 1.442695, %v570_v9 }
 0x5c7   :  { %v737_v12 = vpop.xlane.xlu1 %736 }
 0x5c8   :  { %15416 = vpow2.f32 %v571_v11  ;;  %v738_v13 = vsub.f32 %v732_v5, %v737_v12  ;;  %v16581_v12 = vadd.f32 %v16576_v8, %v16491_v59 }
 0x5ca   :  { %v739_v14 = vmul.f32 1.442695, %v738_v13 }
 0x5cb   :  { %v747_v30 = vpop.permute.xlu1 %746 }
 0x5cc   :  { %15418 = vpow2.f32 %v739_v14 }
 0x5cf   :  { %v972_v39 = vpop.permute.xlu1 %971 }
 0x5d2   :  { %v15417_v15 = vpop.eup %15416 }
 0x5d3   :  { %v573_v16 = vsel %vm492_vm5, %v15417_v15, 0.0 }
 0x5d4   :  { %574 = vadd.xlane.f32.xlu0 %v573_v16 }
 0x5d6   :  { %v15419_v17 = vpop.eup %15418 }
 0x5d7   :  { %v741_v18 = vsel %vm492_vm5, %v15419_v17, 0.0 }
 0x5d8   :  { %742 = vadd.xlane.f32.xlu0 %v741_v18 }
 0x5ee   :  { %578 = vrot.lane.b32.xlu0 %v16470_v54, %s16019_s0 }
 0x5f2   :  { %973 = vrot.lane.b32.xlu0 %v16470_v54, %s16020_s16 }
 0x661   :  { %v575_v21 = vpop.xlane.xlu0 %574 }
 0x662   :  { %15420 = vrcp.f32 %v575_v21 }
 0x665   :  { %v743_v24 = vpop.xlane.xlu0 %742 }
 0x666   :  { %15422 = vrcp.f32 %v743_v24 }
 0x669   :  { %v579_v25 = vpop.permute.xlu0 %578 }
 0x66a   :  { %14292 = vmatpush3.msra.mxu1 %v579_v25 }
 0x66b   :  { %14301 = vmatprep.subr.mxu1 %v16012_v22 }
 0x66c   :  { %v15421_v26 = vpop.eup %15420 }
 0x66d   :  { %v577_v27 = vmul.f32 %v15421_v26, %v15417_v15  ;;  %v974_v37 = vpop.permute.xlu0 %973 }
 0x66f   :  { %14294 = vmatmul.mubr.msk.f32.vlgmr.msra.gmra.mrb[2].mxu1 %vm492_vm5, %v577_v27 }
 0x670   :  { %v15423_v31 = vpop.eup %15422  ;;  %14302 = vmatpush3.msra.mxu1 %v747_v30  ;;  %14303 = vmatprep.mubr.msk.f32.mxu1 %vm16013_vm4, %v16012_v22 }
 0x671   :  { %v745_v32 = vmul.f32 %v15423_v31, %v15419_v17  ;;  %14311 = vmatprep.subr.mxu1 %v16012_v22 }
 0x673   :  { %14304 = vmatmul.mubr.msk.f32.vlgmr.msra.gmra.mrb[4].mxu1 %vm492_vm5, %v745_v32 }
 0x674   :  { %14313 = vmatprep.mubr.msk.f32.mxu1 %vm16013_vm4, %v16012_v22  ;;  %14312 = vmatpush3.msra.mxu1 %v16531_v33 }
 0x675   :  { %14321 = vmatprep.subr.mxu1 %v16012_v22 }
 0x742   :  { %v650_v34 = vpop.f32.mrb[2].mxu1 }
 0x743   :  { %v14295_v35 = vpop.f32.mrb[3].mxu1  ;;  %14314 = vmatmul.mubr.msk.f32.vlgmr.msra.gmra.mrb[6].mxu1 %vm492_vm5, %v650_v34 }
 0x744   :  { %14323 = vmatprep.mubr.msk.f32.mxu1 %vm16013_vm4, %v16012_v22 }
 0x746   :  { %v818_v36 = vpop.f32.mrb[4].mxu1 }
 0x747   :  { %v14305_v38 = vpop.f32.mrb[5].mxu1  ;;  %14309 = vmatmul.mubr.msk.f32.vlgmr.msra.gmra.mrb[6].mxu0 %vm492_vm5, %v818_v36 }
 0x748   :  { %14317 = vmatpush3.xpose.msk.msra.mxu0 %vm492_vm5, %v974_v37  ;;  %14318 = vmatprep.mubr.msk.f32.mxu0 %vm16013_vm4, %v16012_v22  ;;  %v16614_v38 = vld [vmem:[#allocation8 + $0x18] sm:$0xff] }
 0x749   :  { %14326 = vmatprep.subr.mxu0 %v16012_v22 }
 0x74b   :  { %14319 = vmatmul.mubr.msk.f32.vlgmr.msra.gmra.mrb[8].mxu0 %vm492_vm5, %v972_v39 }
 0x74c   :  { %14328 = vmatprep.mubr.msk.f32.mxu0 %vm16013_vm4, %v16012_v22  ;;  %14327 = vmatpush3.msra.mxu0 %v16572_v7 }
 0x74d   :  { %14336 = vmatprep.subr.mxu0 %v16012_v22 }
 0x816   :  { %v964_v40 = vpop.f32.mrb[6].mxu1 }
 0x817   :  { %v14315_v41 = vpop.f32.mrb[7].mxu1 }
 0x818   :  { %v16621_v41 = vadd.f32 %v16429_v20, %v16493_v60 }
 0x81a   :  { %v891_v43 = vpop.f32.mrb[6].mxu0 }
 0x81b   :  { %v16548_v44 = vadd.f32 %v964_v40, %v891_v43  ;;  %v14310_v45 = vpop.f32.mrb[7].mxu0 }
 0x81c   :  { %v16628_v45 = vadd.f32 %v16429_v20, %v16499_v62 }
 0x81e   :  { %v1045_v47 = vpop.f32.mrb[8].mxu0 }
 0x81f   :  { %v1046_v49 = vadd.f32 %v1045_v47, %v16552_v46  ;;  %v14320_v50 = vpop.f32.mrb[9].mxu0 }
 0x821   :  { %v1049_v52 = vsel %vm492_vm5, %v1046_v49, -inf }
 0x822   :  { %1050 = vmax.xlane.f32.xlu0 %v1049_v52 }
 0x838   :  { %1060 = vrot.lane.b32.xlu0 %v16470_v54, %s16021_s26 }
 0x83c   :  { %1213 = vrot.lane.b32.xlu0 %v16470_v54, %s16022_s29 }
 0x8af   :  { %v1051_v55 = vpop.xlane.xlu0 %1050 }
 0x8b0   :  { %v1052_v56 = vsub.f32 %v1046_v49, %v1051_v55 }
 0x8b2   :  { %v1053_v57 = vmul.f32 1.442695, %v1052_v56 }
 0x8b3   :  { %v1061_v58 = vpop.permute.xlu0 %1060 }
 0x8b4   :  { %15424 = vpow2.f32 %v1053_v57  ;;  %14322 = vmatpush3.msra.mxu1 %v1061_v58 }
 0x8b5   :  { %14331 = vmatprep.subr.mxu1 %v16012_v22 }
 0x8b7   :  { %v1214_v6 = vpop.permute.xlu0 %1213 }
 0x8be   :  { %v15425_v63 = vpop.eup %15424 }
 0x8bf   :  { %v1055_v0 = vsel %vm492_vm5, %v15425_v63, 0.0 }
 0x8c0   :  { %1056 = vadd.xlane.f32.xlu1 %v1055_v0 }
 0x8d1   :  { %1215 = vrot.lane.b32.xlu1 %v16470_v54, %s16023_s8 }
 0x94d   :  { %v1057_v1 = vpop.xlane.xlu1 %1056 }
 0x94e   :  { %15426 = vrcp.f32 %v1057_v1 }
 0x951   :  { %v1216_v5 = vpop.permute.xlu1 %1215 }
 0x958   :  { %v15427_v3 = vpop.eup %15426 }
 0x959   :  { %v1059_v4 = vmul.f32 %v15427_v3, %v15425_v63 }
 0x95b   :  { %14324 = vmatmul.mubr.msk.f32.vlgmr.msra.gmra.mrb[8].mxu1 %vm492_vm5, %v1059_v4 }
 0x95c   :  { %14332 = vmatpush3.xpose.msk.msra.mxu1 %vm492_vm5, %v1216_v5  ;;  %14333 = vmatprep.mubr.msk.f32.mxu1 %vm16013_vm4, %v16012_v22 }
 0x95d   :  { %14341 = vmatprep.subr.mxu1 %v16012_v22 }
 0x95f   :  { %14334 = vmatmul.mubr.msk.f32.vlgmr.msra.gmra.mrb[10].mxu1 %vm492_vm5, %v1214_v6 }
 0x960   :  { %14343 = vmatprep.mubr.msk.f32.mxu1 %vm16013_vm4, %v16012_v22  ;;  %14342 = vmatpush3.msra.mxu1 %v16614_v38 }
 0x961   :  { %14351 = vmatprep.subr.mxu1 %v16012_v22 }
 0xa2e   :  { %v1132_v9 = vpop.f32.mrb[8].mxu1 }
 0xa2f   :  { %v14325_v11 = vpop.f32.mrb[9].mxu1  ;;  %14329 = vmatmul.mubr.msk.f32.vlgmr.msra.gmra.mrb[10].mxu0 %vm492_vm5, %v1132_v9 }
 0xa30   :  { %14338 = vmatprep.mubr.msk.f32.mxu0 %vm16013_vm4, %v16012_v22 }
 0xa32   :  { %v1287_v13 = vpop.f32.mrb[10].mxu1 }
 0xa33   :  { %v1288_v14 = vadd.f32 %v1287_v13, %v16581_v12  ;;  %v14335_v15 = vpop.f32.mrb[11].mxu1 }
 0xa35   :  { %v1291_v16 = vsel %vm492_vm5, %v1288_v14, -inf }
 0xa36   :  { %1292 = vmax.xlane.f32.xlu1 %v1291_v16 }
 0xa47   :  { %1458 = vrot.lane.b32.xlu1 %v16468_v53, %s16015_s25 }
 0xa4b   :  { %1624 = vrot.lane.b32.xlu1 %v16468_v53, %s16014_s10 }
 0xac3   :  { %v1293_v17 = vpop.xlane.xlu1 %1292 }
 0xac4   :  { %v1294_v18 = vsub.f32 %v1288_v14, %v1293_v17 }
 0xac6   :  { %v1295_v21 = vmul.f32 1.442695, %v1294_v18 }
 0xac7   :  { %v1459_v35 = vpop.permute.xlu1 %1458 }
 0xac8   :  { %15428 = vpow2.f32 %v1295_v21 }
 0xad2   :  { %v15429_v24 = vpop.eup %15428 }
 0xad3   :  { %v1297_v25 = vsel %vm492_vm5, %v15429_v24, 0.0 }
 0xad4   :  { %1298 = vadd.xlane.f32.xlu0 %v1297_v25 }
 0xaea   :  { %1302 = vrot.lane.b32.xlu0 %v16470_v54, %s16024_s22  ;;  %v1625_v54 = vpop.permute.xlu1 %1624 }
 0xaee   :  { %1622 = vrot.lane.b32.xlu0 %v16468_v53, %s16016_s20 }
 0xb02   :  { %v1205_v26 = vpop.f32.mrb[10].mxu0 }
 0xb03   :  { %v1209_v27 = vadd.f32 %v1205_v26, %v16548_v44  ;;  %v14330_v30 = vpop.f32.mrb[11].mxu0 }
 0xb61   :  { %v1299_v31 = vpop.xlane.xlu0 %1298 }
 0xb62   :  { %15430 = vrcp.f32 %v1299_v31 }
 0xb65   :  { %v1303_v32 = vpop.permute.xlu0 %1302 }
 0xb66   :  { %14337 = vmatpush3.msra.mxu0 %v1303_v32 }
 0xb67   :  { %14346 = vmatprep.subr.mxu0 %v16012_v22 }
 0xb69   :  { %v1623_v37 = vpop.permute.xlu0 %1622 }
 0xb6c   :  { %v15431_v34 = vpop.eup %15430 }
 0xb6d   :  { %v1301_v36 = vmul.f32 %v15431_v34, %v15429_v24 }
 0xb6f   :  { %14339 = vmatmul.mubr.msk.f32.vlgmr.msra.gmra.mrb[12].mxu0 %vm492_vm5, %v1301_v36 }
 0xb70   :  { %14347 = vmatpush3.xpose.msk.msra.mxu0 %vm492_vm5, %v1459_v35  ;;  %14348 = vmatprep.mubr.msk.f32.mxu0 %vm16013_vm4, %v16012_v22 }
 0xb71   :  { %14356 = vmatprep.subr.mxu0 %v16012_v22 }
 0xb73   :  { %14349 = vmatmul.mubr.msk.f32.vlgmr.msra.gmra.mrb[14].mxu0 %vm492_vm5, %v16468_v53 }
 0xb74   :  { %14357 = vmatpush3.xpose.msk.msra.mxu0 %vm492_vm5, %v1625_v54  ;;  %14358 = vmatprep.mubr.msk.f32.mxu0 %vm16013_vm4, %v16012_v22 }
 0xb75   :  { %14366 = vmatprep.subr.mxu0 %v16012_v22 }
 0xb77   :  { %14359 = vmatmul.mubr.msk.f32.vlgmr.msra.gmra.mrb[16].mxu0 %vm492_vm5, %v1623_v37  ;;  %v16671_v37 = vadd.f32 %v16429_v20, %v16546_v42 }
 0xb78   :  { %14367 = vmatpush3.msra.mxu0 %v16519_v19  ;;  %14368 = vmatprep.mubr.msk.f32.mxu0 %vm16013_vm4, %v16012_v22 }
 0xb79   :  { %14376 = vmatprep.subr.mxu0 %v16012_v22 }
 0xc42   :  { %v1374_v39 = vpop.f32.mrb[12].mxu0 }
 0xc43   :  { %v14340_v40 = vpop.f32.mrb[13].mxu0  ;;  %14344 = vmatmul.mubr.msk.f32.vlgmr.msra.gmra.mrb[12].mxu1 %vm492_vm5, %v1374_v39 }
 0xc44   :  { %14353 = vmatprep.mubr.msk.f32.mxu1 %vm16013_vm4, %v16012_v22 }
 0xc46   :  { %v1530_v19 = vpop.f32.mrb[14].mxu0 }
 0xc47   :  { %v1531_v43 = vadd.f32 %v1530_v19, %v16621_v41  ;;  %v14350_v44 = vpop.f32.mrb[15].mxu0 }
 0xc49   :  { %v1534_v47 = vsel %vm492_vm5, %v1531_v43, -inf }
 0xc4a   :  { %1535 = vmax.xlane.f32.xlu1 %v1534_v47  ;;  %v1696_v49 = vpop.f32.mrb[16].mxu0 }
 0xc4b   :  { %v1697_v50 = vadd.f32 %v1696_v49, %v16628_v45  ;;  %v14360_v52 = vpop.f32.mrb[17].mxu0 }
 0xc4d   :  { %v1700_v60 = vsel %vm492_vm5, %v1697_v50, -inf }
 0xc4e   :  { %1701 = vmax.xlane.f32.xlu0 %v1700_v60 }
 0xcd7   :  { %v1536_v55 = vpop.xlane.xlu1 %1535 }
 0xcd8   :  { %v1537_v56 = vsub.f32 %v1531_v43, %v1536_v55 }
 0xcda   :  { %v1538_v57 = vmul.f32 1.442695, %v1537_v56 }
 0xcdb   :  { %v1702_v58 = vpop.xlane.xlu0 %1701 }
 0xcdc   :  { %15432 = vpow2.f32 %v1538_v57  ;;  %v1703_v63 = vsub.f32 %v1697_v50, %v1702_v58 }
 0xcde   :  { %v1704_v0 = vmul.f32 1.442695, %v1703_v63 }
 0xce0   :  { %15434 = vpow2.f32 %v1704_v0  ;;  %v16695_v0 = vadd.f32 %v16429_v20, %v16576_v8 }
 0xce6   :  { %v15433_v62 = vpop.eup %15432 }
 0xce7   :  { %v1540_v1 = vsel %vm492_vm5, %v15433_v62, 0.0 }
 0xce8   :  { %1541 = vadd.xlane.f32.xlu0 %v1540_v1 }
 0xcea   :  { %v15435_v3 = vpop.eup %15434 }
 0xceb   :  { %v1706_v4 = vsel %vm492_vm5, %v15435_v3, 0.0 }
 0xcec   :  { %1707 = vadd.xlane.f32.xlu1 %v1706_v4 }
 0xcfd   :  { %1711 = vrot.lane.b32.xlu1 %v16468_v53, %s16017_s9 }
 0xcfe   :  { %1545 = vrot.lane.b32.xlu0 %v16468_v53, %s16019_s0 }
 0xd01   :  { %1936 = vrot.lane.b32.xlu1 %v16468_v53, %s16020_s16 }
 0xd02   :  { %1934 = vrot.lane.b32.xlu0 %v16468_v53, %s16018_s27 }
 0xd16   :  { %v1447_v5 = vpop.f32.mrb[12].mxu1 }
 0xd17   :  { %v1451_v6 = vadd.f32 %v1447_v5, %v1209_v27  ;;  %v14345_v9 = vpop.f32.mrb[13].mxu1 }
 0xd19   :  { %v16644_v11 = vadd.f32 %v1451_v6, %v16442_v29 }
 0xd75   :  { %v1542_v13 = vpop.xlane.xlu0 %1541 }
 0xd76   :  { %15436 = vrcp.f32 %v1542_v13 }
 0xd79   :  { %v1708_v14 = vpop.xlane.xlu1 %1707  ;;  %v1546_v15 = vpop.permute.xlu0 %1545 }
 0xd7a   :  { %15438 = vrcp.f32 %v1708_v14  ;;  %14352 = vmatpush3.msra.mxu1 %v1546_v15  ;;  %v2416_v14 = vmul.f32 %v16644_v11, %v16644_v11 }
 0xd7b   :  { %14361 = vmatprep.subr.mxu1 %v16012_v22 }
 0xd7c   :  { %v2418_v15 = vsel %vm370_vm3, %v2416_v14, 0.0 }
 0xd7d   :  { %v1712_v18 = vpop.permute.xlu1 %1711 }
 0xd80   :  { %v15437_v16 = vpop.eup %15436 }
 0xd81   :  { %v1544_v17 = vmul.f32 %v15437_v16, %v15433_v62  ;;  %v1937_v30 = vpop.permute.xlu1 %1936 }
 0xd83   :  { %14354 = vmatmul.mubr.msk.f32.vlgmr.msra.gmra.mrb[14].mxu1 %vm492_vm5, %v1544_v17 }
 0xd84   :  { %v15439_v21 = vpop.eup %15438  ;;  %14362 = vmatpush3.msra.mxu1 %v1712_v18  ;;  %14363 = vmatprep.mubr.msk.f32.mxu1 %vm16013_vm4, %v16012_v22 }
 0xd85   :  { %v1710_v24 = vmul.f32 %v15439_v21, %v15435_v3  ;;  %14371 = vmatprep.subr.mxu1 %v16012_v22 }
 0xd87   :  { %14364 = vmatmul.mubr.msk.f32.vlgmr.msra.gmra.mrb[16].mxu1 %vm492_vm5, %v1710_v24 }
 0xd88   :  { %14372 = vmatpush3.msra.mxu1 %v16531_v33  ;;  %14373 = vmatprep.mubr.msk.f32.mxu1 %vm16013_vm4, %v16012_v22  ;;  %v1935_v33 = vpop.permute.xlu0 %1934 }
 0xd89   :  { %14381 = vmatprep.subr.mxu1 %v16012_v22 }
 0xe56   :  { %v1617_v25 = vpop.f32.mrb[14].mxu1 }
 0xe57   :  { %v14355_v26 = vpop.f32.mrb[15].mxu1  ;;  %14374 = vmatmul.mubr.msk.f32.vlgmr.msra.gmra.mrb[18].mxu1 %vm492_vm5, %v1617_v25 }
 0xe58   :  { %14383 = vmatprep.mubr.msk.f32.mxu1 %vm16013_vm4, %v16012_v22 }
 0xe5a   :  { %v1783_v27 = vpop.f32.mrb[16].mxu1 }
 0xe5b   :  { %v14365_v31 = vpop.f32.mrb[17].mxu1  ;;  %14369 = vmatmul.mubr.msk.f32.vlgmr.msra.gmra.mrb[18].mxu0 %vm492_vm5, %v1783_v27 }
 0xe5c   :  { %14377 = vmatpush3.xpose.msk.msra.mxu0 %vm492_vm5, %v1937_v30  ;;  %14378 = vmatprep.mubr.msk.f32.mxu0 %vm16013_vm4, %v16012_v22  ;;  %v13640_v31 = vld [vmem:[%s17978_s7] ss:$0 sm:$0xff] }
 0xe5d   :  { %14386 = vmatprep.subr.mxu0 %v16012_v22 }
 0xe5f   :  { %14379 = vmatmul.mubr.msk.f32.vlgmr.msra.gmra.mrb[20].mxu0 %vm492_vm5, %v1935_v33 }
 0xe60   :  { %14387 = vmatpush3.msra.mxu0 %v16572_v7  ;;  %14388 = vmatprep.mubr.msk.f32.mxu0 %vm16013_vm4, %v16012_v22 }
 0xe61   :  { %14396 = vmatprep.subr.mxu0 %v16012_v22 }
 0xf2a   :  { %v1929_v32 = vpop.f32.mrb[18].mxu1 }
 0xf2b   :  { %v14375_v34 = vpop.f32.mrb[19].mxu1 }
 0xf2e   :  { %v1856_v35 = vpop.f32.mrb[18].mxu0 }
 0xf2f   :  { %v1930_v36 = vadd.f32 %v1929_v32, %v1856_v35  ;;  %v14370_v54 = vpop.f32.mrb[19].mxu0 }
 0xf32   :  { %v2008_v39 = vpop.f32.mrb[20].mxu0 }
 0xf33   :  { %v2009_v40 = vadd.f32 %v2008_v39, %v16671_v37  ;;  %v14380_v19 = vpop.f32.mrb[21].mxu0 }
 0xf35   :  { %v2012_v7 = vsel %vm492_vm5, %v2009_v40, -inf }
 0xf36   :  { %2013 = vmax.xlane.f32.xlu1 %v2012_v7 }
 0xf47   :  { %2176 = vrot.lane.b32.xlu1 %v16468_v53, %s16023_s8 }
 0xf4b   :  { %2174 = vrot.lane.b32.xlu1 %v16468_v53, %s16022_s29 }
 0xfc3   :  { %v2014_v43 = vpop.xlane.xlu1 %2013 }
 0xfc4   :  { %v2015_v44 = vsub.f32 %v2009_v40, %v2014_v43  ;;  %v2440_v43 = vld [vmem:[#allocation10] sm:$0xff] }
 0xfc6   :  { %v2016_v47 = vmul.f32 1.442695, %v2015_v44  ;;  %v2441_v44 = vld [vmem:[#allocation10 + $0x8] sm:$0xff] }
 0xfc7   :  { %v2177_v55 = vpop.permute.xlu1 %2176 }
 0xfc8   :  { %15440 = vpow2.f32 %v2016_v47  ;;  %v15227_v47 = vpack.c.bf16 %v2441_v44, %v2440_v43 }
 0xfcb   :  { %v2175_v57 = vpop.permute.xlu1 %2174 }
 0xfd2   :  { %v15441_v49 = vpop.eup %15440 }
 0xfd3   :  { %v2018_v42 = vsel %vm492_vm5, %v15441_v49, 0.0 }
 0xfd4   :  { %2019 = vadd.xlane.f32.xlu0 %v2018_v42  ;;  %v2443_v42 = vld [vmem:[#allocation10 + $0x18] sm:$0xff] }
 0xfea   :  { %2023 = vrot.lane.b32.xlu0 %v16468_v53, %s16021_s26 }
0x1061   :  { %v2020_v50 = vpop.xlane.xlu0 %2019 }
0x1062   :  { %15442 = vrcp.f32 %v2020_v50 }
0x1065   :  { %v2024_v52 = vpop.permute.xlu0 %2023 }
0x1066   :  { %14382 = vmatpush3.msra.mxu1 %v2024_v52  ;;  %v2527_v52 = vld [vmem:[#allocation11] sm:$0xff] }
0x1067   :  { %14391 = vmatprep.subr.mxu1 %v16012_v22 }
0x106c   :  { %v15443_v60 = vpop.eup %15442 }
0x106d   :  { %v2022_v56 = vmul.f32 %v15443_v60, %v15441_v49  ;;  %v2442_v49 = vld [vmem:[#allocation10 + $0x10] sm:$0xff]  ;;  %v2528_v60 = vld [vmem:[#allocation11 + $0x8] sm:$0xff] }
0x106e   :  { %v15231_v50 = vpack.c.bf16 %v2443_v42, %v2442_v49 }
0x106f   :  { %14384 = vmatmul.mubr.msk.f32.vlgmr.msra.gmra.mrb[20].mxu1 %vm492_vm5, %v2022_v56  ;;  %v15235_v56 = vpack.c.bf16 %v2528_v60, %v2527_v52 }
0x1070   :  { %14392 = vmatpush3.xpose.msk.msra.mxu1 %vm492_vm5, %v2177_v55  ;;  %14393 = vmatprep.mubr.msk.f32.mxu1 %vm16013_vm4, %v16012_v22  ;;  %v2529_v55 = vld [vmem:[#allocation11 + $0x10] sm:$0xff] }
0x1071   :  { %14401 = vmatprep.subr.mxu1 %v16012_v22 }
0x1073   :  { %14394 = vmatmul.mubr.msk.f32.vlgmr.msra.gmra.mrb[22].mxu1 %vm492_vm5, %v2175_v57  ;;  %v2530_v57 = vld [vmem:[#allocation11 + $0x18] sm:$0xff] }
0x1074   :  { %14402 = vmatpush3.msra.mxu1 %v16614_v38  ;;  %14403 = vmatprep.mubr.msk.f32.mxu1 %vm16013_vm4, %v16012_v22 }
0x1075   :  { %15236 = vmatprep.subr.bf16.mxu1 %v15235_v56 }
0x1142   :  { %v2095_v58 = vpop.f32.mrb[20].mxu1 }
0x1143   :  { %v14385_v63 = vpop.f32.mrb[21].mxu1  ;;  %14389 = vmatmul.mubr.msk.f32.vlgmr.msra.gmra.mrb[22].mxu0 %vm492_vm5, %v2095_v58  ;;  %v15239_v58 = vpack.c.bf16 %v2530_v57, %v2529_v55 }
0x1144   :  { %14398 = vmatprep.mubr.msk.f32.mxu0 %vm16013_vm4, %v16012_v22  ;;  %v2531_v63 = vld [vmem:[#allocation11 + $0x20] sm:$0xff] }
0x1146   :  { %v2248_v62 = vpop.f32.mrb[22].mxu1 }
0x1147   :  { %v2249_v1 = vadd.f32 %v2248_v62, %v16695_v0  ;;  %v14395_v3 = vpop.f32.mrb[23].mxu1  ;;  %v2532_v62 = vld [vmem:[#allocation11 + $0x28] sm:$0xff] }
0x1149   :  { %v2252_v38 = vsel %vm492_vm5, %v2249_v1, -inf }
0x114a   :  { %2253 = vmax.xlane.f32.xlu0 %v2252_v38 }
0x1160   :  { %2263 = vrot.lane.b32.xlu0 %v16468_v53, %s16024_s22 }
0x11d7   :  { %v2254_v4 = vpop.xlane.xlu0 %2253 }
0x11d8   :  { %v2255_v5 = vsub.f32 %v2249_v1, %v2254_v4  ;;  %v15243_v1 = vpack.c.bf16 %v2532_v62, %v2531_v63 }
0x11da   :  { %v2256_v6 = vmul.f32 1.442695, %v2255_v5 }
0x11db   :  { %v2264_v9 = vpop.permute.xlu0 %2263 }
0x11dc   :  { %15444 = vpow2.f32 %v2256_v6  ;;  %14397 = vmatpush3.msra.mxu0 %v2264_v9 }
0x11dd   :  { %15228 = vmatprep.subr.bf16.mxu0 %v15227_v47 }
0x11e6   :  { %v15445_v8 = vpop.eup %15444 }
0x11e7   :  { %v2258_v13 = vsel %vm492_vm5, %v15445_v8, 0.0 }
0x11e8   :  { %2259 = vadd.xlane.f32.xlu1 %v2258_v13  ;;  %v2534_v13 = vld [vmem:[#allocation11 + $0x38] sm:$0xff] }
0x11ec   :  { %2419 = vadd.xlane.f32.xlu1 %v2418_v15 }
0x1216   :  { %v2168_v16 = vpop.f32.mrb[22].mxu0 }
0x1217   :  { %v2172_v17 = vadd.f32 %v2168_v16, %v1930_v36  ;;  %v14390_v18 = vpop.f32.mrb[23].mxu0 }
0x1275   :  { %v2260_v53 = vpop.xlane.xlu1 %2259 }
0x1276   :  { %15446 = vrcp.f32 %v2260_v53 }
0x1279   :  { %v2420_v21 = vpop.xlane.xlu1 %2419 }
0x127a   :  { %v2424_v24 = vmul.f32 0.03125, %v2420_v21 }
0x127c   :  { %v2426_v25 = vadd.f32 1e-06, %v2424_v24 }
0x127e   :  { %15448 = vrsqrt.f32 %v2426_v25 }
0x1280   :  { %v15447_v26 = vpop.eup %15446 }
0x1281   :  { %v2262_v27 = vmul.f32 %v15447_v26, %v15445_v8  ;;  %v2533_v8 = vld [vmem:[#allocation11 + $0x30] sm:$0xff] }
0x1282   :  { %v15247_v14 = vpack.c.bf16 %v2534_v13, %v2533_v8 }
0x1283   :  { %14399 = vmatmul.mubr.msk.f32.vlgmr.msra.gmra.mrb[24].mxu0 %vm492_vm5, %v2262_v27 }
0x1284   :  { %15230 = vmatpush3.bf16.msra.mxu0 %v15227_v47  ;;  %v13646_v47 = vld [vmem:[%s17977_s21 + $0x1] ss:$0 sm:$0xff] }
0x1285   :  { %15232 = vmatprep.subr.bf16.mxu0 %v15231_v50 }
0x1288   :  { %v15449_v30 = vpop.eup %15448  ;;  %15234 = vmatpush3.bf16.msra.mxu0 %v15231_v50 }
0x1289   :  { %v2430_v33 = vmul.f32 %v15449_v30, %v16644_v11 }
0x128b   :  { %v2438_v32 = vmul.f32 %v13640_v31, %v2430_v33  ;;  %v2645_v33 = vld [vmem:[#allocation7 + $0x20] sm:$0xff] }
0x128d   :  { %14414 = vmatprep.mubr.msk.f32.mxu0 %vm370_vm3, %v2438_v32  ;;  %v2646_v32 = vld [vmem:[#allocation7 + $0x28] sm:$0xff] }
0x1356   :  { %v2335_v34 = vpop.f32.mrb[24].mxu0 }
0x1357   :  { %v14400_v35 = vpop.f32.mrb[25].mxu0  ;;  %14404 = vmatmul.mubr.msk.f32.vlgmr.msra.gmra.mrb[24].mxu1 %vm492_vm5, %v2335_v34  ;;  %v2647_v34 = vld [vmem:[#allocation7 + $0x30] sm:$0xff] }
0x1358   :  { %15238 = vmatpush3.bf16.msra.mxu1 %v15235_v56  ;;  %v15251_v35 = vpack.c.bf16 %v2646_v32, %v2645_v33 }
0x1359   :  { %15240 = vmatprep.subr.bf16.mxu1 %v15239_v58 }
0x135a   :  { %15252 = vmatprep.subr.bf16.mxu0 %v15251_v35 }
0x135c   :  { %15242 = vmatpush3.bf16.msra.mxu1 %v15239_v58 }
0x135d   :  { %15244 = vmatprep.subr.bf16.mxu1 %v15243_v1 }
0x1360   :  { %15246 = vmatpush3.bf16.msra.mxu1 %v15243_v1 }
0x1361   :  { %15248 = vmatprep.subr.bf16.mxu1 %v15247_v14 }
0x1364   :  { %15250 = vmatpush3.bf16.msra.mxu1 %v15247_v14 }
0x1365   :  { %14452 = vmatprep.subr.mxu1 %v16012_v22 }
0x142a   :  { %v2408_v36 = vpop.f32.mrb[24].mxu1 }
0x142b   :  { %v2412_v54 = vadd.f32 %v2408_v36, %v2172_v17  ;;  %v14405_v39 = vpop.f32.mrb[25].mxu1  ;;  %v2648_v36 = vld [vmem:[#allocation7 + $0x38] sm:$0xff] }
0x142d   :  { %v2414_v40 = vadd.f32 %v16440_v28, %v2412_v54  ;;  %v15255_v54 = vpack.c.bf16 %v2648_v36, %v2647_v34  ;;  %v16790_v36 = vld [vmem:[#allocation8 + $0x20] sm:$0xff] }
0x142f   :  { %v2417_v19 = vmul.f32 %v2414_v40, %v2414_v40 }
0x1431   :  { %v2421_v7 = vsel %vm370_vm3, %v2417_v19, 0.0 }
0x1432   :  { %2422 = vadd.xlane.f32.xlu1 %v2421_v7 }
0x14bf   :  { %v2423_v3 = vpop.xlane.xlu1 %2422 }
0x14c0   :  { %v2425_v38 = vmul.f32 0.03125, %v2423_v3 }
0x14c2   :  { %v2427_v4 = vadd.f32 1e-06, %v2425_v38 }
0x14c4   :  { %15450 = vrsqrt.f32 %v2427_v4 }
0x14ce   :  { %v15451_v5 = vpop.eup %15450 }
0x14cf   :  { %v2431_v6 = vmul.f32 %v15451_v5, %v2414_v40 }
0x14d1   :  { %v2439_v9 = vmul.f32 %v13640_v31, %v2431_v6 }
0x14d3   :  { %14415 = vmatmul.mubr.msk.f32.vlgmr.msra.gmra.mrb[26].mxu0 %vm370_vm3, %v2439_v9 }
0x14d4   :  { %15254 = vmatpush3.bf16.msra.mxu0 %v15251_v35 }
0x14d5   :  { %15256 = vmatprep.subr.bf16.mxu0 %v15255_v54 }
0x14d8   :  { %15258 = vmatpush3.bf16.msra.mxu0 %v15255_v54 }
0x14d9   :  { %14447 = vmatprep.subr.mxu0 %v16012_v22 }
0x15a6   :  { %v14416_v15 = vpop.f32.mrb[26].mxu0 }
0x15a7   :  { %v2516_v16 = vpop.f32.mrb[27].mxu0  ;;  %v2526_v18 = vmax.f32 %v14416_v15, 0.0 }
0x15a8   :  { %v2525_v17 = vmax.f32 %v2516_v16, 0.0 }
0x15aa   :  { %14433 = vmatprep.mubr.msk.f32.mxu1 %vm285_vm0, %v2525_v17 }
0x15ab   :  { %14434 = vmatmul.mubr.msk.f32.vlgmr.msra.gmra.mrb[26].mxu1 %vm285_vm0, %v2526_v18 }
0x15ac   :  { %14454 = vmatprep.mubr.msk.f32.mxu1 %vm16013_vm4, %v16012_v22 }
0x167e   :  { %v14435_v53 = vpop.f32.mrb[26].mxu1 }
0x167f   :  { %v2607_v21 = vpop.f32.mrb[27].mxu1  ;;  %v16722_v24 = vadd.f32 %v14435_v53, %v2414_v40 }
0x1680   :  { %v16725_v25 = vadd.f32 %v2607_v21, %v16644_v11  ;;  %v16778_v21 = vld [vmem:[#allocation8 + $0x28] sm:$0xff] }
0x1681   :  { %v2621_v30 = vmul.f32 %v16722_v24, %v16722_v24 }
0x1682   :  { %v2620_v26 = vmul.f32 %v16725_v25, %v16725_v25 }
0x1683   :  { %v2625_v31 = vsel %vm370_vm3, %v2621_v30, 0.0 }
0x1684   :  { %v2622_v27 = vsel %vm370_vm3, %v2620_v26, 0.0 }
0x1685   :  { %2623 = vadd.xlane.f32.xlu1 %v2622_v27 }
0x1689   :  { %2626 = vadd.xlane.f32.xlu1 %v2625_v31 }
0x1712   :  { %v2624_v11 = vpop.xlane.xlu1 %2623 }
0x1713   :  { %v2628_v39 = vmul.f32 0.03125, %v2624_v11 }
0x1715   :  { %v2630_v40 = vadd.f32 1e-06, %v2628_v39 }
0x1716   :  { %v2627_v19 = vpop.xlane.xlu1 %2626 }
0x1717   :  { %15452 = vrsqrt.f32 %v2630_v40  ;;  %v2629_v7 = vmul.f32 0.03125, %v2627_v19 }
0x1719   :  { %v2631_v43 = vadd.f32 1e-06, %v2629_v7 }
0x171b   :  { %15454 = vrsqrt.f32 %v2631_v43 }
0x1721   :  { %v15453_v44 = vpop.eup %15452 }
0x1722   :  { %v2634_v49 = vmul.f32 %v15453_v44, %v16725_v25 }
0x1724   :  { %v2642_v42 = vmul.f32 %v13646_v47, %v2634_v49 }
0x1725   :  { %v15455_v50 = vpop.eup %15454 }
0x1726   :  { %v2635_v52 = vmul.f32 %v15455_v50, %v16722_v24  ;;  %14444 = vmatprep.mubr.msk.f32.mxu0 %vm370_vm3, %v2642_v42 }
0x1728   :  { %v2643_v60 = vmul.f32 %v13646_v47, %v2635_v52 }
0x172a   :  { %14445 = vmatmul.mubr.msk.f32.vlgmr.msra.gmra.mrb[28].mxu0 %vm370_vm3, %v2643_v60 }
0x172b   :  { %14449 = vmatprep.mubr.msk.f32.mxu0 %vm16013_vm4, %v16012_v22 }
0x17fd   :  { %v16743_v55 = vpop.f32.mrb[28].mxu0 }
0x17fe   :  { %v16745_v56 = vpop.f32.mrb[29].mxu0 }
0x17ff   :  { %2901 = vrot.lane.b32.xlu1 %v16745_v56, %s16014_s10  ;;  %2736 = vrot.lane.b32.xlu0 %v16745_v56, %s16015_s25 }
0x1803   :  { %2899 = vrot.lane.b32.xlu0 %v16745_v56, %s16016_s20 }
0x1871   :  { %v2737_v57 = vpop.permute.xlu0 %2736  ;;  %v2902_v58 = vpop.permute.xlu1 %2901 }
0x1872   :  { %14448 = vmatpush3.xpose.msk.msra.mxu0 %vm492_vm5, %v2737_v57 }
0x1873   :  { %14457 = vmatprep.subr.mxu0 %v16012_v22 }
0x1875   :  { %14450 = vmatmul.mubr.msk.f32.vlgmr.msra.gmra.mrb[30].mxu0 %vm492_vm5, %v16745_v56  ;;  %v2900_v63 = vpop.permute.xlu0 %2899 }
0x1876   :  { %14458 = vmatpush3.xpose.msk.msra.mxu0 %vm492_vm5, %v2902_v58  ;;  %14459 = vmatprep.mubr.msk.f32.mxu0 %vm16013_vm4, %v16012_v22 }
0x1877   :  { %14467 = vmatprep.subr.mxu0 %v16012_v22 }
0x1879   :  { %14460 = vmatmul.mubr.msk.f32.vlgmr.msra.gmra.mrb[32].mxu0 %vm492_vm5, %v2900_v63 }
0x187a   :  { %14469 = vmatprep.mubr.msk.f32.mxu0 %vm16013_vm4, %v16012_v22  ;;  %14468 = vmatpush3.msra.mxu0 %v16778_v21 }
0x187b   :  { %14477 = vmatprep.subr.mxu0 %v16012_v22 }
0x1948   :  { %v2808_v62 = vpop.f32.mrb[30].mxu0 }
0x1949   :  { %v2809_v1 = vadd.f32 %v2808_v62, %v16497_v61  ;;  %v14451_v3 = vpop.f32.mrb[31].mxu0 }
0x194b   :  { %v2812_v38 = vsel %vm492_vm5, %v2809_v1, -inf }
0x194c   :  { %2813 = vmax.xlane.f32.xlu0 %v2812_v38  ;;  %v2973_v4 = vpop.f32.mrb[32].mxu0 }
0x194d   :  { %v2974_v5 = vadd.f32 %v2973_v4, %v16504_v2  ;;  %v14461_v6 = vpop.f32.mrb[33].mxu0 }
0x194f   :  { %v2977_v9 = vsel %vm492_vm5, %v2974_v5, -inf }
0x1950   :  { %2978 = vmax.xlane.f32.xlu1 %v2977_v9 }
0x1961   :  { %2988 = vrot.lane.b32.xlu1 %v16745_v56, %s16017_s9 }
0x1965   :  { %3210 = vrot.lane.b32.xlu1 %v16745_v56, %s16018_s27 }
0x19d9   :  { %v2814_v8 = vpop.xlane.xlu0 %2813 }
0x19da   :  { %v2815_v13 = vsub.f32 %v2809_v1, %v2814_v8  ;;  %v16823_v8 = vld [vmem:[#allocation8 + $0x30] sm:$0xff] }
0x19dc   :  { %v2816_v61 = vmul.f32 1.442695, %v2815_v13 }
0x19dd   :  { %v2979_v14 = vpop.xlane.xlu1 %2978 }
0x19de   :  { %15456 = vpow2.f32 %v2816_v61  ;;  %v2980_v15 = vsub.f32 %v2974_v5, %v2979_v14 }
0x19e0   :  { %v2981_v16 = vmul.f32 1.442695, %v2980_v15 }
0x19e1   :  { %v2989_v32 = vpop.permute.xlu1 %2988 }
0x19e2   :  { %15458 = vpow2.f32 %v2981_v16 }
0x19e5   :  { %v3211_v7 = vpop.permute.xlu1 %3210 }
0x19e8   :  { %v15457_v17 = vpop.eup %15456 }
0x19e9   :  { %v2818_v2 = vsel %vm492_vm5, %v15457_v17, 0.0 }
0x19ea   :  { %2819 = vadd.xlane.f32.xlu0 %v2818_v2 }
0x19ec   :  { %v15459_v18 = vpop.eup %15458 }
0x19ed   :  { %v2983_v53 = vsel %vm492_vm5, %v15459_v18, 0.0 }
0x19ee   :  { %2984 = vadd.xlane.f32.xlu0 %v2983_v53 }
0x1a04   :  { %2823 = vrot.lane.b32.xlu0 %v16745_v56, %s16019_s0 }
0x1a08   :  { %3212 = vrot.lane.b32.xlu0 %v16745_v56, %s16020_s16 }
0x1a77   :  { %v2820_v26 = vpop.xlane.xlu0 %2819 }
0x1a78   :  { %15460 = vrcp.f32 %v2820_v26 }
0x1a7b   :  { %v2985_v27 = vpop.xlane.xlu0 %2984 }
0x1a7c   :  { %15462 = vrcp.f32 %v2985_v27 }
0x1a7f   :  { %v2824_v30 = vpop.permute.xlu0 %2823 }
0x1a80   :  { %14453 = vmatpush3.msra.mxu1 %v2824_v30 }
0x1a81   :  { %14462 = vmatprep.subr.mxu1 %v16012_v22 }
0x1a82   :  { %v15461_v31 = vpop.eup %15460 }
0x1a83   :  { %v2822_v33 = vmul.f32 %v15461_v31, %v15457_v17  ;;  %v3213_v40 = vpop.permute.xlu0 %3212 }
0x1a85   :  { %14455 = vmatmul.mubr.msk.f32.vlgmr.msra.gmra.mrb[28].mxu1 %vm492_vm5, %v2822_v33 }
0x1a86   :  { %v15463_v34 = vpop.eup %15462  ;;  %14463 = vmatpush3.msra.mxu1 %v2989_v32  ;;  %14464 = vmatprep.mubr.msk.f32.mxu1 %vm16013_vm4, %v16012_v22 }
0x1a87   :  { %v2987_v35 = vmul.f32 %v15463_v34, %v15459_v18  ;;  %14472 = vmatprep.subr.mxu1 %v16012_v22 }
0x1a89   :  { %14465 = vmatmul.mubr.msk.f32.vlgmr.msra.gmra.mrb[30].mxu1 %vm492_vm5, %v2987_v35 }
0x1a8a   :  { %14474 = vmatprep.mubr.msk.f32.mxu1 %vm16013_vm4, %v16012_v22  ;;  %14473 = vmatpush3.msra.mxu1 %v16790_v36 }
0x1a8b   :  { %14482 = vmatprep.subr.mxu1 %v16012_v22 }
0x1b58   :  { %v2895_v54 = vpop.f32.mrb[28].mxu1 }
0x1b59   :  { %v14456_v11 = vpop.f32.mrb[29].mxu1  ;;  %14475 = vmatmul.mubr.msk.f32.vlgmr.msra.gmra.mrb[32].mxu1 %vm492_vm5, %v2895_v54 }
0x1b5a   :  { %14484 = vmatprep.mubr.msk.f32.mxu1 %vm16013_vm4, %v16012_v22 }
0x1b5c   :  { %v3060_v39 = vpop.f32.mrb[30].mxu1 }
0x1b5d   :  { %v14466_v19 = vpop.f32.mrb[31].mxu1  ;;  %14470 = vmatmul.mubr.msk.f32.vlgmr.msra.gmra.mrb[34].mxu0 %vm492_vm5, %v3060_v39  ;;  %v16858_v39 = vld [vmem:[#allocation8 + $0x38] sm:$0xff] }
0x1b5e   :  { %14478 = vmatpush3.xpose.msk.msra.mxu0 %vm492_vm5, %v3213_v40  ;;  %14479 = vmatprep.mubr.msk.f32.mxu0 %vm16013_vm4, %v16012_v22 }
0x1b5f   :  { %14487 = vmatprep.subr.mxu0 %v16012_v22 }
0x1b61   :  { %14480 = vmatmul.mubr.msk.f32.vlgmr.msra.gmra.mrb[36].mxu0 %vm492_vm5, %v3211_v7 }
0x1b62   :  { %14489 = vmatprep.mubr.msk.f32.mxu0 %vm16013_vm4, %v16012_v22  ;;  %14488 = vmatpush3.msra.mxu0 %v16823_v8 }
0x1b63   :  { %14497 = vmatprep.subr.mxu0 %v16012_v22 }
0x1c2c   :  { %v3206_v43 = vpop.f32.mrb[32].mxu1 }
0x1c2d   :  { %v14476_v44 = vpop.f32.mrb[33].mxu1 }
0x1c30   :  { %v3133_v47 = vpop.f32.mrb[34].mxu0 }
0x1c31   :  { %v3207_v49 = vadd.f32 %v3206_v43, %v3133_v47  ;;  %v14471_v42 = vpop.f32.mrb[35].mxu0 }
0x1c34   :  { %v3284_v50 = vpop.f32.mrb[36].mxu0 }
0x1c35   :  { %v3285_v52 = vadd.f32 %v3284_v50, %v16552_v46  ;;  %v14481_v60 = vpop.f32.mrb[37].mxu0 }
0x1c37   :  { %v3288_v57 = vsel %vm492_vm5, %v3285_v52, -inf }
0x1c38   :  { %3289 = vmax.xlane.f32.xlu0 %v3288_v57 }
0x1c4e   :  { %3299 = vrot.lane.b32.xlu0 %v16745_v56, %s16021_s26 }
0x1c52   :  { %3449 = vrot.lane.b32.xlu0 %v16745_v56, %s16022_s29 }
0x1cc5   :  { %v3290_v58 = vpop.xlane.xlu0 %3289 }
0x1cc6   :  { %v3291_v63 = vsub.f32 %v3285_v52, %v3290_v58 }
0x1cc8   :  { %v3292_v62 = vmul.f32 1.442695, %v3291_v63 }
0x1cc9   :  { %v3300_v1 = vpop.permute.xlu0 %3299 }
0x1cca   :  { %15464 = vpow2.f32 %v3292_v62  ;;  %14483 = vmatpush3.msra.mxu1 %v3300_v1 }
0x1ccb   :  { %14492 = vmatprep.subr.mxu1 %v16012_v22 }
0x1ccd   :  { %v3450_v9 = vpop.permute.xlu0 %3449 }
0x1cd4   :  { %v15465_v3 = vpop.eup %15464 }
0x1cd5   :  { %v3294_v46 = vsel %vm492_vm5, %v15465_v3, 0.0 }
0x1cd6   :  { %3295 = vadd.xlane.f32.xlu1 %v3294_v46 }
0x1ce7   :  { %3451 = vrot.lane.b32.xlu1 %v16745_v56, %s16023_s8 }
0x1d63   :  { %v3296_v38 = vpop.xlane.xlu1 %3295 }
0x1d64   :  { %15466 = vrcp.f32 %v3296_v38 }
0x1d67   :  { %v3452_v6 = vpop.permute.xlu1 %3451 }
0x1d6e   :  { %v15467_v4 = vpop.eup %15466 }
0x1d6f   :  { %v3298_v5 = vmul.f32 %v15467_v4, %v15465_v3 }
0x1d71   :  { %14485 = vmatmul.mubr.msk.f32.vlgmr.msra.gmra.mrb[34].mxu1 %vm492_vm5, %v3298_v5 }
0x1d72   :  { %14493 = vmatpush3.xpose.msk.msra.mxu1 %vm492_vm5, %v3452_v6  ;;  %14494 = vmatprep.mubr.msk.f32.mxu1 %vm16013_vm4, %v16012_v22 }
0x1d73   :  { %14502 = vmatprep.subr.mxu1 %v16012_v22 }
0x1d75   :  { %14495 = vmatmul.mubr.msk.f32.vlgmr.msra.gmra.mrb[36].mxu1 %vm492_vm5, %v3450_v9 }
0x1d76   :  { %14504 = vmatprep.mubr.msk.f32.mxu1 %vm16013_vm4, %v16012_v22  ;;  %14503 = vmatpush3.msra.mxu1 %v16858_v39 }
0x1d77   :  { %14512 = vmatprep.subr.mxu1 %v16012_v22 }
0x1e44   :  { %v3371_v13 = vpop.f32.mrb[34].mxu1 }
0x1e45   :  { %v14486_v61 = vpop.f32.mrb[35].mxu1  ;;  %14490 = vmatmul.mubr.msk.f32.vlgmr.msra.gmra.mrb[38].mxu0 %vm492_vm5, %v3371_v13 }
0x1e46   :  { %14499 = vmatprep.mubr.msk.f32.mxu0 %vm16013_vm4, %v16012_v22 }
0x1e48   :  { %v3523_v14 = vpop.f32.mrb[36].mxu1 }
0x1e49   :  { %v3524_v15 = vadd.f32 %v3523_v14, %v16581_v12  ;;  %v14496_v16 = vpop.f32.mrb[37].mxu1 }
0x1e4b   :  { %v3527_v17 = vsel %vm492_vm5, %v3524_v15, -inf }
0x1e4c   :  { %3528 = vmax.xlane.f32.xlu1 %v3527_v17 }
0x1e5d   :  { %3689 = vrot.lane.b32.xlu1 %v16743_v55, %s16015_s25 }
0x1e61   :  { %3854 = vrot.lane.b32.xlu1 %v16743_v55, %s16014_s10 }
0x1ed9   :  { %v3529_v2 = vpop.xlane.xlu1 %3528 }
0x1eda   :  { %v3530_v18 = vsub.f32 %v3524_v15, %v3529_v2 }
0x1edc   :  { %v3531_v53 = vmul.f32 1.442695, %v3530_v18 }
0x1edd   :  { %v3690_v35 = vpop.permute.xlu1 %3689 }
0x1ede   :  { %15468 = vpow2.f32 %v3531_v53 }
0x1ee8   :  { %v15469_v26 = vpop.eup %15468 }
0x1ee9   :  { %v3533_v27 = vsel %vm492_vm5, %v15469_v26, 0.0 }
0x1eea   :  { %3534 = vadd.xlane.f32.xlu0 %v3533_v27 }
0x1f00   :  { %3538 = vrot.lane.b32.xlu0 %v16745_v56, %s16024_s22  ;;  %v3855_v56 = vpop.permute.xlu1 %3854 }
0x1f04   :  { %3852 = vrot.lane.b32.xlu0 %v16743_v55, %s16016_s20 }
0x1f18   :  { %v3444_v12 = vpop.f32.mrb[38].mxu0 }
0x1f19   :  { %v3448_v30 = vadd.f32 %v3444_v12, %v3207_v49  ;;  %v14491_v31 = vpop.f32.mrb[39].mxu0 }
0x1f77   :  { %v3535_v33 = vpop.xlane.xlu0 %3534 }
0x1f78   :  { %15470 = vrcp.f32 %v3535_v33 }
0x1f7b   :  { %v3539_v32 = vpop.permute.xlu0 %3538 }
0x1f7c   :  { %14498 = vmatpush3.msra.mxu0 %v3539_v32 }
0x1f7d   :  { %14507 = vmatprep.subr.mxu0 %v16012_v22 }
0x1f7f   :  { %v3853_v11 = vpop.permute.xlu0 %3852 }
0x1f82   :  { %v15471_v34 = vpop.eup %15470 }
0x1f83   :  { %v3537_v54 = vmul.f32 %v15471_v34, %v15469_v26 }
0x1f85   :  { %14500 = vmatmul.mubr.msk.f32.vlgmr.msra.gmra.mrb[40].mxu0 %vm492_vm5, %v3537_v54 }
0x1f86   :  { %14508 = vmatpush3.xpose.msk.msra.mxu0 %vm492_vm5, %v3690_v35  ;;  %14509 = vmatprep.mubr.msk.f32.mxu0 %vm16013_vm4, %v16012_v22 }
0x1f87   :  { %14517 = vmatprep.subr.mxu0 %v16012_v22 }
0x1f89   :  { %14510 = vmatmul.mubr.msk.f32.vlgmr.msra.gmra.mrb[42].mxu0 %vm492_vm5, %v16743_v55 }
0x1f8a   :  { %14518 = vmatpush3.xpose.msk.msra.mxu0 %vm492_vm5, %v3855_v56  ;;  %14519 = vmatprep.mubr.msk.f32.mxu0 %vm16013_vm4, %v16012_v22 }
0x1f8b   :  { %14527 = vmatprep.subr.mxu0 %v16012_v22 }
0x1f8d   :  { %14520 = vmatmul.mubr.msk.f32.vlgmr.msra.gmra.mrb[44].mxu0 %vm492_vm5, %v3853_v11 }
0x1f8e   :  { %14528 = vmatpush3.msra.mxu0 %v16778_v21  ;;  %14529 = vmatprep.mubr.msk.f32.mxu0 %vm16013_vm4, %v16012_v22 }
0x1f8f   :  { %14537 = vmatprep.subr.mxu0 %v16012_v22 }
0x2058   :  { %v3610_v40 = vpop.f32.mrb[40].mxu0 }
0x2059   :  { %v14501_v19 = vpop.f32.mrb[41].mxu0  ;;  %14505 = vmatmul.mubr.msk.f32.vlgmr.msra.gmra.mrb[38].mxu1 %vm492_vm5, %v3610_v40 }
0x205a   :  { %14514 = vmatprep.mubr.msk.f32.mxu1 %vm16013_vm4, %v16012_v22 }
0x205c   :  { %v3761_v7 = vpop.f32.mrb[42].mxu0 }
0x205d   :  { %v3762_v21 = vadd.f32 %v3761_v7, %v16621_v41  ;;  %v14511_v43 = vpop.f32.mrb[43].mxu0 }
0x205f   :  { %v3765_v44 = vsel %vm492_vm5, %v3762_v21, -inf }
0x2060   :  { %3766 = vmax.xlane.f32.xlu1 %v3765_v44  ;;  %v3926_v47 = vpop.f32.mrb[44].mxu0 }
0x2061   :  { %v3927_v49 = vadd.f32 %v3926_v47, %v16628_v45  ;;  %v14521_v42 = vpop.f32.mrb[45].mxu0 }
0x2063   :  { %v3930_v50 = vsel %vm492_vm5, %v3927_v49, -inf }
0x2064   :  { %3931 = vmax.xlane.f32.xlu0 %v3930_v50 }
0x20ed   :  { %v3767_v52 = vpop.xlane.xlu1 %3766 }
0x20ee   :  { %v3768_v60 = vsub.f32 %v3762_v21, %v3767_v52 }
0x20f0   :  { %v3769_v57 = vmul.f32 1.442695, %v3768_v60 }
0x20f1   :  { %v3932_v58 = vpop.xlane.xlu0 %3931 }
0x20f2   :  { %15472 = vpow2.f32 %v3769_v57  ;;  %v3933_v63 = vsub.f32 %v3927_v49, %v3932_v58 }
0x20f4   :  { %v3934_v62 = vmul.f32 1.442695, %v3933_v63 }
0x20f6   :  { %15474 = vpow2.f32 %v3934_v62 }
0x20fc   :  { %v15473_v41 = vpop.eup %15472 }
0x20fd   :  { %v3771_v1 = vsel %vm492_vm5, %v15473_v41, 0.0 }
0x20fe   :  { %3772 = vadd.xlane.f32.xlu0 %v3771_v1 }
0x2100   :  { %v15475_v3 = vpop.eup %15474 }
0x2101   :  { %v3936_v46 = vsel %vm492_vm5, %v15475_v3, 0.0 }
0x2102   :  { %3937 = vadd.xlane.f32.xlu1 %v3936_v46 }
0x2113   :  { %3941 = vrot.lane.b32.xlu1 %v16743_v55, %s16017_s9 }
0x2114   :  { %3776 = vrot.lane.b32.xlu0 %v16743_v55, %s16019_s0 }
0x2117   :  { %4165 = vrot.lane.b32.xlu1 %v16743_v55, %s16020_s16 }
0x2118   :  { %4163 = vrot.lane.b32.xlu0 %v16743_v55, %s16018_s27 }
0x212c   :  { %v3683_v45 = vpop.f32.mrb[38].mxu1 }
0x212d   :  { %v16879_v38 = vadd.f32 %v3683_v45, %v3448_v30  ;;  %v14506_v4 = vpop.f32.mrb[39].mxu1 }
0x218b   :  { %v3773_v5 = vpop.xlane.xlu0 %3772 }
0x218c   :  { %15476 = vrcp.f32 %v3773_v5 }
0x218f   :  { %v3938_v6 = vpop.xlane.xlu1 %3937  ;;  %v3777_v9 = vpop.permute.xlu0 %3776 }
0x2190   :  { %15478 = vrcp.f32 %v3938_v6  ;;  %14513 = vmatpush3.msra.mxu1 %v3777_v9 }
0x2191   :  { %14522 = vmatprep.subr.mxu1 %v16012_v22 }
0x2193   :  { %v3942_v14 = vpop.permute.xlu1 %3941 }
0x2196   :  { %v15477_v13 = vpop.eup %15476 }
0x2197   :  { %v3775_v61 = vmul.f32 %v15477_v13, %v15473_v41  ;;  %v4166_v53 = vpop.permute.xlu1 %4165  ;;  %v16932_v41 = vadd.f32 %v16879_v38, %v16725_v25 }
0x2199   :  { %14515 = vmatmul.mubr.msk.f32.vlgmr.msra.gmra.mrb[40].mxu1 %vm492_vm5, %v3775_v61 }
0x219a   :  { %v15479_v15 = vpop.eup %15478  ;;  %14523 = vmatpush3.msra.mxu1 %v3942_v14  ;;  %14524 = vmatprep.mubr.msk.f32.mxu1 %vm16013_vm4, %v16012_v22  ;;  %v13682_v14 = vld [vmem:[%s17978_s7 + $0x1] ss:$0 sm:$0xff] }
0x219b   :  { %v3940_v16 = vmul.f32 %v15479_v15, %v15475_v3  ;;  %14532 = vmatprep.subr.mxu1 %v16012_v22  ;;  %v4645_v3 = vmul.f32 %v16932_v41, %v16932_v41 }
0x219d   :  { %14525 = vmatmul.mubr.msk.f32.vlgmr.msra.gmra.mrb[42].mxu1 %vm492_vm5, %v3940_v16  ;;  %v4647_v46 = vsel %vm370_vm3, %v4645_v3, 0.0  ;;  %v4765_v3 = vld [vmem:[#allocation11 + $0x78] sm:$0xff] }
0x219e   :  { %14533 = vmatpush3.msra.mxu1 %v16790_v36  ;;  %14534 = vmatprep.mubr.msk.f32.mxu1 %vm16013_vm4, %v16012_v22  ;;  %v4164_v36 = vpop.permute.xlu0 %4163 }
0x219f   :  { %14542 = vmatprep.subr.mxu1 %v16012_v22 }
0x226c   :  { %v3848_v17 = vpop.f32.mrb[40].mxu1 }
0x226d   :  { %v14516_v2 = vpop.f32.mrb[41].mxu1  ;;  %14535 = vmatmul.mubr.msk.f32.vlgmr.msra.gmra.mrb[44].mxu1 %vm492_vm5, %v3848_v17 }
0x226e   :  { %14544 = vmatprep.mubr.msk.f32.mxu1 %vm16013_vm4, %v16012_v22 }
0x2270   :  { %v4013_v18 = vpop.f32.mrb[42].mxu1 }
0x2271   :  { %v14526_v26 = vpop.f32.mrb[43].mxu1  ;;  %14530 = vmatmul.mubr.msk.f32.vlgmr.msra.gmra.mrb[46].mxu0 %vm492_vm5, %v4013_v18 }
0x2272   :  { %14538 = vmatpush3.xpose.msk.msra.mxu0 %vm492_vm5, %v4166_v53  ;;  %14539 = vmatprep.mubr.msk.f32.mxu0 %vm16013_vm4, %v16012_v22 }
0x2273   :  { %14547 = vmatprep.subr.mxu0 %v16012_v22 }
0x2275   :  { %14540 = vmatmul.mubr.msk.f32.vlgmr.msra.gmra.mrb[48].mxu0 %vm492_vm5, %v4164_v36 }
0x2276   :  { %14548 = vmatpush3.msra.mxu0 %v16823_v8  ;;  %14549 = vmatprep.mubr.msk.f32.mxu0 %vm16013_vm4, %v16012_v22 }
0x2277   :  { %14557 = vmatprep.subr.mxu0 %v16012_v22 }
0x2340   :  { %v4159_v27 = vpop.f32.mrb[44].mxu1 }
0x2341   :  { %v14536_v12 = vpop.f32.mrb[45].mxu1 }
0x2344   :  { %v4086_v30 = vpop.f32.mrb[46].mxu0 }
0x2345   :  { %v4160_v31 = vadd.f32 %v4159_v27, %v4086_v30  ;;  %v14531_v33 = vpop.f32.mrb[47].mxu0  ;;  %v4670_v30 = vld [vmem:[#allocation10 + $0x20] sm:$0xff] }
0x2348   :  { %v4237_v32 = vpop.f32.mrb[48].mxu0 }
0x2349   :  { %v4238_v34 = vadd.f32 %v4237_v32, %v16671_v37  ;;  %v14541_v35 = vpop.f32.mrb[49].mxu0  ;;  %v4672_v32 = vld [vmem:[#allocation10 + $0x30] sm:$0xff] }
0x234b   :  { %v4241_v54 = vsel %vm492_vm5, %v4238_v34, -inf }
0x234c   :  { %4242 = vmax.xlane.f32.xlu1 %v4241_v54  ;;  %v4885_v54 = vld [vmem:[#allocation13] sm:$0xff] }
0x235d   :  { %4404 = vrot.lane.b32.xlu1 %v16743_v55, %s16023_s8 }
0x2361   :  { %4402 = vrot.lane.b32.xlu1 %v16743_v55, %s16022_s29 }
0x23d9   :  { %v4243_v8 = vpop.xlane.xlu1 %4242 }
0x23da   :  { %v4244_v56 = vsub.f32 %v4238_v34, %v4243_v8  ;;  %v4673_v34 = vld [vmem:[#allocation10 + $0x38] sm:$0xff]  ;;  %v4886_v8 = vld [vmem:[#allocation13 + $0x8] sm:$0xff] }
0x23db   :  { %v15263_v35 = vpack.c.bf16 %v4673_v34, %v4672_v32 }
0x23dc   :  { %v4245_v11 = vmul.f32 1.442695, %v4244_v56  ;;  %v4758_v56 = vld [vmem:[#allocation11 + $0x40] sm:$0xff] }
0x23dd   :  { %v4405_v43 = vpop.permute.xlu1 %4404 }
0x23de   :  { %15480 = vpow2.f32 %v4245_v11  ;;  %v4759_v11 = vld [vmem:[#allocation11 + $0x48] sm:$0xff] }
0x23e1   :  { %v4403_v47 = vpop.permute.xlu1 %4402 }
0x23e8   :  { %v15481_v40 = vpop.eup %15480 }
0x23e9   :  { %v4247_v19 = vsel %vm492_vm5, %v15481_v40, 0.0 }
0x23ea   :  { %4248 = vadd.xlane.f32.xlu0 %v4247_v19  ;;  %v15267_v19 = vpack.c.bf16 %v4759_v11, %v4758_v56 }
0x2400   :  { %4252 = vrot.lane.b32.xlu0 %v16743_v55, %s16021_s26 }
0x2477   :  { %v4249_v37 = vpop.xlane.xlu0 %4248 }
0x2478   :  { %15482 = vrcp.f32 %v4249_v37  ;;  %v4761_v37 = vld [vmem:[#allocation11 + $0x58] sm:$0xff] }
0x247b   :  { %v4253_v7 = vpop.permute.xlu0 %4252 }
0x247c   :  { %14543 = vmatpush3.msra.mxu1 %v4253_v7 }
0x247d   :  { %14552 = vmatprep.subr.mxu1 %v16012_v22 }
0x2482   :  { %v15483_v21 = vpop.eup %15482 }
0x2483   :  { %v4251_v44 = vmul.f32 %v15483_v21, %v15481_v40  ;;  %v4760_v40 = vld [vmem:[#allocation11 + $0x50] sm:$0xff]  ;;  %v4762_v21 = vld [vmem:[#allocation11 + $0x60] sm:$0xff] }
0x2484   :  { %v15271_v7 = vpack.c.bf16 %v4761_v37, %v4760_v40 }
0x2485   :  { %14545 = vmatmul.mubr.msk.f32.vlgmr.msra.gmra.mrb[46].mxu1 %vm492_vm5, %v4251_v44 }
0x2486   :  { %14553 = vmatpush3.xpose.msk.msra.mxu1 %vm492_vm5, %v4405_v43  ;;  %14554 = vmatprep.mubr.msk.f32.mxu1 %vm16013_vm4, %v16012_v22  ;;  %v4763_v43 = vld [vmem:[#allocation11 + $0x68] sm:$0xff] }
0x2487   :  { %14562 = vmatprep.subr.mxu1 %v16012_v22  ;;  %v15275_v44 = vpack.c.bf16 %v4763_v43, %v4762_v21 }
0x2489   :  { %14555 = vmatmul.mubr.msk.f32.vlgmr.msra.gmra.mrb[48].mxu1 %vm492_vm5, %v4403_v47 }
0x248a   :  { %14563 = vmatpush3.msra.mxu1 %v16858_v39  ;;  %14564 = vmatprep.mubr.msk.f32.mxu1 %vm16013_vm4, %v16012_v22 }
0x248b   :  { %15268 = vmatprep.subr.bf16.mxu1 %v15267_v19 }
0x2558   :  { %v4324_v49 = vpop.f32.mrb[46].mxu1 }
0x2559   :  { %v14546_v42 = vpop.f32.mrb[47].mxu1  ;;  %14550 = vmatmul.mubr.msk.f32.vlgmr.msra.gmra.mrb[50].mxu0 %vm492_vm5, %v4324_v49 }
0x255a   :  { %14559 = vmatprep.mubr.msk.f32.mxu0 %vm16013_vm4, %v16012_v22 }
0x255c   :  { %v4476_v50 = vpop.f32.mrb[48].mxu1 }
0x255d   :  { %v4477_v52 = vadd.f32 %v4476_v50, %v16695_v0  ;;  %v14556_v60 = vpop.f32.mrb[49].mxu1 }
0x255e   :  { %v4888_v60 = vld [vmem:[#allocation13 + $0x18] sm:$0xff] }
0x255f   :  { %v4480_v57 = vsel %vm492_vm5, %v4477_v52, -inf }
0x2560   :  { %4481 = vmax.xlane.f32.xlu0 %v4480_v57  ;;  %v13688_v57 = vld [vmem:[%s17937_s12] ss:$0 sm:$0xff] }
0x2576   :  { %4491 = vrot.lane.b32.xlu0 %v16743_v55, %s16024_s22 }
0x25ed   :  { %v4482_v39 = vpop.xlane.xlu0 %4481 }
0x25ee   :  { %v4483_v58 = vsub.f32 %v4477_v52, %v4482_v39  ;;  %v4887_v52 = vld [vmem:[#allocation13 + $0x10] sm:$0xff] }
0x25f0   :  { %v4484_v63 = vmul.f32 1.442695, %v4483_v58 }
0x25f1   :  { %v4492_v62 = vpop.permute.xlu0 %4491 }
0x25f2   :  { %15484 = vpow2.f32 %v4484_v63  ;;  %14558 = vmatpush3.msra.mxu0 %v4492_v62  ;;  %v15287_v63 = vpack.c.bf16 %v4888_v60, %v4887_v52  ;;  %v4883_v62 = vmul.f32 %v13688_v57, %v16455_v48 }
0x25fc   :  { %v15485_v1 = vpop.eup %15484 }
0x25fd   :  { %v4486_v0 = vsel %vm492_vm5, %v15485_v1, 0.0 }
0x25fe   :  { %4487 = vadd.xlane.f32.xlu1 %v4486_v0  ;;  %v4764_v0 = vld [vmem:[#allocation11 + $0x70] sm:$0xff] }
0x2602   :  { %4648 = vadd.xlane.f32.xlu1 %v4647_v46  ;;  %v15279_v46 = vpack.c.bf16 %v4765_v3, %v4764_v0 }
0x262c   :  { %v4397_v55 = vpop.f32.mrb[50].mxu0 }
0x262d   :  { %v4401_v45 = vadd.f32 %v4397_v55, %v4160_v31  ;;  %v14551_v4 = vpop.f32.mrb[51].mxu0  ;;  %v4671_v31 = vld [vmem:[#allocation10 + $0x28] sm:$0xff] }
0x262e   :  { %v15259_v33 = vpack.c.bf16 %v4671_v31, %v4670_v30 }
0x2630   :  { %15260 = vmatprep.subr.bf16.mxu0 %v15259_v33 }
0x268b   :  { %v4488_v5 = vpop.xlane.xlu1 %4487 }
0x268c   :  { %15486 = vrcp.f32 %v4488_v5 }
0x268f   :  { %v4649_v6 = vpop.xlane.xlu1 %4648 }
0x2690   :  { %v4653_v9 = vmul.f32 0.03125, %v4649_v6 }
0x2692   :  { %v4655_v13 = vadd.f32 1e-06, %v4653_v9 }
0x2694   :  { %15488 = vrsqrt.f32 %v4655_v13 }
0x2696   :  { %v15487_v25 = vpop.eup %15486 }
0x2697   :  { %v4490_v38 = vmul.f32 %v15487_v25, %v15485_v1  ;;  %v4884_v1 = vmul.f32 %v13688_v57, %v16459_v51 }
0x2699   :  { %14560 = vmatmul.mubr.msk.f32.vlgmr.msra.gmra.mrb[52].mxu0 %vm492_vm5, %v4490_v38 }
0x269a   :  { %15262 = vmatpush3.bf16.msra.mxu0 %v15259_v33 }
0x269b   :  { %15264 = vmatprep.subr.bf16.mxu0 %v15263_v35 }
0x269e   :  { %v15489_v61 = vpop.eup %15488  ;;  %15266 = vmatpush3.bf16.msra.mxu0 %v15263_v35 }
0x269f   :  { %v4659_v15 = vmul.f32 %v15489_v61, %v16932_v41  ;;  %v16025_v61 = vmov -1e+09  }
0x26a1   :  { %v4667_v16 = vmul.f32 %v13682_v14, %v4659_v15  ;;  %v4974_v15 = vld [vmem:[#allocation5] sm:$0xff] }
0x26a3   :  { %14575 = vmatprep.mubr.msk.f32.mxu0 %vm370_vm3, %v4667_v16 }
0x276c   :  { %v4563_v17 = vpop.f32.mrb[52].mxu0 }
0x276d   :  { %v14561_v2 = vpop.f32.mrb[53].mxu0  ;;  %14565 = vmatmul.mubr.msk.f32.vlgmr.msra.gmra.mrb[50].mxu1 %vm492_vm5, %v4563_v17  ;;  %v5141_v17 = vld [vmem:[#allocation5 + $0x8] sm:$0xff] }
0x276e   :  { %15270 = vmatpush3.bf16.msra.mxu1 %v15267_v19  ;;  %v17018_v19 = vld [vmem:[#allocation14 + $0x8] sm:$0xff] }
0x276f   :  { %15272 = vmatprep.subr.bf16.mxu1 %v15271_v7 }
0x2772   :  { %15274 = vmatpush3.bf16.msra.mxu1 %v15271_v7 }
0x2773   :  { %15276 = vmatprep.subr.bf16.mxu1 %v15275_v44 }
0x2776   :  { %15278 = vmatpush3.bf16.msra.mxu1 %v15275_v44 }
0x2777   :  { %15280 = vmatprep.subr.bf16.mxu1 %v15279_v46 }
0x277a   :  { %15282 = vmatpush3.bf16.msra.mxu1 %v15279_v46 }
0x277b   :  { %14613 = vmatprep.subr.mxu1 %v16012_v22 }
0x2840   :  { %v4636_v18 = vpop.f32.mrb[50].mxu1 }
0x2841   :  { %v4640_v53 = vadd.f32 %v4636_v18, %v4401_v45  ;;  %v14566_v26 = vpop.f32.mrb[51].mxu1 }
0x2843   :  { %v16946_v36 = vadd.f32 %v4640_v53, %v16722_v24  ;;  %v15283_v24 = vpack.c.bf16 %v4886_v8, %v4885_v54 }
0x2845   :  { %v4646_v27 = vmul.f32 %v16946_v36, %v16946_v36  ;;  %15284 = vmatprep.subr.bf16.mxu0 %v15283_v24 }
0x2847   :  { %v4650_v12 = vsel %vm370_vm3, %v4646_v27, 0.0 }
0x2848   :  { %4651 = vadd.xlane.f32.xlu1 %v4650_v12 }
0x28d5   :  { %v4652_v47 = vpop.xlane.xlu1 %4651 }
0x28d6   :  { %v4654_v49 = vmul.f32 0.03125, %v4652_v47 }
0x28d8   :  { %v4656_v42 = vadd.f32 1e-06, %v4654_v49 }
0x28da   :  { %15490 = vrsqrt.f32 %v4656_v42  ;;  %v17029_v42 = vld [vmem:[#allocation14] sm:$0xff] }
0x28e4   :  { %v15491_v50 = vpop.eup %15490 }
0x28e5   :  { %v4660_v39 = vmul.f32 %v15491_v50, %v16946_v36 }
0x28e7   :  { %v4668_v58 = vmul.f32 %v13682_v14, %v4660_v39  ;;  %v16995_v14 = vsel %vm261_vm6, 0.0, %v16025_v61 }
0x28e8   :  { %v16998_v16 = vadd.f32 %v4974_v15, %v16995_v14  ;;  %v17002_v26 = vadd.f32 %v5141_v17, %v16995_v14 }
0x28e9   :  { %14576 = vmatmul.mubr.msk.f32.vlgmr.msra.gmra.mrb[54].mxu0 %vm370_vm3, %v4668_v58 }
0x28ea   :  { %15286 = vmatpush3.bf16.msra.mxu0 %v15283_v24  ;;  %14605 = vmatprep.mubr.msk.f32.mxu0 %vm370_vm3, %v4883_v62 }
0x28eb   :  { %15288 = vmatprep.subr.bf16.mxu0 %v15287_v63 }
0x28ee   :  { %15290 = vmatpush3.bf16.msra.mxu0 %v15287_v63 }
0x28ef   :  { %14608 = vmatprep.subr.mxu0 %v16012_v22 }
0x28f1   :  { %14606 = vmatmul.mubr.msk.f32.vlgmr.msra.gmra.mrb[56].mxu0 %vm370_vm3, %v4884_v1  ;;  %v5455_v1 = vld [vmem:[#allocation5 + $0x10] sm:$0xff] }
0x28f2   :  { %14610 = vmatprep.mubr.msk.f32.mxu0 %vm16013_vm4, %v16012_v22 }
0x29bc   :  { %v14577_v48 = vpop.f32.mrb[54].mxu0 }
0x29bd   :  { %v4746_v55 = vpop.f32.mrb[55].mxu0  ;;  %v4756_v4 = vmax.f32 %v14577_v48, 0.0  ;;  %v17045_v48 = vadd.f32 %v5455_v1, %v16995_v14 }
0x29be   :  { %v4755_v45 = vmax.f32 %v4746_v55, 0.0 }
0x29c0   :  { %14594 = vmatprep.mubr.msk.f32.mxu1 %vm285_vm0, %v4755_v45 }
0x29c1   :  { %14595 = vmatmul.mubr.msk.f32.vlgmr.msra.gmra.mrb[52].mxu1 %vm285_vm0, %v4756_v4 }
0x29c2   :  { %14615 = vmatprep.mubr.msk.f32.mxu1 %vm16013_vm4, %v16012_v22 }
0x29c4   :  { %v16968_v51 = vpop.f32.mrb[56].mxu0 }
0x29c5   :  { %v16970_v5 = vpop.f32.mrb[57].mxu0 }
0x29c6   :  { %5145 = vrot.lane.b32.xlu0 %v16970_v5, %s16014_s10  ;;  %4977 = vrot.lane.b32.xlu1 %v16970_v5, %s16015_s25 }
0x29ca   :  { %5143 = vrot.lane.b32.xlu0 %v16970_v5, %s16016_s20 }
0x2a38   :  { %v4978_v6 = vpop.permute.xlu1 %4977  ;;  %v5146_v9 = vpop.permute.xlu0 %5145 }
0x2a39   :  { %14609 = vmatpush3.xpose.msk.msra.mxu0 %vm492_vm5, %v4978_v6 }
0x2a3a   :  { %14618 = vmatprep.subr.mxu0 %v16012_v22 }
0x2a3c   :  { %14611 = vmatmul.mubr.msk.f32.vlgmr.msra.gmra.mrb[58].mxu0 %vm492_vm5, %v16970_v5  ;;  %v5144_v13 = vpop.permute.xlu0 %5143 }
0x2a3d   :  { %14619 = vmatpush3.xpose.msk.msra.mxu0 %vm492_vm5, %v5146_v9  ;;  %14620 = vmatprep.mubr.msk.f32.mxu0 %vm16013_vm4, %v16012_v22 }
0x2a3e   :  { %14628 = vmatprep.subr.mxu0 %v16012_v22 }
0x2a40   :  { %14621 = vmatmul.mubr.msk.f32.vlgmr.msra.gmra.mrb[60].mxu0 %vm492_vm5, %v5144_v13 }
0x2a41   :  { %14630 = vmatprep.mubr.msk.f32.mxu0 %vm16013_vm4, %v16012_v22  ;;  %14629 = vmatpush3.msra.mxu0 %v17018_v19 }
0x2a42   :  { %14638 = vmatprep.subr.mxu0 %v16012_v22 }
0x2a94   :  { %v16989_v25 = vpop.f32.mrb[52].mxu1 }
0x2a95   :  { %v16991_v38 = vpop.f32.mrb[53].mxu1 }
0x2b0f   :  { %v5049_v2 = vpop.f32.mrb[58].mxu0 }
0x2b10   :  { %v5050_v18 = vadd.f32 %v5049_v2, %v16998_v16  ;;  %v14612_v53 = vpop.f32.mrb[59].mxu0 }
0x2b12   :  { %v5053_v27 = vsel %vm492_vm5, %v5050_v18, -inf }
0x2b13   :  { %5054 = vmax.xlane.f32.xlu0 %v5053_v27  ;;  %v5217_v12 = vpop.f32.mrb[60].mxu0 }
0x2b14   :  { %v5218_v10 = vadd.f32 %v5217_v12, %v17002_v26  ;;  %v14622_v23 = vpop.f32.mrb[61].mxu0 }
0x2b15   :  { %v17065_v23 = vld [vmem:[#allocation14 + $0x10] sm:$0xff] }
0x2b16   :  { %v5221_v30 = vsel %vm492_vm5, %v5218_v10, -inf }
0x2b17   :  { %5222 = vmax.xlane.f32.xlu1 %v5221_v30  ;;  %v5697_v30 = vld [vmem:[#allocation5 + $0x18] sm:$0xff] }
0x2b28   :  { %5064 = vrot.lane.b32.xlu1 %v16970_v5, %s16019_s0 }
0x2b2c   :  { %5459 = vrot.lane.b32.xlu1 %v16970_v5, %s16020_s16 }
0x2b30   :  { %5457 = vrot.lane.b32.xlu1 %v16970_v5, %s16018_s27 }
0x2ba0   :  { %v5055_v31 = vpop.xlane.xlu0 %5054 }
0x2ba1   :  { %v5056_v33 = vsub.f32 %v5050_v18, %v5055_v31 }
0x2ba3   :  { %v5057_v32 = vmul.f32 1.442695, %v5056_v33 }
0x2ba4   :  { %v5223_v34 = vpop.xlane.xlu1 %5222 }
0x2ba5   :  { %15492 = vpow2.f32 %v5057_v32  ;;  %v5224_v35 = vsub.f32 %v5218_v10, %v5223_v34  ;;  %v17071_v32 = vadd.f32 %v5697_v30, %v16995_v14 }
0x2ba7   :  { %v5225_v54 = vmul.f32 1.442695, %v5224_v35 }
0x2ba8   :  { %v5065_v8 = vpop.permute.xlu1 %5064 }
0x2ba9   :  { %15494 = vpow2.f32 %v5225_v54  ;;  %14614 = vmatpush3.msra.mxu1 %v5065_v8 }
0x2baa   :  { %14623 = vmatprep.subr.mxu1 %v16012_v22 }
0x2bac   :  { %v5460_v60 = vpop.permute.xlu1 %5459 }
0x2baf   :  { %v15493_v24 = vpop.eup %15492 }
0x2bb0   :  { %v5059_v56 = vsel %vm492_vm5, %v15493_v24, 0.0  ;;  %v5458_v58 = vpop.permute.xlu1 %5457 }
0x2bb1   :  { %5060 = vadd.xlane.f32.xlu0 %v5059_v56 }
0x2bb3   :  { %v15495_v11 = vpop.eup %15494 }
0x2bb4   :  { %v5227_v40 = vsel %vm492_vm5, %v15495_v11, 0.0 }
0x2bb5   :  { %5228 = vadd.xlane.f32.xlu0 %v5227_v40 }
0x2bcb   :  { %5232 = vrot.lane.b32.xlu0 %v16970_v5, %s16017_s9 }
0x2c3e   :  { %v5061_v37 = vpop.xlane.xlu0 %5060 }
0x2c3f   :  { %15496 = vrcp.f32 %v5061_v37 }
0x2c42   :  { %v5229_v7 = vpop.xlane.xlu0 %5228 }
0x2c43   :  { %15498 = vrcp.f32 %v5229_v7 }
0x2c46   :  { %v5233_v44 = vpop.permute.xlu0 %5232 }
0x2c49   :  { %v15497_v21 = vpop.eup %15496 }
0x2c4a   :  { %v5063_v43 = vmul.f32 %v15497_v21, %v15493_v24 }
0x2c4c   :  { %14616 = vmatmul.mubr.msk.f32.vlgmr.msra.gmra.mrb[54].mxu1 %vm492_vm5, %v5063_v43 }
0x2c4d   :  { %v15499_v47 = vpop.eup %15498  ;;  %14624 = vmatpush3.msra.mxu1 %v5233_v44  ;;  %14625 = vmatprep.mubr.msk.f32.mxu1 %vm16013_vm4, %v16012_v22 }
0x2c4e   :  { %v5231_v49 = vmul.f32 %v15499_v47, %v15495_v11  ;;  %14633 = vmatprep.subr.mxu1 %v16012_v22 }
0x2c50   :  { %14626 = vmatmul.mubr.msk.f32.vlgmr.msra.gmra.mrb[56].mxu1 %vm492_vm5, %v5231_v49 }
0x2c51   :  { %14635 = vmatprep.mubr.msk.f32.mxu1 %vm16013_vm4, %v16012_v22  ;;  %14634 = vmatpush3.msra.mxu1 %v17029_v42 }
0x2c52   :  { %14643 = vmatprep.subr.mxu1 %v16012_v22 }
0x2d1f   :  { %v5136_v50 = vpop.f32.mrb[54].mxu1 }
0x2d20   :  { %v14617_v52 = vpop.f32.mrb[55].mxu1  ;;  %14636 = vmatmul.mubr.msk.f32.vlgmr.msra.gmra.mrb[58].mxu1 %vm492_vm5, %v5136_v50 }
0x2d21   :  { %14645 = vmatprep.mubr.msk.f32.mxu1 %vm16013_vm4, %v16012_v22 }
0x2d23   :  { %v5304_v57 = vpop.f32.mrb[56].mxu1 }
0x2d24   :  { %v14627_v39 = vpop.f32.mrb[57].mxu1  ;;  %14631 = vmatmul.mubr.msk.f32.vlgmr.msra.gmra.mrb[62].mxu0 %vm492_vm5, %v5304_v57 }
0x2d25   :  { %14639 = vmatpush3.xpose.msk.msra.mxu0 %vm492_vm5, %v5460_v60  ;;  %14640 = vmatprep.mubr.msk.f32.mxu0 %vm16013_vm4, %v16012_v22  ;;  %v17103_v60 = vld [vmem:[#allocation14 + $0x18] sm:$0xff] }
0x2d26   :  { %14648 = vmatprep.subr.mxu0 %v16012_v22 }
0x2d28   :  { %14641 = vmatmul.mubr.msk.f32.vlgmr.msra.gmra.mrb[64].mxu0 %vm492_vm5, %v5458_v58 }
0x2d29   :  { %14650 = vmatprep.mubr.msk.f32.mxu0 %vm16013_vm4, %v16012_v22  ;;  %14649 = vmatpush3.msra.mxu0 %v17065_v23 }
0x2d2a   :  { %14658 = vmatprep.subr.mxu0 %v16012_v22 }
0x2df3   :  { %v5450_v63 = vpop.f32.mrb[58].mxu1 }
0x2df4   :  { %v14637_v62 = vpop.f32.mrb[59].mxu1 }
0x2df7   :  { %v5377_v0 = vpop.f32.mrb[62].mxu0 }
0x2df8   :  { %v5451_v3 = vadd.f32 %v5450_v63, %v5377_v0  ;;  %v14632_v46 = vpop.f32.mrb[63].mxu0 }
0x2dfb   :  { %v5531_v55 = vpop.f32.mrb[64].mxu0 }
0x2dfc   :  { %v5532_v45 = vadd.f32 %v5531_v55, %v17045_v48  ;;  %v14642_v4 = vpop.f32.mrb[65].mxu0 }
0x2dfe   :  { %v5535_v6 = vsel %vm492_vm5, %v5532_v45, -inf }
0x2dff   :  { %5536 = vmax.xlane.f32.xlu0 %v5535_v6 }
0x2e15   :  { %5546 = vrot.lane.b32.xlu0 %v16970_v5, %s16021_s26 }
0x2e19   :  { %5699 = vrot.lane.b32.xlu0 %v16970_v5, %s16022_s29 }
0x2e8c   :  { %v5537_v9 = vpop.xlane.xlu0 %5536 }
0x2e8d   :  { %v5538_v13 = vsub.f32 %v5532_v45, %v5537_v9 }
0x2e8f   :  { %v5539_v61 = vmul.f32 1.442695, %v5538_v13 }
0x2e90   :  { %v5547_v15 = vpop.permute.xlu0 %5546 }
0x2e91   :  { %15500 = vpow2.f32 %v5539_v61  ;;  %14644 = vmatpush3.msra.mxu1 %v5547_v15 }
0x2e92   :  { %14653 = vmatprep.subr.mxu1 %v16012_v22 }
0x2e94   :  { %v5700_v10 = vpop.permute.xlu0 %5699 }
0x2e9b   :  { %v15501_v17 = vpop.eup %15500 }
0x2e9c   :  { %v5541_v2 = vsel %vm492_vm5, %v15501_v17, 0.0 }
0x2e9d   :  { %5542 = vadd.xlane.f32.xlu1 %v5541_v2 }
0x2eae   :  { %5701 = vrot.lane.b32.xlu1 %v16970_v5, %s16023_s8 }
0x2f2a   :  { %v5543_v18 = vpop.xlane.xlu1 %5542 }
0x2f2b   :  { %15502 = vrcp.f32 %v5543_v18 }
0x2f2e   :  { %v5702_v12 = vpop.permute.xlu1 %5701 }
0x2f35   :  { %v15503_v53 = vpop.eup %15502 }
0x2f36   :  { %v5545_v27 = vmul.f32 %v15503_v53, %v15501_v17 }
0x2f38   :  { %14646 = vmatmul.mubr.msk.f32.vlgmr.msra.gmra.mrb[60].mxu1 %vm492_vm5, %v5545_v27 }
0x2f39   :  { %14654 = vmatpush3.xpose.msk.msra.mxu1 %vm492_vm5, %v5702_v12  ;;  %14655 = vmatprep.mubr.msk.f32.mxu1 %vm16013_vm4, %v16012_v22 }
0x2f3a   :  { %14663 = vmatprep.subr.mxu1 %v16012_v22 }
0x2f3c   :  { %14656 = vmatmul.mubr.msk.f32.vlgmr.msra.gmra.mrb[62].mxu1 %vm492_vm5, %v5700_v10 }
0x2f3d   :  { %14665 = vmatprep.mubr.msk.f32.mxu1 %vm16013_vm4, %v16012_v22  ;;  %14664 = vmatpush3.msra.mxu1 %v17103_v60 }
0x2f3e   :  { %14673 = vmatprep.subr.mxu1 %v16012_v22 }
0x300b   :  { %v5618_v31 = vpop.f32.mrb[60].mxu1 }
0x300c   :  { %v14647_v33 = vpop.f32.mrb[61].mxu1  ;;  %14651 = vmatmul.mubr.msk.f32.vlgmr.msra.gmra.mrb[66].mxu0 %vm492_vm5, %v5618_v31 }
0x300d   :  { %14660 = vmatprep.mubr.msk.f32.mxu0 %vm16013_vm4, %v16012_v22 }
0x300f   :  { %v5773_v34 = vpop.f32.mrb[62].mxu1 }
0x3010   :  { %v5774_v35 = vadd.f32 %v5773_v34, %v17071_v32  ;;  %v14657_v54 = vpop.f32.mrb[63].mxu1 }
0x3012   :  { %v5777_v8 = vsel %vm492_vm5, %v5774_v35, -inf }
0x3013   :  { %5778 = vmax.xlane.f32.xlu1 %v5777_v8 }
0x3024   :  { %5939 = vrot.lane.b32.xlu1 %v16968_v51, %s16015_s25 }
0x3028   :  { %6104 = vrot.lane.b32.xlu1 %v16968_v51, %s16014_s10 }
0x30a0   :  { %v5779_v24 = vpop.xlane.xlu1 %5778 }
0x30a1   :  { %v5780_v56 = vsub.f32 %v5774_v35, %v5779_v24 }
0x30a3   :  { %v5781_v14 = vmul.f32 1.442695, %v5780_v56 }
0x30a4   :  { %v5940_v49 = vpop.permute.xlu1 %5939 }
0x30a5   :  { %15504 = vpow2.f32 %v5781_v14 }
0x30af   :  { %v15505_v11 = vpop.eup %15504 }
0x30b0   :  { %v5783_v40 = vsel %vm492_vm5, %v15505_v11, 0.0 }
0x30b1   :  { %5784 = vadd.xlane.f32.xlu0 %v5783_v40 }
0x30c7   :  { %5788 = vrot.lane.b32.xlu0 %v16970_v5, %s16024_s22  ;;  %v6105_v5 = vpop.permute.xlu1 %6104 }
0x30cb   :  { %6102 = vrot.lane.b32.xlu0 %v16968_v51, %s16016_s20 }
0x30df   :  { %v5691_v37 = vpop.f32.mrb[66].mxu0 }
0x30e0   :  { %v5695_v7 = vadd.f32 %v5691_v37, %v5451_v3  ;;  %v14652_v21 = vpop.f32.mrb[67].mxu0 }
0x313e   :  { %v5785_v43 = vpop.xlane.xlu0 %5784 }
0x313f   :  { %15506 = vrcp.f32 %v5785_v43 }
0x3142   :  { %v5789_v44 = vpop.permute.xlu0 %5788 }
0x3143   :  { %14659 = vmatpush3.msra.mxu0 %v5789_v44 }
0x3144   :  { %14668 = vmatprep.subr.mxu0 %v16012_v22 }
0x3146   :  { %v6103_v52 = vpop.permute.xlu0 %6102 }
0x3149   :  { %v15507_v47 = vpop.eup %15506 }
0x314a   :  { %v5787_v50 = vmul.f32 %v15507_v47, %v15505_v11 }
0x314c   :  { %14661 = vmatmul.mubr.msk.f32.vlgmr.msra.gmra.mrb[68].mxu0 %vm492_vm5, %v5787_v50 }
0x314d   :  { %14669 = vmatpush3.xpose.msk.msra.mxu0 %vm492_vm5, %v5940_v49  ;;  %14670 = vmatprep.mubr.msk.f32.mxu0 %vm16013_vm4, %v16012_v22 }
0x314e   :  { %14678 = vmatprep.subr.mxu0 %v16012_v22 }
0x3150   :  { %14671 = vmatmul.mubr.msk.f32.vlgmr.msra.gmra.mrb[70].mxu0 %vm492_vm5, %v16968_v51 }
0x3151   :  { %14679 = vmatpush3.xpose.msk.msra.mxu0 %vm492_vm5, %v6105_v5  ;;  %14680 = vmatprep.mubr.msk.f32.mxu0 %vm16013_vm4, %v16012_v22 }
0x3152   :  { %14688 = vmatprep.subr.mxu0 %v16012_v22 }
0x3154   :  { %14681 = vmatmul.mubr.msk.f32.vlgmr.msra.gmra.mrb[72].mxu0 %vm492_vm5, %v6103_v52 }
0x3155   :  { %14689 = vmatpush3.msra.mxu0 %v17018_v19  ;;  %14690 = vmatprep.mubr.msk.f32.mxu0 %vm16013_vm4, %v16012_v22 }
0x3156   :  { %14698 = vmatprep.subr.mxu0 %v16012_v22 }
0x321f   :  { %v5860_v57 = vpop.f32.mrb[68].mxu0 }
0x3220   :  { %v14662_v39 = vpop.f32.mrb[69].mxu0  ;;  %14666 = vmatmul.mubr.msk.f32.vlgmr.msra.gmra.mrb[64].mxu1 %vm492_vm5, %v5860_v57 }
0x3221   :  { %14675 = vmatprep.mubr.msk.f32.mxu1 %vm16013_vm4, %v16012_v22 }
0x3223   :  { %v6011_v58 = vpop.f32.mrb[70].mxu0 }
0x3224   :  { %v6012_v19 = vadd.f32 %v6011_v58, %v16998_v16  ;;  %v14672_v63 = vpop.f32.mrb[71].mxu0 }
0x3226   :  { %v6015_v62 = vsel %vm492_vm5, %v6012_v19, -inf }
0x3227   :  { %6016 = vmax.xlane.f32.xlu1 %v6015_v62  ;;  %v6176_v1 = vpop.f32.mrb[72].mxu0 }
0x3228   :  { %v6177_v0 = vadd.f32 %v6176_v1, %v17002_v26  ;;  %v14682_v3 = vpop.f32.mrb[73].mxu0 }
0x322a   :  { %v6180_v46 = vsel %vm492_vm5, %v6177_v0, -inf }
0x322b   :  { %6181 = vmax.xlane.f32.xlu0 %v6180_v46 }
0x32b4   :  { %v6017_v55 = vpop.xlane.xlu1 %6016 }
0x32b5   :  { %v6018_v45 = vsub.f32 %v6012_v19, %v6017_v55 }
0x32b7   :  { %v6019_v4 = vmul.f32 1.442695, %v6018_v45 }
0x32b8   :  { %v6182_v6 = vpop.xlane.xlu0 %6181 }
0x32b9   :  { %15508 = vpow2.f32 %v6019_v4  ;;  %v6183_v9 = vsub.f32 %v6177_v0, %v6182_v6 }
0x32bb   :  { %v6184_v13 = vmul.f32 1.442695, %v6183_v9 }
0x32bd   :  { %15510 = vpow2.f32 %v6184_v13 }
0x32c3   :  { %v15509_v61 = vpop.eup %15508 }
0x32c4   :  { %v6021_v15 = vsel %vm492_vm5, %v15509_v61, 0.0 }
0x32c5   :  { %6022 = vadd.xlane.f32.xlu0 %v6021_v15  ;;  %v4847_v15 = vadd.f32 %v16991_v38, %v16932_v41 }
0x32c7   :  { %v15511_v17 = vpop.eup %15510 }
0x32c8   :  { %v6186_v2 = vsel %vm492_vm5, %v15511_v17, 0.0 }
0x32c9   :  { %6187 = vadd.xlane.f32.xlu1 %v6186_v2  ;;  %v4848_v2 = vadd.f32 %v16989_v25, %v16946_v36 }
0x32da   :  { %6191 = vrot.lane.b32.xlu1 %v16968_v51, %s16017_s9 }
0x32db   :  { %6026 = vrot.lane.b32.xlu0 %v16968_v51, %s16019_s0 }
0x32de   :  { %6415 = vrot.lane.b32.xlu1 %v16968_v51, %s16020_s16 }
0x32df   :  { %6413 = vrot.lane.b32.xlu0 %v16968_v51, %s16018_s27 }
0x32f3   :  { %v5933_v18 = vpop.f32.mrb[64].mxu1 }
0x32f4   :  { %v5937_v53 = vadd.f32 %v5933_v18, %v5695_v7  ;;  %v14667_v27 = vpop.f32.mrb[65].mxu1  ;;  %v4850_v18 = vmul.f32 %v4847_v15, %v4847_v15 }
0x32f5   :  { %v4851_v27 = vmul.f32 %v4848_v2, %v4848_v2 }
0x32f6   :  { %v17125_v12 = vadd.f32 %v5937_v53, %v16442_v29 }
0x3352   :  { %v6023_v10 = vpop.xlane.xlu0 %6022 }
0x3353   :  { %15512 = vrcp.f32 %v6023_v10  ;;  %v4855_v10 = vsel %vm370_vm3, %v4851_v27, 0.0 }
0x3356   :  { %v6027_v30 = vpop.permute.xlu0 %6026  ;;  %v6188_v31 = vpop.xlane.xlu1 %6187 }
0x3357   :  { %15514 = vrcp.f32 %v6188_v31  ;;  %14674 = vmatpush3.msra.mxu1 %v6027_v30  ;;  %v6894_v30 = vmul.f32 %v17125_v12, %v17125_v12 }
0x3358   :  { %14683 = vmatprep.subr.mxu1 %v16012_v22 }
0x3359   :  { %v6896_v41 = vsel %vm370_vm3, %v6894_v30, 0.0 }
0x335a   :  { %v6192_v35 = vpop.permute.xlu1 %6191 }
0x335d   :  { %v15513_v33 = vpop.eup %15512 }
0x335e   :  { %v6025_v34 = vmul.f32 %v15513_v33, %v15509_v61  ;;  %v6416_v14 = vpop.permute.xlu1 %6415 }
0x3360   :  { %14676 = vmatmul.mubr.msk.f32.vlgmr.msra.gmra.mrb[66].mxu1 %vm492_vm5, %v6025_v34 }
0x3361   :  { %v15515_v54 = vpop.eup %15514  ;;  %14684 = vmatpush3.msra.mxu1 %v6192_v35  ;;  %14685 = vmatprep.mubr.msk.f32.mxu1 %vm16013_vm4, %v16012_v22 }
0x3362   :  { %v6190_v29 = vmul.f32 %v15515_v54, %v15511_v17  ;;  %14693 = vmatprep.subr.mxu1 %v16012_v22 }
0x3364   :  { %14686 = vmatmul.mubr.msk.f32.vlgmr.msra.gmra.mrb[68].mxu1 %vm492_vm5, %v6190_v29 }
0x3365   :  { %14694 = vmatpush3.msra.mxu1 %v17029_v42  ;;  %14695 = vmatprep.mubr.msk.f32.mxu1 %vm16013_vm4, %v16012_v22  ;;  %v6414_v42 = vpop.permute.xlu0 %6413 }
0x3366   :  { %14703 = vmatprep.subr.mxu1 %v16012_v22 }
0x3433   :  { %v6098_v8 = vpop.f32.mrb[66].mxu1 }
0x3434   :  { %v14677_v24 = vpop.f32.mrb[67].mxu1  ;;  %14696 = vmatmul.mubr.msk.f32.vlgmr.msra.gmra.mrb[70].mxu1 %vm492_vm5, %v6098_v8 }
0x3435   :  { %14705 = vmatprep.mubr.msk.f32.mxu1 %vm16013_vm4, %v16012_v22 }
0x3437   :  { %v6263_v56 = vpop.f32.mrb[68].mxu1 }
0x3438   :  { %v14687_v11 = vpop.f32.mrb[69].mxu1  ;;  %14691 = vmatmul.mubr.msk.f32.vlgmr.msra.gmra.mrb[74].mxu0 %vm492_vm5, %v6263_v56 }
0x3439   :  { %14699 = vmatpush3.xpose.msk.msra.mxu0 %vm492_vm5, %v6416_v14  ;;  %14700 = vmatprep.mubr.msk.f32.mxu0 %vm16013_vm4, %v16012_v22 }
0x343a   :  { %14708 = vmatprep.subr.mxu0 %v16012_v22 }
0x343c   :  { %14701 = vmatmul.mubr.msk.f32.vlgmr.msra.gmra.mrb[76].mxu0 %vm492_vm5, %v6414_v42 }
0x343d   :  { %14709 = vmatpush3.msra.mxu0 %v17065_v23  ;;  %14710 = vmatprep.mubr.msk.f32.mxu0 %vm16013_vm4, %v16012_v22 }
0x343e   :  { %14718 = vmatprep.subr.mxu0 %v16012_v22 }
0x3507   :  { %v6409_v40 = vpop.f32.mrb[70].mxu1 }
0x3508   :  { %v14697_v37 = vpop.f32.mrb[71].mxu1 }
0x3509   :  { %v13687_v37 = vld [vmem:[%s17936_s11] ss:$0 sm:$0xff] }
0x350b   :  { %v6336_v7 = vpop.f32.mrb[74].mxu0 }
0x350c   :  { %v17150_v21 = vadd.f32 %v6409_v40, %v6336_v7  ;;  %v14692_v43 = vpop.f32.mrb[75].mxu0 }
0x350f   :  { %v6487_v44 = vpop.f32.mrb[76].mxu0 }
0x3510   :  { %v6488_v47 = vadd.f32 %v6487_v44, %v17045_v48  ;;  %v14702_v49 = vpop.f32.mrb[77].mxu0 }
0x3512   :  { %v6491_v50 = vsel %vm492_vm5, %v6488_v47, -inf }
0x3513   :  { %6492 = vmax.xlane.f32.xlu1 %v6491_v50  ;;  %v13723_v50 = vld [vmem:[%s17940_s15] ss:$0 sm:$0xff] }
0x3524   :  { %6654 = vrot.lane.b32.xlu1 %v16968_v51, %s16023_s8 }
0x3528   :  { %6652 = vrot.lane.b32.xlu1 %v16968_v51, %s16022_s29 }
0x35a0   :  { %v6493_v23 = vpop.xlane.xlu1 %6492 }
0x35a1   :  { %v6494_v5 = vsub.f32 %v6488_v47, %v6493_v23 }
0x35a3   :  { %v6495_v52 = vmul.f32 1.442695, %v6494_v5 }
0x35a4   :  { %v6655_v62 = vpop.permute.xlu1 %6654 }
0x35a5   :  { %15516 = vpow2.f32 %v6495_v52  ;;  %v7003_v52 = vld [vmem:[#allocation17] sm:$0xff] }
0x35a8   :  { %v6653_v0 = vpop.permute.xlu1 %6652 }
0x35af   :  { %v15517_v57 = vpop.eup %15516 }
0x35b0   :  { %v6497_v39 = vsel %vm492_vm5, %v15517_v57, 0.0 }
0x35b1   :  { %6498 = vadd.xlane.f32.xlu0 %v6497_v39 }
0x35c7   :  { %6502 = vrot.lane.b32.xlu0 %v16968_v51, %s16021_s26 }
0x363e   :  { %v6499_v58 = vpop.xlane.xlu0 %6498 }
0x363f   :  { %15518 = vrcp.f32 %v6499_v58  ;;  %v7005_v58 = vld [vmem:[#allocation17 + $0x10] sm:$0xff] }
0x3642   :  { %v6503_v19 = vpop.permute.xlu0 %6502 }
0x3643   :  { %14704 = vmatpush3.msra.mxu1 %v6503_v19  ;;  %v7006_v19 = vld [vmem:[#allocation17 + $0x18] sm:$0xff] }
0x3644   :  { %14713 = vmatprep.subr.mxu1 %v16012_v22 }
0x3649   :  { %v15519_v63 = vpop.eup %15518 }
0x364a   :  { %v6501_v1 = vmul.f32 %v15519_v63, %v15517_v57  ;;  %v7004_v57 = vld [vmem:[#allocation17 + $0x8] sm:$0xff]  ;;  %v15303_v63 = vpack.c.bf16 %v7006_v19, %v7005_v58  ;;  %v17271_v19 = vld [vmem:[#allocation19] sm:$0xff] }
0x364b   :  { %v15299_v39 = vpack.c.bf16 %v7004_v57, %v7003_v52 }
0x364c   :  { %14706 = vmatmul.mubr.msk.f32.vlgmr.msra.gmra.mrb[72].mxu1 %vm492_vm5, %v6501_v1 }
0x364d   :  { %14714 = vmatpush3.xpose.msk.msra.mxu1 %vm492_vm5, %v6655_v62  ;;  %14715 = vmatprep.mubr.msk.f32.mxu1 %vm16013_vm4, %v16012_v22 }
0x364e   :  { %14723 = vmatprep.subr.mxu1 %v16012_v22 }
0x3650   :  { %14716 = vmatmul.mubr.msk.f32.vlgmr.msra.gmra.mrb[74].mxu1 %vm492_vm5, %v6653_v0 }
0x3651   :  { %14724 = vmatpush3.msra.mxu1 %v17103_v60  ;;  %14725 = vmatprep.mubr.msk.f32.mxu1 %vm16013_vm4, %v16012_v22 }
0x3652   :  { %15300 = vmatprep.subr.bf16.mxu1 %v15299_v39 }
0x371f   :  { %v6574_v3 = vpop.f32.mrb[72].mxu1 }
0x3720   :  { %v14707_v46 = vpop.f32.mrb[73].mxu1  ;;  %14711 = vmatmul.mubr.msk.f32.vlgmr.msra.gmra.mrb[78].mxu0 %vm492_vm5, %v6574_v3 }
0x3721   :  { %14720 = vmatprep.mubr.msk.f32.mxu0 %vm16013_vm4, %v16012_v22 }
0x3723   :  { %v6726_v55 = vpop.f32.mrb[74].mxu1 }
0x3724   :  { %v6727_v45 = vadd.f32 %v6726_v55, %v17071_v32  ;;  %v14717_v4 = vpop.f32.mrb[75].mxu1 }
0x3726   :  { %v6730_v6 = vsel %vm492_vm5, %v6727_v45, -inf }
0x3727   :  { %6731 = vmax.xlane.f32.xlu0 %v6730_v6 }
0x373d   :  { %6741 = vrot.lane.b32.xlu0 %v16968_v51, %s16024_s22  ;;  %v4852_v51 = vsel %vm370_vm3, %v4850_v18, 0.0 }
0x37b4   :  { %v6732_v60 = vpop.xlane.xlu0 %6731 }
0x37b5   :  { %v6733_v9 = vsub.f32 %v6727_v45, %v6732_v60 }
0x37b7   :  { %v6734_v13 = vmul.f32 1.442695, %v6733_v9  ;;  %v6918_v9 = vld [vmem:[#allocation16] sm:$0xff] }
0x37b8   :  { %v6742_v61 = vpop.permute.xlu0 %6741 }
0x37b9   :  { %15520 = vpow2.f32 %v6734_v13  ;;  %14719 = vmatpush3.msra.mxu0 %v6742_v61  ;;  %v6919_v13 = vld [vmem:[#allocation16 + $0x8] sm:$0xff] }
0x37ba   :  { %v15291_v61 = vpack.c.bf16 %v6919_v13, %v6918_v9 }
0x37bc   :  { %15292 = vmatprep.subr.bf16.mxu0 %v15291_v61 }
0x37c3   :  { %v15521_v17 = vpop.eup %15520 }
0x37c4   :  { %v6736_v53 = vsel %vm492_vm5, %v15521_v17, 0.0 }
0x37c5   :  { %6737 = vadd.xlane.f32.xlu1 %v6736_v53 }
0x37c9   :  { %4853 = vadd.xlane.f32.xlu1 %v4852_v51 }
0x37cd   :  { %4856 = vadd.xlane.f32.xlu1 %v4855_v10 }
0x37d1   :  { %6897 = vadd.xlane.f32.xlu1 %v6896_v41 }
0x37f3   :  { %v6647_v38 = vpop.f32.mrb[78].mxu0 }
0x37f4   :  { %v6651_v36 = vadd.f32 %v6647_v38, %v17150_v21  ;;  %v14712_v25 = vpop.f32.mrb[79].mxu0 }
0x3852   :  { %v6738_v31 = vpop.xlane.xlu1 %6737 }
0x3853   :  { %15522 = vrcp.f32 %v6738_v31 }
0x3856   :  { %v4854_v33 = vpop.xlane.xlu1 %4853 }
0x3857   :  { %v4858_v34 = vmul.f32 0.03125, %v4854_v33 }
0x3859   :  { %v4860_v35 = vadd.f32 1e-06, %v4858_v34 }
0x385a   :  { %v4857_v54 = vpop.xlane.xlu1 %4856 }
0x385b   :  { %15524 = vrsqrt.f32 %v4860_v35  ;;  %v4859_v29 = vmul.f32 0.03125, %v4857_v54 }
0x385d   :  { %v15523_v8 = vpop.eup %15522  ;;  %v4861_v24 = vadd.f32 1e-06, %v4859_v29 }
0x385e   :  { %v6898_v56 = vpop.xlane.xlu1 %6897  ;;  %v6740_v14 = vmul.f32 %v15523_v8, %v15521_v17 }
0x385f   :  { %15526 = vrsqrt.f32 %v4861_v24  ;;  %v6902_v11 = vmul.f32 0.03125, %v6898_v56 }
0x3860   :  { %14721 = vmatmul.mubr.msk.f32.vlgmr.msra.gmra.mrb[80].mxu0 %vm492_vm5, %v6740_v14 }
0x3861   :  { %v6904_v42 = vadd.f32 1e-06, %v6902_v11  ;;  %15294 = vmatpush3.bf16.msra.mxu0 %v15291_v61 }
0x3863   :  { %15528 = vrsqrt.f32 %v6904_v42 }
0x3865   :  { %v15525_v40 = vpop.eup %15524 }
0x3866   :  { %v4864_v7 = vmul.f32 %v15525_v40, %v4847_v15  ;;  %v6921_v15 = vld [vmem:[#allocation16 + $0x18] sm:$0xff] }
0x3868   :  { %v17193_v21 = vmul.f32 %v13687_v37, %v4864_v7 }
0x3869   :  { %v15527_v43 = vpop.eup %15526 }
0x386a   :  { %v4865_v44 = vmul.f32 %v15527_v43, %v4848_v2  ;;  %4874 = vst.msk [vmem:[#allocation24] sm:$0xff] %vm370_vm3, %v17193_v21 }
0x386c   :  { %v17197_v47 = vmul.f32 %v13687_v37, %v4865_v44 }
0x386d   :  { %v15529_v49 = vpop.eup %15528 }
0x386e   :  { %v6908_v23 = vmul.f32 %v15529_v49, %v17125_v12  ;;  %4875 = vst.msk [vmem:[#allocation24 + $0x8] sm:$0xff] %vm370_vm3, %v17197_v47 }
0x3870   :  { %v6916_v5 = vmul.f32 %v13723_v50, %v6908_v23 }
0x3872   :  { %14736 = vmatprep.mubr.msk.f32.mxu0 %vm370_vm3, %v6916_v5 }
0x3933   :  { %v6813_v62 = vpop.f32.mrb[80].mxu0 }
0x3934   :  { %v14722_v1 = vpop.f32.mrb[81].mxu0  ;;  %14726 = vmatmul.mubr.msk.f32.vlgmr.msra.gmra.mrb[76].mxu1 %vm492_vm5, %v6813_v62 }
0x3935   :  { %15302 = vmatpush3.bf16.msra.mxu1 %v15299_v39  ;;  %14747 = vmatprep.mubr.msk.f32.mxu1 %vm370_vm3, %v17193_v21 }
0x3936   :  { %15304 = vmatprep.subr.bf16.mxu1 %v15303_v63 }
0x3939   :  { %15306 = vmatpush3.bf16.msra.mxu1 %v15303_v63  ;;  %v17274_v63 = vld [vmem:[#allocation19 + $0x8] sm:$0xff] }
0x393a   :  { %14755 = vmatprep.subr.mxu1 %v16012_v22 }
0x393c   :  { %14748 = vmatmul.mubr.msk.f32.vlgmr.msra.gmra.mrb[78].mxu1 %vm370_vm3, %v17197_v47 }
0x393d   :  { %14757 = vmatprep.mubr.msk.f32.mxu1 %vm16013_vm4, %v16012_v22 }
0x3a07   :  { %v6886_v0 = vpop.f32.mrb[76].mxu1 }
0x3a08   :  { %v6890_v3 = vadd.f32 %v6886_v0, %v6651_v36  ;;  %v14727_v46 = vpop.f32.mrb[77].mxu1 }
0x3a0a   :  { %v17215_v55 = vadd.f32 %v16440_v28, %v6890_v3  ;;  %v6920_v28 = vld [vmem:[#allocation16 + $0x10] sm:$0xff] }
0x3a0b   :  { %v15295_v17 = vpack.c.bf16 %v6921_v15, %v6920_v28 }
0x3a0c   :  { %v6895_v45 = vmul.f32 %v17215_v55, %v17215_v55 }
0x3a0d   :  { %15296 = vmatprep.subr.bf16.mxu0 %v15295_v17 }
0x3a0e   :  { %v6899_v4 = vsel %vm370_vm3, %v6895_v45, 0.0  ;;  %15298 = vmatpush3.bf16.msra.mxu0 %v15295_v17 }
0x3a0f   :  { %v17220_v6 = vpop.f32.mrb[78].mxu1  ;;  %6900 = vadd.xlane.f32.xlu1 %v6899_v4  ;;  %14750 = vmatprep.subr.mxu0 %v16012_v22 }
0x3a10   :  { %v17222_v60 = vpop.f32.mrb[79].mxu1 }
0x3a11   :  { %7257 = vrot.lane.b32.xlu0 %v17222_v60, %s16016_s20 }
0x3a83   :  { %v7258_v38 = vpop.permute.xlu0 %7257 }
0x3a9c   :  { %v6901_v2 = vpop.xlane.xlu1 %6900 }
0x3a9d   :  { %v6903_v18 = vmul.f32 0.03125, %v6901_v2 }
0x3a9f   :  { %v6905_v53 = vadd.f32 1e-06, %v6903_v18 }
0x3aa1   :  { %15530 = vrsqrt.f32 %v6905_v53 }
0x3aab   :  { %v15531_v27 = vpop.eup %15530 }
0x3aac   :  { %v6909_v51 = vmul.f32 %v15531_v27, %v17215_v55 }
0x3aae   :  { %v6917_v10 = vmul.f32 %v13723_v50, %v6909_v51 }
0x3ab0   :  { %14737 = vmatmul.mubr.msk.f32.vlgmr.msra.gmra.mrb[82].mxu0 %vm370_vm3, %v6917_v10 }
0x3ab1   :  { %14751 = vmatpush3.xpose.msk.msra.mxu0 %vm492_vm5, %v17222_v60  ;;  %14752 = vmatprep.mubr.msk.f32.mxu0 %vm16013_vm4, %v16012_v22 }
0x3ab2   :  { %14760 = vmatprep.subr.mxu0 %v16012_v22 }
0x3b83   :  { %v17234_v30 = vpop.f32.mrb[82].mxu0 }
0x3b84   :  { %v17236_v41 = vpop.f32.mrb[83].mxu0 }
0x3b85   :  { %7255 = vrot.lane.b32.xlu1 %v17236_v41, %s16016_s20  ;;  %14753 = vmatmul.mubr.msk.f32.vlgmr.msra.gmra.mrb[84].mxu0 %vm492_vm5, %v17236_v41 }
0x3b86   :  { %14761 = vmatpush3.xpose.msk.msra.mxu0 %vm492_vm5, %v7258_v38  ;;  %14762 = vmatprep.mubr.msk.f32.mxu0 %vm16013_vm4, %v16012_v22 }
0x3b87   :  { %14770 = vmatprep.subr.mxu0 %v16012_v22 }
0x3bf7   :  { %v7256_v36 = vpop.permute.xlu1 %7255 }
0x3bf8   :  { %14763 = vmatmul.mubr.msk.f32.vlgmr.msra.gmra.mrb[86].mxu0 %vm492_vm5, %v7256_v36 }
0x3bf9   :  { %14772 = vmatprep.mubr.msk.f32.mxu0 %vm16013_vm4, %v16012_v22  ;;  %14771 = vmatpush3.msra.mxu0 %v17274_v63 }
0x3bfa   :  { %14780 = vmatprep.subr.mxu0 %v16012_v22 }
0x3c58   :  { %v7164_v25 = vpop.f32.mrb[84].mxu0 }
0x3c59   :  { %v7165_v31 = vadd.f32 %v7164_v25, %v16491_v59  ;;  %v14754_v33 = vpop.f32.mrb[85].mxu0 }
0x3c5b   :  { %v7168_v34 = vsel %vm492_vm5, %v7165_v31, -inf }
0x3c5c   :  { %7169 = vmax.xlane.f32.xlu0 %v7168_v34 }
0x3ccb   :  { %v7329_v35 = vpop.f32.mrb[86].mxu0 }
0x3ccc   :  { %v7330_v54 = vadd.f32 %v7329_v35, %v16491_v59  ;;  %v14764_v29 = vpop.f32.mrb[87].mxu0  ;;  %v17308_v35 = vld [vmem:[#allocation19 + $0x10] sm:$0xff] }
0x3cce   :  { %v7333_v8 = vsel %vm492_vm5, %v7330_v54, -inf }
0x3ccf   :  { %7334 = vmax.xlane.f32.xlu1 %v7333_v8 }
0x3ce0   :  { %7344 = vrot.lane.b32.xlu1 %v17222_v60, %s16014_s10 }
0x3ce9   :  { %v7170_v24 = vpop.xlane.xlu0 %7169 }
0x3cea   :  { %v7171_v56 = vsub.f32 %v7165_v31, %v7170_v24 }
0x3cec   :  { %v7172_v14 = vmul.f32 1.442695, %v7171_v56 }
0x3cee   :  { %15532 = vpow2.f32 %v7172_v14 }
0x3cf8   :  { %v15533_v11 = vpop.eup %15532 }
0x3cf9   :  { %v7174_v42 = vsel %vm492_vm5, %v15533_v11, 0.0 }
0x3cfa   :  { %7175 = vadd.xlane.f32.xlu0 %v7174_v42 }
0x3d5c   :  { %v7335_v40 = vpop.xlane.xlu1 %7334 }
0x3d5d   :  { %v7336_v37 = vsub.f32 %v7330_v54, %v7335_v40 }
0x3d5f   :  { %v7337_v7 = vmul.f32 1.442695, %v7336_v37 }
0x3d60   :  { %v7345_v57 = vpop.permute.xlu1 %7344 }
0x3d61   :  { %15534 = vpow2.f32 %v7337_v7 }
0x3d6b   :  { %v15535_v43 = vpop.eup %15534 }
0x3d6c   :  { %v7339_v44 = vsel %vm492_vm5, %v15535_v43, 0.0 }
0x3d6d   :  { %7340 = vadd.xlane.f32.xlu0 %v7339_v44 }
0x3d83   :  { %7179 = vrot.lane.b32.xlu0 %v17222_v60, %s16015_s25 }
0x3d87   :  { %7568 = vrot.lane.b32.xlu0 %v17222_v60, %s16018_s27  ;;  %v7176_v49 = vpop.xlane.xlu0 %7175 }
0x3d88   :  { %15536 = vrcp.f32 %v7176_v49 }
0x3d8b   :  { %7566 = vrot.lane.b32.xlu0 %v17236_v41, %s16018_s27 }
0x3d92   :  { %v15537_v23 = vpop.eup %15536 }
0x3d93   :  { %v7178_v52 = vmul.f32 %v15537_v23, %v15533_v11 }
0x3dfa   :  { %v7341_v50 = vpop.xlane.xlu0 %7340 }
0x3dfb   :  { %15538 = vrcp.f32 %v7341_v50 }
0x3dfe   :  { %v7180_v5 = vpop.permute.xlu0 %7179 }
0x3dff   :  { %14756 = vmatpush3.msra.mxu1 %v7180_v5 }
0x3e00   :  { %14758 = vmatmul.mubr.msk.f32.vlgmr.msra.gmra.mrb[80].mxu1 %vm492_vm5, %v7178_v52  ;;  %14765 = vmatprep.subr.mxu1 %v16012_v22 }
0x3e01   :  { %14766 = vmatpush3.msra.mxu1 %v7345_v57  ;;  %14767 = vmatprep.mubr.msk.f32.mxu1 %vm16013_vm4, %v16012_v22 }
0x3e02   :  { %14775 = vmatprep.subr.mxu1 %v16012_v22  ;;  %v7569_v0 = vpop.permute.xlu0 %7568 }
0x3e05   :  { %v15539_v39 = vpop.eup %15538 }
0x3e06   :  { %v7343_v58 = vmul.f32 %v15539_v39, %v15535_v43  ;;  %v7567_v45 = vpop.permute.xlu0 %7566  ;;  %v17342_v39 = vld [vmem:[#allocation19 + $0x18] sm:$0xff] }
0x3e08   :  { %14768 = vmatmul.mubr.msk.f32.vlgmr.msra.gmra.mrb[82].mxu1 %vm492_vm5, %v7343_v58 }
0x3e09   :  { %14777 = vmatprep.mubr.msk.f32.mxu1 %vm16013_vm4, %v16012_v22  ;;  %14776 = vmatpush3.msra.mxu1 %v17271_v19 }
0x3e0a   :  { %14785 = vmatprep.subr.mxu1 %v16012_v22 }
0x3ed3   :  { %v7251_v62 = vpop.f32.mrb[80].mxu1 }
0x3ed4   :  { %v14759_v1 = vpop.f32.mrb[81].mxu1  ;;  %14778 = vmatmul.mubr.msk.f32.vlgmr.msra.gmra.mrb[84].mxu1 %vm492_vm5, %v7251_v62 }
0x3ed5   :  { %14787 = vmatprep.mubr.msk.f32.mxu1 %vm16013_vm4, %v16012_v22 }
0x3edb   :  { %v7416_v3 = vpop.f32.mrb[82].mxu1 }
0x3edc   :  { %v14769_v46 = vpop.f32.mrb[83].mxu1  ;;  %14773 = vmatmul.mubr.msk.f32.vlgmr.msra.gmra.mrb[88].mxu0 %vm492_vm5, %v7416_v3 }
0x3edd   :  { %14781 = vmatpush3.xpose.msk.msra.mxu0 %vm492_vm5, %v7569_v0  ;;  %14782 = vmatprep.mubr.msk.f32.mxu0 %vm16013_vm4, %v16012_v22 }
0x3ede   :  { %14790 = vmatprep.subr.mxu0 %v16012_v22 }
0x3ee0   :  { %14783 = vmatmul.mubr.msk.f32.vlgmr.msra.gmra.mrb[90].mxu0 %vm492_vm5, %v7567_v45 }
0x3ee1   :  { %14792 = vmatprep.mubr.msk.f32.mxu0 %vm16013_vm4, %v16012_v22  ;;  %14791 = vmatpush3.msra.mxu0 %v17308_v35 }
0x3ee2   :  { %14800 = vmatprep.subr.mxu0 %v16012_v22 }
0x3fa7   :  { %v7562_v4 = vpop.f32.mrb[84].mxu1 }
0x3fa8   :  { %v14779_v9 = vpop.f32.mrb[85].mxu1 }
0x3faf   :  { %v7489_v13 = vpop.f32.mrb[88].mxu0 }
0x3fb0   :  { %v7563_v61 = vadd.f32 %v7562_v4, %v7489_v13  ;;  %v14774_v28 = vpop.f32.mrb[89].mxu0 }
0x3fb3   :  { %v7640_v15 = vpop.f32.mrb[90].mxu0 }
0x3fb4   :  { %v7641_v17 = vadd.f32 %v7640_v15, %v16491_v59  ;;  %v14784_v2 = vpop.f32.mrb[91].mxu0 }
0x3fb6   :  { %v7644_v18 = vsel %vm492_vm5, %v7641_v17, -inf }
0x3fb7   :  { %7645 = vmax.xlane.f32.xlu1 %v7644_v18 }
0x3fc8   :  { %7807 = vrot.lane.b32.xlu1 %v17222_v60, %s16022_s29 }
0x3fcc   :  { %7805 = vrot.lane.b32.xlu1 %v17236_v41, %s16022_s29 }
0x4044   :  { %v7646_v53 = vpop.xlane.xlu1 %7645 }
0x4045   :  { %v7647_v27 = vsub.f32 %v7641_v17, %v7646_v53 }
0x4047   :  { %v7648_v51 = vmul.f32 1.442695, %v7647_v27 }
0x4048   :  { %v7808_v33 = vpop.permute.xlu1 %7807 }
0x4049   :  { %15540 = vpow2.f32 %v7648_v51 }
0x404c   :  { %v7806_v34 = vpop.permute.xlu1 %7805 }
0x4053   :  { %v15541_v10 = vpop.eup %15540 }
0x4054   :  { %v7650_v38 = vsel %vm492_vm5, %v15541_v10, 0.0 }
0x4055   :  { %7651 = vadd.xlane.f32.xlu0 %v7650_v38 }
0x406b   :  { %7655 = vrot.lane.b32.xlu0 %v17222_v60, %s16020_s16 }
0x40e2   :  { %v7652_v36 = vpop.xlane.xlu0 %7651 }
0x40e3   :  { %15542 = vrcp.f32 %v7652_v36 }
0x40e6   :  { %v7656_v25 = vpop.permute.xlu0 %7655 }
0x40e7   :  { %14786 = vmatpush3.msra.mxu1 %v7656_v25 }
0x40e8   :  { %14795 = vmatprep.subr.mxu1 %v16012_v22 }
0x40ed   :  { %v15543_v31 = vpop.eup %15542 }
0x40ee   :  { %v7654_v41 = vmul.f32 %v15543_v31, %v15541_v10 }
0x40f0   :  { %14788 = vmatmul.mubr.msk.f32.vlgmr.msra.gmra.mrb[86].mxu1 %vm492_vm5, %v7654_v41 }
0x40f1   :  { %14796 = vmatpush3.xpose.msk.msra.mxu1 %vm492_vm5, %v7808_v33  ;;  %14797 = vmatprep.mubr.msk.f32.mxu1 %vm16013_vm4, %v16012_v22 }
0x40f2   :  { %14805 = vmatprep.subr.mxu1 %v16012_v22 }
0x40f4   :  { %14798 = vmatmul.mubr.msk.f32.vlgmr.msra.gmra.mrb[88].mxu1 %vm492_vm5, %v7806_v34 }
0x40f5   :  { %14807 = vmatprep.mubr.msk.f32.mxu1 %vm16013_vm4, %v16012_v22  ;;  %14806 = vmatpush3.msra.mxu1 %v17342_v39 }
0x40f6   :  { %14815 = vmatprep.subr.mxu1 %v16012_v22 }
0x41c3   :  { %v7727_v54 = vpop.f32.mrb[86].mxu1 }
0x41c4   :  { %v14789_v29 = vpop.f32.mrb[87].mxu1  ;;  %14793 = vmatmul.mubr.msk.f32.vlgmr.msra.gmra.mrb[92].mxu0 %vm492_vm5, %v7727_v54 }
0x41c5   :  { %14802 = vmatprep.mubr.msk.f32.mxu0 %vm16013_vm4, %v16012_v22 }
0x41c7   :  { %v7879_v8 = vpop.f32.mrb[88].mxu1 }
0x41c8   :  { %v7880_v24 = vadd.f32 %v7879_v8, %v16491_v59  ;;  %v14799_v56 = vpop.f32.mrb[89].mxu1 }
0x41ca   :  { %v7883_v14 = vsel %vm492_vm5, %v7880_v24, -inf }
0x41cb   :  { %7884 = vmax.xlane.f32.xlu0 %v7883_v14 }
0x41e1   :  { %7894 = vrot.lane.b32.xlu0 %v17222_v60, %s16023_s8 }
0x41e5   :  { %8207 = vrot.lane.b32.xlu0 %v17234_v30, %s16016_s20 }
0x4258   :  { %v7885_v11 = vpop.xlane.xlu0 %7884 }
0x4259   :  { %v7886_v42 = vsub.f32 %v7880_v24, %v7885_v11 }
0x425b   :  { %v7887_v40 = vmul.f32 1.442695, %v7886_v42 }
0x425c   :  { %v7895_v37 = vpop.permute.xlu0 %7894 }
0x425d   :  { %15544 = vpow2.f32 %v7887_v40  ;;  %14801 = vmatpush3.msra.mxu0 %v7895_v37 }
0x425e   :  { %14810 = vmatprep.subr.mxu0 %v16012_v22 }
0x4260   :  { %v8208_v57 = vpop.permute.xlu0 %8207 }
0x4267   :  { %v15545_v7 = vpop.eup %15544 }
0x4268   :  { %v7889_v43 = vsel %vm492_vm5, %v15545_v7, 0.0 }
0x4269   :  { %7890 = vadd.xlane.f32.xlu1 %v7889_v43 }
0x427a   :  { %8209 = vrot.lane.b32.xlu1 %v17220_v6, %s16016_s20 }
0x4297   :  { %v7800_v44 = vpop.f32.mrb[92].mxu0 }
0x4298   :  { %v7804_v60 = vadd.f32 %v7800_v44, %v7563_v61  ;;  %v14794_v49 = vpop.f32.mrb[93].mxu0 }
0x42f6   :  { %v7891_v50 = vpop.xlane.xlu1 %7890 }
0x42f7   :  { %15546 = vrcp.f32 %v7891_v50 }
0x42fa   :  { %v8210_v52 = vpop.permute.xlu1 %8209 }
0x4301   :  { %v15547_v23 = vpop.eup %15546 }
0x4302   :  { %v7893_v5 = vmul.f32 %v15547_v23, %v15545_v7 }
0x4304   :  { %14803 = vmatmul.mubr.msk.f32.vlgmr.msra.gmra.mrb[94].mxu0 %vm492_vm5, %v7893_v5 }
0x4305   :  { %14811 = vmatpush3.xpose.msk.msra.mxu0 %vm492_vm5, %v17220_v6  ;;  %14812 = vmatprep.mubr.msk.f32.mxu0 %vm16013_vm4, %v16012_v22 }
0x4306   :  { %14820 = vmatprep.subr.mxu0 %v16012_v22 }
0x4308   :  { %14813 = vmatmul.mubr.msk.f32.vlgmr.msra.gmra.mrb[96].mxu0 %vm492_vm5, %v17234_v30 }
0x4309   :  { %14821 = vmatpush3.xpose.msk.msra.mxu0 %vm492_vm5, %v8210_v52  ;;  %14822 = vmatprep.mubr.msk.f32.mxu0 %vm16013_vm4, %v16012_v22 }
0x430a   :  { %14830 = vmatprep.subr.mxu0 %v16012_v22 }
0x430c   :  { %14823 = vmatmul.mubr.msk.f32.vlgmr.msra.gmra.mrb[98].mxu0 %vm492_vm5, %v8208_v57 }
0x430d   :  { %14831 = vmatpush3.msra.mxu0 %v17274_v63  ;;  %14832 = vmatprep.mubr.msk.f32.mxu0 %vm16013_vm4, %v16012_v22 }
0x430e   :  { %14840 = vmatprep.subr.mxu0 %v16012_v22 }
0x43d7   :  { %v7966_v58 = vpop.f32.mrb[94].mxu0 }
0x43d8   :  { %v14804_v62 = vpop.f32.mrb[95].mxu0  ;;  %14808 = vmatmul.mubr.msk.f32.vlgmr.msra.gmra.mrb[90].mxu1 %vm492_vm5, %v7966_v58 }
0x43d9   :  { %14817 = vmatprep.mubr.msk.f32.mxu1 %vm16013_vm4, %v16012_v22 }
0x43db   :  { %v8116_v1 = vpop.f32.mrb[96].mxu0 }
0x43dc   :  { %v8117_v63 = vadd.f32 %v8116_v1, %v16429_v20  ;;  %v14814_v0 = vpop.f32.mrb[97].mxu0 }
0x43de   :  { %v8120_v3 = vsel %vm492_vm5, %v8117_v63, -inf }
0x43df   :  { %8121 = vmax.xlane.f32.xlu1 %v8120_v3  ;;  %v8281_v46 = vpop.f32.mrb[98].mxu0 }
0x43e0   :  { %v8282_v45 = vadd.f32 %v8281_v46, %v16429_v20  ;;  %v14824_v4 = vpop.f32.mrb[99].mxu0 }
0x43e2   :  { %v8285_v9 = vsel %vm492_vm5, %v8282_v45, -inf }
0x43e3   :  { %8286 = vmax.xlane.f32.xlu0 %v8285_v9 }
0x446c   :  { %v8122_v13 = vpop.xlane.xlu1 %8121 }
0x446d   :  { %v8123_v61 = vsub.f32 %v8117_v63, %v8122_v13 }
0x446f   :  { %v8124_v28 = vmul.f32 1.442695, %v8123_v61 }
0x4470   :  { %v8287_v15 = vpop.xlane.xlu0 %8286 }
0x4471   :  { %15548 = vpow2.f32 %v8124_v28  ;;  %v8288_v17 = vsub.f32 %v8282_v45, %v8287_v15 }
0x4473   :  { %v8289_v2 = vmul.f32 1.442695, %v8288_v17 }
0x4475   :  { %15550 = vpow2.f32 %v8289_v2 }
0x447b   :  { %v15549_v18 = vpop.eup %15548 }
0x447c   :  { %v8126_v53 = vsel %vm492_vm5, %v15549_v18, 0.0 }
0x447d   :  { %8127 = vadd.xlane.f32.xlu0 %v8126_v53 }
0x447f   :  { %v15551_v27 = vpop.eup %15550 }
0x4480   :  { %v8291_v51 = vsel %vm492_vm5, %v15551_v27, 0.0 }
0x4481   :  { %8292 = vadd.xlane.f32.xlu1 %v8291_v51 }
0x4492   :  { %8296 = vrot.lane.b32.xlu1 %v17220_v6, %s16014_s10 }
0x4493   :  { %8131 = vrot.lane.b32.xlu0 %v17220_v6, %s16015_s25 }
0x4496   :  { %8520 = vrot.lane.b32.xlu1 %v17220_v6, %s16018_s27 }
0x4497   :  { %8518 = vrot.lane.b32.xlu0 %v17234_v30, %s16018_s27 }
0x44ab   :  { %v8039_v10 = vpop.f32.mrb[90].mxu1 }
0x44ac   :  { %v17363_v38 = vadd.f32 %v8039_v10, %v7804_v60  ;;  %v14809_v36 = vpop.f32.mrb[91].mxu1 }
0x44ae   :  { %v17416_v2 = vadd.f32 %v17363_v38, %v17125_v12 }
0x450a   :  { %v8128_v25 = vpop.xlane.xlu0 %8127 }
0x450b   :  { %15552 = vrcp.f32 %v8128_v25 }
0x450e   :  { %v8293_v31 = vpop.xlane.xlu1 %8292  ;;  %v8132_v33 = vpop.permute.xlu0 %8131 }
0x450f   :  { %15554 = vrcp.f32 %v8293_v31  ;;  %14816 = vmatpush3.msra.mxu1 %v8132_v33 }
0x4510   :  { %14825 = vmatprep.subr.mxu1 %v16012_v22 }
0x4512   :  { %v8297_v54 = vpop.permute.xlu1 %8296 }
0x4515   :  { %v15553_v41 = vpop.eup %15552 }
0x4516   :  { %v8130_v34 = vmul.f32 %v15553_v41, %v15549_v18  ;;  %v8521_v11 = vpop.permute.xlu1 %8520 }
0x4518   :  { %14818 = vmatmul.mubr.msk.f32.vlgmr.msra.gmra.mrb[92].mxu1 %vm492_vm5, %v8130_v34 }
0x4519   :  { %v15555_v29 = vpop.eup %15554  ;;  %14826 = vmatpush3.msra.mxu1 %v8297_v54  ;;  %14827 = vmatprep.mubr.msk.f32.mxu1 %vm16013_vm4, %v16012_v22  ;;  %v13760_v54 = vld [vmem:[%s17944_s19] ss:$0 sm:$0xff] }
0x451a   :  { %v8295_v8 = vmul.f32 %v15555_v29, %v15551_v27  ;;  %14835 = vmatprep.subr.mxu1 %v16012_v22  ;;  %v8999_v27 = vmul.f32 %v17416_v2, %v17416_v2 }
0x451c   :  { %14828 = vmatmul.mubr.msk.f32.vlgmr.msra.gmra.mrb[94].mxu1 %vm492_vm5, %v8295_v8  ;;  %v9001_v51 = vsel %vm370_vm3, %v8999_v27, 0.0 }
0x451d   :  { %14836 = vmatpush3.msra.mxu1 %v17271_v19  ;;  %14837 = vmatprep.mubr.msk.f32.mxu1 %vm16013_vm4, %v16012_v22  ;;  %v8519_v19 = vpop.permute.xlu0 %8518 }
0x451e   :  { %14845 = vmatprep.subr.mxu1 %v16012_v22 }
0x45eb   :  { %v8203_v24 = vpop.f32.mrb[92].mxu1 }
0x45ec   :  { %v14819_v56 = vpop.f32.mrb[93].mxu1  ;;  %14838 = vmatmul.mubr.msk.f32.vlgmr.msra.gmra.mrb[96].mxu1 %vm492_vm5, %v8203_v24 }
0x45ed   :  { %14847 = vmatprep.mubr.msk.f32.mxu1 %vm16013_vm4, %v16012_v22 }
0x45ef   :  { %v8368_v14 = vpop.f32.mrb[94].mxu1 }
0x45f0   :  { %v14829_v42 = vpop.f32.mrb[95].mxu1  ;;  %14833 = vmatmul.mubr.msk.f32.vlgmr.msra.gmra.mrb[100].mxu0 %vm492_vm5, %v8368_v14 }
0x45f1   :  { %14841 = vmatpush3.xpose.msk.msra.mxu0 %vm492_vm5, %v8521_v11  ;;  %14842 = vmatprep.mubr.msk.f32.mxu0 %vm16013_vm4, %v16012_v22 }
0x45f2   :  { %14850 = vmatprep.subr.mxu0 %v16012_v22 }
0x45f4   :  { %14843 = vmatmul.mubr.msk.f32.vlgmr.msra.gmra.mrb[102].mxu0 %vm492_vm5, %v8519_v19 }
0x45f5   :  { %14851 = vmatpush3.msra.mxu0 %v17308_v35  ;;  %14852 = vmatprep.mubr.msk.f32.mxu0 %vm16013_vm4, %v16012_v22 }
0x45f6   :  { %14860 = vmatprep.subr.mxu0 %v16012_v22 }
0x46bf   :  { %v8514_v40 = vpop.f32.mrb[96].mxu1 }
0x46c0   :  { %v14839_v37 = vpop.f32.mrb[97].mxu1 }
0x46c3   :  { %v8441_v7 = vpop.f32.mrb[100].mxu0 }
0x46c4   :  { %v8515_v43 = vadd.f32 %v8514_v40, %v8441_v7  ;;  %v14834_v44 = vpop.f32.mrb[101].mxu0  ;;  %v9023_v7 = vld [vmem:[#allocation20] sm:$0xff] }
0x46c7   :  { %v8592_v60 = vpop.f32.mrb[102].mxu0 }
0x46c8   :  { %v8593_v49 = vadd.f32 %v8592_v60, %v16429_v20  ;;  %v14844_v50 = vpop.f32.mrb[103].mxu0  ;;  %v9025_v60 = vld [vmem:[#allocation20 + $0x10] sm:$0xff] }
0x46ca   :  { %v8596_v23 = vsel %vm492_vm5, %v8593_v49, -inf }
0x46cb   :  { %8597 = vmax.xlane.f32.xlu1 %v8596_v23  ;;  %v9110_v23 = vld [vmem:[#allocation22] sm:$0xff] }
0x46dc   :  { %8759 = vrot.lane.b32.xlu1 %v17220_v6, %s16022_s29 }
0x46e0   :  { %8757 = vrot.lane.b32.xlu1 %v17234_v30, %s16022_s29 }
0x4758   :  { %v8598_v35 = vpop.xlane.xlu1 %8597 }
0x4759   :  { %v8599_v5 = vsub.f32 %v8593_v49, %v8598_v35  ;;  %v9026_v49 = vld [vmem:[#allocation20 + $0x18] sm:$0xff]  ;;  %v9111_v35 = vld [vmem:[#allocation22 + $0x8] sm:$0xff] }
0x475a   :  { %v15311_v50 = vpack.c.bf16 %v9026_v49, %v9025_v60 }
0x475b   :  { %v8600_v52 = vmul.f32 1.442695, %v8599_v5  ;;  %v9112_v5 = vld [vmem:[#allocation22 + $0x10] sm:$0xff] }
0x475c   :  { %v8760_v0 = vpop.permute.xlu1 %8759 }
0x475d   :  { %15556 = vpow2.f32 %v8600_v52  ;;  %v15315_v52 = vpack.c.bf16 %v9111_v35, %v9110_v23 }
0x4760   :  { %v8758_v3 = vpop.permute.xlu1 %8757 }
0x4767   :  { %v15557_v57 = vpop.eup %15556 }
0x4768   :  { %v8602_v58 = vsel %vm492_vm5, %v15557_v57, 0.0 }
0x4769   :  { %8603 = vadd.xlane.f32.xlu0 %v8602_v58  ;;  %v9114_v58 = vld [vmem:[#allocation22 + $0x20] sm:$0xff] }
0x477f   :  { %8607 = vrot.lane.b32.xlu0 %v17220_v6, %s16020_s16 }
0x47f6   :  { %v8604_v62 = vpop.xlane.xlu0 %8603 }
0x47f7   :  { %15558 = vrcp.f32 %v8604_v62  ;;  %v9115_v62 = vld [vmem:[#allocation22 + $0x28] sm:$0xff] }
0x47fa   :  { %v8608_v1 = vpop.permute.xlu0 %8607 }
0x47fb   :  { %14846 = vmatpush3.msra.mxu1 %v8608_v1  ;;  %v15323_v1 = vpack.c.bf16 %v9115_v62, %v9114_v58 }
0x47fc   :  { %14855 = vmatprep.subr.mxu1 %v16012_v22 }
0x4801   :  { %v15559_v63 = vpop.eup %15558 }
0x4802   :  { %v8606_v30 = vmul.f32 %v15559_v63, %v15557_v57  ;;  %v9113_v57 = vld [vmem:[#allocation22 + $0x18] sm:$0xff] }
0x4804   :  { %14848 = vmatmul.mubr.msk.f32.vlgmr.msra.gmra.mrb[98].mxu1 %vm492_vm5, %v8606_v30 }
0x4805   :  { %14856 = vmatpush3.xpose.msk.msra.mxu1 %vm492_vm5, %v8760_v0  ;;  %14857 = vmatprep.mubr.msk.f32.mxu1 %vm16013_vm4, %v16012_v22 }
0x4806   :  { %14865 = vmatprep.subr.mxu1 %v16012_v22 }
0x4808   :  { %14858 = vmatmul.mubr.msk.f32.vlgmr.msra.gmra.mrb[100].mxu1 %vm492_vm5, %v8758_v3 }
0x4809   :  { %14866 = vmatpush3.msra.mxu1 %v17342_v39  ;;  %14867 = vmatprep.mubr.msk.f32.mxu1 %vm16013_vm4, %v16012_v22 }
0x480a   :  { %15316 = vmatprep.subr.bf16.mxu1 %v15315_v52 }
0x48d7   :  { %v8679_v46 = vpop.f32.mrb[98].mxu1 }
0x48d8   :  { %v14849_v45 = vpop.f32.mrb[99].mxu1  ;;  %14853 = vmatmul.mubr.msk.f32.vlgmr.msra.gmra.mrb[104].mxu0 %vm492_vm5, %v8679_v46 }
0x48d9   :  { %14862 = vmatprep.mubr.msk.f32.mxu0 %vm16013_vm4, %v16012_v22 }
0x48db   :  { %v8831_v4 = vpop.f32.mrb[100].mxu1 }
0x48dc   :  { %v8832_v9 = vadd.f32 %v8831_v4, %v16429_v20  ;;  %v14859_v13 = vpop.f32.mrb[101].mxu1  ;;  %v9116_v4 = vld [vmem:[#allocation22 + $0x30] sm:$0xff] }
0x48de   :  { %v8835_v61 = vsel %vm492_vm5, %v8832_v9, -inf }
0x48df   :  { %8836 = vmax.xlane.f32.xlu0 %v8835_v61 }
0x48f5   :  { %8846 = vrot.lane.b32.xlu0 %v17220_v6, %s16023_s8 }
0x496c   :  { %v8837_v39 = vpop.xlane.xlu0 %8836 }
0x496d   :  { %v8838_v28 = vsub.f32 %v8832_v9, %v8837_v39  ;;  %v9117_v9 = vld [vmem:[#allocation22 + $0x38] sm:$0xff] }
0x496e   :  { %v15327_v13 = vpack.c.bf16 %v9117_v9, %v9116_v4 }
0x496f   :  { %v8839_v15 = vmul.f32 1.442695, %v8838_v28 }
0x4970   :  { %v8847_v17 = vpop.permute.xlu0 %8846 }
0x4971   :  { %15560 = vpow2.f32 %v8839_v15  ;;  %14861 = vmatpush3.msra.mxu0 %v8847_v17 }
0x497b   :  { %v15561_v18 = vpop.eup %15560 }
0x497c   :  { %v8841_v53 = vsel %vm492_vm5, %v15561_v18, 0.0 }
0x497d   :  { %8842 = vadd.xlane.f32.xlu1 %v8841_v53 }
0x4981   :  { %9002 = vadd.xlane.f32.xlu1 %v9001_v51 }
0x49ab   :  { %v8752_v6 = vpop.f32.mrb[104].mxu0 }
0x49ac   :  { %v8756_v10 = vadd.f32 %v8752_v6, %v8515_v43  ;;  %v14854_v36 = vpop.f32.mrb[105].mxu0  ;;  %v9024_v43 = vld [vmem:[#allocation20 + $0x8] sm:$0xff] }
0x49ad   :  { %v15307_v44 = vpack.c.bf16 %v9024_v43, %v9023_v7 }
0x49af   :  { %15308 = vmatprep.subr.bf16.mxu0 %v15307_v44 }
0x4a0a   :  { %v8843_v25 = vpop.xlane.xlu1 %8842 }
0x4a0b   :  { %15562 = vrcp.f32 %v8843_v25  ;;  %v9228_v25 = vld [vmem:[#allocation13 + $0x20] sm:$0xff] }
0x4a0e   :  { %v9003_v31 = vpop.xlane.xlu1 %9002 }
0x4a0f   :  { %v9007_v33 = vmul.f32 0.03125, %v9003_v31  ;;  %v9229_v31 = vld [vmem:[#allocation13 + $0x28] sm:$0xff] }
0x4a11   :  { %v9009_v41 = vadd.f32 1e-06, %v9007_v33  ;;  %v9230_v33 = vld [vmem:[#allocation13 + $0x30] sm:$0xff] }
0x4a13   :  { %15564 = vrsqrt.f32 %v9009_v41  ;;  %v15331_v41 = vpack.c.bf16 %v9229_v31, %v9228_v25 }
0x4a15   :  { %v15563_v12 = vpop.eup %15562 }
0x4a16   :  { %v8845_v38 = vmul.f32 %v15563_v12, %v15561_v18  ;;  %v9231_v12 = vld [vmem:[#allocation13 + $0x38] sm:$0xff] }
0x4a18   :  { %14863 = vmatmul.mubr.msk.f32.vlgmr.msra.gmra.mrb[106].mxu0 %vm492_vm5, %v8845_v38  ;;  %v15335_v38 = vpack.c.bf16 %v9231_v12, %v9230_v33 }
0x4a19   :  { %15310 = vmatpush3.bf16.msra.mxu0 %v15307_v44 }
0x4a1a   :  { %15312 = vmatprep.subr.bf16.mxu0 %v15311_v50 }
0x4a1d   :  { %v15565_v34 = vpop.eup %15564  ;;  %15314 = vmatpush3.bf16.msra.mxu0 %v15311_v50 }
0x4a1e   :  { %v9013_v29 = vmul.f32 %v15565_v34, %v17416_v2  ;;  %15332 = vmatprep.subr.bf16.mxu0 %v15331_v41 }
0x4a20   :  { %v9021_v8 = vmul.f32 %v13760_v54, %v9013_v29 }
0x4a22   :  { %14878 = vmatprep.mubr.msk.f32.mxu0 %vm370_vm3, %v9021_v8 }
0x4aeb   :  { %v8918_v24 = vpop.f32.mrb[106].mxu0 }
0x4aec   :  { %v14864_v56 = vpop.f32.mrb[107].mxu0  ;;  %14868 = vmatmul.mubr.msk.f32.vlgmr.msra.gmra.mrb[102].mxu1 %vm492_vm5, %v8918_v24 }
0x4aed   :  { %15318 = vmatpush3.bf16.msra.mxu1 %v15315_v52 }
0x4bbf   :  { %v8991_v14 = vpop.f32.mrb[102].mxu1 }
0x4bc0   :  { %v8995_v11 = vadd.f32 %v8991_v14, %v8756_v10  ;;  %v14869_v42 = vpop.f32.mrb[103].mxu1  ;;  %v13766_v14 = vld [vmem:[%s17937_s12 + $0x1] ss:$0 sm:$0xff] }
0x4bc2   :  { %v8997_v19 = vadd.f32 %v8995_v11, %v17215_v55  ;;  %v15319_v55 = vpack.c.bf16 %v9113_v57, %v9112_v5 }
0x4bc4   :  { %v9000_v40 = vmul.f32 %v8997_v19, %v8997_v19  ;;  %15320 = vmatprep.subr.bf16.mxu1 %v15319_v55 }
0x4bc5   :  { %15322 = vmatpush3.bf16.msra.mxu1 %v15319_v55 }
0x4bc6   :  { %v9004_v37 = vsel %vm370_vm3, %v9000_v40, 0.0  ;;  %15324 = vmatprep.subr.bf16.mxu1 %v15323_v1 }
0x4bc7   :  { %9005 = vadd.xlane.f32.xlu1 %v9004_v37 }
0x4bc9   :  { %15326 = vmatpush3.bf16.msra.mxu1 %v15323_v1 }
0x4bca   :  { %15328 = vmatprep.subr.bf16.mxu1 %v15327_v13 }
0x4bcd   :  { %15330 = vmatpush3.bf16.msra.mxu1 %v15327_v13  ;;  %v17493_v13 = vld [vmem:[#allocation14 + $0x28] sm:$0xff] }
0x4bce   :  { %14916 = vmatprep.subr.mxu1 %v16012_v22 }
0x4c54   :  { %v9006_v63 = vpop.xlane.xlu1 %9005 }
0x4c55   :  { %v9008_v0 = vmul.f32 0.03125, %v9006_v63 }
0x4c57   :  { %v9010_v30 = vadd.f32 1e-06, %v9008_v0 }
0x4c59   :  { %15566 = vrsqrt.f32 %v9010_v30 }
0x4c63   :  { %v15567_v3 = vpop.eup %15566 }
0x4c64   :  { %v9014_v46 = vmul.f32 %v15567_v3, %v8997_v19 }
0x4c66   :  { %v9022_v45 = vmul.f32 %v13760_v54, %v9014_v46 }
0x4c68   :  { %14879 = vmatmul.mubr.msk.f32.vlgmr.msra.gmra.mrb[108].mxu0 %vm370_vm3, %v9022_v45 }
0x4c69   :  { %15334 = vmatpush3.bf16.msra.mxu0 %v15331_v41 }
0x4c6a   :  { %15336 = vmatprep.subr.bf16.mxu0 %v15335_v38 }
0x4c6d   :  { %15338 = vmatpush3.bf16.msra.mxu0 %v15335_v38 }
0x4c6e   :  { %14911 = vmatprep.subr.mxu0 %v16012_v22 }
0x4d3b   :  { %v14880_v61 = vpop.f32.mrb[108].mxu0 }
0x4d3c   :  { %v9099_v39 = vpop.f32.mrb[109].mxu0  ;;  %v9109_v15 = vmax.f32 %v14880_v61, 0.0 }
0x4d3d   :  { %v9108_v28 = vmax.f32 %v9099_v39, 0.0 }
0x4d3f   :  { %14897 = vmatprep.mubr.msk.f32.mxu1 %vm285_vm0, %v9108_v28 }
0x4d40   :  { %14898 = vmatmul.mubr.msk.f32.vlgmr.msra.gmra.mrb[104].mxu1 %vm285_vm0, %v9109_v15 }
0x4d41   :  { %14918 = vmatprep.mubr.msk.f32.mxu1 %vm16013_vm4, %v16012_v22 }
0x4e13   :  { %v14899_v17 = vpop.f32.mrb[104].mxu1 }
0x4e14   :  { %v9190_v18 = vpop.f32.mrb[105].mxu1  ;;  %v17437_v53 = vadd.f32 %v14899_v17, %v8997_v19 }
0x4e15   :  { %v17440_v27 = vadd.f32 %v9190_v18, %v17416_v2 }
0x4e16   :  { %v9204_v10 = vmul.f32 %v17437_v53, %v17437_v53 }
0x4e17   :  { %v9203_v51 = vmul.f32 %v17440_v27, %v17440_v27 }
0x4e18   :  { %v9208_v36 = vsel %vm370_vm3, %v9204_v10, 0.0  ;;  %v17505_v10 = vld [vmem:[#allocation14 + $0x20] sm:$0xff] }
0x4e19   :  { %v9205_v6 = vsel %vm370_vm3, %v9203_v51, 0.0 }
0x4e1a   :  { %9206 = vadd.xlane.f32.xlu1 %v9205_v6 }
0x4e1e   :  { %9209 = vadd.xlane.f32.xlu1 %v9208_v36 }
0x4ea7   :  { %v9207_v2 = vpop.xlane.xlu1 %9206 }
0x4ea8   :  { %v9211_v34 = vmul.f32 0.03125, %v9207_v2 }
0x4eaa   :  { %v9213_v54 = vadd.f32 1e-06, %v9211_v34 }
0x4eab   :  { %v9210_v29 = vpop.xlane.xlu1 %9209 }
0x4eac   :  { %15568 = vrsqrt.f32 %v9213_v54  ;;  %v9212_v8 = vmul.f32 0.03125, %v9210_v29 }
0x4eae   :  { %v9214_v24 = vadd.f32 1e-06, %v9212_v8 }
0x4eb0   :  { %15570 = vrsqrt.f32 %v9214_v24 }
0x4eb6   :  { %v15569_v56 = vpop.eup %15568 }
0x4eb7   :  { %v9217_v11 = vmul.f32 %v15569_v56, %v17440_v27 }
0x4eb9   :  { %v9225_v42 = vmul.f32 %v13766_v14, %v9217_v11 }
0x4eba   :  { %v15571_v19 = vpop.eup %15570 }
0x4ebb   :  { %v9218_v40 = vmul.f32 %v15571_v19, %v17437_v53  ;;  %14908 = vmatprep.mubr.msk.f32.mxu0 %vm370_vm3, %v9225_v42 }
0x4ebd   :  { %v9226_v37 = vmul.f32 %v13766_v14, %v9218_v40 }
0x4ebf   :  { %14909 = vmatmul.mubr.msk.f32.vlgmr.msra.gmra.mrb[110].mxu0 %vm370_vm3, %v9226_v37 }
0x4ec0   :  { %14913 = vmatprep.mubr.msk.f32.mxu0 %vm16013_vm4, %v16012_v22 }
0x4f92   :  { %v17458_v7 = vpop.f32.mrb[110].mxu0 }
0x4f93   :  { %v17460_v43 = vpop.f32.mrb[111].mxu0 }
0x4f94   :  { %9484 = vrot.lane.b32.xlu1 %v17460_v43, %s16014_s10  ;;  %9319 = vrot.lane.b32.xlu0 %v17460_v43, %s16015_s25 }
0x4f98   :  { %9482 = vrot.lane.b32.xlu0 %v17460_v43, %s16016_s20 }
0x5006   :  { %v9320_v44 = vpop.permute.xlu0 %9319  ;;  %v9485_v60 = vpop.permute.xlu1 %9484 }
0x5007   :  { %14912 = vmatpush3.xpose.msk.msra.mxu0 %vm492_vm5, %v9320_v44 }
0x5008   :  { %14921 = vmatprep.subr.mxu0 %v16012_v22 }
0x500a   :  { %14914 = vmatmul.mubr.msk.f32.vlgmr.msra.gmra.mrb[112].mxu0 %vm492_vm5, %v17460_v43  ;;  %v9483_v49 = vpop.permute.xlu0 %9482 }
0x500b   :  { %14922 = vmatpush3.xpose.msk.msra.mxu0 %vm492_vm5, %v9485_v60  ;;  %14923 = vmatprep.mubr.msk.f32.mxu0 %vm16013_vm4, %v16012_v22 }
0x500c   :  { %14931 = vmatprep.subr.mxu0 %v16012_v22 }
0x500e   :  { %14924 = vmatmul.mubr.msk.f32.vlgmr.msra.gmra.mrb[114].mxu0 %vm492_vm5, %v9483_v49 }
0x500f   :  { %14933 = vmatprep.mubr.msk.f32.mxu0 %vm16013_vm4, %v16012_v22  ;;  %14932 = vmatpush3.msra.mxu0 %v17493_v13 }
0x5010   :  { %14941 = vmatprep.subr.mxu0 %v16012_v22 }
0x50dd   :  { %v9391_v50 = vpop.f32.mrb[112].mxu0 }
0x50de   :  { %v9392_v23 = vadd.f32 %v9391_v50, %v16998_v16  ;;  %v14915_v35 = vpop.f32.mrb[113].mxu0 }
0x50e0   :  { %v9395_v5 = vsel %vm492_vm5, %v9392_v23, -inf }
0x50e1   :  { %9396 = vmax.xlane.f32.xlu0 %v9395_v5  ;;  %v9556_v52 = vpop.f32.mrb[114].mxu0  ;;  %v17538_v5 = vld [vmem:[#allocation14 + $0x30] sm:$0xff] }
0x50e2   :  { %v9557_v57 = vadd.f32 %v9556_v52, %v17002_v26  ;;  %v14925_v55 = vpop.f32.mrb[115].mxu0 }
0x50e4   :  { %v9560_v58 = vsel %vm492_vm5, %v9557_v57, -inf }
0x50e5   :  { %9561 = vmax.xlane.f32.xlu1 %v9560_v58 }
0x50f6   :  { %9571 = vrot.lane.b32.xlu1 %v17460_v43, %s16017_s9 }
0x50fa   :  { %9793 = vrot.lane.b32.xlu1 %v17460_v43, %s16018_s27 }
0x516e   :  { %v9397_v62 = vpop.xlane.xlu0 %9396 }
0x516f   :  { %v9398_v1 = vsub.f32 %v9392_v23, %v9397_v62 }
0x5171   :  { %v9399_v63 = vmul.f32 1.442695, %v9398_v1 }
0x5172   :  { %v9562_v0 = vpop.xlane.xlu1 %9561 }
0x5173   :  { %15572 = vpow2.f32 %v9399_v63  ;;  %v9563_v30 = vsub.f32 %v9557_v57, %v9562_v0 }
0x5175   :  { %v9564_v3 = vmul.f32 1.442695, %v9563_v30 }
0x5176   :  { %v9572_v18 = vpop.permute.xlu1 %9571 }
0x5177   :  { %15574 = vpow2.f32 %v9564_v3 }
0x517a   :  { %v9794_v12 = vpop.permute.xlu1 %9793 }
0x517d   :  { %v15573_v46 = vpop.eup %15572 }
0x517e   :  { %v9401_v45 = vsel %vm492_vm5, %v15573_v46, 0.0 }
0x517f   :  { %9402 = vadd.xlane.f32.xlu0 %v9401_v45 }
0x5181   :  { %v15575_v4 = vpop.eup %15574 }
0x5182   :  { %v9566_v9 = vsel %vm492_vm5, %v15575_v4, 0.0 }
0x5183   :  { %9567 = vadd.xlane.f32.xlu0 %v9566_v9 }
0x5199   :  { %9406 = vrot.lane.b32.xlu0 %v17460_v43, %s16019_s0 }
0x519d   :  { %9795 = vrot.lane.b32.xlu0 %v17460_v43, %s16020_s16 }
0x520c   :  { %v9403_v61 = vpop.xlane.xlu0 %9402 }
0x520d   :  { %15576 = vrcp.f32 %v9403_v61 }
0x5210   :  { %v9568_v39 = vpop.xlane.xlu0 %9567 }
0x5211   :  { %15578 = vrcp.f32 %v9568_v39 }
0x5214   :  { %v9407_v28 = vpop.permute.xlu0 %9406 }
0x5215   :  { %14917 = vmatpush3.msra.mxu1 %v9407_v28 }
0x5216   :  { %14926 = vmatprep.subr.mxu1 %v16012_v22 }
0x5217   :  { %v15577_v15 = vpop.eup %15576 }
0x5218   :  { %v9405_v17 = vmul.f32 %v15577_v15, %v15573_v46  ;;  %v9796_v33 = vpop.permute.xlu0 %9795 }
0x521a   :  { %14919 = vmatmul.mubr.msk.f32.vlgmr.msra.gmra.mrb[106].mxu1 %vm492_vm5, %v9405_v17 }
0x521b   :  { %v15579_v51 = vpop.eup %15578  ;;  %14927 = vmatpush3.msra.mxu1 %v9572_v18  ;;  %14928 = vmatprep.mubr.msk.f32.mxu1 %vm16013_vm4, %v16012_v22 }
0x521c   :  { %v9570_v6 = vmul.f32 %v15579_v51, %v15575_v4  ;;  %14936 = vmatprep.subr.mxu1 %v16012_v22  ;;  %v17573_v51 = vld [vmem:[#allocation14 + $0x38] sm:$0xff] }
0x521e   :  { %14929 = vmatmul.mubr.msk.f32.vlgmr.msra.gmra.mrb[108].mxu1 %vm492_vm5, %v9570_v6 }
0x521f   :  { %14938 = vmatprep.mubr.msk.f32.mxu1 %vm16013_vm4, %v16012_v22  ;;  %14937 = vmatpush3.msra.mxu1 %v17505_v10 }
0x5220   :  { %14946 = vmatprep.subr.mxu1 %v16012_v22 }
0x52ed   :  { %v9478_v36 = vpop.f32.mrb[106].mxu1 }
0x52ee   :  { %v14920_v25 = vpop.f32.mrb[107].mxu1  ;;  %14939 = vmatmul.mubr.msk.f32.vlgmr.msra.gmra.mrb[110].mxu1 %vm492_vm5, %v9478_v36 }
0x52ef   :  { %14948 = vmatprep.mubr.msk.f32.mxu1 %vm16013_vm4, %v16012_v22 }
0x52f1   :  { %v9643_v31 = vpop.f32.mrb[108].mxu1 }
0x52f2   :  { %v14930_v41 = vpop.f32.mrb[109].mxu1  ;;  %14934 = vmatmul.mubr.msk.f32.vlgmr.msra.gmra.mrb[116].mxu0 %vm492_vm5, %v9643_v31 }
0x52f3   :  { %14942 = vmatpush3.xpose.msk.msra.mxu0 %vm492_vm5, %v9796_v33  ;;  %14943 = vmatprep.mubr.msk.f32.mxu0 %vm16013_vm4, %v16012_v22 }
0x52f4   :  { %14951 = vmatprep.subr.mxu0 %v16012_v22 }
0x52f6   :  { %14944 = vmatmul.mubr.msk.f32.vlgmr.msra.gmra.mrb[118].mxu0 %vm492_vm5, %v9794_v12 }
0x52f7   :  { %14953 = vmatprep.mubr.msk.f32.mxu0 %vm16013_vm4, %v16012_v22  ;;  %14952 = vmatpush3.msra.mxu0 %v17538_v5 }
0x52f8   :  { %14961 = vmatprep.subr.mxu0 %v16012_v22 }
0x53c1   :  { %v9789_v38 = vpop.f32.mrb[110].mxu1 }
0x53c2   :  { %v14940_v2 = vpop.f32.mrb[111].mxu1 }
0x53c5   :  { %v9716_v34 = vpop.f32.mrb[116].mxu0 }
0x53c6   :  { %v9790_v54 = vadd.f32 %v9789_v38, %v9716_v34  ;;  %v14935_v29 = vpop.f32.mrb[117].mxu0 }
0x53c9   :  { %v9867_v8 = vpop.f32.mrb[118].mxu0 }
0x53ca   :  { %v9868_v24 = vadd.f32 %v9867_v8, %v17045_v48  ;;  %v14945_v56 = vpop.f32.mrb[119].mxu0 }
0x53cc   :  { %v9871_v14 = vsel %vm492_vm5, %v9868_v24, -inf }
0x53cd   :  { %9872 = vmax.xlane.f32.xlu0 %v9871_v14 }
0x53e3   :  { %9882 = vrot.lane.b32.xlu0 %v17460_v43, %s16021_s26 }
0x53e7   :  { %10032 = vrot.lane.b32.xlu0 %v17460_v43, %s16022_s29 }
0x545a   :  { %v9873_v11 = vpop.xlane.xlu0 %9872 }
0x545b   :  { %v9874_v42 = vsub.f32 %v9868_v24, %v9873_v11 }
0x545d   :  { %v9875_v19 = vmul.f32 1.442695, %v9874_v42 }
0x545e   :  { %v9883_v40 = vpop.permute.xlu0 %9882 }
0x545f   :  { %15580 = vpow2.f32 %v9875_v19  ;;  %14947 = vmatpush3.msra.mxu1 %v9883_v40 }
0x5460   :  { %14956 = vmatprep.subr.mxu1 %v16012_v22 }
0x5462   :  { %v10033_v35 = vpop.permute.xlu0 %10032 }
0x5469   :  { %v15581_v37 = vpop.eup %15580 }
0x546a   :  { %v9877_v44 = vsel %vm492_vm5, %v15581_v37, 0.0 }
0x546b   :  { %9878 = vadd.xlane.f32.xlu1 %v9877_v44 }
0x547c   :  { %10034 = vrot.lane.b32.xlu1 %v17460_v43, %s16023_s8 }
0x54f8   :  { %v9879_v60 = vpop.xlane.xlu1 %9878 }
0x54f9   :  { %15582 = vrcp.f32 %v9879_v60 }
0x54fc   :  { %v10035_v23 = vpop.permute.xlu1 %10034 }
0x5503   :  { %v15583_v49 = vpop.eup %15582 }
0x5504   :  { %v9881_v50 = vmul.f32 %v15583_v49, %v15581_v37 }
0x5506   :  { %14949 = vmatmul.mubr.msk.f32.vlgmr.msra.gmra.mrb[112].mxu1 %vm492_vm5, %v9881_v50 }
0x5507   :  { %14957 = vmatpush3.xpose.msk.msra.mxu1 %vm492_vm5, %v10035_v23  ;;  %14958 = vmatprep.mubr.msk.f32.mxu1 %vm16013_vm4, %v16012_v22 }
0x5508   :  { %14966 = vmatprep.subr.mxu1 %v16012_v22 }
0x550a   :  { %14959 = vmatmul.mubr.msk.f32.vlgmr.msra.gmra.mrb[114].mxu1 %vm492_vm5, %v10033_v35 }
0x550b   :  { %14968 = vmatprep.mubr.msk.f32.mxu1 %vm16013_vm4, %v16012_v22  ;;  %14967 = vmatpush3.msra.mxu1 %v17573_v51 }
0x550c   :  { %14976 = vmatprep.subr.mxu1 %v16012_v22 }
0x55d9   :  { %v9954_v52 = vpop.f32.mrb[112].mxu1 }
0x55da   :  { %v14950_v57 = vpop.f32.mrb[113].mxu1  ;;  %14954 = vmatmul.mubr.msk.f32.vlgmr.msra.gmra.mrb[120].mxu0 %vm492_vm5, %v9954_v52 }
0x55db   :  { %14963 = vmatprep.mubr.msk.f32.mxu0 %vm16013_vm4, %v16012_v22 }
0x55dd   :  { %v10106_v55 = vpop.f32.mrb[114].mxu1 }
0x55de   :  { %v10107_v58 = vadd.f32 %v10106_v55, %v17071_v32  ;;  %v14960_v62 = vpop.f32.mrb[115].mxu1 }
0x55e0   :  { %v10110_v1 = vsel %vm492_vm5, %v10107_v58, -inf }
0x55e1   :  { %10111 = vmax.xlane.f32.xlu1 %v10110_v1 }
0x55f2   :  { %10272 = vrot.lane.b32.xlu1 %v17458_v7, %s16015_s25 }
0x55f6   :  { %10437 = vrot.lane.b32.xlu1 %v17458_v7, %s16014_s10 }
0x566e   :  { %v10112_v63 = vpop.xlane.xlu1 %10111 }
0x566f   :  { %v10113_v0 = vsub.f32 %v10107_v58, %v10112_v63 }
0x5671   :  { %v10114_v30 = vmul.f32 1.442695, %v10113_v0 }
0x5672   :  { %v10273_v15 = vpop.permute.xlu1 %10272 }
0x5673   :  { %15584 = vpow2.f32 %v10114_v30 }
0x567d   :  { %v15585_v3 = vpop.eup %15584 }
0x567e   :  { %v10116_v46 = vsel %vm492_vm5, %v15585_v3, 0.0 }
0x567f   :  { %10117 = vadd.xlane.f32.xlu0 %v10116_v46 }
0x5695   :  { %10121 = vrot.lane.b32.xlu0 %v17460_v43, %s16024_s22  ;;  %v10438_v43 = vpop.permute.xlu1 %10437 }
0x5699   :  { %10435 = vrot.lane.b32.xlu0 %v17458_v7, %s16016_s20 }
0x56ad   :  { %v10027_v45 = vpop.f32.mrb[120].mxu0 }
0x56ae   :  { %v10031_v4 = vadd.f32 %v10027_v45, %v9790_v54  ;;  %v14955_v9 = vpop.f32.mrb[121].mxu0 }
0x570c   :  { %v10118_v61 = vpop.xlane.xlu0 %10117 }
0x570d   :  { %15586 = vrcp.f32 %v10118_v61 }
0x5710   :  { %v10122_v39 = vpop.permute.xlu0 %10121 }
0x5711   :  { %14962 = vmatpush3.msra.mxu0 %v10122_v39 }
0x5712   :  { %14971 = vmatprep.subr.mxu0 %v16012_v22 }
0x5714   :  { %v10436_v18 = vpop.permute.xlu0 %10435 }
0x5717   :  { %v15587_v28 = vpop.eup %15586 }
0x5718   :  { %v10120_v17 = vmul.f32 %v15587_v28, %v15585_v3 }
0x571a   :  { %14964 = vmatmul.mubr.msk.f32.vlgmr.msra.gmra.mrb[122].mxu0 %vm492_vm5, %v10120_v17 }
0x571b   :  { %14972 = vmatpush3.xpose.msk.msra.mxu0 %vm492_vm5, %v10273_v15  ;;  %14973 = vmatprep.mubr.msk.f32.mxu0 %vm16013_vm4, %v16012_v22 }
0x571c   :  { %14981 = vmatprep.subr.mxu0 %v16012_v22 }
0x571e   :  { %14974 = vmatmul.mubr.msk.f32.vlgmr.msra.gmra.mrb[124].mxu0 %vm492_vm5, %v17458_v7 }
0x571f   :  { %14982 = vmatpush3.xpose.msk.msra.mxu0 %vm492_vm5, %v10438_v43  ;;  %14983 = vmatprep.mubr.msk.f32.mxu0 %vm16013_vm4, %v16012_v22 }
0x5720   :  { %14991 = vmatprep.subr.mxu0 %v16012_v22 }
0x5722   :  { %14984 = vmatmul.mubr.msk.f32.vlgmr.msra.gmra.mrb[126].mxu0 %vm492_vm5, %v10436_v18 }
0x5723   :  { %14992 = vmatpush3.msra.mxu0 %v17493_v13  ;;  %14993 = vmatprep.mubr.msk.f32.mxu0 %vm16013_vm4, %v16012_v22 }
0x5724   :  { %15001 = vmatprep.subr.mxu0 %v16012_v22 }
0x57ed   :  { %v10193_v6 = vpop.f32.mrb[122].mxu0 }
0x57ee   :  { %v14965_v36 = vpop.f32.mrb[123].mxu0  ;;  %14969 = vmatmul.mubr.msk.f32.vlgmr.msra.gmra.mrb[116].mxu1 %vm492_vm5, %v10193_v6 }
0x57ef   :  { %14978 = vmatprep.mubr.msk.f32.mxu1 %vm16013_vm4, %v16012_v22 }
0x57f1   :  { %v10344_v25 = vpop.f32.mrb[124].mxu0 }
0x57f2   :  { %v10345_v13 = vadd.f32 %v10344_v25, %v16998_v16  ;;  %v14975_v31 = vpop.f32.mrb[125].mxu0 }
0x57f4   :  { %v10348_v33 = vsel %vm492_vm5, %v10345_v13, -inf }
0x57f5   :  { %10349 = vmax.xlane.f32.xlu1 %v10348_v33  ;;  %v10509_v41 = vpop.f32.mrb[126].mxu0 }
0x57f6   :  { %v10510_v12 = vadd.f32 %v10509_v41, %v17002_v26  ;;  %v14985_v38 = vpop.f32.mrb[127].mxu0 }
0x57f8   :  { %v10513_v2 = vsel %vm492_vm5, %v10510_v12, -inf }
0x57f9   :  { %10514 = vmax.xlane.f32.xlu0 %v10513_v2 }
0x5882   :  { %v10350_v34 = vpop.xlane.xlu1 %10349 }
0x5883   :  { %v10351_v54 = vsub.f32 %v10345_v13, %v10350_v34 }
0x5885   :  { %v10352_v29 = vmul.f32 1.442695, %v10351_v54 }
0x5886   :  { %v10515_v8 = vpop.xlane.xlu0 %10514 }
0x5887   :  { %15588 = vpow2.f32 %v10352_v29  ;;  %v10516_v24 = vsub.f32 %v10510_v12, %v10515_v8 }
0x5889   :  { %v10517_v56 = vmul.f32 1.442695, %v10516_v24 }
0x588b   :  { %15590 = vpow2.f32 %v10517_v56 }
0x5891   :  { %v15589_v16 = vpop.eup %15588 }
0x5892   :  { %v10354_v14 = vsel %vm492_vm5, %v15589_v16, 0.0 }
0x5893   :  { %10355 = vadd.xlane.f32.xlu0 %v10354_v14 }
0x5895   :  { %v15591_v11 = vpop.eup %15590 }
0x5896   :  { %v10519_v42 = vsel %vm492_vm5, %v15591_v11, 0.0 }
0x5897   :  { %10520 = vadd.xlane.f32.xlu1 %v10519_v42 }
0x58a8   :  { %10524 = vrot.lane.b32.xlu1 %v17458_v7, %s16017_s9 }
0x58a9   :  { %10359 = vrot.lane.b32.xlu0 %v17458_v7, %s16019_s0 }
0x58ac   :  { %10748 = vrot.lane.b32.xlu1 %v17458_v7, %s16020_s16 }
0x58ad   :  { %10746 = vrot.lane.b32.xlu0 %v17458_v7, %s16018_s27 }
0x58c1   :  { %v10266_v26 = vpop.f32.mrb[116].mxu1 }
0x58c2   :  { %v17594_v19 = vadd.f32 %v10266_v26, %v10031_v4  ;;  %v14970_v40 = vpop.f32.mrb[117].mxu1 }
0x58c4   :  { %v17647_v29 = vadd.f32 %v17594_v19, %v17440_v27 }
0x58c6   :  { %v11228_v24 = vmul.f32 %v17647_v29, %v17647_v29 }
0x58c8   :  { %v11230_v56 = vsel %vm370_vm3, %v11228_v24, 0.0 }
0x5920   :  { %v10356_v37 = vpop.xlane.xlu0 %10355 }
0x5921   :  { %15592 = vrcp.f32 %v10356_v37 }
0x5924   :  { %v10521_v44 = vpop.xlane.xlu1 %10520  ;;  %v10360_v60 = vpop.permute.xlu0 %10359 }
0x5925   :  { %15594 = vrcp.f32 %v10521_v44  ;;  %14977 = vmatpush3.msra.mxu1 %v10360_v60  ;;  %v13802_v44 = vld [vmem:[%s17940_s15 + $0x1] ss:$0 sm:$0xff] }
0x5926   :  { %14986 = vmatprep.subr.mxu1 %v16012_v22 }
0x5928   :  { %v10525_v23 = vpop.permute.xlu1 %10524 }
0x592b   :  { %v15593_v49 = vpop.eup %15592 }
0x592c   :  { %v10358_v50 = vmul.f32 %v15593_v49, %v15589_v16  ;;  %v10749_v62 = vpop.permute.xlu1 %10748 }
0x592e   :  { %14979 = vmatmul.mubr.msk.f32.vlgmr.msra.gmra.mrb[118].mxu1 %vm492_vm5, %v10358_v50  ;;  %v11339_v50 = vld [vmem:[#allocation17 + $0x20] sm:$0xff] }
0x592f   :  { %v15595_v35 = vpop.eup %15594  ;;  %14987 = vmatpush3.msra.mxu1 %v10525_v23  ;;  %14988 = vmatprep.mubr.msk.f32.mxu1 %vm16013_vm4, %v16012_v22  ;;  %v11340_v23 = vld [vmem:[#allocation17 + $0x28] sm:$0xff] }
0x5930   :  { %v10523_v52 = vmul.f32 %v15595_v35, %v15591_v11  ;;  %14996 = vmatprep.subr.mxu1 %v16012_v22  ;;  %v15347_v35 = vpack.c.bf16 %v11340_v23, %v11339_v50 }
0x5932   :  { %14989 = vmatmul.mubr.msk.f32.vlgmr.msra.gmra.mrb[120].mxu1 %vm492_vm5, %v10523_v52  ;;  %v11341_v52 = vld [vmem:[#allocation17 + $0x30] sm:$0xff] }
0x5933   :  { %14997 = vmatpush3.msra.mxu1 %v17505_v10  ;;  %14998 = vmatprep.mubr.msk.f32.mxu1 %vm16013_vm4, %v16012_v22  ;;  %v10747_v10 = vpop.permute.xlu0 %10746 }
0x5934   :  { %15006 = vmatprep.subr.mxu1 %v16012_v22 }
0x5a01   :  { %v10431_v57 = vpop.f32.mrb[118].mxu1 }
0x5a02   :  { %v14980_v55 = vpop.f32.mrb[119].mxu1  ;;  %14999 = vmatmul.mubr.msk.f32.vlgmr.msra.gmra.mrb[122].mxu1 %vm492_vm5, %v10431_v57  ;;  %v11342_v57 = vld [vmem:[#allocation17 + $0x38] sm:$0xff] }
0x5a03   :  { %15008 = vmatprep.mubr.msk.f32.mxu1 %vm16013_vm4, %v16012_v22  ;;  %v15351_v55 = vpack.c.bf16 %v11342_v57, %v11341_v52 }
0x5a05   :  { %v10596_v58 = vpop.f32.mrb[120].mxu1 }
0x5a06   :  { %v14990_v1 = vpop.f32.mrb[121].mxu1  ;;  %14994 = vmatmul.mubr.msk.f32.vlgmr.msra.gmra.mrb[128].mxu0 %vm492_vm5, %v10596_v58 }
0x5a07   :  { %15002 = vmatpush3.xpose.msk.msra.mxu0 %vm492_vm5, %v10749_v62  ;;  %15003 = vmatprep.mubr.msk.f32.mxu0 %vm16013_vm4, %v16012_v22 }
0x5a08   :  { %15011 = vmatprep.subr.mxu0 %v16012_v22 }
0x5a0a   :  { %15004 = vmatmul.mubr.msk.f32.vlgmr.msra.gmra.mrb[130].mxu0 %vm492_vm5, %v10747_v10 }
0x5a0b   :  { %15012 = vmatpush3.msra.mxu0 %v17538_v5  ;;  %15013 = vmatprep.mubr.msk.f32.mxu0 %vm16013_vm4, %v16012_v22 }
0x5a0c   :  { %15021 = vmatprep.subr.mxu0 %v16012_v22 }
0x5ad5   :  { %v10742_v63 = vpop.f32.mrb[122].mxu1 }
0x5ad6   :  { %v15000_v0 = vpop.f32.mrb[123].mxu1 }
0x5ad9   :  { %v10669_v30 = vpop.f32.mrb[128].mxu0 }
0x5ada   :  { %v10743_v3 = vadd.f32 %v10742_v63, %v10669_v30  ;;  %v14995_v46 = vpop.f32.mrb[129].mxu0 }
0x5add   :  { %v10820_v45 = vpop.f32.mrb[130].mxu0 }
0x5ade   :  { %v10821_v4 = vadd.f32 %v10820_v45, %v17045_v48  ;;  %v15005_v9 = vpop.f32.mrb[131].mxu0  ;;  %v11254_v45 = vld [vmem:[#allocation16 + $0x28] sm:$0xff] }
0x5adf   :  { %v11256_v9 = vld [vmem:[#allocation16 + $0x38] sm:$0xff] }
0x5ae0   :  { %v10824_v61 = vsel %vm492_vm5, %v10821_v4, -inf }
0x5ae1   :  { %10825 = vmax.xlane.f32.xlu1 %v10824_v61 }
0x5af2   :  { %10987 = vrot.lane.b32.xlu1 %v17458_v7, %s16023_s8 }
0x5af6   :  { %10985 = vrot.lane.b32.xlu1 %v17458_v7, %s16022_s29 }
0x5b6e   :  { %v10826_v5 = vpop.xlane.xlu1 %10825 }
0x5b6f   :  { %v10827_v39 = vsub.f32 %v10821_v4, %v10826_v5 }
0x5b71   :  { %v10828_v28 = vmul.f32 1.442695, %v10827_v39 }
0x5b72   :  { %v10988_v6 = vpop.permute.xlu1 %10987 }
0x5b73   :  { %15596 = vpow2.f32 %v10828_v28 }
0x5b76   :  { %v10986_v25 = vpop.permute.xlu1 %10985 }
0x5b7d   :  { %v15597_v15 = vpop.eup %15596 }
0x5b7e   :  { %v10830_v17 = vsel %vm492_vm5, %v15597_v15, 0.0 }
0x5b7f   :  { %10831 = vadd.xlane.f32.xlu0 %v10830_v17 }
0x5b95   :  { %10835 = vrot.lane.b32.xlu0 %v17458_v7, %s16021_s26 }
0x5c0c   :  { %v10832_v48 = vpop.xlane.xlu0 %10831 }
0x5c0d   :  { %15598 = vrcp.f32 %v10832_v48 }
0x5c10   :  { %v10836_v43 = vpop.permute.xlu0 %10835 }
0x5c11   :  { %15007 = vmatpush3.msra.mxu1 %v10836_v43 }
0x5c12   :  { %15016 = vmatprep.subr.mxu1 %v16012_v22 }
0x5c17   :  { %v15599_v18 = vpop.eup %15598 }
0x5c18   :  { %v10834_v36 = vmul.f32 %v15599_v18, %v15597_v15 }
0x5c1a   :  { %15009 = vmatmul.mubr.msk.f32.vlgmr.msra.gmra.mrb[124].mxu1 %vm492_vm5, %v10834_v36 }
0x5c1b   :  { %15017 = vmatpush3.xpose.msk.msra.mxu1 %vm492_vm5, %v10988_v6  ;;  %15018 = vmatprep.mubr.msk.f32.mxu1 %vm16013_vm4, %v16012_v22 }
0x5c1c   :  { %15026 = vmatprep.subr.mxu1 %v16012_v22 }
0x5c1e   :  { %15019 = vmatmul.mubr.msk.f32.vlgmr.msra.gmra.mrb[126].mxu1 %vm492_vm5, %v10986_v25 }
0x5c1f   :  { %15027 = vmatpush3.msra.mxu1 %v17573_v51  ;;  %15028 = vmatprep.mubr.msk.f32.mxu1 %vm16013_vm4, %v16012_v22 }
0x5c20   :  { %15348 = vmatprep.subr.bf16.mxu1 %v15347_v35 }
0x5ced   :  { %v10907_v13 = vpop.f32.mrb[124].mxu1 }
0x5cee   :  { %v15010_v31 = vpop.f32.mrb[125].mxu1  ;;  %15014 = vmatmul.mubr.msk.f32.vlgmr.msra.gmra.mrb[132].mxu0 %vm492_vm5, %v10907_v13 }
0x5cef   :  { %15023 = vmatprep.mubr.msk.f32.mxu0 %vm16013_vm4, %v16012_v22 }
0x5cf1   :  { %v11059_v33 = vpop.f32.mrb[126].mxu1 }
0x5cf2   :  { %v11060_v41 = vadd.f32 %v11059_v33, %v17071_v32  ;;  %v15020_v12 = vpop.f32.mrb[127].mxu1 }
0x5cf4   :  { %v11063_v38 = vsel %vm492_vm5, %v11060_v41, -inf }
0x5cf5   :  { %11064 = vmax.xlane.f32.xlu0 %v11063_v38 }
0x5d0b   :  { %11074 = vrot.lane.b32.xlu0 %v17458_v7, %s16024_s22 }
0x5d82   :  { %v11065_v51 = vpop.xlane.xlu0 %11064 }
0x5d83   :  { %v11066_v2 = vsub.f32 %v11060_v41, %v11065_v51 }
0x5d85   :  { %v11067_v34 = vmul.f32 1.442695, %v11066_v2 }
0x5d86   :  { %v11075_v54 = vpop.permute.xlu0 %11074 }
0x5d87   :  { %15600 = vpow2.f32 %v11067_v34  ;;  %15022 = vmatpush3.msra.mxu0 %v11075_v54 }
0x5d91   :  { %v15601_v8 = vpop.eup %15600 }
0x5d92   :  { %v11069_v32 = vsel %vm492_vm5, %v15601_v8, 0.0 }
0x5d93   :  { %11070 = vadd.xlane.f32.xlu1 %v11069_v32 }
0x5d97   :  { %11231 = vadd.xlane.f32.xlu1 %v11230_v56 }
0x5dc1   :  { %v10980_v7 = vpop.f32.mrb[132].mxu0 }
0x5dc2   :  { %v10984_v16 = vadd.f32 %v10980_v7, %v10743_v3  ;;  %v15015_v14 = vpop.f32.mrb[133].mxu0 }
0x5e20   :  { %v11071_v11 = vpop.xlane.xlu1 %11070 }
0x5e21   :  { %15602 = vrcp.f32 %v11071_v11 }
0x5e24   :  { %v11232_v42 = vpop.xlane.xlu1 %11231 }
0x5e25   :  { %v11236_v26 = vmul.f32 0.03125, %v11232_v42 }
0x5e27   :  { %v11238_v40 = vadd.f32 1e-06, %v11236_v26 }
0x5e29   :  { %15604 = vrsqrt.f32 %v11238_v40 }
0x5e2b   :  { %v15603_v27 = vpop.eup %15602 }
0x5e2c   :  { %v11073_v19 = vmul.f32 %v15603_v27, %v15601_v8 }
0x5e2e   :  { %15024 = vmatmul.mubr.msk.f32.vlgmr.msra.gmra.mrb[134].mxu0 %vm492_vm5, %v11073_v19 }
0x5e33   :  { %v15605_v37 = vpop.eup %15604 }
0x5e34   :  { %v11242_v60 = vmul.f32 %v15605_v37, %v17647_v29 }
0x5e36   :  { %v11250_v49 = vmul.f32 %v13802_v44, %v11242_v60  ;;  %v17724_v60 = vld [vmem:[#allocation19 + $0x20] sm:$0xff] }
0x5e38   :  { %15039 = vmatprep.mubr.msk.f32.mxu0 %vm370_vm3, %v11250_v49  ;;  %v17727_v49 = vld [vmem:[#allocation19 + $0x28] sm:$0xff] }
0x5f01   :  { %v11146_v58 = vpop.f32.mrb[134].mxu0 }
0x5f02   :  { %v15025_v62 = vpop.f32.mrb[135].mxu0  ;;  %15029 = vmatmul.mubr.msk.f32.vlgmr.msra.gmra.mrb[128].mxu1 %vm492_vm5, %v11146_v58 }
0x5f03   :  { %15350 = vmatpush3.bf16.msra.mxu1 %v15347_v35  ;;  %15050 = vmatprep.mubr.msk.f32.mxu1 %vm370_vm3, %v17193_v21 }
0x5f04   :  { %15352 = vmatprep.subr.bf16.mxu1 %v15351_v55 }
0x5f07   :  { %15354 = vmatpush3.bf16.msra.mxu1 %v15351_v55 }
0x5f08   :  { %15058 = vmatprep.subr.mxu1 %v16012_v22 }
0x5f0a   :  { %15051 = vmatmul.mubr.msk.f32.vlgmr.msra.gmra.mrb[130].mxu1 %vm370_vm3, %v17197_v47  ;;  %v11253_v47 = vld [vmem:[#allocation16 + $0x20] sm:$0xff] }
0x5f0b   :  { %15060 = vmatprep.mubr.msk.f32.mxu1 %vm16013_vm4, %v16012_v22  ;;  %v15339_v4 = vpack.c.bf16 %v11254_v45, %v11253_v47 }
0x5f0d   :  { %15340 = vmatprep.subr.bf16.mxu0 %v15339_v4 }
0x5f0e   :  { %15342 = vmatpush3.bf16.msra.mxu0 %v15339_v4 }
0x5fd5   :  { %v11219_v1 = vpop.f32.mrb[128].mxu1 }
0x5fd6   :  { %v11223_v10 = vadd.f32 %v11219_v1, %v10984_v16  ;;  %v15030_v63 = vpop.f32.mrb[129].mxu1 }
0x5fd8   :  { %v17668_v0 = vadd.f32 %v11223_v10, %v17437_v53  ;;  %v11255_v53 = vld [vmem:[#allocation16 + $0x30] sm:$0xff] }
0x5fd9   :  { %v15343_v61 = vpack.c.bf16 %v11256_v9, %v11255_v53 }
0x5fda   :  { %v11229_v30 = vmul.f32 %v17668_v0, %v17668_v0 }
0x5fdb   :  { %15344 = vmatprep.subr.bf16.mxu0 %v15343_v61 }
0x5fdc   :  { %v11233_v21 = vsel %vm370_vm3, %v11229_v30, 0.0  ;;  %15346 = vmatpush3.bf16.msra.mxu0 %v15343_v61 }
0x5fdd   :  { %v17673_v3 = vpop.f32.mrb[130].mxu1  ;;  %11234 = vadd.xlane.f32.xlu1 %v11233_v21  ;;  %15053 = vmatprep.subr.mxu0 %v16012_v22 }
0x5fde   :  { %v17675_v46 = vpop.f32.mrb[131].mxu1 }
0x5fee   :  { %11588 = vrot.lane.b32.xlu1 %v17675_v46, %s16016_s20 }
0x606a   :  { %v11235_v5 = vpop.xlane.xlu1 %11234 }
0x606b   :  { %v11237_v39 = vmul.f32 0.03125, %v11235_v5 }
0x606d   :  { %v11239_v28 = vadd.f32 1e-06, %v11237_v39 }
0x606e   :  { %v11589_v6 = vpop.permute.xlu1 %11588 }
0x606f   :  { %15606 = vrsqrt.f32 %v11239_v28 }
0x6079   :  { %v15607_v15 = vpop.eup %15606 }
0x607a   :  { %v11243_v17 = vmul.f32 %v15607_v15, %v17668_v0 }
0x607c   :  { %v11251_v48 = vmul.f32 %v13802_v44, %v11243_v17 }
0x607e   :  { %15040 = vmatmul.mubr.msk.f32.vlgmr.msra.gmra.mrb[136].mxu0 %vm370_vm3, %v11251_v48 }
0x607f   :  { %15054 = vmatpush3.xpose.msk.msra.mxu0 %vm492_vm5, %v17675_v46  ;;  %15055 = vmatprep.mubr.msk.f32.mxu0 %vm16013_vm4, %v16012_v22 }
0x6080   :  { %15063 = vmatprep.subr.mxu0 %v16012_v22 }
0x6151   :  { %v17687_v43 = vpop.f32.mrb[136].mxu0 }
0x6152   :  { %v17689_v18 = vpop.f32.mrb[137].mxu0 }
0x6153   :  { %11586 = vrot.lane.b32.xlu0 %v17689_v18, %s16016_s20  ;;  %15056 = vmatmul.mubr.msk.f32.vlgmr.msra.gmra.mrb[138].mxu0 %vm492_vm5, %v17689_v18 }
0x6154   :  { %15064 = vmatpush3.xpose.msk.msra.mxu0 %vm492_vm5, %v11589_v6  ;;  %15065 = vmatprep.mubr.msk.f32.mxu0 %vm16013_vm4, %v16012_v22  ;;  %v17761_v6 = vld [vmem:[#allocation19 + $0x30] sm:$0xff] }
0x6155   :  { %15073 = vmatprep.subr.mxu0 %v16012_v22 }
0x61c5   :  { %v11587_v36 = vpop.permute.xlu0 %11586 }
0x61c6   :  { %15066 = vmatmul.mubr.msk.f32.vlgmr.msra.gmra.mrb[140].mxu0 %vm492_vm5, %v11587_v36 }
0x61c7   :  { %15075 = vmatprep.mubr.msk.f32.mxu0 %vm16013_vm4, %v16012_v22  ;;  %15074 = vmatpush3.msra.mxu0 %v17727_v49 }
0x61c8   :  { %15083 = vmatprep.subr.mxu0 %v16012_v22 }
0x6226   :  { %v11495_v25 = vpop.f32.mrb[138].mxu0 }
0x6227   :  { %v11496_v13 = vadd.f32 %v11495_v25, %v16491_v59  ;;  %v15057_v31 = vpop.f32.mrb[139].mxu0 }
0x6229   :  { %v11499_v33 = vsel %vm492_vm5, %v11496_v13, -inf }
0x622a   :  { %11500 = vmax.xlane.f32.xlu0 %v11499_v33 }
0x6299   :  { %v11660_v41 = vpop.f32.mrb[140].mxu0 }
0x629a   :  { %v11661_v12 = vadd.f32 %v11660_v41, %v16491_v59  ;;  %v15067_v38 = vpop.f32.mrb[141].mxu0 }
0x629c   :  { %v11664_v51 = vsel %vm492_vm5, %v11661_v12, -inf }
0x629d   :  { %11665 = vmax.xlane.f32.xlu1 %v11664_v51 }
0x62ae   :  { %11675 = vrot.lane.b32.xlu1 %v17675_v46, %s16014_s10 }
0x62b2   :  { %11899 = vrot.lane.b32.xlu1 %v17675_v46, %s16018_s27 }
0x62b7   :  { %v11501_v2 = vpop.xlane.xlu0 %11500 }
0x62b8   :  { %v11502_v34 = vsub.f32 %v11496_v13, %v11501_v2 }
0x62ba   :  { %v11503_v54 = vmul.f32 1.442695, %v11502_v34 }
0x62bc   :  { %15608 = vpow2.f32 %v11503_v54 }
0x62c6   :  { %v15609_v8 = vpop.eup %15608 }
0x62c7   :  { %v11505_v32 = vsel %vm492_vm5, %v15609_v8, 0.0 }
0x62c8   :  { %11506 = vadd.xlane.f32.xlu0 %v11505_v32 }
0x632a   :  { %v11666_v24 = vpop.xlane.xlu1 %11665 }
0x632b   :  { %v11667_v56 = vsub.f32 %v11661_v12, %v11666_v24 }
0x632d   :  { %v11668_v7 = vmul.f32 1.442695, %v11667_v56 }
0x632e   :  { %v11676_v19 = vpop.permute.xlu1 %11675 }
0x632f   :  { %15610 = vpow2.f32 %v11668_v7 }
0x6332   :  { %v11900_v52 = vpop.permute.xlu1 %11899 }
0x6339   :  { %v15611_v16 = vpop.eup %15610 }
0x633a   :  { %v11670_v14 = vsel %vm492_vm5, %v15611_v16, 0.0 }
0x633b   :  { %11671 = vadd.xlane.f32.xlu0 %v11670_v14  ;;  %v17795_v14 = vld [vmem:[#allocation19 + $0x38] sm:$0xff] }
0x6351   :  { %11510 = vrot.lane.b32.xlu0 %v17675_v46, %s16015_s25 }
0x6355   :  { %11897 = vrot.lane.b32.xlu0 %v17689_v18, %s16018_s27  ;;  %v11507_v11 = vpop.xlane.xlu0 %11506 }
0x6356   :  { %15612 = vrcp.f32 %v11507_v11 }
0x6360   :  { %v15613_v26 = vpop.eup %15612 }
0x6361   :  { %v11509_v40 = vmul.f32 %v15613_v26, %v15609_v8 }
0x63c8   :  { %v11672_v42 = vpop.xlane.xlu0 %11671 }
0x63c9   :  { %15614 = vrcp.f32 %v11672_v42 }
0x63cc   :  { %v11511_v27 = vpop.permute.xlu0 %11510 }
0x63cd   :  { %15059 = vmatpush3.msra.mxu1 %v11511_v27 }
0x63ce   :  { %15061 = vmatmul.mubr.msk.f32.vlgmr.msra.gmra.mrb[132].mxu1 %vm492_vm5, %v11509_v40  ;;  %15068 = vmatprep.subr.mxu1 %v16012_v22 }
0x63cf   :  { %15069 = vmatpush3.msra.mxu1 %v11676_v19  ;;  %15070 = vmatprep.mubr.msk.f32.mxu1 %vm16013_vm4, %v16012_v22 }
0x63d0   :  { %15078 = vmatprep.subr.mxu1 %v16012_v22  ;;  %v11898_v55 = vpop.permute.xlu0 %11897 }
0x63d3   :  { %v15615_v37 = vpop.eup %15614 }
0x63d4   :  { %v11674_v44 = vmul.f32 %v15615_v37, %v15611_v16 }
0x63d6   :  { %15071 = vmatmul.mubr.msk.f32.vlgmr.msra.gmra.mrb[134].mxu1 %vm492_vm5, %v11674_v44 }
0x63d7   :  { %15080 = vmatprep.mubr.msk.f32.mxu1 %vm16013_vm4, %v16012_v22  ;;  %15079 = vmatpush3.msra.mxu1 %v17724_v60 }
0x63d8   :  { %15088 = vmatprep.subr.mxu1 %v16012_v22 }
0x64a1   :  { %v11582_v50 = vpop.f32.mrb[132].mxu1 }
0x64a2   :  { %v15062_v23 = vpop.f32.mrb[133].mxu1  ;;  %15081 = vmatmul.mubr.msk.f32.vlgmr.msra.gmra.mrb[136].mxu1 %vm492_vm5, %v11582_v50 }
0x64a3   :  { %15090 = vmatprep.mubr.msk.f32.mxu1 %vm16013_vm4, %v16012_v22 }
0x64a9   :  { %v11747_v35 = vpop.f32.mrb[134].mxu1 }
0x64aa   :  { %v15072_v57 = vpop.f32.mrb[135].mxu1  ;;  %15076 = vmatmul.mubr.msk.f32.vlgmr.msra.gmra.mrb[142].mxu0 %vm492_vm5, %v11747_v35 }
0x64ab   :  { %15084 = vmatpush3.xpose.msk.msra.mxu0 %vm492_vm5, %v11900_v52  ;;  %15085 = vmatprep.mubr.msk.f32.mxu0 %vm16013_vm4, %v16012_v22 }
0x64ac   :  { %15093 = vmatprep.subr.mxu0 %v16012_v22 }
0x64ae   :  { %15086 = vmatmul.mubr.msk.f32.vlgmr.msra.gmra.mrb[144].mxu0 %vm492_vm5, %v11898_v55 }
0x64af   :  { %15095 = vmatprep.mubr.msk.f32.mxu0 %vm16013_vm4, %v16012_v22  ;;  %15094 = vmatpush3.msra.mxu0 %v17761_v6 }
0x64b0   :  { %15103 = vmatprep.subr.mxu0 %v16012_v22 }
0x6575   :  { %v11893_v58 = vpop.f32.mrb[136].mxu1 }
0x6576   :  { %v15082_v62 = vpop.f32.mrb[137].mxu1 }
0x657d   :  { %v11820_v1 = vpop.f32.mrb[142].mxu0 }
0x657e   :  { %v11894_v10 = vadd.f32 %v11893_v58, %v11820_v1  ;;  %v15077_v63 = vpop.f32.mrb[143].mxu0 }
0x6581   :  { %v11971_v30 = vpop.f32.mrb[144].mxu0 }
0x6582   :  { %v11972_v21 = vadd.f32 %v11971_v30, %v16491_v59  ;;  %v15087_v47 = vpop.f32.mrb[145].mxu0 }
0x6584   :  { %v11975_v45 = vsel %vm492_vm5, %v11972_v21, -inf }
0x6585   :  { %11976 = vmax.xlane.f32.xlu1 %v11975_v45 }
0x6596   :  { %12138 = vrot.lane.b32.xlu1 %v17675_v46, %s16022_s29 }
0x659a   :  { %12136 = vrot.lane.b32.xlu1 %v17689_v18, %s16022_s29 }
0x6612   :  { %v11977_v4 = vpop.xlane.xlu1 %11976 }
0x6613   :  { %v11978_v53 = vsub.f32 %v11972_v21, %v11977_v4 }
0x6615   :  { %v11979_v9 = vmul.f32 1.442695, %v11978_v53 }
0x6616   :  { %v12139_v17 = vpop.permute.xlu1 %12138 }
0x6617   :  { %15616 = vpow2.f32 %v11979_v9 }
0x661a   :  { %v12137_v18 = vpop.permute.xlu1 %12136 }
0x6621   :  { %v15617_v61 = vpop.eup %15616 }
0x6622   :  { %v11981_v5 = vsel %vm492_vm5, %v15617_v61, 0.0 }
0x6623   :  { %11982 = vadd.xlane.f32.xlu0 %v11981_v5 }
0x6639   :  { %11986 = vrot.lane.b32.xlu0 %v17675_v46, %s16020_s16 }
0x66b0   :  { %v11983_v39 = vpop.xlane.xlu0 %11982 }
0x66b1   :  { %15618 = vrcp.f32 %v11983_v39 }
0x66b4   :  { %v11987_v28 = vpop.permute.xlu0 %11986 }
0x66b5   :  { %15089 = vmatpush3.msra.mxu1 %v11987_v28 }
0x66b6   :  { %15098 = vmatprep.subr.mxu1 %v16012_v22 }
0x66bb   :  { %v15619_v15 = vpop.eup %15618 }
0x66bc   :  { %v11985_v48 = vmul.f32 %v15619_v15, %v15617_v61 }
0x66be   :  { %15091 = vmatmul.mubr.msk.f32.vlgmr.msra.gmra.mrb[138].mxu1 %vm492_vm5, %v11985_v48 }
0x66bf   :  { %15099 = vmatpush3.xpose.msk.msra.mxu1 %vm492_vm5, %v12139_v17  ;;  %15100 = vmatprep.mubr.msk.f32.mxu1 %vm16013_vm4, %v16012_v22 }
0x66c0   :  { %15108 = vmatprep.subr.mxu1 %v16012_v22 }
0x66c2   :  { %15101 = vmatmul.mubr.msk.f32.vlgmr.msra.gmra.mrb[140].mxu1 %vm492_vm5, %v12137_v18 }
0x66c3   :  { %15110 = vmatprep.mubr.msk.f32.mxu1 %vm16013_vm4, %v16012_v22  ;;  %15109 = vmatpush3.msra.mxu1 %v17795_v14 }
0x66c4   :  { %15118 = vmatprep.subr.mxu1 %v16012_v22 }
0x6791   :  { %v12058_v36 = vpop.f32.mrb[138].mxu1 }
0x6792   :  { %v15092_v25 = vpop.f32.mrb[139].mxu1  ;;  %15096 = vmatmul.mubr.msk.f32.vlgmr.msra.gmra.mrb[146].mxu0 %vm492_vm5, %v12058_v36 }
0x6793   :  { %15105 = vmatprep.mubr.msk.f32.mxu0 %vm16013_vm4, %v16012_v22 }
0x6795   :  { %v12210_v13 = vpop.f32.mrb[140].mxu1 }
0x6796   :  { %v12211_v31 = vadd.f32 %v12210_v13, %v16491_v59  ;;  %v15102_v33 = vpop.f32.mrb[141].mxu1 }
0x6798   :  { %v12214_v41 = vsel %vm492_vm5, %v12211_v31, -inf }
0x6799   :  { %12215 = vmax.xlane.f32.xlu0 %v12214_v41 }
0x67af   :  { %12225 = vrot.lane.b32.xlu0 %v17675_v46, %s16023_s8 }
0x67b3   :  { %12538 = vrot.lane.b32.xlu0 %v17687_v43, %s16016_s20 }
0x6826   :  { %v12216_v12 = vpop.xlane.xlu0 %12215 }
0x6827   :  { %v12217_v38 = vsub.f32 %v12211_v31, %v12216_v12 }
0x6829   :  { %v12218_v51 = vmul.f32 1.442695, %v12217_v38 }
0x682a   :  { %v12226_v2 = vpop.permute.xlu0 %12225 }
0x682b   :  { %15620 = vpow2.f32 %v12218_v51  ;;  %15104 = vmatpush3.msra.mxu0 %v12226_v2 }
0x682c   :  { %15113 = vmatprep.subr.mxu0 %v16012_v22 }
0x682e   :  { %v12539_v16 = vpop.permute.xlu0 %12538 }
0x6835   :  { %v15621_v34 = vpop.eup %15620 }
0x6836   :  { %v12220_v59 = vsel %vm492_vm5, %v15621_v34, 0.0 }
0x6837   :  { %12221 = vadd.xlane.f32.xlu1 %v12220_v59 }
0x6848   :  { %12540 = vrot.lane.b32.xlu1 %v17673_v3, %s16016_s20 }
0x6865   :  { %v12131_v54 = vpop.f32.mrb[146].mxu0 }
0x6866   :  { %v12135_v46 = vadd.f32 %v12131_v54, %v11894_v10  ;;  %v15097_v8 = vpop.f32.mrb[147].mxu0 }
0x68c4   :  { %v12222_v32 = vpop.xlane.xlu1 %12221 }
0x68c5   :  { %15622 = vrcp.f32 %v12222_v32 }
0x68c8   :  { %v12541_v7 = vpop.permute.xlu1 %12540 }
0x68cf   :  { %v15623_v24 = vpop.eup %15622 }
0x68d0   :  { %v12224_v56 = vmul.f32 %v15623_v24, %v15621_v34 }
0x68d2   :  { %15106 = vmatmul.mubr.msk.f32.vlgmr.msra.gmra.mrb[148].mxu0 %vm492_vm5, %v12224_v56 }
0x68d3   :  { %15114 = vmatpush3.xpose.msk.msra.mxu0 %vm492_vm5, %v17673_v3  ;;  %15115 = vmatprep.mubr.msk.f32.mxu0 %vm16013_vm4, %v16012_v22 }
0x68d4   :  { %15123 = vmatprep.subr.mxu0 %v16012_v22 }
0x68d6   :  { %15116 = vmatmul.mubr.msk.f32.vlgmr.msra.gmra.mrb[150].mxu0 %vm492_vm5, %v17687_v43 }
0x68d7   :  { %15124 = vmatpush3.xpose.msk.msra.mxu0 %vm492_vm5, %v12541_v7  ;;  %15125 = vmatprep.mubr.msk.f32.mxu0 %vm16013_vm4, %v16012_v22 }
0x68d8   :  { %15133 = vmatprep.subr.mxu0 %v16012_v22 }
0x68da   :  { %15126 = vmatmul.mubr.msk.f32.vlgmr.msra.gmra.mrb[152].mxu0 %vm492_vm5, %v12539_v16 }
0x68db   :  { %15134 = vmatpush3.msra.mxu0 %v17727_v49  ;;  %15135 = vmatprep.mubr.msk.f32.mxu0 %vm16013_vm4, %v16012_v22 }
0x68dc   :  { %15143 = vmatprep.subr.mxu0 %v16012_v22 }
0x69a5   :  { %v12297_v11 = vpop.f32.mrb[148].mxu0 }
0x69a6   :  { %v15107_v42 = vpop.f32.mrb[149].mxu0  ;;  %15111 = vmatmul.mubr.msk.f32.vlgmr.msra.gmra.mrb[142].mxu1 %vm492_vm5, %v12297_v11 }
0x69a7   :  { %15120 = vmatprep.mubr.msk.f32.mxu1 %vm16013_vm4, %v16012_v22 }
0x69a9   :  { %v12447_v26 = vpop.f32.mrb[150].mxu0 }
0x69aa   :  { %v12448_v40 = vadd.f32 %v12447_v26, %v16429_v20  ;;  %v15117_v27 = vpop.f32.mrb[151].mxu0 }
0x69ac   :  { %v12451_v19 = vsel %vm492_vm5, %v12448_v40, -inf }
0x69ad   :  { %12452 = vmax.xlane.f32.xlu1 %v12451_v19  ;;  %v12612_v37 = vpop.f32.mrb[152].mxu0 }
0x69ae   :  { %v12613_v44 = vadd.f32 %v12612_v37, %v16429_v20  ;;  %v15127_v49 = vpop.f32.mrb[153].mxu0 }
0x69b0   :  { %v12616_v50 = vsel %vm492_vm5, %v12613_v44, -inf }
0x69b1   :  { %12617 = vmax.xlane.f32.xlu0 %v12616_v50 }
0x6a3a   :  { %v12453_v23 = vpop.xlane.xlu1 %12452 }
0x6a3b   :  { %v12454_v35 = vsub.f32 %v12448_v40, %v12453_v23 }
0x6a3d   :  { %v12455_v52 = vmul.f32 1.442695, %v12454_v35 }
0x6a3e   :  { %v12618_v57 = vpop.xlane.xlu0 %12617 }
0x6a3f   :  { %15624 = vpow2.f32 %v12455_v52  ;;  %v12619_v55 = vsub.f32 %v12613_v44, %v12618_v57 }
0x6a41   :  { %v12620_v58 = vmul.f32 1.442695, %v12619_v55 }
0x6a43   :  { %15626 = vpow2.f32 %v12620_v58 }
0x6a49   :  { %v15625_v62 = vpop.eup %15624 }
0x6a4a   :  { %v12457_v1 = vsel %vm492_vm5, %v15625_v62, 0.0 }
0x6a4b   :  { %12458 = vadd.xlane.f32.xlu0 %v12457_v1 }
0x6a4d   :  { %v15627_v10 = vpop.eup %15626 }
0x6a4e   :  { %v12622_v63 = vsel %vm492_vm5, %v15627_v10, 0.0 }
0x6a4f   :  { %12623 = vadd.xlane.f32.xlu1 %v12622_v63  ;;  %v13840_v63 = vld [vmem:[%s17944_s19 + $0x1] ss:$0 sm:$0xff]  ;;  %s16026_s19 = smov [#allocation24]  }
0x6a60   :  { %12627 = vrot.lane.b32.xlu1 %v17673_v3, %s16014_s10 }
0x6a61   :  { %12462 = vrot.lane.b32.xlu0 %v17673_v3, %s16015_s25  ;;  %s13579_s25 = sshll.u32 %s16026_s19, 4  ;;  %s13580_s25 = int_to_ptr.vmem [resolvable:$true] %s13579_s25 }
0x6a62   :  { %s15934_s20 = scalar_lea.vmem %s13580_s25, 256  ;;  %p15939_p7 = scmp.lt.s32.totalorder %s13580_s25, %s13580_s25 }
0x6a63   :  { %p15935_p6 = scmp.ne.s32.totalorder %s13580_s25, %s15934_s20  ;;  %p15940_p8 = scmp.lt.s32.totalorder %s15934_s20, %s15934_s20 }
0x6a64   :  { %12851 = vrot.lane.b32.xlu1 %v17673_v3, %s16018_s27 }
0x6a65   :  { %12849 = vrot.lane.b32.xlu0 %v17687_v43, %s16018_s27  ;;  %p15941_p9 = por %p15940_p8, %p15939_p7 }
0x6a67   :  { %p15942_p10 = pnand %p15941_p9, %p15935_p6 }
0x6a79   :  { %v12370_v30 = vpop.f32.mrb[142].mxu1 }
0x6a7a   :  { %v17816_v21 = vadd.f32 %v12370_v30, %v12135_v46  ;;  %v15112_v47 = vpop.f32.mrb[143].mxu1 }
0x6a7c   :  { %v17869_v49 = vadd.f32 %v17816_v21, %v17647_v29 }
0x6a7e   :  { %v13331_v50 = vmul.f32 %v17869_v49, %v17869_v49 }
0x6a80   :  { %v13333_v23 = vsel %vm370_vm3, %v13331_v50, 0.0 }
0x6ad8   :  { %v12459_v45 = vpop.xlane.xlu0 %12458 }
0x6ad9   :  { %15628 = vrcp.f32 %v12459_v45 }
0x6adc   :  { %v12624_v4 = vpop.xlane.xlu1 %12623  ;;  %v12463_v53 = vpop.permute.xlu0 %12462 }
0x6add   :  { %15630 = vrcp.f32 %v12624_v4  ;;  %15119 = vmatpush3.msra.mxu1 %v12463_v53 }
0x6ade   :  { %15128 = vmatprep.subr.mxu1 %v16012_v22 }
0x6ae0   :  { %v12628_v5 = vpop.permute.xlu1 %12627 }
0x6ae3   :  { %v15629_v9 = vpop.eup %15628 }
0x6ae4   :  { %v12461_v61 = vmul.f32 %v15629_v9, %v15625_v62  ;;  %v12852_v18 = vpop.permute.xlu1 %12851 }
0x6ae6   :  { %15121 = vmatmul.mubr.msk.f32.vlgmr.msra.gmra.mrb[144].mxu1 %vm492_vm5, %v12461_v61 }
0x6ae7   :  { %v15631_v39 = vpop.eup %15630  ;;  %15129 = vmatpush3.msra.mxu1 %v12628_v5  ;;  %15130 = vmatprep.mubr.msk.f32.mxu1 %vm16013_vm4, %v16012_v22 }
0x6ae8   :  { %v12626_v28 = vmul.f32 %v15631_v39, %v15627_v10  ;;  %15138 = vmatprep.subr.mxu1 %v16012_v22 }
0x6aea   :  { %15131 = vmatmul.mubr.msk.f32.vlgmr.msra.gmra.mrb[146].mxu1 %vm492_vm5, %v12626_v28  ;;  %v13356_v28 = vld [vmem:[#allocation20 + $0x20] sm:$0xff] }
0x6aeb   :  { %15139 = vmatpush3.msra.mxu1 %v17724_v60  ;;  %15140 = vmatprep.mubr.msk.f32.mxu1 %vm16013_vm4, %v16012_v22  ;;  %v12850_v60 = vpop.permute.xlu0 %12849 }
0x6aec   :  { %15148 = vmatprep.subr.mxu1 %v16012_v22 }
0x6bb9   :  { %v12534_v15 = vpop.f32.mrb[144].mxu1 }
0x6bba   :  { %v15122_v17 = vpop.f32.mrb[145].mxu1  ;;  %15141 = vmatmul.mubr.msk.f32.vlgmr.msra.gmra.mrb[148].mxu1 %vm492_vm5, %v12534_v15  ;;  %v13357_v15 = vld [vmem:[#allocation20 + $0x28] sm:$0xff] }
0x6bbb   :  { %15150 = vmatprep.mubr.msk.f32.mxu1 %vm16013_vm4, %v16012_v22  ;;  %v15355_v17 = vpack.c.bf16 %v13357_v15, %v13356_v28 }
0x6bbd   :  { %v12699_v48 = vpop.f32.mrb[146].mxu1 }
0x6bbe   :  { %v15132_v36 = vpop.f32.mrb[147].mxu1  ;;  %15136 = vmatmul.mubr.msk.f32.vlgmr.msra.gmra.mrb[154].mxu0 %vm492_vm5, %v12699_v48  ;;  %v13358_v48 = vld [vmem:[#allocation20 + $0x30] sm:$0xff] }
0x6bbf   :  { %15144 = vmatpush3.xpose.msk.msra.mxu0 %vm492_vm5, %v12852_v18  ;;  %15145 = vmatprep.mubr.msk.f32.mxu0 %vm16013_vm4, %v16012_v22  ;;  %v13359_v18 = vld [vmem:[#allocation20 + $0x38] sm:$0xff] }
0x6bc0   :  { %15153 = vmatprep.subr.mxu0 %v16012_v22  ;;  %v15359_v36 = vpack.c.bf16 %v13359_v18, %v13358_v48 }
0x6bc2   :  { %15146 = vmatmul.mubr.msk.f32.vlgmr.msra.gmra.mrb[156].mxu0 %vm492_vm5, %v12850_v60  ;;  %v13444_v60 = vld [vmem:[#allocation22 + $0x40] sm:$0xff] }
0x6bc3   :  { %15154 = vmatpush3.msra.mxu0 %v17761_v6  ;;  %15155 = vmatprep.mubr.msk.f32.mxu0 %vm16013_vm4, %v16012_v22 }
0x6bc4   :  { %15163 = vmatprep.subr.mxu0 %v16012_v22 }
0x6c8d   :  { %v12845_v25 = vpop.f32.mrb[148].mxu1 }
0x6c8e   :  { %v15142_v13 = vpop.f32.mrb[149].mxu1 }
0x6c8f   :  { %v13446_v13 = vld [vmem:[#allocation22 + $0x50] sm:$0xff] }
0x6c91   :  { %v12772_v31 = vpop.f32.mrb[154].mxu0 }
0x6c92   :  { %v12846_v33 = vadd.f32 %v12845_v25, %v12772_v31  ;;  %v15137_v41 = vpop.f32.mrb[155].mxu0  ;;  %v13445_v25 = vld [vmem:[#allocation22 + $0x48] sm:$0xff] }
0x6c93   :  { %v15363_v31 = vpack.c.bf16 %v13445_v25, %v13444_v60  ;;  %v13448_v41 = vld [vmem:[#allocation22 + $0x60] sm:$0xff] }
0x6c95   :  { %v12923_v12 = vpop.f32.mrb[156].mxu0 }
0x6c96   :  { %v12924_v38 = vadd.f32 %v12923_v12, %v16429_v20  ;;  %v15147_v51 = vpop.f32.mrb[157].mxu0  ;;  %v13449_v12 = vld [vmem:[#allocation22 + $0x68] sm:$0xff] }
0x6c98   :  { %v12927_v2 = vsel %vm492_vm5, %v12924_v38, -inf }
0x6c99   :  { %12928 = vmax.xlane.f32.xlu1 %v12927_v2 }
0x6caa   :  { %13090 = vrot.lane.b32.xlu1 %v17673_v3, %s16022_s29 }
0x6cae   :  { %13088 = vrot.lane.b32.xlu1 %v17687_v43, %s16022_s29 }
0x6d26   :  { %v12929_v6 = vpop.xlane.xlu1 %12928 }
0x6d27   :  { %v12930_v34 = vsub.f32 %v12924_v38, %v12929_v6  ;;  %v15371_v38 = vpack.c.bf16 %v13449_v12, %v13448_v41 }
0x6d29   :  { %v12931_v59 = vmul.f32 1.442695, %v12930_v34 }
0x6d2a   :  { %v13091_v56 = vpop.permute.xlu1 %13090 }
0x6d2b   :  { %15632 = vpow2.f32 %v12931_v59 }
0x6d2e   :  { %v13089_v7 = vpop.permute.xlu1 %13088 }
0x6d35   :  { %v15633_v54 = vpop.eup %15632 }
0x6d36   :  { %v12933_v46 = vsel %vm492_vm5, %v15633_v54, 0.0 }
0x6d37   :  { %12934 = vadd.xlane.f32.xlu0 %v12933_v46  ;;  %v13450_v46 = vld [vmem:[#allocation22 + $0x70] sm:$0xff] }
0x6d4d   :  { %12938 = vrot.lane.b32.xlu0 %v17673_v3, %s16020_s16 }
0x6dc4   :  { %v12935_v8 = vpop.xlane.xlu0 %12934 }
0x6dc5   :  { %15634 = vrcp.f32 %v12935_v8  ;;  %v13451_v8 = vld [vmem:[#allocation22 + $0x78] sm:$0xff] }
0x6dc8   :  { %v12939_v32 = vpop.permute.xlu0 %12938 }
0x6dc9   :  { %15149 = vmatpush3.msra.mxu1 %v12939_v32  ;;  %v15375_v32 = vpack.c.bf16 %v13451_v8, %v13450_v46 }
0x6dca   :  { %15158 = vmatprep.subr.mxu1 %v16012_v22 }
0x6dcf   :  { %v15635_v24 = vpop.eup %15634 }
0x6dd0   :  { %v12937_v43 = vmul.f32 %v15635_v24, %v15633_v54 }
0x6dd2   :  { %15151 = vmatmul.mubr.msk.f32.vlgmr.msra.gmra.mrb[150].mxu1 %vm492_vm5, %v12937_v43 }
0x6dd3   :  { %15159 = vmatpush3.xpose.msk.msra.mxu1 %vm492_vm5, %v13091_v56  ;;  %15160 = vmatprep.mubr.msk.f32.mxu1 %vm16013_vm4, %v16012_v22 }
0x6dd4   :  { %15168 = vmatprep.subr.mxu1 %v16012_v22 }
0x6dd6   :  { %15161 = vmatmul.mubr.msk.f32.vlgmr.msra.gmra.mrb[152].mxu1 %vm492_vm5, %v13089_v7 }
0x6dd7   :  { %15169 = vmatpush3.msra.mxu1 %v17795_v14  ;;  %15170 = vmatprep.mubr.msk.f32.mxu1 %vm16013_vm4, %v16012_v22 }
0x6dd8   :  { %15364 = vmatprep.subr.bf16.mxu1 %v15363_v31 }
0x6ea5   :  { %v13010_v16 = vpop.f32.mrb[150].mxu1 }
0x6ea6   :  { %v15152_v11 = vpop.f32.mrb[151].mxu1  ;;  %15156 = vmatmul.mubr.msk.f32.vlgmr.msra.gmra.mrb[158].mxu0 %vm492_vm5, %v13010_v16 }
0x6ea7   :  { %15165 = vmatprep.mubr.msk.f32.mxu0 %vm16013_vm4, %v16012_v22 }
0x6ea9   :  { %v13162_v42 = vpop.f32.mrb[152].mxu1 }
0x6eaa   :  { %v13163_v26 = vadd.f32 %v13162_v42, %v16429_v20  ;;  %v15162_v40 = vpop.f32.mrb[153].mxu1 }
0x6eac   :  { %v13166_v27 = vsel %vm492_vm5, %v13163_v26, -inf }
0x6ead   :  { %13167 = vmax.xlane.f32.xlu0 %v13166_v27 }
0x6ec3   :  { %13177 = vrot.lane.b32.xlu0 %v17673_v3, %s16023_s8 }
0x6f3a   :  { %v13168_v14 = vpop.xlane.xlu0 %13167 }
0x6f3b   :  { %v13169_v19 = vsub.f32 %v13163_v26, %v13168_v14 }
0x6f3d   :  { %v13170_v37 = vmul.f32 1.442695, %v13169_v19 }
0x6f3e   :  { %v13178_v44 = vpop.permute.xlu0 %13177 }
0x6f3f   :  { %15636 = vpow2.f32 %v13170_v37  ;;  %15164 = vmatpush3.msra.mxu0 %v13178_v44 }
0x6f40   :  { %15356 = vmatprep.subr.bf16.mxu0 %v15355_v17 }
0x6f49   :  { %v15637_v22 = vpop.eup %15636 }
0x6f4a   :  { %v13172_v20 = vsel %vm492_vm5, %v15637_v22, 0.0 }
0x6f4b   :  { %13173 = vadd.xlane.f32.xlu1 %v13172_v20 }
0x6f4f   :  { %13334 = vadd.xlane.f32.xlu1 %v13333_v23 }
0x6f79   :  { %v13083_v3 = vpop.f32.mrb[158].mxu0 }
0x6f7a   :  { %v13087_v35 = vadd.f32 %v13083_v3, %v12846_v33  ;;  %v15157_v52 = vpop.f32.mrb[159].mxu0  ;;  %v13447_v33 = vld [vmem:[#allocation22 + $0x58] sm:$0xff] }
0x6fd8   :  { %v13174_v57 = vpop.xlane.xlu1 %13173 }
0x6fd9   :  { %15638 = vrcp.f32 %v13174_v57 }
0x6fdc   :  { %v13335_v55 = vpop.xlane.xlu1 %13334 }
0x6fdd   :  { %v13339_v58 = vmul.f32 0.03125, %v13335_v55 }
0x6fdf   :  { %v13341_v62 = vadd.f32 1e-06, %v13339_v58 }
0x6fe1   :  { %15640 = vrsqrt.f32 %v13341_v62 }
0x6fe3   :  { %v15639_v29 = vpop.eup %15638 }
0x6fe4   :  { %v13176_v1 = vmul.f32 %v15639_v29, %v15637_v22 }
0x6fe6   :  { %15166 = vmatmul.mubr.msk.f32.vlgmr.msra.gmra.mrb[160].mxu0 %vm492_vm5, %v13176_v1 }
0x6fe7   :  { %15358 = vmatpush3.bf16.msra.mxu0 %v15355_v17 }
0x6fe8   :  { %15360 = vmatprep.subr.bf16.mxu0 %v15359_v36 }
0x6feb   :  { %v15641_v10 = vpop.eup %15640  ;;  %15362 = vmatpush3.bf16.msra.mxu0 %v15359_v36 }
0x6fec   :  { %v13345_v30 = vmul.f32 %v15641_v10, %v17869_v49 }
0x6fee   :  { %v13353_v21 = vmul.f32 %v13840_v63, %v13345_v30 }
0x6ff0   :  { %15181 = vmatprep.mubr.msk.f32.mxu0 %vm370_vm3, %v13353_v21 }
0x70b9   :  { %v13249_v47 = vpop.f32.mrb[160].mxu0 }
0x70ba   :  { %v15167_v45 = vpop.f32.mrb[161].mxu0  ;;  %15171 = vmatmul.mubr.msk.f32.vlgmr.msra.gmra.mrb[154].mxu1 %vm492_vm5, %v13249_v47 }
0x70bb   :  { %15366 = vmatpush3.bf16.msra.mxu1 %v15363_v31 }
0x718d   :  { %v13322_v4 = vpop.f32.mrb[154].mxu1 }
0x718e   :  { %v13326_v53 = vadd.f32 %v13322_v4, %v13087_v35  ;;  %v15172_v9 = vpop.f32.mrb[155].mxu1 }
0x7190   :  { %v13328_v61 = vadd.f32 %v13326_v53, %v17668_v0  ;;  %v15367_v0 = vpack.c.bf16 %v13447_v33, %v13446_v13 }
0x7192   :  { %v13332_v5 = vmul.f32 %v13328_v61, %v13328_v61  ;;  %15368 = vmatprep.subr.bf16.mxu1 %v15367_v0 }
0x7193   :  { %15370 = vmatpush3.bf16.msra.mxu1 %v15367_v0 }
0x7194   :  { %v13336_v39 = vsel %vm370_vm3, %v13332_v5, 0.0  ;;  %15372 = vmatprep.subr.bf16.mxu1 %v15371_v38 }
0x7195   :  { %13337 = vadd.xlane.f32.xlu1 %v13336_v39 }
0x7197   :  { %15374 = vmatpush3.bf16.msra.mxu1 %v15371_v38 }
0x7198   :  { %15376 = vmatprep.subr.bf16.mxu1 %v15375_v32 }
0x719b   :  { %15378 = vmatpush3.bf16.msra.mxu1 %v15375_v32 }
0x7222   :  { %v13338_v51 = vpop.xlane.xlu1 %13337 }
0x7223   :  { %v13340_v2 = vmul.f32 0.03125, %v13338_v51 }
0x7225   :  { %v13342_v6 = vadd.f32 1e-06, %v13340_v2 }
0x7227   :  { %15642 = vrsqrt.f32 %v13342_v6 }
0x7231   :  { %v15643_v34 = vpop.eup %15642 }
0x7232   :  { %v13346_v59 = vmul.f32 %v15643_v34, %v13328_v61 }
0x7234   :  { %v13354_v54 = vmul.f32 %v13840_v63, %v13346_v59 }
0x7236   :  { %15182 = vmatmul.mubr.msk.f32.vlgmr.msra.gmra.mrb[162].mxu0 %vm370_vm3, %v13354_v54 }
0x7309   :  { %v15183_v24 = vpop.f32.mrb[162].mxu0 }
0x730a   :  { %v13432_v56 = vpop.f32.mrb[163].mxu0  ;;  %v13442_v7 = vmax.f32 %v15183_v24, 0.0 }
0x730b   :  { %v13441_v43 = vmax.f32 %v13432_v56, 0.0 }
0x730d   :  { %15200 = vmatprep.mubr.msk.f32.mxu1 %vm285_vm0, %v13441_v43 }
0x730e   :  { %15201 = vmatmul.mubr.msk.f32.vlgmr.msra.gmra.mrb[156].mxu1 %vm285_vm0, %v13442_v7 }
0x73e1   :  { %v15202_v16 = vpop.f32.mrb[156].mxu1 }
0x73e2   :  { %v13524_v11 = vpop.f32.mrb[157].mxu1  ;;  %v13534_v42 = vadd.f32 %v15202_v16, %v13328_v61 }
0x73e3   :  { %v13533_v26 = vadd.f32 %v13524_v11, %v17869_v49 }
0x73e4   :  { %v13537_v27 = vmul.f32 %v13534_v42, %v13534_v42 }
0x73e5   :  { %v13536_v40 = vmul.f32 %v13533_v26, %v13533_v26 }
0x73e6   :  { %v13541_v19 = vsel %vm370_vm3, %v13537_v27, 0.0 }
0x73e7   :  { %v13538_v14 = vsel %vm370_vm3, %v13536_v40, 0.0 }
0x73e8   :  { %13539 = vadd.xlane.f32.xlu1 %v13538_v14 }
0x73ec   :  { %13542 = vadd.xlane.f32.xlu1 %v13541_v19 }
0x73ed   :  { %15945 = shalt.err (!%p15942_p10)
}
0x73ee   :  { %s15946_s16 = scalar_lea.hbm %s17949_s24, 256 }
0x73ef   :  { %p15947_p11 = scmp.ne.s32.totalorder %s17949_s24, %s15946_s16  ;;  %p15950_p12 = scmp.lt.u32.totalorder %s15946_s16, %s17949_s24 }
0x73f1   :  { %p15952_p13 = pnand %p15950_p12, %p15947_p11 }
0x73f3   :  { %15955 = shalt.err (!%p15952_p13)
}
0x73f4   :  { %13585 = dma.vmem_to_hbm [thread:$0]  %s13580_s25, 256, %s17949_s24, [#allocation25], %s15998_s4, %s15998_s4, %s15999_s1  }
0x73f5   :  { %s17979_s18 = sld [smem:[#allocation44_spill]]  ;;  %s16027_s5 = smov [#allocation23]  }
0x73f6   :  { %s13567_s3 = sshll.u32 %s16027_s5, 4  ;;  %s13568_s3 = int_to_ptr.vmem [resolvable:$true] %s13567_s3 }
0x73f7   :  { %s15956_s24 = scalar_lea.vmem %s13568_s3, 256  ;;  %p15961_p1 = scmp.lt.s32.totalorder %s13568_s3, %s13568_s3 }
0x73f8   :  { %p15957_p0 = scmp.ne.s32.totalorder %s13568_s3, %s15956_s24  ;;  %p15962_p2 = scmp.lt.s32.totalorder %s15956_s24, %s15956_s24 }
0x73fa   :  { %p15963_p3 = por %p15962_p2, %p15961_p1 }
0x73fb   :  { %v13845_v3 = vld [vmem:[%s17979_s18] ss:$0 sm:$0xff] }
0x73fc   :  { %p15964_p4 = pnand %p15963_p3, %p15957_p0 }
0x7475   :  { %v13540_v37 = vpop.xlane.xlu1 %13539 }
0x7476   :  { %v13544_v44 = vmul.f32 0.03125, %v13540_v37 }
0x7478   :  { %v13546_v49 = vadd.f32 1e-06, %v13544_v44 }
0x7479   :  { %v13543_v22 = vpop.xlane.xlu1 %13542 }
0x747a   :  { %15644 = vrsqrt.f32 %v13546_v49  ;;  %v13545_v20 = vmul.f32 0.03125, %v13543_v22 }
0x747c   :  { %v13547_v50 = vadd.f32 1e-06, %v13545_v20 }
0x747e   :  { %15646 = vrsqrt.f32 %v13547_v50 }
0x7484   :  { %v15645_v23 = vpop.eup %15644 }
0x7485   :  { %v13550_v35 = vmul.f32 %v15645_v23, %v13533_v26 }
0x7487   :  { %v13558_v52 = vmul.f32 %v13845_v3, %v13550_v35 }
0x7488   :  { %v15647_v57 = vpop.eup %15646 }
0x7489   :  { %v13551_v55 = vmul.f32 %v15647_v57, %v13534_v42  ;;  %13560 = vst.msk [vmem:[#allocation23] sm:$0xff] %vm370_vm3, %v13558_v52 }
0x748b   :  { %v13559_v58 = vmul.f32 %v13845_v3, %v13551_v55 }
0x748d   :  { %13561 = vst.msk [vmem:[#allocation23 + $0x8] sm:$0xff] %vm370_vm3, %v13559_v58 }
0x748e   :  { %15967 = shalt.err (!%p15964_p4)
}
0x748f   :  { %s17980_s21 = sld [smem:[#allocation45_spill]] }
0x7495   :  { %s15968_s11 = scalar_lea.hbm %s17980_s21, 256 }
0x7496   :  { %p15969_p5 = scmp.ne.s32.totalorder %s17980_s21, %s15968_s11  ;;  %p15972_p6 = scmp.lt.u32.totalorder %s15968_s11, %s17980_s21 }
0x7498   :  { %p15974_p7 = pnand %p15972_p6, %p15969_p5 }
0x749a   :  { %15977 = shalt.err (!%p15974_p7)
}
0x749b   :  { %13573 = dma.vmem_to_hbm [thread:$0]  %s13568_s3, 256, %s17980_s21, [#allocation4], %s15998_s4, %s15998_s4, %s15999_s1  }
0x749c   :  { %15992 = dma.done.wait [#allocation4], 256  }
0x749d   :  { %15993 = vsyncadd [#allocation4], 4294967040 }
0x749e   :  { %15994 = dma.done.wait [#allocation25], 256  }
0x749f   :  { %15995 = vsyncadd [#allocation25], 4294967040 }
0x74a0   :  { %13592 = vsyncpa [#allocation3], 1 }
0x74a1   :  { %13593 = vsyncpa [#allocation6], 1 }
0x74a2   :  { %13594 = vsyncpa [#allocation9], 1 }
0x74a3   :  { %13595 = vsyncpa [#allocation12], 1 }
0x74a4   :  { %13596 = vsyncpa [#allocation15], 1 }
0x74a5   :  { %13597 = vsyncpa [#allocation18], 1 }
0x74a6   :  { %13598 = vsyncpa [#allocation21], 1 }
0x74a7   :  { %13599 = vsyncpa [#allocation4], 1 }
0x74a8   :  { %13600 = vsyncpa [#allocation25], 1 }

</bundles_post_ra>
